<compile_context>
chip_gen: v7x
topology: tpu7x:2x2x1
jax: 0.10.0
libtpu: 0.0.40
codegen_flags: <defaults>
</compile_context>

<pallas_src>
import functools
import numpy as np

import jax
import jax.numpy as jnp
from jax.experimental import pallas as pl
from jax.experimental.pallas import tpu as pltpu


# ----------------------------- per-generation knobs --------------------------

def _device_cfg():
    try:
        kind = jax.devices()[0].device_kind.lower()
    except Exception:
        kind = ""
    if "v5" in kind:   # 128 MiB VMEM, slowest HBM: biggest tiles / limit
        return dict(vmem_limit=96 * 2 ** 20, tile_bytes=8 * 2 ** 20)
    if "v6" in kind:   # 128 MiB VMEM, memory-bound at these widths
        return dict(vmem_limit=80 * 2 ** 20, tile_bytes=6 * 2 ** 20)
    # v7x: only 64 MiB physical VMEM per TensorCore -> stay well under it.
    return dict(vmem_limit=48 * 2 ** 20, tile_bytes=3 * 2 ** 20)


_CFG = _device_cfg()


def _params(semantics):
    return pltpu.CompilerParams(dimension_semantics=semantics,
                                vmem_limit_bytes=_CFG["vmem_limit"])


def _pick_rows(n_rows, bytes_per_row, target_bytes):
    """Largest divisor of n_rows whose per-step footprint stays under target."""
    cap = max(1, min(n_rows, target_bytes // max(int(bytes_per_row), 1)))
    for d in range(int(cap), 0, -1):
        if n_rows % d == 0:
            return d
    return n_rows


# ----------------------------- Pallas kernels --------------------------------

def _conv1_kernel(x0_ref, x1_ref, x2_ref, x3_ref, w_ref, b_ref,
                  o0_ref, o1_ref, o2_ref, o3_ref, *, T, Wp):
    """Backbone layer 1: im2col'd 3x3/stride-2 conv + bias + ReLU.

    Inputs are the 4 stride-2 output phases of the (spatially padded) im2col
    tensor; outputs are the matching 4 phase planes of padded-t1, so layer 2
    consumes them directly (no XLA re-layout of the 128-channel tensor).
    The 1-element zero border required by layer-2's padding is written in-kernel.
    """
    t = pl.program_id(1)
    n_tiles = pl.num_programs(1)
    x_refs = (x0_ref, x1_ref, x2_ref, x3_ref)
    o_refs = (o0_ref, o1_ref, o2_ref, o3_ref)
    K = x0_ref.shape[-1]
    C = o0_ref.shape[-1]
    w = w_ref[...]
    b = b_ref[...]
    for plane in range(4):
        p, q = plane // 2, plane % 2
        o_ref = o_refs[plane]
        x = x_refs[plane][0].reshape(T * Wp, K)
        y = jnp.maximum(jnp.dot(x, w, preferred_element_type=jnp.float32) + b, 0.0)
        o_ref[...] = y.reshape(1, T, Wp, C).astype(o_ref.dtype)
        # zero the spatial-padding border so layer 2 sees true zero padding
        zcol = jnp.zeros((1, T, 1, C), o_ref.dtype)
        if q == 0:
            o_ref[:, :, 0:1, :] = zcol
        else:
            o_ref[:, :, Wp - 1:Wp, :] = zcol
        zrow = jnp.zeros((1, 1, Wp, C), o_ref.dtype)
        if p == 0:
            @pl.when(t == 0)
            def _():
                o_ref[:, 0:1, :, :] = zrow
        else:
            @pl.when(t == n_tiles - 1)
            def _():
                o_ref[:, T - 1:T, :, :] = zrow


def conv1_l1(planes_in, w, b):
    B, Hp, Wp, K = planes_in[0].shape
    C = w.shape[-1]
    bytes_per_row = 16 * Wp * (K + C)            # 4 planes, in+out, double buffered
    T = _pick_rows(Hp, bytes_per_row, _CFG["tile_bytes"])
    nT = Hp // T
    xspec = pl.BlockSpec((1, T, Wp, K), lambda bi, ti: (bi, ti, 0, 0))
    ospec = pl.BlockSpec((1, T, Wp, C), lambda bi, ti: (bi, ti, 0, 0))
    out_sds = jax.ShapeDtypeStruct((B, Hp, Wp, C), jnp.bfloat16)
    return pl.pallas_call(
        functools.partial(_conv1_kernel, T=T, Wp=Wp),
        grid=(B, nT),
        in_specs=[xspec, xspec, xspec, xspec,
                  pl.BlockSpec((K, C), lambda bi, ti: (0, 0)),
                  pl.BlockSpec((1, C), lambda bi, ti: (0, 0))],
        out_specs=[ospec, ospec, ospec, ospec],
        out_shape=[out_sds] * 4,
        compiler_params=_params(("parallel", "parallel")),
    )(*planes_in, w, b)


def _conv2_kernel(xm0, xm1, xm2, xm3, xh0, xh1, xh2, xh3,
                  wp_ref, wl_ref, b_ref, o_ref, *, T, Wo):
    """Backbone layer 2: 3x3/stride-2 conv + bias + ReLU on phase-split planes.

    Main blocks carry T phase rows, the extra halo row comes from a 1-row
    BlockSpec on the same arrays.  Taps are paired along channels so the MXU
    contraction is K=256 (4 paired matmuls + 1 K=128 matmul)."""
    C = xm0.shape[-1]
    Cout = o_ref.shape[-1]
    xm = (xm0, xm1, xm2, xm3)
    xh = (xh0, xh1, xh2, xh3)
    # extend each plane by its +1 halo row -> [T+1, Wp, C]
    xe = [jnp.concatenate([xm[i][0], xh[i][0]], axis=0) for i in range(4)]

    def patch(k):
        ky, kx = divmod(k, 3)
        plane = 2 * (ky % 2) + (kx % 2)
        dy, dx = ky // 2, kx // 2
        return xe[plane][dy:dy + T, dx:dx + Wo, :].reshape(T * Wo, C)

    acc = jnp.zeros((T * Wo, Cout), jnp.float32)
    for i in range(4):
        pair = jnp.concatenate([patch(2 * i), patch(2 * i + 1)], axis=-1)
        acc = acc + jnp.dot(pair, wp_ref[i], preferred_element_type=jnp.float32)
    acc = acc + jnp.dot(patch(8), wl_ref[...], preferred_element_type=jnp.float32)
    y = jnp.maximum(acc + b_ref[...], 0.0)
    o_ref[...] = y.reshape(1, T, Wo, Cout).astype(o_ref.dtype)


def conv2_l2(planes, w_pairs, w_last, b, Ho, Wo):
    B, Hp, Wp, C = planes[0].shape
    Cout = w_last.shape[-1]
    bytes_per_row = 24 * Wp * C + 6 * Wo * Cout
    T = _pick_rows(Ho, bytes_per_row, _CFG["tile_bytes"])
    nT = Ho // T
    mspec = pl.BlockSpec((1, T, Wp, C), lambda bi, ti: (bi, ti, 0, 0))
    hspec = pl.BlockSpec((1, 1, Wp, C),
                         lambda bi, ti: (bi, jnp.minimum(ti * T + T, Hp - 1), 0, 0))
    return pl.pallas_call(
        functools.partial(_conv2_kernel, T=T, Wo=Wo),
        grid=(B, nT),
        in_specs=[mspec] * 4 + [hspec] * 4 + [
            pl.BlockSpec((4, 2 * C, Cout), lambda bi, ti: (0, 0, 0)),
            pl.BlockSpec((C, Cout), lambda bi, ti: (0, 0)),
            pl.BlockSpec((1, Cout), lambda bi, ti: (0, 0))],
        out_specs=pl.BlockSpec((1, T, Wo, Cout), lambda bi, ti: (bi, ti, 0, 0)),
        out_shape=jax.ShapeDtypeStruct((B, Ho, Wo, Cout), jnp.bfloat16),
        compiler_params=_params(("parallel", "parallel")),
    )(*planes, *planes, w_pairs, w_last, b)


def _maxpool_kernel(x_ref, o_ref, *, Ho, Wo):
    """3x3/stride-2 max pool (padding=1) on a phase-split, (-large)-padded input."""
    x = x_ref[0]                                  # [4, Hp, Wp, C]
    res = None
    for k in range(9):
        ky, kx = divmod(k, 3)
        plane = 2 * (ky % 2) + (kx % 2)
        dy, dx = ky // 2, kx // 2
        patch = x[plane, dy:dy + Ho, dx:dx + Wo, :]
        res = patch if res is None else jnp.maximum(res, patch)
    o_ref[...] = res.reshape(o_ref.shape).astype(o_ref.dtype)


def maxpool3x3_s2(x_planes):
    B, _, Hp, Wp, C = x_planes.shape
    Ho, Wo = Hp - 1, Wp - 1
    return pl.pallas_call(
        functools.partial(_maxpool_kernel, Ho=Ho, Wo=Wo),
        grid=(B,),
        in_specs=[pl.BlockSpec((1, 4, Hp, Wp, C), lambda bi: (bi, 0, 0, 0, 0))],
        out_specs=pl.BlockSpec((1, Ho, Wo, C), lambda bi: (bi, 0, 0, 0)),
        out_shape=jax.ShapeDtypeStruct((B, Ho, Wo, C), jnp.bfloat16),
        compiler_params=_params(("parallel",)),
    )(x_planes)


def _regress_kernel(xm_ref, xt_ref, xb_ref, w1_ref, b1_ref, w2_ref, b2_ref,
                    w3_ref, b3_ref, o_ref, pad_ref, *, T, W):
    """regress = conv1x1(128->256)+ReLU -> conv3x3(256->128,pad=1)+ReLU -> conv1x1.

    Fully fused per row-tile.  The 256-channel intermediate is staged zero-padded
    in a bf16 VMEM scratch (never touches HBM); the 3x3 halo rows come from 1-row
    BlockSpecs on the same input array and are overwritten with zeros at the true
    image top/bottom.  Only the halo strips of the scratch are zeroed."""
    t = pl.program_id(1)
    nT = pl.num_programs(1)
    Cin = xm_ref.shape[-1]
    C1 = w1_ref.shape[-1]
    C2 = w3_ref.shape[-1]
    w1 = w1_ref[...]
    b1 = b1_ref[...]

    def conv1x1_relu(x2d):
        return jnp.maximum(
            jnp.dot(x2d, w1, preferred_element_type=jnp.float32) + b1, 0.0)

    # interior rows of the intermediate
    t_main = conv1x1_relu(xm_ref[0].reshape(T * W, Cin))
    pad_ref[1:T + 1, 1:W + 1, :] = t_main.reshape(T, W, C1).astype(pad_ref.dtype)
    # halo rows (recomputed 1x1; overwritten with zeros at image boundaries)
    t_top = conv1x1_relu(xt_ref[0].reshape(W, Cin))
    pad_ref[0:1, 1:W + 1, :] = t_top.reshape(1, W, C1).astype(pad_ref.dtype)
    t_bot = conv1x1_relu(xb_ref[0].reshape(W, Cin))
    pad_ref[T + 1:T + 2, 1:W + 1, :] = t_bot.reshape(1, W, C1).astype(pad_ref.dtype)
    # zero-padding strips only (not the whole scratch)
    pad_ref[:, 0:1, :] = jnp.zeros((T + 2, 1, C1), pad_ref.dtype)
    pad_ref[:, W + 1:W + 2, :] = jnp.zeros((T + 2, 1, C1), pad_ref.dtype)

    @pl.when(t == 0)
    def _():
        pad_ref[0:1, :, :] = jnp.zeros((1, W + 2, C1), pad_ref.dtype)

    @pl.when(t == nT - 1)
    def _():
        pad_ref[T + 1:T + 2, :, :] = jnp.zeros((1, W + 2, C1), pad_ref.dtype)

    # 3x3 conv over the bf16 scratch: K=256 already fills the MXU depth
    acc = jnp.zeros((T * W, C2), jnp.float32)
    for k in range(9):
        ky, kx = divmod(k, 3)
        patch = pad_ref[ky:ky + T, kx:kx + W, :].reshape(T * W, C1)
        acc = acc + jnp.dot(patch, w2_ref[k], preferred_element_type=jnp.float32)
    t2 = jnp.maximum(acc + b2_ref[...], 0.0).astype(jnp.bfloat16)

    out = jnp.dot(t2, w3_ref[...], preferred_element_type=jnp.float32) + b3_ref[...]
    o_ref[...] = out.reshape(1, T, W, C2).astype(o_ref.dtype)


def regress_fused(x, pp):
    B, H, W, Cin = x.shape
    C1 = pp['r1_w'].shape[-1]
    C2 = pp['r3_w'].shape[-1]
    bytes_per_row = W * (4 * Cin + 8 * C1 + 6 * C2)
    # TODO(synk): for very small pooled maps, batch could be folded into the
    # matmul M dimension to raise MXU occupancy further.
    T = _pick_rows(H, bytes_per_row, _CFG["tile_bytes"])
    nT = H // T
    mspec = pl.BlockSpec((1, T, W, Cin), lambda bi, ti: (bi, ti, 0, 0))
    tspec = pl.BlockSpec((1, 1, W, Cin),
                         lambda bi, ti: (bi, jnp.maximum(ti * T - 1, 0), 0, 0))
    bspec = pl.BlockSpec((1, 1, W, Cin),
                         lambda bi, ti: (bi, jnp.minimum(ti * T + T, H - 1), 0, 0))
    return pl.pallas_call(
        functools.partial(_regress_kernel, T=T, W=W),
        grid=(B, nT),
        in_specs=[mspec, tspec, bspec,
                  pl.BlockSpec((Cin, C1), lambda bi, ti: (0, 0)),
                  pl.BlockSpec((1, C1), lambda bi, ti: (0, 0)),
                  pl.BlockSpec((9, C1, C2), lambda bi, ti: (0, 0, 0)),
                  pl.BlockSpec((1, C2), lambda bi, ti: (0, 0)),
                  pl.BlockSpec((C2, C2), lambda bi, ti: (0, 0)),
                  pl.BlockSpec((1, C2), lambda bi, ti: (0, 0))],
        out_specs=pl.BlockSpec((1, T, W, C2), lambda bi, ti: (bi, ti, 0, 0)),
        out_shape=jax.ShapeDtypeStruct((B, H, W, C2), jnp.bfloat16),
        scratch_shapes=[pltpu.VMEM((T + 2, W + 2, C1), jnp.bfloat16)],
        compiler_params=_params(("parallel", "parallel")),
    )(x, x, x, pp['r1_w'], pp['r1_b'], pp['r2_w'], pp['r2_b'],
      pp['r3_w'], pp['r3_b'])


def _blend_norm_kernel(d_ref, u_ref, a_ref, o_ref):
    """mixed = a*up + (1-a)*descs;  out = mixed / max(||mixed||_2, 1e-12)."""
    d = d_ref[...].astype(jnp.float32)
    u = u_ref[...].astype(jnp.float32)
    a = a_ref[...]                                    # [1,T,W,1] f32
    mixed = d + a * (u - d)
    ssq = jnp.sum(mixed * mixed, axis=-1, keepdims=True)
    o_ref[...] = mixed * jax.lax.rsqrt(jnp.maximum(ssq, 1e-24))


def blend_and_normalize(descs, up_descs, a):
    B, H, W, C = descs.shape
    bytes_per_row = 14 * W * C
    T = _pick_rows(H, bytes_per_row, _CFG["tile_bytes"])
    nT = H // T
    dspec = pl.BlockSpec((1, T, W, C), lambda bi, ti: (bi, ti, 0, 0))
    aspec = pl.BlockSpec((1, T, W, 1), lambda bi, ti: (bi, ti, 0, 0))
    return pl.pallas_call(
        _blend_norm_kernel,
        grid=(B, nT),
        in_specs=[dspec, dspec, aspec],
        out_specs=dspec,
        out_shape=jax.ShapeDtypeStruct((B, H, W, C), jnp.float32),
        compiler_params=_params(("parallel", "parallel")),
    )(descs, up_descs, a)


# ----------------------------- XLA glue --------------------------------------

def im2col_l1_phase_split(x):
    """Layer-1 prep: pack the 9 taps x 3 channels into a lane-dense K=27->32
    contraction and split into the 4 stride-2 output phases of padded-t1 (the
    layout layer 2 consumes), so layer 1 writes phase-split output directly."""
    B, H, W, _ = x.shape
    xp = jnp.pad(x, ((0, 0), (1, 1), (1, 1), (0, 0)))
    taps = [xp[:, ky:ky + H:2, kx:kx + W:2, :]
            for ky in range(3) for kx in range(3)]
    im = jnp.concatenate(taps, axis=-1)                        # [B, H/2, W/2, 27]
    im = jnp.pad(im, ((0, 0), (0, 0), (0, 0), (0, 32 - im.shape[-1])))
    imp = jnp.pad(im, ((0, 0), (1, 1), (1, 1), (0, 0)))        # [B, H/2+2, W/2+2, 32]
    return [imp[:, p::2, q::2, :].astype(jnp.bfloat16)
            for p in (0, 1) for q in (0, 1)]                    # 4x [B, H/4+1, W/4+1, 32]


def pad_phase_split4(x, pad_value=0.0):
    """Pad spatially by 1 and split into the 4 stride-2 phases: [B,4,Hp,Wp,C]."""
    B, H, W, C = x.shape
    xp = jnp.pad(x, ((0, 0), (1, 1), (1, 1), (0, 0)), constant_values=pad_value)
    Hp, Wp = (H + 2) // 2, (W + 2) // 2
    ph = xp.reshape(B, Hp, 2, Wp, 2, C).transpose(0, 2, 4, 1, 3, 5)
    return ph.reshape(B, 4, Hp, Wp, C)


def _bilinear_matrix_1d(out_size, in_size):
    """PyTorch F.interpolate(bilinear, align_corners=False) 1-D operator."""
    M = np.zeros((out_size, in_size), dtype=np.float32)
    scale = in_size / out_size
    for i in range(out_size):
        src = max((i + 0.5) * scale - 0.5, 0.0)
        i0 = min(int(np.floor(src)), in_size - 1)
        i1 = min(i0 + 1, in_size - 1)
        frac = float(src - i0)
        M[i, i0] += 1.0 - frac
        M[i, i1] += frac
    return M


def bilinear_resize(x, out_hw):
    """Separable bilinear resize (tiny XLA glue, f32 accumulation)."""
    _, H, W, _ = x.shape
    oh, ow = out_hw
    Rh = jnp.asarray(_bilinear_matrix_1d(oh, H))
    Rw = jnp.asarray(_bilinear_matrix_1d(ow, W))
    y = jnp.einsum('oh,bhwc->bowc', Rh, x.astype(jnp.float32))
    return jnp.einsum('pw,bowc->bopc', Rw, y)


# ----------------------------- model ------------------------------------------

def desc_extractor_forward(pp, images_nchw, scales_nchw):
    """DescExtractor.forward.  images: [B,3,H,W] NCHW, scales: [B,1,H,W] NCHW."""
    x = jnp.transpose(images_nchw, (0, 2, 3, 1)).astype(jnp.float32)
    B, H, W, _ = x.shape
    assert H % 8 == 0 and W % 8 == 0, "phase-split/pool path assumes H,W % 8 == 0"

    # TODO(synk): build_backbone(cfg) is external/unspecified; synthetic stand-in.
    planes_in = im2col_l1_phase_split(x)              # 4x [B,H/4+1,W/4+1,32] bf16
    t1_planes = conv1_l1(planes_in, pp['bb1_w'], pp['bb1_b'])
    feats3 = conv2_l2(t1_planes, pp['bb2_wp'], pp['bb2_wl'], pp['bb2_b'],
                      H // 4, W // 4)                 # [B,h,w,128] bf16
    h, w = H // 4, W // 4

    descs = regress_fused(feats3, pp)                 # [B,h,w,128] bf16

    neg = float(jnp.finfo(jnp.bfloat16).min)
    f_planes = pad_phase_split4(feats3, pad_value=neg)
    pooled = maxpool3x3_s2(f_planes)                  # [B,h/2,w/2,128] bf16
    down_small = regress_fused(pooled, pp)            # [B,h/2,w/2,128] bf16
    down_descs = bilinear_resize(down_small, (h, w)).astype(jnp.bfloat16)

    scales = jnp.transpose(scales_nchw, (0, 2, 3, 1)).astype(jnp.float32)
    scales = bilinear_resize(scales, (h, w))          # [B,h,w,1] f32 (C=1: XLA)
    # msk/clamp blend of the reference collapses exactly to a = clip(s-1, 0, 1)
    a = jnp.clip(scales - 1.0, 0.0, 1.0)

    out = blend_and_normalize(descs, down_descs, a)   # [B,h,w,128] f32
    return jnp.transpose(out, (0, 3, 1, 2))           # NCHW like PyTorch


def multiscale_net_v14_forward(params, images0, images1, targets):
    """MultiScaleNetV14.forward (descriptor branch)."""
    descs0 = desc_extractor_forward(params, images0, targets['left_scale'])
    descs1 = desc_extractor_forward(params, images1, targets['scale'])
    results = dict(descs0=descs0, descs1=descs1)
    # TODO(synk): MultiDescEvaluator / make_evaluator(cfg) and `logger` are external,
    # unspecified dependencies; loss/distance/similarity are not computed here.
    return results


# ----------------------------- param init / prep ------------------------------

def _init_conv(key, kh, kw, cin, cout):
    kw_, kb_ = jax.random.split(key)
    w = jax.random.normal(kw_, (kh, kw, cin, cout), jnp.float32) / np.sqrt(kh * kw * cin)
    b = 0.01 * jax.random.normal(kb_, (1, cout), jnp.float32)
    return w, b


def prepare_params(raw):
    """Kernel layouts/dtypes.  Backbone channels zero-padded to 128 lanes (inert);
    layer-1 weight packed for the K=32 im2col matmul; layer-2 taps packed in
    pairs so the MXU contraction is K=256 on v6e/v7x."""
    pp = {}
    # layer 1: [3,3,3,64] -> [27,64] -> pad -> [32,128]
    w1 = raw['bb1_w'].reshape(27, -1)
    w1 = jnp.pad(w1, ((0, 32 - w1.shape[0]), (0, 128 - w1.shape[1])))
    pp['bb1_w'] = w1.astype(jnp.bfloat16)
    pp['bb1_b'] = jnp.pad(raw['bb1_b'],
                          ((0, 0), (0, 128 - raw['bb1_b'].shape[1]))).astype(jnp.float32)
    # layer 2: [3,3,64,128] -> pad Cin -> [9,128,128] -> 4 pairs [4,256,128] + last
    w2 = jnp.pad(raw['bb2_w'], ((0, 0), (0, 0), (0, 128 - raw['bb2_w'].shape[2]), (0, 0)))
    w2 = w2.reshape(9, 128, -1)
    pp['bb2_wp'] = jnp.stack(
        [jnp.concatenate([w2[2 * i], w2[2 * i + 1]], axis=0) for i in range(4)],
        axis=0).astype(jnp.bfloat16)
    pp['bb2_wl'] = w2[8].astype(jnp.bfloat16)
    pp['bb2_b'] = raw['bb2_b'].astype(jnp.float32)
    # regress head
    pp['r1_w'] = raw['r1_w'].astype(jnp.bfloat16)                    # [128,256]
    pp['r1_b'] = raw['r1_b'].astype(jnp.float32)
    pp['r2_w'] = raw['r2_w'].reshape(9, 256, 128).astype(jnp.bfloat16)
    pp['r2_b'] = raw['r2_b'].astype(jnp.float32)
    pp['r3_w'] = raw['r3_w'].astype(jnp.bfloat16)                    # [128,128]
    pp['r3_b'] = raw['r3_b'].astype(jnp.float32)
    return pp


# ----------------------------- main --------------------------------------------

if __name__ == "__main__":
    key = jax.random.PRNGKey(0)
    ks = jax.random.split(key, 10)

    raw = {}
    raw['bb1_w'], raw['bb1_b'] = _init_conv(ks[0], 3, 3, 3, 64)
    raw['bb2_w'], raw['bb2_b'] = _init_conv(ks[1], 3, 3, 64, 128)
    w, b = _init_conv(ks[2], 1, 1, 128, 256)
    raw['r1_w'], raw['r1_b'] = w.reshape(128, 256), b
    raw['r2_w'], raw['r2_b'] = _init_conv(ks[3], 3, 3, 256, 128)
    w, b = _init_conv(ks[4], 1, 1, 128, 128)
    raw['r3_w'], raw['r3_b'] = w.reshape(128, 128), b
    params = prepare_params(raw)

    B, H, W, N = 2, 16, 16, 8
    images0 = jax.random.normal(ks[5], (B, 3, H, W), jnp.float32)
    images1 = jax.random.normal(ks[6], (B, 3, H, W), jnp.float32)
    targets = {
        'left_scale': 0.5 + 1.5 * jax.random.uniform(ks[7], (B, 1, H, W), jnp.float32),
        'scale': 0.5 + 1.5 * jax.random.uniform(ks[8], (B, 1, H, W), jnp.float32),
        'kps0': jax.random.uniform(ks[9], (B, N, 2), jnp.float32, 0.0, H - 1),
        'kps1': jax.random.uniform(ks[9], (B, N, 2), jnp.float32, 0.0, H - 1),
        'kps2': jax.random.uniform(ks[9], (B, N, 2), jnp.float32, 0.0, H - 1),
    }

    fwd = jax.jit(multiscale_net_v14_forward)
    results = fwd(params, images0, images1, targets)
    jax.block_until_ready(results)

    d0, d1 = results['descs0'], results['descs1']
    assert d0.shape == (B, 128, H // 4, W // 4) and d1.shape == (B, 128, H // 4, W // 4)
    assert bool(jnp.all(jnp.isfinite(d0))) and bool(jnp.all(jnp.isfinite(d1)))
    print("KERNEL_OK")
</pallas_src>

<mosaic_0001>
module attributes {stable_mosaic.version = 11 : i64} {
  func.func @_conv1_kernel(%arg0: i32, %arg1: i32, %arg2: memref<1x5x5x32xbf16, #tpu.memory_space<vmem>>, %arg3: memref<1x5x5x32xbf16, #tpu.memory_space<vmem>>, %arg4: memref<1x5x5x32xbf16, #tpu.memory_space<vmem>>, %arg5: memref<1x5x5x32xbf16, #tpu.memory_space<vmem>>, %arg6: memref<32x128xbf16, #tpu.memory_space<vmem>>, %arg7: memref<1x128xf32, #tpu.memory_space<vmem>>, %arg8: memref<1x5x5x128xbf16, #tpu.memory_space<vmem>>, %arg9: memref<1x5x5x128xbf16, #tpu.memory_space<vmem>>, %arg10: memref<1x5x5x128xbf16, #tpu.memory_space<vmem>>, %arg11: memref<1x5x5x128xbf16, #tpu.memory_space<vmem>>) attributes {dimension_semantics = [#tpu.dimension_semantics<parallel>, #tpu.dimension_semantics<parallel>], iteration_bounds = array<i64: 2, 1>, scalar_prefetch = 0 : i64, scratch_operands = 0 : i64, tpu.core_type = #tpu.core_type<tc>, window_params = [{transform_indices = @transform_0, window_bounds = array<i64: 1, 5, 5, 32>}, {transform_indices = @transform_1, window_bounds = array<i64: 1, 5, 5, 32>}, {transform_indices = @transform_2, window_bounds = array<i64: 1, 5, 5, 32>}, {transform_indices = @transform_3, window_bounds = array<i64: 1, 5, 5, 32>}, {pipeline_mode = #tpu.pipeline_mode<synchronous>, transform_indices = @transform_4, window_bounds = array<i64: 32, 128>}, {pipeline_mode = #tpu.pipeline_mode<synchronous>, transform_indices = @transform_5, window_bounds = array<i64: 1, 128>}, {transform_indices = @transform_6, window_bounds = array<i64: 1, 5, 5, 128>}, {transform_indices = @transform_7, window_bounds = array<i64: 1, 5, 5, 128>}, {transform_indices = @transform_8, window_bounds = array<i64: 1, 5, 5, 128>}, {transform_indices = @transform_9, window_bounds = array<i64: 1, 5, 5, 128>}]} {
    %c0 = arith.constant 0 : index
    %c0_0 = arith.constant 0 : index
    %0 = vector.load %arg6[%c0, %c0_0] : memref<32x128xbf16, #tpu.memory_space<vmem>>, vector<32x128xbf16>
    %c0_1 = arith.constant 0 : index
    %c0_2 = arith.constant 0 : index
    %1 = vector.load %arg7[%c0_1, %c0_2] : memref<1x128xf32, #tpu.memory_space<vmem>>, vector<1x128xf32>
    %c0_3 = arith.constant 0 : index
    %c0_4 = arith.constant 0 : index
    %c0_5 = arith.constant 0 : index
    %c0_6 = arith.constant 0 : index
    %2 = vector.load %arg2[%c0_3, %c0_4, %c0_5, %c0_6] : memref<1x5x5x32xbf16, #tpu.memory_space<vmem>>, vector<1x5x5x32xbf16>
    %3 = vector.shape_cast %2 : vector<1x5x5x32xbf16> to vector<5x5x32xbf16>
    %4 = vector.shape_cast %3 : vector<5x5x32xbf16> to vector<25x32xbf16>
    %cst = arith.constant dense<0.000000e+00> : vector<25x128xf32>
    %5 = tpu.matmul %4, %0, %cst {dimension_numbers = #tpu.dot_dimension_numbers<[1], [0], [0], [1], [0, 0, 1, 1], [], []>} : vector<25x32xbf16>, vector<32x128xbf16>, vector<25x128xf32> -> vector<25x128xf32>
    %6 = vector.broadcast %1 : vector<1x128xf32> to vector<25x128xf32>
    %7 = arith.addf %5, %6 : vector<25x128xf32>
    %cst_7 = arith.constant 0.000000e+00 : f32
    %8 = vector.broadcast %cst_7 : f32 to vector<25x128xf32>
    %9 = arith.maximumf %7, %8 : vector<25x128xf32>
    %10 = vector.shape_cast %9 : vector<25x128xf32> to vector<1x5x5x128xf32>
    %11 = arith.truncf %10 : vector<1x5x5x128xf32> to vector<1x5x5x128xbf16>
    %c0_8 = arith.constant 0 : index
    %c0_9 = arith.constant 0 : index
    %c0_10 = arith.constant 0 : index
    %c0_11 = arith.constant 0 : index
    %12 = vector.load %arg8[%c0_8, %c0_9, %c0_10, %c0_11] : memref<1x5x5x128xbf16, #tpu.memory_space<vmem>>, vector<1x5x5x128xbf16>
    tpu.vector_store %arg8[%c0_8, %c0_9, %c0_10, %c0_11], %11 {strides = array<i32>} : memref<1x5x5x128xbf16, #tpu.memory_space<vmem>>, vector<1x5x5x128xbf16>,
    %cst_12 = arith.constant 0.000000e+00 : bf16
    %13 = vector.broadcast %cst_12 : bf16 to vector<1x5x1x128xbf16>
    %c0_13 = arith.constant 0 : index
    %c0_14 = arith.constant 0 : index
    %c0_15 = arith.constant 0 : index
    %c0_16 = arith.constant 0 : index
    %14 = vector.load %arg8[%c0_13, %c0_14, %c0_15, %c0_16] : memref<1x5x5x128xbf16, #tpu.memory_space<vmem>>, vector<1x5x1x128xbf16>
    tpu.vector_store %arg8[%c0_13, %c0_14, %c0_15, %c0_16], %13 {strides = array<i32>} : memref<1x5x5x128xbf16, #tpu.memory_space<vmem>>, vector<1x5x1x128xbf16>,
    %cst_17 = arith.constant 0.000000e+00 : bf16
    %15 = vector.broadcast %cst_17 : bf16 to vector<1x1x5x128xbf16>
    %c0_i32 = arith.constant 0 : i32
    %16 = arith.cmpi eq, %arg1, %c0_i32 : i32
    %17 = arith.extui %16 : i1 to i32
    %c0_i32_18 = arith.constant 0 : i32
    %18 = arith.cmpi ne, %17, %c0_i32_18 : i32
    scf.if %18 {
      %c0_72 = arith.constant 0 : index
      %c0_73 = arith.constant 0 : index
      %c0_74 = arith.constant 0 : index
      %c0_75 = arith.constant 0 : index
      %70 = vector.load %arg8[%c0_72, %c0_73, %c0_74, %c0_75] : memref<1x5x5x128xbf16, #tpu.memory_space<vmem>>, vector<1x1x5x128xbf16>
      tpu.vector_store %arg8[%c0_72, %c0_73, %c0_74, %c0_75], %15 {strides = array<i32>} : memref<1x5x5x128xbf16, #tpu.memory_space<vmem>>, vector<1x1x5x128xbf16>,
    } else {
    }
    %c0_19 = arith.constant 0 : index
    %c0_20 = arith.constant 0 : index
    %c0_21 = arith.constant 0 : index
    %c0_22 = arith.constant 0 : index
    %19 = vector.load %arg3[%c0_19, %c0_20, %c0_21, %c0_22] : memref<1x5x5x32xbf16, #tpu.memory_space<vmem>>, vector<1x5x5x32xbf16>
    %20 = vector.shape_cast %19 : vector<1x5x5x32xbf16> to vector<5x5x32xbf16>
    %21 = vector.shape_cast %20 : vector<5x5x32xbf16> to vector<25x32xbf16>
    %cst_23 = arith.constant dense<0.000000e+00> : vector<25x128xf32>
    %22 = tpu.matmul %21, %0, %cst_23 {dimension_numbers = #tpu.dot_dimension_numbers<[1], [0], [0], [1], [0, 0, 1, 1], [], []>} : vector<25x32xbf16>, vector<32x128xbf16>, vector<25x128xf32> -> vector<25x128xf32>
    %23 = vector.broadcast %1 : vector<1x128xf32> to vector<25x128xf32>
    %24 = arith.addf %22, %23 : vector<25x128xf32>
    %cst_24 = arith.constant 0.000000e+00 : f32
    %25 = vector.broadcast %cst_24 : f32 to vector<25x128xf32>
    %26 = arith.maximumf %24, %25 : vector<25x128xf32>
    %27 = vector.shape_cast %26 : vector<25x128xf32> to vector<1x5x5x128xf32>
    %28 = arith.truncf %27 : vector<1x5x5x128xf32> to vector<1x5x5x128xbf16>
    %c0_25 = arith.constant 0 : index
    %c0_26 = arith.constant 0 : index
    %c0_27 = arith.constant 0 : index
    %c0_28 = arith.constant 0 : index
    %29 = vector.load %arg9[%c0_25, %c0_26, %c0_27, %c0_28] : memref<1x5x5x128xbf16, #tpu.memory_space<vmem>>, vector<1x5x5x128xbf16>
    tpu.vector_store %arg9[%c0_25, %c0_26, %c0_27, %c0_28], %28 {strides = array<i32>} : memref<1x5x5x128xbf16, #tpu.memory_space<vmem>>, vector<1x5x5x128xbf16>,
    %cst_29 = arith.constant 0.000000e+00 : bf16
    %30 = vector.broadcast %cst_29 : bf16 to vector<1x5x1x128xbf16>
    %c0_30 = arith.constant 0 : index
    %c0_31 = arith.constant 0 : index
    %c4 = arith.constant 4 : index
    %c0_32 = arith.constant 0 : index
    %31 = vector.load %arg9[%c0_30, %c0_31, %c4, %c0_32] : memref<1x5x5x128xbf16, #tpu.memory_space<vmem>>, vector<1x5x1x128xbf16>
    tpu.vector_store %arg9[%c0_30, %c0_31, %c4, %c0_32], %30 {strides = array<i32>} : memref<1x5x5x128xbf16, #tpu.memory_space<vmem>>, vector<1x5x1x128xbf16>,
    %cst_33 = arith.constant 0.000000e+00 : bf16
    %32 = vector.broadcast %cst_33 : bf16 to vector<1x1x5x128xbf16>
    %c0_i32_34 = arith.constant 0 : i32
    %33 = arith.cmpi eq, %arg1, %c0_i32_34 : i32
    %34 = arith.extui %33 : i1 to i32
    %c0_i32_35 = arith.constant 0 : i32
    %35 = arith.cmpi ne, %34, %c0_i32_35 : i32
    scf.if %35 {
      %c0_72 = arith.constant 0 : index
      %c0_73 = arith.constant 0 : index
      %c0_74 = arith.constant 0 : index
      %c0_75 = arith.constant 0 : index
      %70 = vector.load %arg9[%c0_72, %c0_73, %c0_74, %c0_75] : memref<1x5x5x128xbf16, #tpu.memory_space<vmem>>, vector<1x1x5x128xbf16>
      tpu.vector_store %arg9[%c0_72, %c0_73, %c0_74, %c0_75], %32 {strides = array<i32>} : memref<1x5x5x128xbf16, #tpu.memory_space<vmem>>, vector<1x1x5x128xbf16>,
    } else {
    }
    %c0_36 = arith.constant 0 : index
    %c0_37 = arith.constant 0 : index
    %c0_38 = arith.constant 0 : index
    %c0_39 = arith.constant 0 : index
    %36 = vector.load %arg4[%c0_36, %c0_37, %c0_38, %c0_39] : memref<1x5x5x32xbf16, #tpu.memory_space<vmem>>, vector<1x5x5x32xbf16>
    %37 = vector.shape_cast %36 : vector<1x5x5x32xbf16> to vector<5x5x32xbf16>
    %38 = vector.shape_cast %37 : vector<5x5x32xbf16> to vector<25x32xbf16>
    %cst_40 = arith.constant dense<0.000000e+00> : vector<25x128xf32>
    %39 = tpu.matmul %38, %0, %cst_40 {dimension_numbers = #tpu.dot_dimension_numbers<[1], [0], [0], [1], [0, 0, 1, 1], [], []>} : vector<25x32xbf16>, vector<32x128xbf16>, vector<25x128xf32> -> vector<25x128xf32>
    %40 = vector.broadcast %1 : vector<1x128xf32> to vector<25x128xf32>
    %41 = arith.addf %39, %40 : vector<25x128xf32>
    %cst_41 = arith.constant 0.000000e+00 : f32
    %42 = vector.broadcast %cst_41 : f32 to vector<25x128xf32>
    %43 = arith.maximumf %41, %42 : vector<25x128xf32>
    %44 = vector.shape_cast %43 : vector<25x128xf32> to vector<1x5x5x128xf32>
    %45 = arith.truncf %44 : vector<1x5x5x128xf32> to vector<1x5x5x128xbf16>
    %c0_42 = arith.constant 0 : index
    %c0_43 = arith.constant 0 : index
    %c0_44 = arith.constant 0 : index
    %c0_45 = arith.constant 0 : index
    %46 = vector.load %arg10[%c0_42, %c0_43, %c0_44, %c0_45] : memref<1x5x5x128xbf16, #tpu.memory_space<vmem>>, vector<1x5x5x128xbf16>
    tpu.vector_store %arg10[%c0_42, %c0_43, %c0_44, %c0_45], %45 {strides = array<i32>} : memref<1x5x5x128xbf16, #tpu.memory_space<vmem>>, vector<1x5x5x128xbf16>,
    %cst_46 = arith.constant 0.000000e+00 : bf16
    %47 = vector.broadcast %cst_46 : bf16 to vector<1x5x1x128xbf16>
    %c0_47 = arith.constant 0 : index
    %c0_48 = arith.constant 0 : index
    %c0_49 = arith.constant 0 : index
    %c0_50 = arith.constant 0 : index
    %48 = vector.load %arg10[%c0_47, %c0_48, %c0_49, %c0_50] : memref<1x5x5x128xbf16, #tpu.memory_space<vmem>>, vector<1x5x1x128xbf16>
    tpu.vector_store %arg10[%c0_47, %c0_48, %c0_49, %c0_50], %47 {strides = array<i32>} : memref<1x5x5x128xbf16, #tpu.memory_space<vmem>>, vector<1x5x1x128xbf16>,
    %cst_51 = arith.constant 0.000000e+00 : bf16
    %49 = vector.broadcast %cst_51 : bf16 to vector<1x1x5x128xbf16>
    %c0_i32_52 = arith.constant 0 : i32
    %50 = arith.cmpi eq, %arg1, %c0_i32_52 : i32
    %51 = arith.extui %50 : i1 to i32
    %c0_i32_53 = arith.constant 0 : i32
    %52 = arith.cmpi ne, %51, %c0_i32_53 : i32
    scf.if %52 {
      %c0_72 = arith.constant 0 : index
      %c4_73 = arith.constant 4 : index
      %c0_74 = arith.constant 0 : index
      %c0_75 = arith.constant 0 : index
      %70 = vector.load %arg10[%c0_72, %c4_73, %c0_74, %c0_75] : memref<1x5x5x128xbf16, #tpu.memory_space<vmem>>, vector<1x1x5x128xbf16>
      tpu.vector_store %arg10[%c0_72, %c4_73, %c0_74, %c0_75], %49 {strides = array<i32>} : memref<1x5x5x128xbf16, #tpu.memory_space<vmem>>, vector<1x1x5x128xbf16>,
    } else {
    }
    %c0_54 = arith.constant 0 : index
    %c0_55 = arith.constant 0 : index
    %c0_56 = arith.constant 0 : index
    %c0_57 = arith.constant 0 : index
    %53 = vector.load %arg5[%c0_54, %c0_55, %c0_56, %c0_57] : memref<1x5x5x32xbf16, #tpu.memory_space<vmem>>, vector<1x5x5x32xbf16>
    %54 = vector.shape_cast %53 : vector<1x5x5x32xbf16> to vector<5x5x32xbf16>
    %55 = vector.shape_cast %54 : vector<5x5x32xbf16> to vector<25x32xbf16>
    %cst_58 = arith.constant dense<0.000000e+00> : vector<25x128xf32>
    %56 = tpu.matmul %55, %0, %cst_58 {dimension_numbers = #tpu.dot_dimension_numbers<[1], [0], [0], [1], [0, 0, 1, 1], [], []>} : vector<25x32xbf16>, vector<32x128xbf16>, vector<25x128xf32> -> vector<25x128xf32>
    %57 = vector.broadcast %1 : vector<1x128xf32> to vector<25x128xf32>
    %58 = arith.addf %56, %57 : vector<25x128xf32>
    %cst_59 = arith.constant 0.000000e+00 : f32
    %59 = vector.broadcast %cst_59 : f32 to vector<25x128xf32>
    %60 = arith.maximumf %58, %59 : vector<25x128xf32>
    %61 = vector.shape_cast %60 : vector<25x128xf32> to vector<1x5x5x128xf32>
    %62 = arith.truncf %61 : vector<1x5x5x128xf32> to vector<1x5x5x128xbf16>
    %c0_60 = arith.constant 0 : index
    %c0_61 = arith.constant 0 : index
    %c0_62 = arith.constant 0 : index
    %c0_63 = arith.constant 0 : index
    %63 = vector.load %arg11[%c0_60, %c0_61, %c0_62, %c0_63] : memref<1x5x5x128xbf16, #tpu.memory_space<vmem>>, vector<1x5x5x128xbf16>
    tpu.vector_store %arg11[%c0_60, %c0_61, %c0_62, %c0_63], %62 {strides = array<i32>} : memref<1x5x5x128xbf16, #tpu.memory_space<vmem>>, vector<1x5x5x128xbf16>,
    %cst_64 = arith.constant 0.000000e+00 : bf16
    %64 = vector.broadcast %cst_64 : bf16 to vector<1x5x1x128xbf16>
    %c0_65 = arith.constant 0 : index
    %c0_66 = arith.constant 0 : index
    %c4_67 = arith.constant 4 : index
    %c0_68 = arith.constant 0 : index
    %65 = vector.load %arg11[%c0_65, %c0_66, %c4_67, %c0_68] : memref<1x5x5x128xbf16, #tpu.memory_space<vmem>>, vector<1x5x1x128xbf16>
    tpu.vector_store %arg11[%c0_65, %c0_66, %c4_67, %c0_68], %64 {strides = array<i32>} : memref<1x5x5x128xbf16, #tpu.memory_space<vmem>>, vector<1x5x1x128xbf16>,
    %cst_69 = arith.constant 0.000000e+00 : bf16
    %66 = vector.broadcast %cst_69 : bf16 to vector<1x1x5x128xbf16>
    %c0_i32_70 = arith.constant 0 : i32
    %67 = arith.cmpi eq, %arg1, %c0_i32_70 : i32
    %68 = arith.extui %67 : i1 to i32
    %c0_i32_71 = arith.constant 0 : i32
    %69 = arith.cmpi ne, %68, %c0_i32_71 : i32
    scf.if %69 {
      %c0_72 = arith.constant 0 : index
      %c4_73 = arith.constant 4 : index
      %c0_74 = arith.constant 0 : index
      %c0_75 = arith.constant 0 : index
      %70 = vector.load %arg11[%c0_72, %c4_73, %c0_74, %c0_75] : memref<1x5x5x128xbf16, #tpu.memory_space<vmem>>, vector<1x1x5x128xbf16>
      tpu.vector_store %arg11[%c0_72, %c4_73, %c0_74, %c0_75], %66 {strides = array<i32>} : memref<1x5x5x128xbf16, #tpu.memory_space<vmem>>, vector<1x1x5x128xbf16>,
    } else {
    }
    return
  }
  func.func @transform_0(%arg0: i32, %arg1: i32) -> (i32, i32, i32, i32) {
    %c0_i32 = arith.constant 0 : i32
    %c0_i32_0 = arith.constant 0 : i32
    %c0_i32_1 = arith.constant 0 : i32
    return %arg0, %arg1, %c0_i32, %c0_i32_0 : i32, i32, i32, i32
  }
  func.func @transform_1(%arg0: i32, %arg1: i32) -> (i32, i32, i32, i32) {
    %c0_i32 = arith.constant 0 : i32
    %c0_i32_0 = arith.constant 0 : i32
    %c0_i32_1 = arith.constant 0 : i32
    return %arg0, %arg1, %c0_i32, %c0_i32_0 : i32, i32, i32, i32
  }
  func.func @transform_2(%arg0: i32, %arg1: i32) -> (i32, i32, i32, i32) {
    %c0_i32 = arith.constant 0 : i32
    %c0_i32_0 = arith.constant 0 : i32
    %c0_i32_1 = arith.constant 0 : i32
    return %arg0, %arg1, %c0_i32, %c0_i32_0 : i32, i32, i32, i32
  }
  func.func @transform_3(%arg0: i32, %arg1: i32) -> (i32, i32, i32, i32) {
    %c0_i32 = arith.constant 0 : i32
    %c0_i32_0 = arith.constant 0 : i32
    %c0_i32_1 = arith.constant 0 : i32
    return %arg0, %arg1, %c0_i32, %c0_i32_0 : i32, i32, i32, i32
  }
  func.func @transform_4(%arg0: i32, %arg1: i32) -> (i32, i32) {
    %c0_i32 = arith.constant 0 : i32
    %c0_i32_0 = arith.constant 0 : i32
    %c0_i32_1 = arith.constant 0 : i32
    return %c0_i32, %c0_i32_0 : i32, i32
  }
  func.func @transform_5(%arg0: i32, %arg1: i32) -> (i32, i32) {
    %c0_i32 = arith.constant 0 : i32
    %c0_i32_0 = arith.constant 0 : i32
    %c0_i32_1 = arith.constant 0 : i32
    return %c0_i32, %c0_i32_0 : i32, i32
  }
  func.func @transform_6(%arg0: i32, %arg1: i32) -> (i32, i32, i32, i32) {
    %c0_i32 = arith.constant 0 : i32
    %c0_i32_0 = arith.constant 0 : i32
    %c0_i32_1 = arith.constant 0 : i32
    return %arg0, %arg1, %c0_i32, %c0_i32_0 : i32, i32, i32, i32
  }
  func.func @transform_7(%arg0: i32, %arg1: i32) -> (i32, i32, i32, i32) {
    %c0_i32 = arith.constant 0 : i32
    %c0_i32_0 = arith.constant 0 : i32
    %c0_i32_1 = arith.constant 0 : i32
    return %arg0, %arg1, %c0_i32, %c0_i32_0 : i32, i32, i32, i32
  }
  func.func @transform_8(%arg0: i32, %arg1: i32) -> (i32, i32, i32, i32) {
    %c0_i32 = arith.constant 0 : i32
    %c0_i32_0 = arith.constant 0 : i32
    %c0_i32_1 = arith.constant 0 : i32
    return %arg0, %arg1, %c0_i32, %c0_i32_0 : i32, i32, i32, i32
  }
  func.func @transform_9(%arg0: i32, %arg1: i32) -> (i32, i32, i32, i32) {
    %c0_i32 = arith.constant 0 : i32
    %c0_i32_0 = arith.constant 0 : i32
    %c0_i32_1 = arith.constant 0 : i32
    return %arg0, %arg1, %c0_i32, %c0_i32_0 : i32, i32, i32, i32
  }
}

module attributes {stable_mosaic.version = 11 : i64} {
  func.func @_conv2_kernel(%arg0: i32, %arg1: i32, %arg2: memref<1x4x5x128xbf16, #tpu.memory_space<vmem>>, %arg3: memref<1x4x5x128xbf16, #tpu.memory_space<vmem>>, %arg4: memref<1x4x5x128xbf16, #tpu.memory_space<vmem>>, %arg5: memref<1x4x5x128xbf16, #tpu.memory_space<vmem>>, %arg6: memref<1x1x5x128xbf16, #tpu.memory_space<vmem>>, %arg7: memref<1x1x5x128xbf16, #tpu.memory_space<vmem>>, %arg8: memref<1x1x5x128xbf16, #tpu.memory_space<vmem>>, %arg9: memref<1x1x5x128xbf16, #tpu.memory_space<vmem>>, %arg10: memref<4x256x128xbf16, #tpu.memory_space<vmem>>, %arg11: memref<128x128xbf16, #tpu.memory_space<vmem>>, %arg12: memref<1x128xf32, #tpu.memory_space<vmem>>, %arg13: memref<1x4x4x128xbf16, #tpu.memory_space<vmem>>) attributes {dimension_semantics = [#tpu.dimension_semantics<parallel>, #tpu.dimension_semantics<parallel>], iteration_bounds = array<i64: 2, 1>, scalar_prefetch = 0 : i64, scratch_operands = 0 : i64, tpu.core_type = #tpu.core_type<tc>, window_params = [{transform_indices = @transform_0, window_bounds = array<i64: 1, 4, 5, 128>}, {transform_indices = @transform_1, window_bounds = array<i64: 1, 4, 5, 128>}, {transform_indices = @transform_2, window_bounds = array<i64: 1, 4, 5, 128>}, {transform_indices = @transform_3, window_bounds = array<i64: 1, 4, 5, 128>}, {transform_indices = @transform_4, window_bounds = array<i64: 1, 1, 5, 128>}, {transform_indices = @transform_5, window_bounds = array<i64: 1, 1, 5, 128>}, {transform_indices = @transform_6, window_bounds = array<i64: 1, 1, 5, 128>}, {transform_indices = @transform_7, window_bounds = array<i64: 1, 1, 5, 128>}, {pipeline_mode = #tpu.pipeline_mode<synchronous>, transform_indices = @transform_8, window_bounds = array<i64: 4, 256, 128>}, {pipeline_mode = #tpu.pipeline_mode<synchronous>, transform_indices = @transform_9, window_bounds = array<i64: 128, 128>}, {pipeline_mode = #tpu.pipeline_mode<synchronous>, transform_indices = @transform_10, window_bounds = array<i64: 1, 128>}, {transform_indices = @transform_11, window_bounds = array<i64: 1, 4, 4, 128>}]} {
    %c0 = arith.constant 0 : index
    %c0_0 = arith.constant 0 : index
    %c0_1 = arith.constant 0 : index
    %c0_2 = arith.constant 0 : index
    %0 = vector.load %arg2[%c0, %c0_0, %c0_1, %c0_2] : memref<1x4x5x128xbf16, #tpu.memory_space<vmem>>, vector<1x4x5x128xbf16>
    %1 = vector.shape_cast %0 : vector<1x4x5x128xbf16> to vector<4x5x128xbf16>
    %c0_3 = arith.constant 0 : index
    %c0_4 = arith.constant 0 : index
    %c0_5 = arith.constant 0 : index
    %c0_6 = arith.constant 0 : index
    %2 = vector.load %arg6[%c0_3, %c0_4, %c0_5, %c0_6] : memref<1x1x5x128xbf16, #tpu.memory_space<vmem>>, vector<1x1x5x128xbf16>
    %3 = vector.shape_cast %2 : vector<1x1x5x128xbf16> to vector<1x5x128xbf16>
    %4 = tpu.concatenate %1, %3 in 0 : vector<4x5x128xbf16>, vector<1x5x128xbf16> -> vector<5x5x128xbf16>
    %c0_7 = arith.constant 0 : index
    %c0_8 = arith.constant 0 : index
    %c0_9 = arith.constant 0 : index
    %c0_10 = arith.constant 0 : index
    %5 = vector.load %arg3[%c0_7, %c0_8, %c0_9, %c0_10] : memref<1x4x5x128xbf16, #tpu.memory_space<vmem>>, vector<1x4x5x128xbf16>
    %6 = vector.shape_cast %5 : vector<1x4x5x128xbf16> to vector<4x5x128xbf16>
    %c0_11 = arith.constant 0 : index
    %c0_12 = arith.constant 0 : index
    %c0_13 = arith.constant 0 : index
    %c0_14 = arith.constant 0 : index
    %7 = vector.load %arg7[%c0_11, %c0_12, %c0_13, %c0_14] : memref<1x1x5x128xbf16, #tpu.memory_space<vmem>>, vector<1x1x5x128xbf16>
    %8 = vector.shape_cast %7 : vector<1x1x5x128xbf16> to vector<1x5x128xbf16>
    %9 = tpu.concatenate %6, %8 in 0 : vector<4x5x128xbf16>, vector<1x5x128xbf16> -> vector<5x5x128xbf16>
    %c0_15 = arith.constant 0 : index
    %c0_16 = arith.constant 0 : index
    %c0_17 = arith.constant 0 : index
    %c0_18 = arith.constant 0 : index
    %10 = vector.load %arg4[%c0_15, %c0_16, %c0_17, %c0_18] : memref<1x4x5x128xbf16, #tpu.memory_space<vmem>>, vector<1x4x5x128xbf16>
    %11 = vector.shape_cast %10 : vector<1x4x5x128xbf16> to vector<4x5x128xbf16>
    %c0_19 = arith.constant 0 : index
    %c0_20 = arith.constant 0 : index
    %c0_21 = arith.constant 0 : index
    %c0_22 = arith.constant 0 : index
    %12 = vector.load %arg8[%c0_19, %c0_20, %c0_21, %c0_22] : memref<1x1x5x128xbf16, #tpu.memory_space<vmem>>, vector<1x1x5x128xbf16>
    %13 = vector.shape_cast %12 : vector<1x1x5x128xbf16> to vector<1x5x128xbf16>
    %14 = tpu.concatenate %11, %13 in 0 : vector<4x5x128xbf16>, vector<1x5x128xbf16> -> vector<5x5x128xbf16>
    %c0_23 = arith.constant 0 : index
    %c0_24 = arith.constant 0 : index
    %c0_25 = arith.constant 0 : index
    %c0_26 = arith.constant 0 : index
    %15 = vector.load %arg5[%c0_23, %c0_24, %c0_25, %c0_26] : memref<1x4x5x128xbf16, #tpu.memory_space<vmem>>, vector<1x4x5x128xbf16>
    %16 = vector.shape_cast %15 : vector<1x4x5x128xbf16> to vector<4x5x128xbf16>
    %c0_27 = arith.constant 0 : index
    %c0_28 = arith.constant 0 : index
    %c0_29 = arith.constant 0 : index
    %c0_30 = arith.constant 0 : index
    %17 = vector.load %arg9[%c0_27, %c0_28, %c0_29, %c0_30] : memref<1x1x5x128xbf16, #tpu.memory_space<vmem>>, vector<1x1x5x128xbf16>
    %18 = vector.shape_cast %17 : vector<1x1x5x128xbf16> to vector<1x5x128xbf16>
    %19 = tpu.concatenate %16, %18 in 0 : vector<4x5x128xbf16>, vector<1x5x128xbf16> -> vector<5x5x128xbf16>
    %cst = arith.constant 0.000000e+00 : f32
    %20 = vector.broadcast %cst : f32 to vector<16x128xf32>
    %21 = vector.extract_strided_slice %4 {offsets = [0, 0, 0], sizes = [4, 4, 128], strides = [1, 1, 1]} : vector<5x5x128xbf16> to vector<4x4x128xbf16>
    %22 = vector.shape_cast %21 : vector<4x4x128xbf16> to vector<16x128xbf16>
    %23 = vector.extract_strided_slice %9 {offsets = [0, 0, 0], sizes = [4, 4, 128], strides = [1, 1, 1]} : vector<5x5x128xbf16> to vector<4x4x128xbf16>
    %24 = vector.shape_cast %23 : vector<4x4x128xbf16> to vector<16x128xbf16>
    %25 = tpu.concatenate %22, %24 in 1 : vector<16x128xbf16>, vector<16x128xbf16> -> vector<16x256xbf16>
    %c0_31 = arith.constant 0 : index
    %c0_32 = arith.constant 0 : index
    %c0_33 = arith.constant 0 : index
    %26 = vector.load %arg10[%c0_31, %c0_32, %c0_33] : memref<4x256x128xbf16, #tpu.memory_space<vmem>>, vector<1x256x128xbf16>
    %27 = vector.shape_cast %26 : vector<1x256x128xbf16> to vector<256x128xbf16>
    %cst_34 = arith.constant dense<0.000000e+00> : vector<16x128xf32>
    %28 = tpu.matmul %25, %27, %cst_34 {dimension_numbers = #tpu.dot_dimension_numbers<[1], [0], [0], [1], [0, 0, 1, 1], [], []>} : vector<16x256xbf16>, vector<256x128xbf16>, vector<16x128xf32> -> vector<16x128xf32>
    %29 = arith.addf %20, %28 : vector<16x128xf32>
    %30 = vector.extract_strided_slice %4 {offsets = [0, 1, 0], sizes = [4, 4, 128], strides = [1, 1, 1]} : vector<5x5x128xbf16> to vector<4x4x128xbf16>
    %31 = vector.shape_cast %30 : vector<4x4x128xbf16> to vector<16x128xbf16>
    %32 = vector.extract_strided_slice %14 {offsets = [0, 0, 0], sizes = [4, 4, 128], strides = [1, 1, 1]} : vector<5x5x128xbf16> to vector<4x4x128xbf16>
    %33 = vector.shape_cast %32 : vector<4x4x128xbf16> to vector<16x128xbf16>
    %34 = tpu.concatenate %31, %33 in 1 : vector<16x128xbf16>, vector<16x128xbf16> -> vector<16x256xbf16>
    %c1 = arith.constant 1 : index
    %c0_35 = arith.constant 0 : index
    %c0_36 = arith.constant 0 : index
    %35 = vector.load %arg10[%c1, %c0_35, %c0_36] : memref<4x256x128xbf16, #tpu.memory_space<vmem>>, vector<1x256x128xbf16>
    %36 = vector.shape_cast %35 : vector<1x256x128xbf16> to vector<256x128xbf16>
    %cst_37 = arith.constant dense<0.000000e+00> : vector<16x128xf32>
    %37 = tpu.matmul %34, %36, %cst_37 {dimension_numbers = #tpu.dot_dimension_numbers<[1], [0], [0], [1], [0, 0, 1, 1], [], []>} : vector<16x256xbf16>, vector<256x128xbf16>, vector<16x128xf32> -> vector<16x128xf32>
    %38 = arith.addf %29, %37 : vector<16x128xf32>
    %39 = vector.extract_strided_slice %19 {offsets = [0, 0, 0], sizes = [4, 4, 128], strides = [1, 1, 1]} : vector<5x5x128xbf16> to vector<4x4x128xbf16>
    %40 = vector.shape_cast %39 : vector<4x4x128xbf16> to vector<16x128xbf16>
    %41 = vector.extract_strided_slice %14 {offsets = [0, 1, 0], sizes = [4, 4, 128], strides = [1, 1, 1]} : vector<5x5x128xbf16> to vector<4x4x128xbf16>
    %42 = vector.shape_cast %41 : vector<4x4x128xbf16> to vector<16x128xbf16>
    %43 = tpu.concatenate %40, %42 in 1 : vector<16x128xbf16>, vector<16x128xbf16> -> vector<16x256xbf16>
    %c2 = arith.constant 2 : index
    %c0_38 = arith.constant 0 : index
    %c0_39 = arith.constant 0 : index
    %44 = vector.load %arg10[%c2, %c0_38, %c0_39] : memref<4x256x128xbf16, #tpu.memory_space<vmem>>, vector<1x256x128xbf16>
    %45 = vector.shape_cast %44 : vector<1x256x128xbf16> to vector<256x128xbf16>
    %cst_40 = arith.constant dense<0.000000e+00> : vector<16x128xf32>
    %46 = tpu.matmul %43, %45, %cst_40 {dimension_numbers = #tpu.dot_dimension_numbers<[1], [0], [0], [1], [0, 0, 1, 1], [], []>} : vector<16x256xbf16>, vector<256x128xbf16>, vector<16x128xf32> -> vector<16x128xf32>
    %47 = arith.addf %38, %46 : vector<16x128xf32>
    %48 = vector.extract_strided_slice %4 {offsets = [1, 0, 0], sizes = [4, 4, 128], strides = [1, 1, 1]} : vector<5x5x128xbf16> to vector<4x4x128xbf16>
    %49 = vector.shape_cast %48 : vector<4x4x128xbf16> to vector<16x128xbf16>
    %50 = vector.extract_strided_slice %9 {offsets = [1, 0, 0], sizes = [4, 4, 128], strides = [1, 1, 1]} : vector<5x5x128xbf16> to vector<4x4x128xbf16>
    %51 = vector.shape_cast %50 : vector<4x4x128xbf16> to vector<16x128xbf16>
    %52 = tpu.concatenate %49, %51 in 1 : vector<16x128xbf16>, vector<16x128xbf16> -> vector<16x256xbf16>
    %c3 = arith.constant 3 : index
    %c0_41 = arith.constant 0 : index
    %c0_42 = arith.constant 0 : index
    %53 = vector.load %arg10[%c3, %c0_41, %c0_42] : memref<4x256x128xbf16, #tpu.memory_space<vmem>>, vector<1x256x128xbf16>
    %54 = vector.shape_cast %53 : vector<1x256x128xbf16> to vector<256x128xbf16>
    %cst_43 = arith.constant dense<0.000000e+00> : vector<16x128xf32>
    %55 = tpu.matmul %52, %54, %cst_43 {dimension_numbers = #tpu.dot_dimension_numbers<[1], [0], [0], [1], [0, 0, 1, 1], [], []>} : vector<16x256xbf16>, vector<256x128xbf16>, vector<16x128xf32> -> vector<16x128xf32>
    %56 = arith.addf %47, %55 : vector<16x128xf32>
    %57 = vector.extract_strided_slice %4 {offsets = [1, 1, 0], sizes = [4, 4, 128], strides = [1, 1, 1]} : vector<5x5x128xbf16> to vector<4x4x128xbf16>
    %58 = vector.shape_cast %57 : vector<4x4x128xbf16> to vector<16x128xbf16>
    %c0_44 = arith.constant 0 : index
    %c0_45 = arith.constant 0 : index
    %59 = vector.load %arg11[%c0_44, %c0_45] : memref<128x128xbf16, #tpu.memory_space<vmem>>, vector<128x128xbf16>
    %cst_46 = arith.constant dense<0.000000e+00> : vector<16x128xf32>
    %60 = tpu.matmul %58, %59, %cst_46 {dimension_numbers = #tpu.dot_dimension_numbers<[1], [0], [0], [1], [0, 0, 1, 1], [], []>} : vector<16x128xbf16>, vector<128x128xbf16>, vector<16x128xf32> -> vector<16x128xf32>
    %61 = arith.addf %56, %60 : vector<16x128xf32>
    %c0_47 = arith.constant 0 : index
    %c0_48 = arith.constant 0 : index
    %62 = vector.load %arg12[%c0_47, %c0_48] : memref<1x128xf32, #tpu.memory_space<vmem>>, vector<1x128xf32>
    %63 = vector.broadcast %62 : vector<1x128xf32> to vector<16x128xf32>
    %64 = arith.addf %61, %63 : vector<16x128xf32>
    %cst_49 = arith.constant 0.000000e+00 : f32
    %65 = vector.broadcast %cst_49 : f32 to vector<16x128xf32>
    %66 = arith.maximumf %64, %65 : vector<16x128xf32>
    %67 = vector.shape_cast %66 : vector<16x128xf32> to vector<1x4x4x128xf32>
    %68 = arith.truncf %67 : vector<1x4x4x128xf32> to vector<1x4x4x128xbf16>
    %c0_50 = arith.constant 0 : index
    %c0_51 = arith.constant 0 : index
    %c0_52 = arith.constant 0 : index
    %c0_53 = arith.constant 0 : index
    %69 = vector.load %arg13[%c0_50, %c0_51, %c0_52, %c0_53] : memref<1x4x4x128xbf16, #tpu.memory_space<vmem>>, vector<1x4x4x128xbf16>
    tpu.vector_store %arg13[%c0_50, %c0_51, %c0_52, %c0_53], %68 {strides = array<i32>} : memref<1x4x4x128xbf16, #tpu.memory_space<vmem>>, vector<1x4x4x128xbf16>,
    return
  }
  func.func @transform_0(%arg0: i32, %arg1: i32) -> (i32, i32, i32, i32) {
    %c0_i32 = arith.constant 0 : i32
    %c0_i32_0 = arith.constant 0 : i32
    %c0_i32_1 = arith.constant 0 : i32
    return %arg0, %arg1, %c0_i32, %c0_i32_0 : i32, i32, i32, i32
  }
  func.func @transform_1(%arg0: i32, %arg1: i32) -> (i32, i32, i32, i32) {
    %c0_i32 = arith.constant 0 : i32
    %c0_i32_0 = arith.constant 0 : i32
    %c0_i32_1 = arith.constant 0 : i32
    return %arg0, %arg1, %c0_i32, %c0_i32_0 : i32, i32, i32, i32
  }
  func.func @transform_2(%arg0: i32, %arg1: i32) -> (i32, i32, i32, i32) {
    %c0_i32 = arith.constant 0 : i32
    %c0_i32_0 = arith.constant 0 : i32
    %c0_i32_1 = arith.constant 0 : i32
    return %arg0, %arg1, %c0_i32, %c0_i32_0 : i32, i32, i32, i32
  }
  func.func @transform_3(%arg0: i32, %arg1: i32) -> (i32, i32, i32, i32) {
    %c0_i32 = arith.constant 0 : i32
    %c0_i32_0 = arith.constant 0 : i32
    %c0_i32_1 = arith.constant 0 : i32
    return %arg0, %arg1, %c0_i32, %c0_i32_0 : i32, i32, i32, i32
  }
  func.func @transform_4(%arg0: i32, %arg1: i32) -> (i32, i32, i32, i32) {
    %c4_i32 = arith.constant 4 : i32
    %0 = arith.muli %arg1, %c4_i32 : i32
    %c4_i32_0 = arith.constant 4 : i32
    %1 = arith.addi %0, %c4_i32_0 : i32
    %c4_i32_1 = arith.constant 4 : i32
    %2 = arith.minsi %1, %c4_i32_1 : i32
    %c0_i32 = arith.constant 0 : i32
    %c0_i32_2 = arith.constant 0 : i32
    %c0_i32_3 = arith.constant 0 : i32
    return %arg0, %2, %c0_i32, %c0_i32_2 : i32, i32, i32, i32
  }
  func.func @transform_5(%arg0: i32, %arg1: i32) -> (i32, i32, i32, i32) {
    %c4_i32 = arith.constant 4 : i32
    %0 = arith.muli %arg1, %c4_i32 : i32
    %c4_i32_0 = arith.constant 4 : i32
    %1 = arith.addi %0, %c4_i32_0 : i32
    %c4_i32_1 = arith.constant 4 : i32
    %2 = arith.minsi %1, %c4_i32_1 : i32
    %c0_i32 = arith.constant 0 : i32
    %c0_i32_2 = arith.constant 0 : i32
    %c0_i32_3 = arith.constant 0 : i32
    return %arg0, %2, %c0_i32, %c0_i32_2 : i32, i32, i32, i32
  }
  func.func @transform_6(%arg0: i32, %arg1: i32) -> (i32, i32, i32, i32) {
    %c4_i32 = arith.constant 4 : i32
    %0 = arith.muli %arg1, %c4_i32 : i32
    %c4_i32_0 = arith.constant 4 : i32
    %1 = arith.addi %0, %c4_i32_0 : i32
    %c4_i32_1 = arith.constant 4 : i32
    %2 = arith.minsi %1, %c4_i32_1 : i32
    %c0_i32 = arith.constant 0 : i32
    %c0_i32_2 = arith.constant 0 : i32
    %c0_i32_3 = arith.constant 0 : i32
    return %arg0, %2, %c0_i32, %c0_i32_2 : i32, i32, i32, i32
  }
  func.func @transform_7(%arg0: i32, %arg1: i32) -> (i32, i32, i32, i32) {
    %c4_i32 = arith.constant 4 : i32
    %0 = arith.muli %arg1, %c4_i32 : i32
    %c4_i32_0 = arith.constant 4 : i32
    %1 = arith.addi %0, %c4_i32_0 : i32
    %c4_i32_1 = arith.constant 4 : i32
    %2 = arith.minsi %1, %c4_i32_1 : i32
    %c0_i32 = arith.constant 0 : i32
    %c0_i32_2 = arith.constant 0 : i32
    %c0_i32_3 = arith.constant 0 : i32
    return %arg0, %2, %c0_i32, %c0_i32_2 : i32, i32, i32, i32
  }
  func.func @transform_8(%arg0: i32, %arg1: i32) -> (i32, i32, i32) {
    %c0_i32 = arith.constant 0 : i32
    %c0_i32_0 = arith.constant 0 : i32
    %c0_i32_1 = arith.constant 0 : i32
    %c0_i32_2 = arith.constant 0 : i32
    return %c0_i32, %c0_i32_0, %c0_i32_1 : i32, i32, i32
  }
  func.func @transform_9(%arg0: i32, %arg1: i32) -> (i32, i32) {
    %c0_i32 = arith.constant 0 : i32
    %c0_i32_0 = arith.constant 0 : i32
    %c0_i32_1 = arith.constant 0 : i32
    return %c0_i32, %c0_i32_0 : i32, i32
  }
  func.func @transform_10(%arg0: i32, %arg1: i32) -> (i32, i32) {
    %c0_i32 = arith.constant 0 : i32
    %c0_i32_0 = arith.constant 0 : i32
    %c0_i32_1 = arith.constant 0 : i32
    return %c0_i32, %c0_i32_0 : i32, i32
  }
  func.func @transform_11(%arg0: i32, %arg1: i32) -> (i32, i32, i32, i32) {
    %c0_i32 = arith.constant 0 : i32
    %c0_i32_0 = arith.constant 0 : i32
    %c0_i32_1 = arith.constant 0 : i32
    return %arg0, %arg1, %c0_i32, %c0_i32_0 : i32, i32, i32, i32
  }
}

module attributes {stable_mosaic.version = 11 : i64} {
  func.func @_maxpool_kernel(%arg0: i32, %arg1: memref<1x4x3x3x128xbf16, #tpu.memory_space<vmem>>, %arg2: memref<1x2x2x128xbf16, #tpu.memory_space<vmem>>) attributes {dimension_semantics = [#tpu.dimension_semantics<parallel>], iteration_bounds = array<i64: 2>, scalar_prefetch = 0 : i64, scratch_operands = 0 : i64, tpu.core_type = #tpu.core_type<tc>, window_params = [{transform_indices = @transform_0, window_bounds = array<i64: 1, 4, 3, 3, 128>}, {transform_indices = @transform_1, window_bounds = array<i64: 1, 2, 2, 128>}]} {
    %c0 = arith.constant 0 : index
    %c0_0 = arith.constant 0 : index
    %c0_1 = arith.constant 0 : index
    %c0_2 = arith.constant 0 : index
    %c0_3 = arith.constant 0 : index
    %0 = vector.load %arg1[%c0, %c0_0, %c0_1, %c0_2, %c0_3] : memref<1x4x3x3x128xbf16, #tpu.memory_space<vmem>>, vector<1x4x3x3x128xbf16>
    %1 = vector.shape_cast %0 : vector<1x4x3x3x128xbf16> to vector<4x3x3x128xbf16>
    %2 = vector.extract_strided_slice %1 {offsets = [0, 0, 0, 0], sizes = [1, 2, 2, 128], strides = [1, 1, 1, 1]} : vector<4x3x3x128xbf16> to vector<1x2x2x128xbf16>
    %3 = vector.shape_cast %2 : vector<1x2x2x128xbf16> to vector<2x2x128xbf16>
    %4 = vector.extract_strided_slice %1 {offsets = [1, 0, 0, 0], sizes = [1, 2, 2, 128], strides = [1, 1, 1, 1]} : vector<4x3x3x128xbf16> to vector<1x2x2x128xbf16>
    %5 = vector.shape_cast %4 : vector<1x2x2x128xbf16> to vector<2x2x128xbf16>
    %6 = arith.maximumf %3, %5 : vector<2x2x128xbf16>
    %7 = vector.extract_strided_slice %1 {offsets = [0, 0, 1, 0], sizes = [1, 2, 2, 128], strides = [1, 1, 1, 1]} : vector<4x3x3x128xbf16> to vector<1x2x2x128xbf16>
    %8 = vector.shape_cast %7 : vector<1x2x2x128xbf16> to vector<2x2x128xbf16>
    %9 = arith.maximumf %6, %8 : vector<2x2x128xbf16>
    %10 = vector.extract_strided_slice %1 {offsets = [2, 0, 0, 0], sizes = [1, 2, 2, 128], strides = [1, 1, 1, 1]} : vector<4x3x3x128xbf16> to vector<1x2x2x128xbf16>
    %11 = vector.shape_cast %10 : vector<1x2x2x128xbf16> to vector<2x2x128xbf16>
    %12 = arith.maximumf %9, %11 : vector<2x2x128xbf16>
    %13 = vector.extract_strided_slice %1 {offsets = [3, 0, 0, 0], sizes = [1, 2, 2, 128], strides = [1, 1, 1, 1]} : vector<4x3x3x128xbf16> to vector<1x2x2x128xbf16>
    %14 = vector.shape_cast %13 : vector<1x2x2x128xbf16> to vector<2x2x128xbf16>
    %15 = arith.maximumf %12, %14 : vector<2x2x128xbf16>
    %16 = vector.extract_strided_slice %1 {offsets = [2, 0, 1, 0], sizes = [1, 2, 2, 128], strides = [1, 1, 1, 1]} : vector<4x3x3x128xbf16> to vector<1x2x2x128xbf16>
    %17 = vector.shape_cast %16 : vector<1x2x2x128xbf16> to vector<2x2x128xbf16>
    %18 = arith.maximumf %15, %17 : vector<2x2x128xbf16>
    %19 = vector.extract_strided_slice %1 {offsets = [0, 1, 0, 0], sizes = [1, 2, 2, 128], strides = [1, 1, 1, 1]} : vector<4x3x3x128xbf16> to vector<1x2x2x128xbf16>
    %20 = vector.shape_cast %19 : vector<1x2x2x128xbf16> to vector<2x2x128xbf16>
    %21 = arith.maximumf %18, %20 : vector<2x2x128xbf16>
    %22 = vector.extract_strided_slice %1 {offsets = [1, 1, 0, 0], sizes = [1, 2, 2, 128], strides = [1, 1, 1, 1]} : vector<4x3x3x128xbf16> to vector<1x2x2x128xbf16>
    %23 = vector.shape_cast %22 : vector<1x2x2x128xbf16> to vector<2x2x128xbf16>
    %24 = arith.maximumf %21, %23 : vector<2x2x128xbf16>
    %25 = vector.extract_strided_slice %1 {offsets = [0, 1, 1, 0], sizes = [1, 2, 2, 128], strides = [1, 1, 1, 1]} : vector<4x3x3x128xbf16> to vector<1x2x2x128xbf16>
    %26 = vector.shape_cast %25 : vector<1x2x2x128xbf16> to vector<2x2x128xbf16>
    %27 = arith.maximumf %24, %26 : vector<2x2x128xbf16>
    %28 = vector.shape_cast %27 : vector<2x2x128xbf16> to vector<1x2x2x128xbf16>
    %c0_4 = arith.constant 0 : index
    %c0_5 = arith.constant 0 : index
    %c0_6 = arith.constant 0 : index
    %c0_7 = arith.constant 0 : index
    %29 = vector.load %arg2[%c0_4, %c0_5, %c0_6, %c0_7] : memref<1x2x2x128xbf16, #tpu.memory_space<vmem>>, vector<1x2x2x128xbf16>
    tpu.vector_store %arg2[%c0_4, %c0_5, %c0_6, %c0_7], %28 {strides = array<i32>} : memref<1x2x2x128xbf16, #tpu.memory_space<vmem>>, vector<1x2x2x128xbf16>,
    return
  }
  func.func @transform_0(%arg0: i32) -> (i32, i32, i32, i32, i32) {
    %c0_i32 = arith.constant 0 : i32
    %c0_i32_0 = arith.constant 0 : i32
    %c0_i32_1 = arith.constant 0 : i32
    %c0_i32_2 = arith.constant 0 : i32
    %c0_i32_3 = arith.constant 0 : i32
    return %arg0, %c0_i32, %c0_i32_0, %c0_i32_1, %c0_i32_2 : i32, i32, i32, i32, i32
  }
  func.func @transform_1(%arg0: i32) -> (i32, i32, i32, i32) {
    %c0_i32 = arith.constant 0 : i32
    %c0_i32_0 = arith.constant 0 : i32
    %c0_i32_1 = arith.constant 0 : i32
    %c0_i32_2 = arith.constant 0 : i32
    return %arg0, %c0_i32, %c0_i32_0, %c0_i32_1 : i32, i32, i32, i32
  }
}

module attributes {stable_mosaic.version = 11 : i64} {
  func.func @_regress_kernel(%arg0: i32, %arg1: i32, %arg2: memref<1x2x2x128xbf16, #tpu.memory_space<vmem>>, %arg3: memref<1x1x2x128xbf16, #tpu.memory_space<vmem>>, %arg4: memref<1x1x2x128xbf16, #tpu.memory_space<vmem>>, %arg5: memref<128x256xbf16, #tpu.memory_space<vmem>>, %arg6: memref<1x256xf32, #tpu.memory_space<vmem>>, %arg7: memref<9x256x128xbf16, #tpu.memory_space<vmem>>, %arg8: memref<1x128xf32, #tpu.memory_space<vmem>>, %arg9: memref<128x128xbf16, #tpu.memory_space<vmem>>, %arg10: memref<1x128xf32, #tpu.memory_space<vmem>>, %arg11: memref<1x2x2x128xbf16, #tpu.memory_space<vmem>>, %arg12: memref<4x4x256xbf16, #tpu.memory_space<vmem>>) attributes {dimension_semantics = [#tpu.dimension_semantics<parallel>, #tpu.dimension_semantics<parallel>], iteration_bounds = array<i64: 2, 1>, scalar_prefetch = 0 : i64, scratch_operands = 1 : i64, tpu.core_type = #tpu.core_type<tc>, window_params = [{transform_indices = @transform_0, window_bounds = array<i64: 1, 2, 2, 128>}, {transform_indices = @transform_1, window_bounds = array<i64: 1, 1, 2, 128>}, {transform_indices = @transform_2, window_bounds = array<i64: 1, 1, 2, 128>}, {pipeline_mode = #tpu.pipeline_mode<synchronous>, transform_indices = @transform_3, window_bounds = array<i64: 128, 256>}, {pipeline_mode = #tpu.pipeline_mode<synchronous>, transform_indices = @transform_4, window_bounds = array<i64: 1, 256>}, {pipeline_mode = #tpu.pipeline_mode<synchronous>, transform_indices = @transform_5, window_bounds = array<i64: 9, 256, 128>}, {pipeline_mode = #tpu.pipeline_mode<synchronous>, transform_indices = @transform_6, window_bounds = array<i64: 1, 128>}, {pipeline_mode = #tpu.pipeline_mode<synchronous>, transform_indices = @transform_7, window_bounds = array<i64: 128, 128>}, {pipeline_mode = #tpu.pipeline_mode<synchronous>, transform_indices = @transform_8, window_bounds = array<i64: 1, 128>}, {transform_indices = @transform_9, window_bounds = array<i64: 1, 2, 2, 128>}]} {
    %c0 = arith.constant 0 : index
    %c0_0 = arith.constant 0 : index
    %0 = vector.load %arg5[%c0, %c0_0] : memref<128x256xbf16, #tpu.memory_space<vmem>>, vector<128x256xbf16>
    %c0_1 = arith.constant 0 : index
    %c0_2 = arith.constant 0 : index
    %1 = vector.load %arg6[%c0_1, %c0_2] : memref<1x256xf32, #tpu.memory_space<vmem>>, vector<1x256xf32>
    %c0_3 = arith.constant 0 : index
    %c0_4 = arith.constant 0 : index
    %c0_5 = arith.constant 0 : index
    %c0_6 = arith.constant 0 : index
    %2 = vector.load %arg2[%c0_3, %c0_4, %c0_5, %c0_6] : memref<1x2x2x128xbf16, #tpu.memory_space<vmem>>, vector<1x2x2x128xbf16>
    %3 = vector.shape_cast %2 : vector<1x2x2x128xbf16> to vector<2x2x128xbf16>
    %4 = vector.shape_cast %3 : vector<2x2x128xbf16> to vector<4x128xbf16>
    %cst = arith.constant dense<0.000000e+00> : vector<4x256xf32>
    %5 = tpu.matmul %4, %0, %cst {dimension_numbers = #tpu.dot_dimension_numbers<[1], [0], [0], [1], [0, 0, 1, 1], [], []>} : vector<4x128xbf16>, vector<128x256xbf16>, vector<4x256xf32> -> vector<4x256xf32>
    %6 = vector.broadcast %1 : vector<1x256xf32> to vector<4x256xf32>
    %7 = arith.addf %5, %6 : vector<4x256xf32>
    %cst_7 = arith.constant 0.000000e+00 : f32
    %8 = vector.broadcast %cst_7 : f32 to vector<4x256xf32>
    %9 = arith.maximumf %7, %8 : vector<4x256xf32>
    %10 = vector.shape_cast %9 : vector<4x256xf32> to vector<2x2x256xf32>
    %11 = arith.truncf %10 : vector<2x2x256xf32> to vector<2x2x256xbf16>
    %c1 = arith.constant 1 : index
    %c1_8 = arith.constant 1 : index
    %c0_9 = arith.constant 0 : index
    %12 = vector.load %arg12[%c1, %c1_8, %c0_9] : memref<4x4x256xbf16, #tpu.memory_space<vmem>>, vector<2x2x256xbf16>
    tpu.vector_store %arg12[%c1, %c1_8, %c0_9], %11 {strides = array<i32>} : memref<4x4x256xbf16, #tpu.memory_space<vmem>>, vector<2x2x256xbf16>,
    %c0_10 = arith.constant 0 : index
    %c0_11 = arith.constant 0 : index
    %c0_12 = arith.constant 0 : index
    %c0_13 = arith.constant 0 : index
    %13 = vector.load %arg3[%c0_10, %c0_11, %c0_12, %c0_13] : memref<1x1x2x128xbf16, #tpu.memory_space<vmem>>, vector<1x1x2x128xbf16>
    %14 = vector.shape_cast %13 : vector<1x1x2x128xbf16> to vector<1x2x128xbf16>
    %15 = vector.shape_cast %14 : vector<1x2x128xbf16> to vector<2x128xbf16>
    %cst_14 = arith.constant dense<0.000000e+00> : vector<2x256xf32>
    %16 = tpu.matmul %15, %0, %cst_14 {dimension_numbers = #tpu.dot_dimension_numbers<[1], [0], [0], [1], [0, 0, 1, 1], [], []>} : vector<2x128xbf16>, vector<128x256xbf16>, vector<2x256xf32> -> vector<2x256xf32>
    %17 = vector.broadcast %1 : vector<1x256xf32> to vector<2x256xf32>
    %18 = arith.addf %16, %17 : vector<2x256xf32>
    %cst_15 = arith.constant 0.000000e+00 : f32
    %19 = vector.broadcast %cst_15 : f32 to vector<2x256xf32>
    %20 = arith.maximumf %18, %19 : vector<2x256xf32>
    %21 = vector.shape_cast %20 : vector<2x256xf32> to vector<1x2x256xf32>
    %22 = arith.truncf %21 : vector<1x2x256xf32> to vector<1x2x256xbf16>
    %c0_16 = arith.constant 0 : index
    %c1_17 = arith.constant 1 : index
    %c0_18 = arith.constant 0 : index
    %23 = vector.load %arg12[%c0_16, %c1_17, %c0_18] : memref<4x4x256xbf16, #tpu.memory_space<vmem>>, vector<1x2x256xbf16>
    tpu.vector_store %arg12[%c0_16, %c1_17, %c0_18], %22 {strides = array<i32>} : memref<4x4x256xbf16, #tpu.memory_space<vmem>>, vector<1x2x256xbf16>,
    %c0_19 = arith.constant 0 : index
    %c0_20 = arith.constant 0 : index
    %c0_21 = arith.constant 0 : index
    %c0_22 = arith.constant 0 : index
    %24 = vector.load %arg4[%c0_19, %c0_20, %c0_21, %c0_22] : memref<1x1x2x128xbf16, #tpu.memory_space<vmem>>, vector<1x1x2x128xbf16>
    %25 = vector.shape_cast %24 : vector<1x1x2x128xbf16> to vector<1x2x128xbf16>
    %26 = vector.shape_cast %25 : vector<1x2x128xbf16> to vector<2x128xbf16>
    %cst_23 = arith.constant dense<0.000000e+00> : vector<2x256xf32>
    %27 = tpu.matmul %26, %0, %cst_23 {dimension_numbers = #tpu.dot_dimension_numbers<[1], [0], [0], [1], [0, 0, 1, 1], [], []>} : vector<2x128xbf16>, vector<128x256xbf16>, vector<2x256xf32> -> vector<2x256xf32>
    %28 = vector.broadcast %1 : vector<1x256xf32> to vector<2x256xf32>
    %29 = arith.addf %27, %28 : vector<2x256xf32>
    %cst_24 = arith.constant 0.000000e+00 : f32
    %30 = vector.broadcast %cst_24 : f32 to vector<2x256xf32>
    %31 = arith.maximumf %29, %30 : vector<2x256xf32>
    %32 = vector.shape_cast %31 : vector<2x256xf32> to vector<1x2x256xf32>
    %33 = arith.truncf %32 : vector<1x2x256xf32> to vector<1x2x256xbf16>
    %c3 = arith.constant 3 : index
    %c1_25 = arith.constant 1 : index
    %c0_26 = arith.constant 0 : index
    %34 = vector.load %arg12[%c3, %c1_25, %c0_26] : memref<4x4x256xbf16, #tpu.memory_space<vmem>>, vector<1x2x256xbf16>
    tpu.vector_store %arg12[%c3, %c1_25, %c0_26], %33 {strides = array<i32>} : memref<4x4x256xbf16, #tpu.memory_space<vmem>>, vector<1x2x256xbf16>,
    %cst_27 = arith.constant 0.000000e+00 : bf16
    %35 = vector.broadcast %cst_27 : bf16 to vector<4x1x256xbf16>
    %c0_28 = arith.constant 0 : index
    %c0_29 = arith.constant 0 : index
    %c0_30 = arith.constant 0 : index
    %36 = vector.load %arg12[%c0_28, %c0_29, %c0_30] : memref<4x4x256xbf16, #tpu.memory_space<vmem>>, vector<4x1x256xbf16>
    tpu.vector_store %arg12[%c0_28, %c0_29, %c0_30], %35 {strides = array<i32>} : memref<4x4x256xbf16, #tpu.memory_space<vmem>>, vector<4x1x256xbf16>,
    %cst_31 = arith.constant 0.000000e+00 : bf16
    %37 = vector.broadcast %cst_31 : bf16 to vector<4x1x256xbf16>
    %c0_32 = arith.constant 0 : index
    %c3_33 = arith.constant 3 : index
    %c0_34 = arith.constant 0 : index
    %38 = vector.load %arg12[%c0_32, %c3_33, %c0_34] : memref<4x4x256xbf16, #tpu.memory_space<vmem>>, vector<4x1x256xbf16>
    tpu.vector_store %arg12[%c0_32, %c3_33, %c0_34], %37 {strides = array<i32>} : memref<4x4x256xbf16, #tpu.memory_space<vmem>>, vector<4x1x256xbf16>,
    %c0_i32 = arith.constant 0 : i32
    %39 = arith.cmpi eq, %arg1, %c0_i32 : i32
    %40 = arith.extui %39 : i1 to i32
    %c0_i32_35 = arith.constant 0 : i32
    %41 = arith.cmpi ne, %40, %c0_i32_35 : i32
    scf.if %41 {
      %cst_108 = arith.constant 0.000000e+00 : bf16
      %114 = vector.broadcast %cst_108 : bf16 to vector<1x4x256xbf16>
      %c0_109 = arith.constant 0 : index
      %c0_110 = arith.constant 0 : index
      %c0_111 = arith.constant 0 : index
      %115 = vector.load %arg12[%c0_109, %c0_110, %c0_111] : memref<4x4x256xbf16, #tpu.memory_space<vmem>>, vector<1x4x256xbf16>
      tpu.vector_store %arg12[%c0_109, %c0_110, %c0_111], %114 {strides = array<i32>} : memref<4x4x256xbf16, #tpu.memory_space<vmem>>, vector<1x4x256xbf16>,
    } else {
    }
    %c0_i32_36 = arith.constant 0 : i32
    %42 = arith.cmpi eq, %arg1, %c0_i32_36 : i32
    %43 = arith.extui %42 : i1 to i32
    %c0_i32_37 = arith.constant 0 : i32
    %44 = arith.cmpi ne, %43, %c0_i32_37 : i32
    scf.if %44 {
      %cst_108 = arith.constant 0.000000e+00 : bf16
      %114 = vector.broadcast %cst_108 : bf16 to vector<1x4x256xbf16>
      %c3_109 = arith.constant 3 : index
      %c0_110 = arith.constant 0 : index
      %c0_111 = arith.constant 0 : index
      %115 = vector.load %arg12[%c3_109, %c0_110, %c0_111] : memref<4x4x256xbf16, #tpu.memory_space<vmem>>, vector<1x4x256xbf16>
      tpu.vector_store %arg12[%c3_109, %c0_110, %c0_111], %114 {strides = array<i32>} : memref<4x4x256xbf16, #tpu.memory_space<vmem>>, vector<1x4x256xbf16>,
    } else {
    }
    %cst_38 = arith.constant 0.000000e+00 : f32
    %45 = vector.broadcast %cst_38 : f32 to vector<4x128xf32>
    %c0_39 = arith.constant 0 : index
    %c0_40 = arith.constant 0 : index
    %c0_41 = arith.constant 0 : index
    %46 = vector.load %arg12[%c0_39, %c0_40, %c0_41] : memref<4x4x256xbf16, #tpu.memory_space<vmem>>, vector<2x2x256xbf16>
    %47 = vector.shape_cast %46 : vector<2x2x256xbf16> to vector<4x256xbf16>
    %c0_42 = arith.constant 0 : index
    %c0_43 = arith.constant 0 : index
    %c0_44 = arith.constant 0 : index
    %48 = vector.load %arg7[%c0_42, %c0_43, %c0_44] : memref<9x256x128xbf16, #tpu.memory_space<vmem>>, vector<1x256x128xbf16>
    %49 = vector.shape_cast %48 : vector<1x256x128xbf16> to vector<256x128xbf16>
    %cst_45 = arith.constant dense<0.000000e+00> : vector<4x128xf32>
    %50 = tpu.matmul %47, %49, %cst_45 {dimension_numbers = #tpu.dot_dimension_numbers<[1], [0], [0], [1], [0, 0, 1, 1], [], []>} : vector<4x256xbf16>, vector<256x128xbf16>, vector<4x128xf32> -> vector<4x128xf32>
    %51 = arith.addf %45, %50 : vector<4x128xf32>
    %c0_46 = arith.constant 0 : index
    %c1_47 = arith.constant 1 : index
    %c0_48 = arith.constant 0 : index
    %52 = vector.load %arg12[%c0_46, %c1_47, %c0_48] : memref<4x4x256xbf16, #tpu.memory_space<vmem>>, vector<2x2x256xbf16>
    %53 = vector.shape_cast %52 : vector<2x2x256xbf16> to vector<4x256xbf16>
    %c1_49 = arith.constant 1 : index
    %c0_50 = arith.constant 0 : index
    %c0_51 = arith.constant 0 : index
    %54 = vector.load %arg7[%c1_49, %c0_50, %c0_51] : memref<9x256x128xbf16, #tpu.memory_space<vmem>>, vector<1x256x128xbf16>
    %55 = vector.shape_cast %54 : vector<1x256x128xbf16> to vector<256x128xbf16>
    %cst_52 = arith.constant dense<0.000000e+00> : vector<4x128xf32>
    %56 = tpu.matmul %53, %55, %cst_52 {dimension_numbers = #tpu.dot_dimension_numbers<[1], [0], [0], [1], [0, 0, 1, 1], [], []>} : vector<4x256xbf16>, vector<256x128xbf16>, vector<4x128xf32> -> vector<4x128xf32>
    %57 = arith.addf %51, %56 : vector<4x128xf32>
    %c0_53 = arith.constant 0 : index
    %c2 = arith.constant 2 : index
    %c0_54 = arith.constant 0 : index
    %58 = vector.load %arg12[%c0_53, %c2, %c0_54] : memref<4x4x256xbf16, #tpu.memory_space<vmem>>, vector<2x2x256xbf16>
    %59 = vector.shape_cast %58 : vector<2x2x256xbf16> to vector<4x256xbf16>
    %c2_55 = arith.constant 2 : index
    %c0_56 = arith.constant 0 : index
    %c0_57 = arith.constant 0 : index
    %60 = vector.load %arg7[%c2_55, %c0_56, %c0_57] : memref<9x256x128xbf16, #tpu.memory_space<vmem>>, vector<1x256x128xbf16>
    %61 = vector.shape_cast %60 : vector<1x256x128xbf16> to vector<256x128xbf16>
    %cst_58 = arith.constant dense<0.000000e+00> : vector<4x128xf32>
    %62 = tpu.matmul %59, %61, %cst_58 {dimension_numbers = #tpu.dot_dimension_numbers<[1], [0], [0], [1], [0, 0, 1, 1], [], []>} : vector<4x256xbf16>, vector<256x128xbf16>, vector<4x128xf32> -> vector<4x128xf32>
    %63 = arith.addf %57, %62 : vector<4x128xf32>
    %c1_59 = arith.constant 1 : index
    %c0_60 = arith.constant 0 : index
    %c0_61 = arith.constant 0 : index
    %64 = vector.load %arg12[%c1_59, %c0_60, %c0_61] : memref<4x4x256xbf16, #tpu.memory_space<vmem>>, vector<2x2x256xbf16>
    %65 = vector.shape_cast %64 : vector<2x2x256xbf16> to vector<4x256xbf16>
    %c3_62 = arith.constant 3 : index
    %c0_63 = arith.constant 0 : index
    %c0_64 = arith.constant 0 : index
    %66 = vector.load %arg7[%c3_62, %c0_63, %c0_64] : memref<9x256x128xbf16, #tpu.memory_space<vmem>>, vector<1x256x128xbf16>
    %67 = vector.shape_cast %66 : vector<1x256x128xbf16> to vector<256x128xbf16>
    %cst_65 = arith.constant dense<0.000000e+00> : vector<4x128xf32>
    %68 = tpu.matmul %65, %67, %cst_65 {dimension_numbers = #tpu.dot_dimension_numbers<[1], [0], [0], [1], [0, 0, 1, 1], [], []>} : vector<4x256xbf16>, vector<256x128xbf16>, vector<4x128xf32> -> vector<4x128xf32>
    %69 = arith.addf %63, %68 : vector<4x128xf32>
    %c1_66 = arith.constant 1 : index
    %c1_67 = arith.constant 1 : index
    %c0_68 = arith.constant 0 : index
    %70 = vector.load %arg12[%c1_66, %c1_67, %c0_68] : memref<4x4x256xbf16, #tpu.memory_space<vmem>>, vector<2x2x256xbf16>
    %71 = vector.shape_cast %70 : vector<2x2x256xbf16> to vector<4x256xbf16>
    %c4 = arith.constant 4 : index
    %c0_69 = arith.constant 0 : index
    %c0_70 = arith.constant 0 : index
    %72 = vector.load %arg7[%c4, %c0_69, %c0_70] : memref<9x256x128xbf16, #tpu.memory_space<vmem>>, vector<1x256x128xbf16>
    %73 = vector.shape_cast %72 : vector<1x256x128xbf16> to vector<256x128xbf16>
    %cst_71 = arith.constant dense<0.000000e+00> : vector<4x128xf32>
    %74 = tpu.matmul %71, %73, %cst_71 {dimension_numbers = #tpu.dot_dimension_numbers<[1], [0], [0], [1], [0, 0, 1, 1], [], []>} : vector<4x256xbf16>, vector<256x128xbf16>, vector<4x128xf32> -> vector<4x128xf32>
    %75 = arith.addf %69, %74 : vector<4x128xf32>
    %c1_72 = arith.constant 1 : index
    %c2_73 = arith.constant 2 : index
    %c0_74 = arith.constant 0 : index
    %76 = vector.load %arg12[%c1_72, %c2_73, %c0_74] : memref<4x4x256xbf16, #tpu.memory_space<vmem>>, vector<2x2x256xbf16>
    %77 = vector.shape_cast %76 : vector<2x2x256xbf16> to vector<4x256xbf16>
    %c5 = arith.constant 5 : index
    %c0_75 = arith.constant 0 : index
    %c0_76 = arith.constant 0 : index
    %78 = vector.load %arg7[%c5, %c0_75, %c0_76] : memref<9x256x128xbf16, #tpu.memory_space<vmem>>, vector<1x256x128xbf16>
    %79 = vector.shape_cast %78 : vector<1x256x128xbf16> to vector<256x128xbf16>
    %cst_77 = arith.constant dense<0.000000e+00> : vector<4x128xf32>
    %80 = tpu.matmul %77, %79, %cst_77 {dimension_numbers = #tpu.dot_dimension_numbers<[1], [0], [0], [1], [0, 0, 1, 1], [], []>} : vector<4x256xbf16>, vector<256x128xbf16>, vector<4x128xf32> -> vector<4x128xf32>
    %81 = arith.addf %75, %80 : vector<4x128xf32>
    %c2_78 = arith.constant 2 : index
    %c0_79 = arith.constant 0 : index
    %c0_80 = arith.constant 0 : index
    %82 = vector.load %arg12[%c2_78, %c0_79, %c0_80] : memref<4x4x256xbf16, #tpu.memory_space<vmem>>, vector<2x2x256xbf16>
    %83 = vector.shape_cast %82 : vector<2x2x256xbf16> to vector<4x256xbf16>
    %c6 = arith.constant 6 : index
    %c0_81 = arith.constant 0 : index
    %c0_82 = arith.constant 0 : index
    %84 = vector.load %arg7[%c6, %c0_81, %c0_82] : memref<9x256x128xbf16, #tpu.memory_space<vmem>>, vector<1x256x128xbf16>
    %85 = vector.shape_cast %84 : vector<1x256x128xbf16> to vector<256x128xbf16>
    %cst_83 = arith.constant dense<0.000000e+00> : vector<4x128xf32>
    %86 = tpu.matmul %83, %85, %cst_83 {dimension_numbers = #tpu.dot_dimension_numbers<[1], [0], [0], [1], [0, 0, 1, 1], [], []>} : vector<4x256xbf16>, vector<256x128xbf16>, vector<4x128xf32> -> vector<4x128xf32>
    %87 = arith.addf %81, %86 : vector<4x128xf32>
    %c2_84 = arith.constant 2 : index
    %c1_85 = arith.constant 1 : index
    %c0_86 = arith.constant 0 : index
    %88 = vector.load %arg12[%c2_84, %c1_85, %c0_86] : memref<4x4x256xbf16, #tpu.memory_space<vmem>>, vector<2x2x256xbf16>
    %89 = vector.shape_cast %88 : vector<2x2x256xbf16> to vector<4x256xbf16>
    %c7 = arith.constant 7 : index
    %c0_87 = arith.constant 0 : index
    %c0_88 = arith.constant 0 : index
    %90 = vector.load %arg7[%c7, %c0_87, %c0_88] : memref<9x256x128xbf16, #tpu.memory_space<vmem>>, vector<1x256x128xbf16>
    %91 = vector.shape_cast %90 : vector<1x256x128xbf16> to vector<256x128xbf16>
    %cst_89 = arith.constant dense<0.000000e+00> : vector<4x128xf32>
    %92 = tpu.matmul %89, %91, %cst_89 {dimension_numbers = #tpu.dot_dimension_numbers<[1], [0], [0], [1], [0, 0, 1, 1], [], []>} : vector<4x256xbf16>, vector<256x128xbf16>, vector<4x128xf32> -> vector<4x128xf32>
    %93 = arith.addf %87, %92 : vector<4x128xf32>
    %c2_90 = arith.constant 2 : index
    %c2_91 = arith.constant 2 : index
    %c0_92 = arith.constant 0 : index
    %94 = vector.load %arg12[%c2_90, %c2_91, %c0_92] : memref<4x4x256xbf16, #tpu.memory_space<vmem>>, vector<2x2x256xbf16>
    %95 = vector.shape_cast %94 : vector<2x2x256xbf16> to vector<4x256xbf16>
    %c8 = arith.constant 8 : index
    %c0_93 = arith.constant 0 : index
    %c0_94 = arith.constant 0 : index
    %96 = vector.load %arg7[%c8, %c0_93, %c0_94] : memref<9x256x128xbf16, #tpu.memory_space<vmem>>, vector<1x256x128xbf16>
    %97 = vector.shape_cast %96 : vector<1x256x128xbf16> to vector<256x128xbf16>
    %cst_95 = arith.constant dense<0.000000e+00> : vector<4x128xf32>
    %98 = tpu.matmul %95, %97, %cst_95 {dimension_numbers = #tpu.dot_dimension_numbers<[1], [0], [0], [1], [0, 0, 1, 1], [], []>} : vector<4x256xbf16>, vector<256x128xbf16>, vector<4x128xf32> -> vector<4x128xf32>
    %99 = arith.addf %93, %98 : vector<4x128xf32>
    %c0_96 = arith.constant 0 : index
    %c0_97 = arith.constant 0 : index
    %100 = vector.load %arg8[%c0_96, %c0_97] : memref<1x128xf32, #tpu.memory_space<vmem>>, vector<1x128xf32>
    %101 = vector.broadcast %100 : vector<1x128xf32> to vector<4x128xf32>
    %102 = arith.addf %99, %101 : vector<4x128xf32>
    %cst_98 = arith.constant 0.000000e+00 : f32
    %103 = vector.broadcast %cst_98 : f32 to vector<4x128xf32>
    %104 = arith.maximumf %102, %103 : vector<4x128xf32>
    %105 = arith.truncf %104 : vector<4x128xf32> to vector<4x128xbf16>
    %c0_99 = arith.constant 0 : index
    %c0_100 = arith.constant 0 : index
    %106 = vector.load %arg9[%c0_99, %c0_100] : memref<128x128xbf16, #tpu.memory_space<vmem>>, vector<128x128xbf16>
    %cst_101 = arith.constant dense<0.000000e+00> : vector<4x128xf32>
    %107 = tpu.matmul %105, %106, %cst_101 {dimension_numbers = #tpu.dot_dimension_numbers<[1], [0], [0], [1], [0, 0, 1, 1], [], []>} : vector<4x128xbf16>, vector<128x128xbf16>, vector<4x128xf32> -> vector<4x128xf32>
    %c0_102 = arith.constant 0 : index
    %c0_103 = arith.constant 0 : index
    %108 = vector.load %arg10[%c0_102, %c0_103] : memref<1x128xf32, #tpu.memory_space<vmem>>, vector<1x128xf32>
    %109 = vector.broadcast %108 : vector<1x128xf32> to vector<4x128xf32>
    %110 = arith.addf %107, %109 : vector<4x128xf32>
    %111 = vector.shape_cast %110 : vector<4x128xf32> to vector<1x2x2x128xf32>
    %112 = arith.truncf %111 : vector<1x2x2x128xf32> to vector<1x2x2x128xbf16>
    %c0_104 = arith.constant 0 : index
    %c0_105 = arith.constant 0 : index
    %c0_106 = arith.constant 0 : index
    %c0_107 = arith.constant 0 : index
    %113 = vector.load %arg11[%c0_104, %c0_105, %c0_106, %c0_107] : memref<1x2x2x128xbf16, #tpu.memory_space<vmem>>, vector<1x2x2x128xbf16>
    tpu.vector_store %arg11[%c0_104, %c0_105, %c0_106, %c0_107], %112 {strides = array<i32>} : memref<1x2x2x128xbf16, #tpu.memory_space<vmem>>, vector<1x2x2x128xbf16>,
    return
  }
  func.func @transform_0(%arg0: i32, %arg1: i32) -> (i32, i32, i32, i32) {
    %c0_i32 = arith.constant 0 : i32
    %c0_i32_0 = arith.constant 0 : i32
    %c0_i32_1 = arith.constant 0 : i32
    return %arg0, %arg1, %c0_i32, %c0_i32_0 : i32, i32, i32, i32
  }
  func.func @transform_1(%arg0: i32, %arg1: i32) -> (i32, i32, i32, i32) {
    %c2_i32 = arith.constant 2 : i32
    %0 = arith.muli %arg1, %c2_i32 : i32
    %c1_i32 = arith.constant 1 : i32
    %1 = arith.subi %0, %c1_i32 : i32
    %c0_i32 = arith.constant 0 : i32
    %2 = arith.maxsi %1, %c0_i32 : i32
    %c0_i32_0 = arith.constant 0 : i32
    %c0_i32_1 = arith.constant 0 : i32
    %c0_i32_2 = arith.constant 0 : i32
    return %arg0, %2, %c0_i32_0, %c0_i32_1 : i32, i32, i32, i32
  }
  func.func @transform_2(%arg0: i32, %arg1: i32) -> (i32, i32, i32, i32) {
    %c2_i32 = arith.constant 2 : i32
    %0 = arith.muli %arg1, %c2_i32 : i32
    %c2_i32_0 = arith.constant 2 : i32
    %1 = arith.addi %0, %c2_i32_0 : i32
    %c1_i32 = arith.constant 1 : i32
    %2 = arith.minsi %1, %c1_i32 : i32
    %c0_i32 = arith.constant 0 : i32
    %c0_i32_1 = arith.constant 0 : i32
    %c0_i32_2 = arith.constant 0 : i32
    return %arg0, %2, %c0_i32, %c0_i32_1 : i32, i32, i32, i32
  }
  func.func @transform_3(%arg0: i32, %arg1: i32) -> (i32, i32) {
    %c0_i32 = arith.constant 0 : i32
    %c0_i32_0 = arith.constant 0 : i32
    %c0_i32_1 = arith.constant 0 : i32
    return %c0_i32, %c0_i32_0 : i32, i32
  }
  func.func @transform_4(%arg0: i32, %arg1: i32) -> (i32, i32) {
    %c0_i32 = arith.constant 0 : i32
    %c0_i32_0 = arith.constant 0 : i32
    %c0_i32_1 = arith.constant 0 : i32
    return %c0_i32, %c0_i32_0 : i32, i32
  }
  func.func @transform_5(%arg0: i32, %arg1: i32) -> (i32, i32, i32) {
    %c0_i32 = arith.constant 0 : i32
    %c0_i32_0 = arith.constant 0 : i32
    %c0_i32_1 = arith.constant 0 : i32
    %c0_i32_2 = arith.constant 0 : i32
    return %c0_i32, %c0_i32_0, %c0_i32_1 : i32, i32, i32
  }
  func.func @transform_6(%arg0: i32, %arg1: i32) -> (i32, i32) {
    %c0_i32 = arith.constant 0 : i32
    %c0_i32_0 = arith.constant 0 : i32
    %c0_i32_1 = arith.constant 0 : i32
    return %c0_i32, %c0_i32_0 : i32, i32
  }
  func.func @transform_7(%arg0: i32, %arg1: i32) -> (i32, i32) {
    %c0_i32 = arith.constant 0 : i32
    %c0_i32_0 = arith.constant 0 : i32
    %c0_i32_1 = arith.constant 0 : i32
    return %c0_i32, %c0_i32_0 : i32, i32
  }
  func.func @transform_8(%arg0: i32, %arg1: i32) -> (i32, i32) {
    %c0_i32 = arith.constant 0 : i32
    %c0_i32_0 = arith.constant 0 : i32
    %c0_i32_1 = arith.constant 0 : i32
    return %c0_i32, %c0_i32_0 : i32, i32
  }
  func.func @transform_9(%arg0: i32, %arg1: i32) -> (i32, i32, i32, i32) {
    %c0_i32 = arith.constant 0 : i32
    %c0_i32_0 = arith.constant 0 : i32
    %c0_i32_1 = arith.constant 0 : i32
    return %arg0, %arg1, %c0_i32, %c0_i32_0 : i32, i32, i32, i32
  }
}

module attributes {stable_mosaic.version = 11 : i64} {
  func.func @_regress_kernel(%arg0: i32, %arg1: i32, %arg2: memref<1x4x4x128xbf16, #tpu.memory_space<vmem>>, %arg3: memref<1x1x4x128xbf16, #tpu.memory_space<vmem>>, %arg4: memref<1x1x4x128xbf16, #tpu.memory_space<vmem>>, %arg5: memref<128x256xbf16, #tpu.memory_space<vmem>>, %arg6: memref<1x256xf32, #tpu.memory_space<vmem>>, %arg7: memref<9x256x128xbf16, #tpu.memory_space<vmem>>, %arg8: memref<1x128xf32, #tpu.memory_space<vmem>>, %arg9: memref<128x128xbf16, #tpu.memory_space<vmem>>, %arg10: memref<1x128xf32, #tpu.memory_space<vmem>>, %arg11: memref<1x4x4x128xbf16, #tpu.memory_space<vmem>>, %arg12: memref<6x6x256xbf16, #tpu.memory_space<vmem>>) attributes {dimension_semantics = [#tpu.dimension_semantics<parallel>, #tpu.dimension_semantics<parallel>], iteration_bounds = array<i64: 2, 1>, scalar_prefetch = 0 : i64, scratch_operands = 1 : i64, tpu.core_type = #tpu.core_type<tc>, window_params = [{transform_indices = @transform_0, window_bounds = array<i64: 1, 4, 4, 128>}, {transform_indices = @transform_1, window_bounds = array<i64: 1, 1, 4, 128>}, {transform_indices = @transform_2, window_bounds = array<i64: 1, 1, 4, 128>}, {pipeline_mode = #tpu.pipeline_mode<synchronous>, transform_indices = @transform_3, window_bounds = array<i64: 128, 256>}, {pipeline_mode = #tpu.pipeline_mode<synchronous>, transform_indices = @transform_4, window_bounds = array<i64: 1, 256>}, {pipeline_mode = #tpu.pipeline_mode<synchronous>, transform_indices = @transform_5, window_bounds = array<i64: 9, 256, 128>}, {pipeline_mode = #tpu.pipeline_mode<synchronous>, transform_indices = @transform_6, window_bounds = array<i64: 1, 128>}, {pipeline_mode = #tpu.pipeline_mode<synchronous>, transform_indices = @transform_7, window_bounds = array<i64: 128, 128>}, {pipeline_mode = #tpu.pipeline_mode<synchronous>, transform_indices = @transform_8, window_bounds = array<i64: 1, 128>}, {transform_indices = @transform_9, window_bounds = array<i64: 1, 4, 4, 128>}]} {
    %c0 = arith.constant 0 : index
    %c0_0 = arith.constant 0 : index
    %0 = vector.load %arg5[%c0, %c0_0] : memref<128x256xbf16, #tpu.memory_space<vmem>>, vector<128x256xbf16>
    %c0_1 = arith.constant 0 : index
    %c0_2 = arith.constant 0 : index
    %1 = vector.load %arg6[%c0_1, %c0_2] : memref<1x256xf32, #tpu.memory_space<vmem>>, vector<1x256xf32>
    %c0_3 = arith.constant 0 : index
    %c0_4 = arith.constant 0 : index
    %c0_5 = arith.constant 0 : index
    %c0_6 = arith.constant 0 : index
    %2 = vector.load %arg2[%c0_3, %c0_4, %c0_5, %c0_6] : memref<1x4x4x128xbf16, #tpu.memory_space<vmem>>, vector<1x4x4x128xbf16>
    %3 = vector.shape_cast %2 : vector<1x4x4x128xbf16> to vector<4x4x128xbf16>
    %4 = vector.shape_cast %3 : vector<4x4x128xbf16> to vector<16x128xbf16>
    %cst = arith.constant dense<0.000000e+00> : vector<16x256xf32>
    %5 = tpu.matmul %4, %0, %cst {dimension_numbers = #tpu.dot_dimension_numbers<[1], [0], [0], [1], [0, 0, 1, 1], [], []>} : vector<16x128xbf16>, vector<128x256xbf16>, vector<16x256xf32> -> vector<16x256xf32>
    %6 = vector.broadcast %1 : vector<1x256xf32> to vector<16x256xf32>
    %7 = arith.addf %5, %6 : vector<16x256xf32>
    %cst_7 = arith.constant 0.000000e+00 : f32
    %8 = vector.broadcast %cst_7 : f32 to vector<16x256xf32>
    %9 = arith.maximumf %7, %8 : vector<16x256xf32>
    %10 = vector.shape_cast %9 : vector<16x256xf32> to vector<4x4x256xf32>
    %11 = arith.truncf %10 : vector<4x4x256xf32> to vector<4x4x256xbf16>
    %c1 = arith.constant 1 : index
    %c1_8 = arith.constant 1 : index
    %c0_9 = arith.constant 0 : index
    %12 = vector.load %arg12[%c1, %c1_8, %c0_9] : memref<6x6x256xbf16, #tpu.memory_space<vmem>>, vector<4x4x256xbf16>
    tpu.vector_store %arg12[%c1, %c1_8, %c0_9], %11 {strides = array<i32>} : memref<6x6x256xbf16, #tpu.memory_space<vmem>>, vector<4x4x256xbf16>,
    %c0_10 = arith.constant 0 : index
    %c0_11 = arith.constant 0 : index
    %c0_12 = arith.constant 0 : index
    %c0_13 = arith.constant 0 : index
    %13 = vector.load %arg3[%c0_10, %c0_11, %c0_12, %c0_13] : memref<1x1x4x128xbf16, #tpu.memory_space<vmem>>, vector<1x1x4x128xbf16>
    %14 = vector.shape_cast %13 : vector<1x1x4x128xbf16> to vector<1x4x128xbf16>
    %15 = vector.shape_cast %14 : vector<1x4x128xbf16> to vector<4x128xbf16>
    %cst_14 = arith.constant dense<0.000000e+00> : vector<4x256xf32>
    %16 = tpu.matmul %15, %0, %cst_14 {dimension_numbers = #tpu.dot_dimension_numbers<[1], [0], [0], [1], [0, 0, 1, 1], [], []>} : vector<4x128xbf16>, vector<128x256xbf16>, vector<4x256xf32> -> vector<4x256xf32>
    %17 = vector.broadcast %1 : vector<1x256xf32> to vector<4x256xf32>
    %18 = arith.addf %16, %17 : vector<4x256xf32>
    %cst_15 = arith.constant 0.000000e+00 : f32
    %19 = vector.broadcast %cst_15 : f32 to vector<4x256xf32>
    %20 = arith.maximumf %18, %19 : vector<4x256xf32>
    %21 = vector.shape_cast %20 : vector<4x256xf32> to vector<1x4x256xf32>
    %22 = arith.truncf %21 : vector<1x4x256xf32> to vector<1x4x256xbf16>
    %c0_16 = arith.constant 0 : index
    %c1_17 = arith.constant 1 : index
    %c0_18 = arith.constant 0 : index
    %23 = vector.load %arg12[%c0_16, %c1_17, %c0_18] : memref<6x6x256xbf16, #tpu.memory_space<vmem>>, vector<1x4x256xbf16>
    tpu.vector_store %arg12[%c0_16, %c1_17, %c0_18], %22 {strides = array<i32>} : memref<6x6x256xbf16, #tpu.memory_space<vmem>>, vector<1x4x256xbf16>,
    %c0_19 = arith.constant 0 : index
    %c0_20 = arith.constant 0 : index
    %c0_21 = arith.constant 0 : index
    %c0_22 = arith.constant 0 : index
    %24 = vector.load %arg4[%c0_19, %c0_20, %c0_21, %c0_22] : memref<1x1x4x128xbf16, #tpu.memory_space<vmem>>, vector<1x1x4x128xbf16>
    %25 = vector.shape_cast %24 : vector<1x1x4x128xbf16> to vector<1x4x128xbf16>
    %26 = vector.shape_cast %25 : vector<1x4x128xbf16> to vector<4x128xbf16>
    %cst_23 = arith.constant dense<0.000000e+00> : vector<4x256xf32>
    %27 = tpu.matmul %26, %0, %cst_23 {dimension_numbers = #tpu.dot_dimension_numbers<[1], [0], [0], [1], [0, 0, 1, 1], [], []>} : vector<4x128xbf16>, vector<128x256xbf16>, vector<4x256xf32> -> vector<4x256xf32>
    %28 = vector.broadcast %1 : vector<1x256xf32> to vector<4x256xf32>
    %29 = arith.addf %27, %28 : vector<4x256xf32>
    %cst_24 = arith.constant 0.000000e+00 : f32
    %30 = vector.broadcast %cst_24 : f32 to vector<4x256xf32>
    %31 = arith.maximumf %29, %30 : vector<4x256xf32>
    %32 = vector.shape_cast %31 : vector<4x256xf32> to vector<1x4x256xf32>
    %33 = arith.truncf %32 : vector<1x4x256xf32> to vector<1x4x256xbf16>
    %c5 = arith.constant 5 : index
    %c1_25 = arith.constant 1 : index
    %c0_26 = arith.constant 0 : index
    %34 = vector.load %arg12[%c5, %c1_25, %c0_26] : memref<6x6x256xbf16, #tpu.memory_space<vmem>>, vector<1x4x256xbf16>
    tpu.vector_store %arg12[%c5, %c1_25, %c0_26], %33 {strides = array<i32>} : memref<6x6x256xbf16, #tpu.memory_space<vmem>>, vector<1x4x256xbf16>,
    %cst_27 = arith.constant 0.000000e+00 : bf16
    %35 = vector.broadcast %cst_27 : bf16 to vector<6x1x256xbf16>
    %c0_28 = arith.constant 0 : index
    %c0_29 = arith.constant 0 : index
    %c0_30 = arith.constant 0 : index
    %36 = vector.load %arg12[%c0_28, %c0_29, %c0_30] : memref<6x6x256xbf16, #tpu.memory_space<vmem>>, vector<6x1x256xbf16>
    tpu.vector_store %arg12[%c0_28, %c0_29, %c0_30], %35 {strides = array<i32>} : memref<6x6x256xbf16, #tpu.memory_space<vmem>>, vector<6x1x256xbf16>,
    %cst_31 = arith.constant 0.000000e+00 : bf16
    %37 = vector.broadcast %cst_31 : bf16 to vector<6x1x256xbf16>
    %c0_32 = arith.constant 0 : index
    %c5_33 = arith.constant 5 : index
    %c0_34 = arith.constant 0 : index
    %38 = vector.load %arg12[%c0_32, %c5_33, %c0_34] : memref<6x6x256xbf16, #tpu.memory_space<vmem>>, vector<6x1x256xbf16>
    tpu.vector_store %arg12[%c0_32, %c5_33, %c0_34], %37 {strides = array<i32>} : memref<6x6x256xbf16, #tpu.memory_space<vmem>>, vector<6x1x256xbf16>,
    %c0_i32 = arith.constant 0 : i32
    %39 = arith.cmpi eq, %arg1, %c0_i32 : i32
    %40 = arith.extui %39 : i1 to i32
    %c0_i32_35 = arith.constant 0 : i32
    %41 = arith.cmpi ne, %40, %c0_i32_35 : i32
    scf.if %41 {
      %cst_108 = arith.constant 0.000000e+00 : bf16
      %114 = vector.broadcast %cst_108 : bf16 to vector<1x6x256xbf16>
      %c0_109 = arith.constant 0 : index
      %c0_110 = arith.constant 0 : index
      %c0_111 = arith.constant 0 : index
      %115 = vector.load %arg12[%c0_109, %c0_110, %c0_111] : memref<6x6x256xbf16, #tpu.memory_space<vmem>>, vector<1x6x256xbf16>
      tpu.vector_store %arg12[%c0_109, %c0_110, %c0_111], %114 {strides = array<i32>} : memref<6x6x256xbf16, #tpu.memory_space<vmem>>, vector<1x6x256xbf16>,
    } else {
    }
    %c0_i32_36 = arith.constant 0 : i32
    %42 = arith.cmpi eq, %arg1, %c0_i32_36 : i32
    %43 = arith.extui %42 : i1 to i32
    %c0_i32_37 = arith.constant 0 : i32
    %44 = arith.cmpi ne, %43, %c0_i32_37 : i32
    scf.if %44 {
      %cst_108 = arith.constant 0.000000e+00 : bf16
      %114 = vector.broadcast %cst_108 : bf16 to vector<1x6x256xbf16>
      %c5_109 = arith.constant 5 : index
      %c0_110 = arith.constant 0 : index
      %c0_111 = arith.constant 0 : index
      %115 = vector.load %arg12[%c5_109, %c0_110, %c0_111] : memref<6x6x256xbf16, #tpu.memory_space<vmem>>, vector<1x6x256xbf16>
      tpu.vector_store %arg12[%c5_109, %c0_110, %c0_111], %114 {strides = array<i32>} : memref<6x6x256xbf16, #tpu.memory_space<vmem>>, vector<1x6x256xbf16>,
    } else {
    }
    %cst_38 = arith.constant 0.000000e+00 : f32
    %45 = vector.broadcast %cst_38 : f32 to vector<16x128xf32>
    %c0_39 = arith.constant 0 : index
    %c0_40 = arith.constant 0 : index
    %c0_41 = arith.constant 0 : index
    %46 = vector.load %arg12[%c0_39, %c0_40, %c0_41] : memref<6x6x256xbf16, #tpu.memory_space<vmem>>, vector<4x4x256xbf16>
    %47 = vector.shape_cast %46 : vector<4x4x256xbf16> to vector<16x256xbf16>
    %c0_42 = arith.constant 0 : index
    %c0_43 = arith.constant 0 : index
    %c0_44 = arith.constant 0 : index
    %48 = vector.load %arg7[%c0_42, %c0_43, %c0_44] : memref<9x256x128xbf16, #tpu.memory_space<vmem>>, vector<1x256x128xbf16>
    %49 = vector.shape_cast %48 : vector<1x256x128xbf16> to vector<256x128xbf16>
    %cst_45 = arith.constant dense<0.000000e+00> : vector<16x128xf32>
    %50 = tpu.matmul %47, %49, %cst_45 {dimension_numbers = #tpu.dot_dimension_numbers<[1], [0], [0], [1], [0, 0, 1, 1], [], []>} : vector<16x256xbf16>, vector<256x128xbf16>, vector<16x128xf32> -> vector<16x128xf32>
    %51 = arith.addf %45, %50 : vector<16x128xf32>
    %c0_46 = arith.constant 0 : index
    %c1_47 = arith.constant 1 : index
    %c0_48 = arith.constant 0 : index
    %52 = vector.load %arg12[%c0_46, %c1_47, %c0_48] : memref<6x6x256xbf16, #tpu.memory_space<vmem>>, vector<4x4x256xbf16>
    %53 = vector.shape_cast %52 : vector<4x4x256xbf16> to vector<16x256xbf16>
    %c1_49 = arith.constant 1 : index
    %c0_50 = arith.constant 0 : index
    %c0_51 = arith.constant 0 : index
    %54 = vector.load %arg7[%c1_49, %c0_50, %c0_51] : memref<9x256x128xbf16, #tpu.memory_space<vmem>>, vector<1x256x128xbf16>
    %55 = vector.shape_cast %54 : vector<1x256x128xbf16> to vector<256x128xbf16>
    %cst_52 = arith.constant dense<0.000000e+00> : vector<16x128xf32>
    %56 = tpu.matmul %53, %55, %cst_52 {dimension_numbers = #tpu.dot_dimension_numbers<[1], [0], [0], [1], [0, 0, 1, 1], [], []>} : vector<16x256xbf16>, vector<256x128xbf16>, vector<16x128xf32> -> vector<16x128xf32>
    %57 = arith.addf %51, %56 : vector<16x128xf32>
    %c0_53 = arith.constant 0 : index
    %c2 = arith.constant 2 : index
    %c0_54 = arith.constant 0 : index
    %58 = vector.load %arg12[%c0_53, %c2, %c0_54] : memref<6x6x256xbf16, #tpu.memory_space<vmem>>, vector<4x4x256xbf16>
    %59 = vector.shape_cast %58 : vector<4x4x256xbf16> to vector<16x256xbf16>
    %c2_55 = arith.constant 2 : index
    %c0_56 = arith.constant 0 : index
    %c0_57 = arith.constant 0 : index
    %60 = vector.load %arg7[%c2_55, %c0_56, %c0_57] : memref<9x256x128xbf16, #tpu.memory_space<vmem>>, vector<1x256x128xbf16>
    %61 = vector.shape_cast %60 : vector<1x256x128xbf16> to vector<256x128xbf16>
    %cst_58 = arith.constant dense<0.000000e+00> : vector<16x128xf32>
    %62 = tpu.matmul %59, %61, %cst_58 {dimension_numbers = #tpu.dot_dimension_numbers<[1], [0], [0], [1], [0, 0, 1, 1], [], []>} : vector<16x256xbf16>, vector<256x128xbf16>, vector<16x128xf32> -> vector<16x128xf32>
    %63 = arith.addf %57, %62 : vector<16x128xf32>
    %c1_59 = arith.constant 1 : index
    %c0_60 = arith.constant 0 : index
    %c0_61 = arith.constant 0 : index
    %64 = vector.load %arg12[%c1_59, %c0_60, %c0_61] : memref<6x6x256xbf16, #tpu.memory_space<vmem>>, vector<4x4x256xbf16>
    %65 = vector.shape_cast %64 : vector<4x4x256xbf16> to vector<16x256xbf16>
    %c3 = arith.constant 3 : index
    %c0_62 = arith.constant 0 : index
    %c0_63 = arith.constant 0 : index
    %66 = vector.load %arg7[%c3, %c0_62, %c0_63] : memref<9x256x128xbf16, #tpu.memory_space<vmem>>, vector<1x256x128xbf16>
    %67 = vector.shape_cast %66 : vector<1x256x128xbf16> to vector<256x128xbf16>
    %cst_64 = arith.constant dense<0.000000e+00> : vector<16x128xf32>
    %68 = tpu.matmul %65, %67, %cst_64 {dimension_numbers = #tpu.dot_dimension_numbers<[1], [0], [0], [1], [0, 0, 1, 1], [], []>} : vector<16x256xbf16>, vector<256x128xbf16>, vector<16x128xf32> -> vector<16x128xf32>
    %69 = arith.addf %63, %68 : vector<16x128xf32>
    %c1_65 = arith.constant 1 : index
    %c1_66 = arith.constant 1 : index
    %c0_67 = arith.constant 0 : index
    %70 = vector.load %arg12[%c1_65, %c1_66, %c0_67] : memref<6x6x256xbf16, #tpu.memory_space<vmem>>, vector<4x4x256xbf16>
    %71 = vector.shape_cast %70 : vector<4x4x256xbf16> to vector<16x256xbf16>
    %c4 = arith.constant 4 : index
    %c0_68 = arith.constant 0 : index
    %c0_69 = arith.constant 0 : index
    %72 = vector.load %arg7[%c4, %c0_68, %c0_69] : memref<9x256x128xbf16, #tpu.memory_space<vmem>>, vector<1x256x128xbf16>
    %73 = vector.shape_cast %72 : vector<1x256x128xbf16> to vector<256x128xbf16>
    %cst_70 = arith.constant dense<0.000000e+00> : vector<16x128xf32>
    %74 = tpu.matmul %71, %73, %cst_70 {dimension_numbers = #tpu.dot_dimension_numbers<[1], [0], [0], [1], [0, 0, 1, 1], [], []>} : vector<16x256xbf16>, vector<256x128xbf16>, vector<16x128xf32> -> vector<16x128xf32>
    %75 = arith.addf %69, %74 : vector<16x128xf32>
    %c1_71 = arith.constant 1 : index
    %c2_72 = arith.constant 2 : index
    %c0_73 = arith.constant 0 : index
    %76 = vector.load %arg12[%c1_71, %c2_72, %c0_73] : memref<6x6x256xbf16, #tpu.memory_space<vmem>>, vector<4x4x256xbf16>
    %77 = vector.shape_cast %76 : vector<4x4x256xbf16> to vector<16x256xbf16>
    %c5_74 = arith.constant 5 : index
    %c0_75 = arith.constant 0 : index
    %c0_76 = arith.constant 0 : index
    %78 = vector.load %arg7[%c5_74, %c0_75, %c0_76] : memref<9x256x128xbf16, #tpu.memory_space<vmem>>, vector<1x256x128xbf16>
    %79 = vector.shape_cast %78 : vector<1x256x128xbf16> to vector<256x128xbf16>
    %cst_77 = arith.constant dense<0.000000e+00> : vector<16x128xf32>
    %80 = tpu.matmul %77, %79, %cst_77 {dimension_numbers = #tpu.dot_dimension_numbers<[1], [0], [0], [1], [0, 0, 1, 1], [], []>} : vector<16x256xbf16>, vector<256x128xbf16>, vector<16x128xf32> -> vector<16x128xf32>
    %81 = arith.addf %75, %80 : vector<16x128xf32>
    %c2_78 = arith.constant 2 : index
    %c0_79 = arith.constant 0 : index
    %c0_80 = arith.constant 0 : index
    %82 = vector.load %arg12[%c2_78, %c0_79, %c0_80] : memref<6x6x256xbf16, #tpu.memory_space<vmem>>, vector<4x4x256xbf16>
    %83 = vector.shape_cast %82 : vector<4x4x256xbf16> to vector<16x256xbf16>
    %c6 = arith.constant 6 : index
    %c0_81 = arith.constant 0 : index
    %c0_82 = arith.constant 0 : index
    %84 = vector.load %arg7[%c6, %c0_81, %c0_82] : memref<9x256x128xbf16, #tpu.memory_space<vmem>>, vector<1x256x128xbf16>
    %85 = vector.shape_cast %84 : vector<1x256x128xbf16> to vector<256x128xbf16>
    %cst_83 = arith.constant dense<0.000000e+00> : vector<16x128xf32>
    %86 = tpu.matmul %83, %85, %cst_83 {dimension_numbers = #tpu.dot_dimension_numbers<[1], [0], [0], [1], [0, 0, 1, 1], [], []>} : vector<16x256xbf16>, vector<256x128xbf16>, vector<16x128xf32> -> vector<16x128xf32>
    %87 = arith.addf %81, %86 : vector<16x128xf32>
    %c2_84 = arith.constant 2 : index
    %c1_85 = arith.constant 1 : index
    %c0_86 = arith.constant 0 : index
    %88 = vector.load %arg12[%c2_84, %c1_85, %c0_86] : memref<6x6x256xbf16, #tpu.memory_space<vmem>>, vector<4x4x256xbf16>
    %89 = vector.shape_cast %88 : vector<4x4x256xbf16> to vector<16x256xbf16>
    %c7 = arith.constant 7 : index
    %c0_87 = arith.constant 0 : index
    %c0_88 = arith.constant 0 : index
    %90 = vector.load %arg7[%c7, %c0_87, %c0_88] : memref<9x256x128xbf16, #tpu.memory_space<vmem>>, vector<1x256x128xbf16>
    %91 = vector.shape_cast %90 : vector<1x256x128xbf16> to vector<256x128xbf16>
    %cst_89 = arith.constant dense<0.000000e+00> : vector<16x128xf32>
    %92 = tpu.matmul %89, %91, %cst_89 {dimension_numbers = #tpu.dot_dimension_numbers<[1], [0], [0], [1], [0, 0, 1, 1], [], []>} : vector<16x256xbf16>, vector<256x128xbf16>, vector<16x128xf32> -> vector<16x128xf32>
    %93 = arith.addf %87, %92 : vector<16x128xf32>
    %c2_90 = arith.constant 2 : index
    %c2_91 = arith.constant 2 : index
    %c0_92 = arith.constant 0 : index
    %94 = vector.load %arg12[%c2_90, %c2_91, %c0_92] : memref<6x6x256xbf16, #tpu.memory_space<vmem>>, vector<4x4x256xbf16>
    %95 = vector.shape_cast %94 : vector<4x4x256xbf16> to vector<16x256xbf16>
    %c8 = arith.constant 8 : index
    %c0_93 = arith.constant 0 : index
    %c0_94 = arith.constant 0 : index
    %96 = vector.load %arg7[%c8, %c0_93, %c0_94] : memref<9x256x128xbf16, #tpu.memory_space<vmem>>, vector<1x256x128xbf16>
    %97 = vector.shape_cast %96 : vector<1x256x128xbf16> to vector<256x128xbf16>
    %cst_95 = arith.constant dense<0.000000e+00> : vector<16x128xf32>
    %98 = tpu.matmul %95, %97, %cst_95 {dimension_numbers = #tpu.dot_dimension_numbers<[1], [0], [0], [1], [0, 0, 1, 1], [], []>} : vector<16x256xbf16>, vector<256x128xbf16>, vector<16x128xf32> -> vector<16x128xf32>
    %99 = arith.addf %93, %98 : vector<16x128xf32>
    %c0_96 = arith.constant 0 : index
    %c0_97 = arith.constant 0 : index
    %100 = vector.load %arg8[%c0_96, %c0_97] : memref<1x128xf32, #tpu.memory_space<vmem>>, vector<1x128xf32>
    %101 = vector.broadcast %100 : vector<1x128xf32> to vector<16x128xf32>
    %102 = arith.addf %99, %101 : vector<16x128xf32>
    %cst_98 = arith.constant 0.000000e+00 : f32
    %103 = vector.broadcast %cst_98 : f32 to vector<16x128xf32>
    %104 = arith.maximumf %102, %103 : vector<16x128xf32>
    %105 = arith.truncf %104 : vector<16x128xf32> to vector<16x128xbf16>
    %c0_99 = arith.constant 0 : index
    %c0_100 = arith.constant 0 : index
    %106 = vector.load %arg9[%c0_99, %c0_100] : memref<128x128xbf16, #tpu.memory_space<vmem>>, vector<128x128xbf16>
    %cst_101 = arith.constant dense<0.000000e+00> : vector<16x128xf32>
    %107 = tpu.matmul %105, %106, %cst_101 {dimension_numbers = #tpu.dot_dimension_numbers<[1], [0], [0], [1], [0, 0, 1, 1], [], []>} : vector<16x128xbf16>, vector<128x128xbf16>, vector<16x128xf32> -> vector<16x128xf32>
    %c0_102 = arith.constant 0 : index
    %c0_103 = arith.constant 0 : index
    %108 = vector.load %arg10[%c0_102, %c0_103] : memref<1x128xf32, #tpu.memory_space<vmem>>, vector<1x128xf32>
    %109 = vector.broadcast %108 : vector<1x128xf32> to vector<16x128xf32>
    %110 = arith.addf %107, %109 : vector<16x128xf32>
    %111 = vector.shape_cast %110 : vector<16x128xf32> to vector<1x4x4x128xf32>
    %112 = arith.truncf %111 : vector<1x4x4x128xf32> to vector<1x4x4x128xbf16>
    %c0_104 = arith.constant 0 : index
    %c0_105 = arith.constant 0 : index
    %c0_106 = arith.constant 0 : index
    %c0_107 = arith.constant 0 : index
    %113 = vector.load %arg11[%c0_104, %c0_105, %c0_106, %c0_107] : memref<1x4x4x128xbf16, #tpu.memory_space<vmem>>, vector<1x4x4x128xbf16>
    tpu.vector_store %arg11[%c0_104, %c0_105, %c0_106, %c0_107], %112 {strides = array<i32>} : memref<1x4x4x128xbf16, #tpu.memory_space<vmem>>, vector<1x4x4x128xbf16>,
    return
  }
  func.func @transform_0(%arg0: i32, %arg1: i32) -> (i32, i32, i32, i32) {
    %c0_i32 = arith.constant 0 : i32
    %c0_i32_0 = arith.constant 0 : i32
    %c0_i32_1 = arith.constant 0 : i32
    return %arg0, %arg1, %c0_i32, %c0_i32_0 : i32, i32, i32, i32
  }
  func.func @transform_1(%arg0: i32, %arg1: i32) -> (i32, i32, i32, i32) {
    %c4_i32 = arith.constant 4 : i32
    %0 = arith.muli %arg1, %c4_i32 : i32
    %c1_i32 = arith.constant 1 : i32
    %1 = arith.subi %0, %c1_i32 : i32
    %c0_i32 = arith.constant 0 : i32
    %2 = arith.maxsi %1, %c0_i32 : i32
    %c0_i32_0 = arith.constant 0 : i32
    %c0_i32_1 = arith.constant 0 : i32
    %c0_i32_2 = arith.constant 0 : i32
    return %arg0, %2, %c0_i32_0, %c0_i32_1 : i32, i32, i32, i32
  }
  func.func @transform_2(%arg0: i32, %arg1: i32) -> (i32, i32, i32, i32) {
    %c4_i32 = arith.constant 4 : i32
    %0 = arith.muli %arg1, %c4_i32 : i32
    %c4_i32_0 = arith.constant 4 : i32
    %1 = arith.addi %0, %c4_i32_0 : i32
    %c3_i32 = arith.constant 3 : i32
    %2 = arith.minsi %1, %c3_i32 : i32
    %c0_i32 = arith.constant 0 : i32
    %c0_i32_1 = arith.constant 0 : i32
    %c0_i32_2 = arith.constant 0 : i32
    return %arg0, %2, %c0_i32, %c0_i32_1 : i32, i32, i32, i32
  }
  func.func @transform_3(%arg0: i32, %arg1: i32) -> (i32, i32) {
    %c0_i32 = arith.constant 0 : i32
    %c0_i32_0 = arith.constant 0 : i32
    %c0_i32_1 = arith.constant 0 : i32
    return %c0_i32, %c0_i32_0 : i32, i32
  }
  func.func @transform_4(%arg0: i32, %arg1: i32) -> (i32, i32) {
    %c0_i32 = arith.constant 0 : i32
    %c0_i32_0 = arith.constant 0 : i32
    %c0_i32_1 = arith.constant 0 : i32
    return %c0_i32, %c0_i32_0 : i32, i32
  }
  func.func @transform_5(%arg0: i32, %arg1: i32) -> (i32, i32, i32) {
    %c0_i32 = arith.constant 0 : i32
    %c0_i32_0 = arith.constant 0 : i32
    %c0_i32_1 = arith.constant 0 : i32
    %c0_i32_2 = arith.constant 0 : i32
    return %c0_i32, %c0_i32_0, %c0_i32_1 : i32, i32, i32
  }
  func.func @transform_6(%arg0: i32, %arg1: i32) -> (i32, i32) {
    %c0_i32 = arith.constant 0 : i32
    %c0_i32_0 = arith.constant 0 : i32
    %c0_i32_1 = arith.constant 0 : i32
    return %c0_i32, %c0_i32_0 : i32, i32
  }
  func.func @transform_7(%arg0: i32, %arg1: i32) -> (i32, i32) {
    %c0_i32 = arith.constant 0 : i32
    %c0_i32_0 = arith.constant 0 : i32
    %c0_i32_1 = arith.constant 0 : i32
    return %c0_i32, %c0_i32_0 : i32, i32
  }
  func.func @transform_8(%arg0: i32, %arg1: i32) -> (i32, i32) {
    %c0_i32 = arith.constant 0 : i32
    %c0_i32_0 = arith.constant 0 : i32
    %c0_i32_1 = arith.constant 0 : i32
    return %c0_i32, %c0_i32_0 : i32, i32
  }
  func.func @transform_9(%arg0: i32, %arg1: i32) -> (i32, i32, i32, i32) {
    %c0_i32 = arith.constant 0 : i32
    %c0_i32_0 = arith.constant 0 : i32
    %c0_i32_1 = arith.constant 0 : i32
    return %arg0, %arg1, %c0_i32, %c0_i32_0 : i32, i32, i32, i32
  }
}

module attributes {stable_mosaic.version = 11 : i64} {
  func.func @_blend_norm_kernel(%arg0: i32, %arg1: i32, %arg2: memref<1x4x4x128xbf16, #tpu.memory_space<vmem>>, %arg3: memref<1x4x4x128xbf16, #tpu.memory_space<vmem>>, %arg4: memref<1x4x4x1xf32, #tpu.memory_space<vmem>>, %arg5: memref<1x4x4x128xf32, #tpu.memory_space<vmem>>) attributes {dimension_semantics = [#tpu.dimension_semantics<parallel>, #tpu.dimension_semantics<parallel>], iteration_bounds = array<i64: 2, 1>, scalar_prefetch = 0 : i64, scratch_operands = 0 : i64, tpu.core_type = #tpu.core_type<tc>, window_params = [{transform_indices = @transform_0, window_bounds = array<i64: 1, 4, 4, 128>}, {transform_indices = @transform_1, window_bounds = array<i64: 1, 4, 4, 128>}, {transform_indices = @transform_2, window_bounds = array<i64: 1, 4, 4, 1>}, {transform_indices = @transform_3, window_bounds = array<i64: 1, 4, 4, 128>}]} {
    %c0 = arith.constant 0 : index
    %c0_0 = arith.constant 0 : index
    %c0_1 = arith.constant 0 : index
    %c0_2 = arith.constant 0 : index
    %0 = vector.load %arg2[%c0, %c0_0, %c0_1, %c0_2] : memref<1x4x4x128xbf16, #tpu.memory_space<vmem>>, vector<1x4x4x128xbf16>
    %1 = arith.extf %0 : vector<1x4x4x128xbf16> to vector<1x4x4x128xf32>
    %c0_3 = arith.constant 0 : index
    %c0_4 = arith.constant 0 : index
    %c0_5 = arith.constant 0 : index
    %c0_6 = arith.constant 0 : index
    %2 = vector.load %arg3[%c0_3, %c0_4, %c0_5, %c0_6] : memref<1x4x4x128xbf16, #tpu.memory_space<vmem>>, vector<1x4x4x128xbf16>
    %3 = arith.extf %2 : vector<1x4x4x128xbf16> to vector<1x4x4x128xf32>
    %c0_7 = arith.constant 0 : index
    %c0_8 = arith.constant 0 : index
    %c0_9 = arith.constant 0 : index
    %c0_10 = arith.constant 0 : index
    %4 = vector.load %arg4[%c0_7, %c0_8, %c0_9, %c0_10] : memref<1x4x4x1xf32, #tpu.memory_space<vmem>>, vector<1x4x4x1xf32>
    %5 = arith.subf %3, %1 : vector<1x4x4x128xf32>
    %6 = vector.broadcast %4 : vector<1x4x4x1xf32> to vector<1x4x4x128xf32>
    %7 = arith.mulf %6, %5 : vector<1x4x4x128xf32>
    %8 = arith.addf %1, %7 : vector<1x4x4x128xf32>
    %9 = arith.mulf %8, %8 : vector<1x4x4x128xf32>
    %cst = arith.constant dense<0.000000e+00> : vector<1x4x4xf32>
    %10 = vector.multi_reduction <add>, %9, %cst [3] : vector<1x4x4x128xf32> to vector<1x4x4xf32>
    %11 = vector.shape_cast %10 : vector<1x4x4xf32> to vector<1x4x4x1xf32>
    %cst_11 = arith.constant 1.000000e-24 : f32
    %12 = vector.broadcast %cst_11 : f32 to vector<1x4x4x1xf32>
    %13 = arith.maximumf %11, %12 : vector<1x4x4x1xf32>
    %14 = math.rsqrt %13 : vector<1x4x4x1xf32>
    %15 = vector.broadcast %14 : vector<1x4x4x1xf32> to vector<1x4x4x128xf32>
    %16 = arith.mulf %8, %15 : vector<1x4x4x128xf32>
    %c0_12 = arith.constant 0 : index
    %c0_13 = arith.constant 0 : index
    %c0_14 = arith.constant 0 : index
    %c0_15 = arith.constant 0 : index
    %17 = vector.load %arg5[%c0_12, %c0_13, %c0_14, %c0_15] : memref<1x4x4x128xf32, #tpu.memory_space<vmem>>, vector<1x4x4x128xf32>
    tpu.vector_store %arg5[%c0_12, %c0_13, %c0_14, %c0_15], %16 {strides = array<i32>} : memref<1x4x4x128xf32, #tpu.memory_space<vmem>>, vector<1x4x4x128xf32>,
    return
  }
  func.func @transform_0(%arg0: i32, %arg1: i32) -> (i32, i32, i32, i32) {
    %c0_i32 = arith.constant 0 : i32
    %c0_i32_0 = arith.constant 0 : i32
    %c0_i32_1 = arith.constant 0 : i32
    return %arg0, %arg1, %c0_i32, %c0_i32_0 : i32, i32, i32, i32
  }
  func.func @transform_1(%arg0: i32, %arg1: i32) -> (i32, i32, i32, i32) {
    %c0_i32 = arith.constant 0 : i32
    %c0_i32_0 = arith.constant 0 : i32
    %c0_i32_1 = arith.constant 0 : i32
    return %arg0, %arg1, %c0_i32, %c0_i32_0 : i32, i32, i32, i32
  }
  func.func @transform_2(%arg0: i32, %arg1: i32) -> (i32, i32, i32, i32) {
    %c0_i32 = arith.constant 0 : i32
    %c0_i32_0 = arith.constant 0 : i32
    %c0_i32_1 = arith.constant 0 : i32
    return %arg0, %arg1, %c0_i32, %c0_i32_0 : i32, i32, i32, i32
  }
  func.func @transform_3(%arg0: i32, %arg1: i32) -> (i32, i32, i32, i32) {
    %c0_i32 = arith.constant 0 : i32
    %c0_i32_0 = arith.constant 0 : i32
    %c0_i32_1 = arith.constant 0 : i32
    return %arg0, %arg1, %c0_i32, %c0_i32_0 : i32, i32, i32, i32
  }
}

</mosaic_0001>

<bundles_post_ra>
// kernel: multiscale_net_v14_forward.21
= control target key start
LH: loop header
LB: loop body
LE: loop exit
PB: predicated region body
PF: predicated region fallthrough
CT: control target
= control target key end

     0   :  { %s282_s6 = smov 0   ;;  %s315_s0 = inlined_call_operand.vmem [shape: bf16[2,4,3,3,128], index: 0, kind: input, shape index: {}]   ;;  %s316_s1 = inlined_call_operand.vmem [shape: bf16[2,2,2,128], index: 1, kind: output, shape index: {}]  }
   0x1 LB: > { %s246_s7 = sadd.s32 4294967295, %s270_s6   ;;  %p250_p0 = scmp.ge.s32.totalorder %s270_s6, 1  ;;  %s270_s6 = sphi %s282_s6, %s11_s6  }
   0x2   : > { %p87_p1 = scmp.lt.s32.totalorder %s270_s6, 3 }
   0x4   : > { %p88_p2 = pnand %p250_p0, %p87_p1 }
   0x5   : > { %p106_p3 = scmp.lt.s32.totalorder (!%p88_p2), %s246_s7, 1 }
   0x6   : > { %91 = sbr.rel (%p88_p2) target bundleno = 42 (0x2a), region = 24 }
   0xd   : > { %s318_s7 = smov (!%p106_p3, %s246_s7), 1 }
   0xe   : > { %s255_s8 = smul.u32 24, %s318_s7  ;;  %s252_s12 = sshll.u32 %s318_s7, 1 }
   0xf   : > { %s114_s15 = scalar_lea.vmem %s316_s1, %s252_s12 }
  0x10   : > { %s296_s11 = scalar_lea.vmem %s315_s0, %s255_s8 }
  0x11   : > { %v115_v0 = vld [vmem:[%s296_s11] sm:$0x3]  ;;  %v116_v1 = vld [vmem:[%s296_s11 + $0x2] sm:$0x3]  ;;  %v121_v2 = vld [vmem:[%s296_s11 + $0xc] sm:$0x3] }
  0x12   : > { %v122_v3 = vld [vmem:[%s296_s11 + $0xe] sm:$0x3]  ;;  %v118_v4 = vld [vmem:[%s296_s11 + $0x6] sm:$0x3]  ;;  %v128_v5 = vshrl.u32 %v115_v0, 16  ;;  %v131_v6 = vshll.u32 %v115_v0, 16 }
  0x13   : > { %v137_v7 = vshrl.u32 %v116_v1, 16  ;;  %v119_v8 = vld [vmem:[%s296_s11 + $0x8] sm:$0x3]  ;;  %v140_v9 = vshll.u32 %v116_v1, 16  ;;  %v154_v10 = vshrl.u32 %v121_v2, 16  ;;  %v157_v11 = vshll.u32 %v121_v2, 16 }
  0x14   : > { %v163_v12 = vshrl.u32 %v122_v3, 16  ;;  %v130_v13 = vrot.slane %v128_v5, 6  ;;  %v133_v14 = vrot.slane %v131_v6, 7  ;;  %v166_v16 = vshll.u32 %v122_v3, 16  ;;  %v117_v17 = vld [vmem:[%s296_s11 + $0x4] sm:$0x3] }
  0x15   : > { %v139_v15 = vrot.slane %v137_v7, 6  ;;  %v142_v18 = vrot.slane %v140_v9, 7  ;;  %v156_v19 = vrot.slane %v154_v10, 6  ;;  %v159_v20 = vrot.slane %v157_v11, 7  ;;  %v123_v34 = vld [vmem:[%s296_s11 + $0x12] sm:$0x3] }
  0x16   : > { %v165_v21 = vrot.slane %v163_v12, 6  ;;  %v125_v22 = vmax.bf16 %v118_v4, %v115_v0  ;;  %v134_v23 = vor.u32 %v133_v14, %v130_v13  ;;  %v168_v24 = vrot.slane %v166_v16, 7  ;;  %v124_v40 = vld [vmem:[%s296_s11 + $0x14] sm:$0x3]  ;;  %v120_v49 = vld [vmem:[%s296_s11 + $0xa] sm:$0x3] }
  0x17   : > { %v126_v25 = vmax.bf16 %v119_v8, %v116_v1  ;;  %v143_v26 = vor.u32 %v142_v18, %v139_v15  ;;  %v180_v27 = vshrl.u32 %v117_v17, 16  ;;  %v183_v28 = vshll.u32 %v117_v17, 16 }
  0x18   : > { %v135_v29 = vrot.slane %v134_v23, 2  ;;  %v160_v30 = vor.u32 %v159_v20, %v156_v19  ;;  %v169_v32 = vor.u32 %v168_v24, %v165_v21 }
  0x19   : > { %v144_v31 = vrot.slane %v143_v26, 2  ;;  %v182_v36 = vrot.slane %v180_v27, 6  ;;  %v185_v37 = vrot.slane %v183_v28, 7 }
  0x1a   : > { %v147_v33 = vmax.bf16 %v135_v29, %v125_v22  ;;  %v161_v39 = vrot.slane %v160_v30, 2  ;;  %v170_v42 = vrot.slane %v169_v32, 2 }
  0x1b   : > { %v148_v35 = vmax.bf16 %v144_v31, %v126_v25  ;;  %v186_v45 = vor.u32 %v185_v37, %v182_v36 }
  0x1c   : > { %v149_v38 = vmax.bf16 %v147_v33, %v121_v2 }
  0x1d   : > { %v150_v41 = vmax.bf16 %v148_v35, %v122_v3  ;;  %v187_v51 = vrot.slane %v186_v45, 2 }
  0x1e   : > { %v151_v43 = vmax.bf16 %v149_v38, %v123_v34 }
  0x1f   : > { %v152_v44 = vmax.bf16 %v150_v41, %v124_v40 }
  0x20   : > { %v173_v46 = vmax.bf16 %v161_v39, %v151_v43 }
  0x21   : > { %v174_v47 = vmax.bf16 %v170_v42, %v152_v44 }
  0x22   : > { %v175_v48 = vmax.bf16 %v173_v46, %v116_v1 }
  0x23   : > { %v176_v50 = vmax.bf16 %v174_v47, %v117_v17 }
  0x24   : > { %v177_v52 = vmax.bf16 %v175_v48, %v119_v8 }
  0x25   : > { %v178_v53 = vmax.bf16 %v176_v50, %v120_v49 }
  0x26   : > { %v189_v54 = vmax.bf16 %v177_v52, %v144_v31 }
  0x27   : > { %v190_v55 = vmax.bf16 %v187_v51, %v178_v53 }
  0x28   : > { %191 = vst [vmem:[%s114_s15] sm:$0x1] %v189_v54 }
  0x29   : > { %192 = vst [vmem:[%s114_s15 + $0x1] sm:$0x1] %v190_v55 }
  0x2a PF: > { %s11_s6 = sadd.s32 1, %s270_s6  }
  0x2b   : > { %p8_p4 = scmp.ge.s32.totalorder %s11_s6, 4  }
  0x2d   :  { %10 = sbr.rel (!%p8_p4) target bundleno = 1 (0x1), region = 54 }

// kernel: multiscale_net_v14_forward.19
= control target key start
LH: loop header
LB: loop body
LE: loop exit
PB: predicated region body
PF: predicated region fallthrough
CT: control target
= control target key end

     0   :  { %s2789_s17 = smov 0   ;;  %s2791_s18 = smov 0   ;;  %s3247_s0 = inlined_call_operand.vmem [shape: bf16[2,5,5,128], index: 0, kind: input, shape index: {}, may-alias: {0,4}]   ;;  %s3248_s1 = inlined_call_operand.vmem [shape: bf16[2,5,5,128], index: 1, kind: input, shape index: {}, may-alias: {1,5}]   ;;  %s3249_s2 = inlined_call_operand.vmem [shape: bf16[2,5,5,128], index: 2, kind: input, shape index: {}, may-alias: {2,6}]   ;;  %s3250_s3 = inlined_call_operand.vmem [shape: bf16[2,5,5,128], index: 3, kind: input, shape index: {}, may-alias: {3,7}]   ;;  %s3251_s4 = inlined_call_operand.vmem [shape: bf16[2,5,5,128], index: 4, kind: input, shape index: {}, may-alias: {0,4}]   ;;  %s3252_s5 = inlined_call_operand.vmem [shape: bf16[2,5,5,128], index: 5, kind: input, shape index: {}, may-alias: {1,5}]   ;;  %s3253_s6 = inlined_call_operand.vmem [shape: bf16[2,5,5,128], index: 6, kind: input, shape index: {}, may-alias: {2,6}]   ;;  %s3254_s7 = inlined_call_operand.vmem [shape: bf16[2,5,5,128], index: 7, kind: input, shape index: {}, may-alias: {3,7}]   ;;  %s3255_s8 = inlined_call_operand.vmem [shape: bf16[4,256,128], index: 8, kind: input, shape index: {}]   ;;  %s3256_s9 = inlined_call_operand.vmem [shape: bf16[128,128], index: 9, kind: input, shape index: {}]   ;;  %s3257_s10 = inlined_call_operand.vmem [shape: f32[1,128], index: 10, kind: input, shape index: {}]   ;;  %s3258_s11 = inlined_call_operand.vmem [shape: bf16[2,4,4,128], index: 11, kind: output, shape index: {}]  }
   0x1   :  { %s2793_s6 = smov 0  }
   0x2 LB: > { %s33_s7 = sadd.s32 1, %s2720_s18  ;;  %p2286_p0 = scmp.ge.s32.totalorder %s2724_s6, 1  ;;  %s2724_s6 = sphi %s2793_s6, %s21_s6   ;;  %s2720_s18 = sphi %s2791_s18, %s3262_s18   ;;  %s2716_s17 = sphi %s2789_s17, %s3261_s17  }
   0x3   : > { %p35_p1 = scmp.ge.s32.totalorder %s33_s7, 2  ;;  %p565_p2 = scmp.lt.s32.totalorder %s2724_s6, 3 }
   0x5   : > { %s3264_s7 = smov (%p35_p1, %s33_s7), 0  ;;  %p566_p3 = pnand %p2286_p0, %p565_p2 }
   0x6   : > { %v2618_v0 = vld [vmem:[%s3255_s8 + $0xc0] sm:$0xff] (!%p566_p3)   ;;  %p709_p4 = scmp.lt.s32.totalorder (!%p566_p3), %s2716_s17, 1  ;;  %v2622_v4 = vld [vmem:[%s3255_s8 + $0xc8] sm:$0xff] (!%p566_p3)   ;;  %v2626_v8 = vld [vmem:[%s3255_s8 + $0xd0] sm:$0xff] (!%p566_p3)   ;;  %v878_v31 = vlaneseq (!%p566_p3)  ;;  %v2726_v37 = vmov (!%p566_p3), 1983009808  }
   0x7   : > { %569 = sbr.rel (%p566_p3) target bundleno = 346 (0x15a), region = 64  ;;  %v2619_v1 = vld [vmem:[%s3255_s8 + $0x40] sm:$0xff] (!%p566_p3)   ;;  %2471 = vmatprep.subr.bf16.mxu0 (!%p566_p3), %v2618_v0  ;;  %v2623_v5 = vld [vmem:[%s3255_s8 + $0x48] sm:$0xff] (!%p566_p3)   ;;  %v2627_v9 = vld [vmem:[%s3255_s8 + $0x50] sm:$0xff] (!%p566_p3)   ;;  %v876_v38 = vunpack.c.l.s4 (!%p566_p3), %v2726_v37  ;;  %vm977_vm0 = vsmask.f32 (!%p566_p3), 1280 }
   0x8   : > { %v2620_v2 = vld [vmem:[%s3255_s8 + $0x80] sm:$0xff] (!%p566_p3)   ;;  %2493 = vmatprep.subr.bf16.mxu1 (!%p566_p3), %v2619_v1  ;;  %v2624_v6 = vld [vmem:[%s3255_s8 + $0x88] sm:$0xff] (!%p566_p3)   ;;  %v2628_v10 = vld [vmem:[%s3255_s8 + $0x90] sm:$0xff] (!%p566_p3)   ;;  %v879_v39 = vshrl.u32 (!%p566_p3), %v878_v31, 7  ;;  %vm978_vm1 = vsmask.f32 (!%p566_p3), 3336 }
   0x9   : > { %v2621_v3 = vld [vmem:[%s3255_s8] sm:$0xff] (!%p566_p3)   ;;  %2472 = vmatpush3.bf16.msra.mxu0 (!%p566_p3), %v2620_v2  ;;  %v2625_v7 = vld [vmem:[%s3255_s8 + $0x8] sm:$0xff] (!%p566_p3)   ;;  %v2629_v11 = vld [vmem:[%s3255_s8 + $0x10] sm:$0xff] (!%p566_p3)   ;;  %v877_v43 = vunpack.c.0.s8 (!%p566_p3), %v876_v38  ;;  %vm980_vm2 = vsmask.f32 (!%p566_p3), 5392  ;;  %vm2728_vm7 = vmmov (!%p566_p3), 0  }
   0xa   : > { %2494 = vmatpush3.bf16.msra.mxu1 (!%p566_p3), %v2621_v3  ;;  %2473 = vmatprep.subr.bf16.mxu0 (!%p566_p3), %v2622_v4  ;;  %v2630_v12 = vld [vmem:[%s3255_s8 + $0xd8] sm:$0xff] (!%p566_p3)   ;;  %v2634_v16 = vld [vmem:[%s3255_s8 + $0xe0] sm:$0xff] (!%p566_p3)   ;;  %v2638_v20 = vld [vmem:[%s3255_s8 + $0xe8] sm:$0xff] (!%p566_p3)   ;;  %vm982_vm3 = vsmask.f32 (!%p566_p3), 7448 }
   0xb   : > { %2495 = vmatprep.subr.bf16.mxu1 (!%p566_p3), %v2623_v5  ;;  %v2631_v13 = vld [vmem:[%s3255_s8 + $0x58] sm:$0xff] (!%p566_p3)   ;;  %v2635_v17 = vld [vmem:[%s3255_s8 + $0x60] sm:$0xff] (!%p566_p3)   ;;  %v2639_v21 = vld [vmem:[%s3255_s8 + $0x68] sm:$0xff] (!%p566_p3)   ;;  %v2939_v50 = vsub.s32 (!%p566_p3), %v877_v43, %v879_v39 }
   0xc   : > { %v2632_v14 = vld [vmem:[%s3255_s8 + $0x98] sm:$0xff] (!%p566_p3)   ;;  %v2636_v18 = vld [vmem:[%s3255_s8 + $0xa0] sm:$0xff] (!%p566_p3)   ;;  %v2640_v22 = vld [vmem:[%s3255_s8 + $0xa8] sm:$0xff] (!%p566_p3)  }
   0xd   : > { %2474 = vmatpush3.bf16.msra.mxu0 (!%p566_p3), %v2624_v6  ;;  %v2633_v15 = vld [vmem:[%s3255_s8 + $0x18] sm:$0xff] (!%p566_p3)   ;;  %v2637_v19 = vld [vmem:[%s3255_s8 + $0x20] sm:$0xff] (!%p566_p3)   ;;  %v2641_v23 = vld [vmem:[%s3255_s8 + $0x28] sm:$0xff] (!%p566_p3)  }
   0xe   : > { %s3266_s17 = smov (!%p709_p4, %s2716_s17), 1  ;;  %2496 = vmatpush3.bf16.msra.mxu1 %v2625_v7  ;;  %2475 = vmatprep.subr.bf16.mxu0 %v2626_v8  ;;  %v2642_v24 = vld [vmem:[%s3255_s8 + $0xf0] sm:$0xff]   ;;  %v2646_v28 = vld [vmem:[%s3255_s8 + $0xf8] sm:$0xff]   ;;  %v2657_v56 = vld [vmem:[%s3255_s8 + $0x140] sm:$0xff]  }
   0xf   : > { %2497 = vmatprep.subr.bf16.mxu1 %v2627_v9  ;;  %v2643_v25 = vld [vmem:[%s3255_s8 + $0x70] sm:$0xff]   ;;  %s2894_s24 = smul.u32 20, %s3266_s17  ;;  %v2647_v29 = vld [vmem:[%s3255_s8 + $0x78] sm:$0xff]   ;;  %v2659_v1 = vld [vmem:[%s3255_s8 + $0x1c0] sm:$0xff]  }
  0x10   : > { %v2644_v26 = vld [vmem:[%s3255_s8 + $0xb0] sm:$0xff]   ;;  %v2648_v30 = vld [vmem:[%s3255_s8 + $0xb8] sm:$0xff]   ;;  %vm979_vm4 = vmor %vm977_vm0, %vm978_vm1 }
  0x11   : > { %2476 = vmatpush3.bf16.msra.mxu0 %v2628_v10  ;;  %v2645_v27 = vld [vmem:[%s3255_s8 + $0x30] sm:$0xff]   ;;  %s752_s12 = scalar_lea.vmem %s3249_s2, %s2894_s24  ;;  %s2467_s15 = sadd.s32 16, %s2894_s24  ;;  %v2649_v32 = vld [vmem:[%s3255_s8 + $0x38] sm:$0xff]   ;;  %vm981_vm5 = vmor %vm979_vm4, %vm980_vm2 }
  0x12   : > { %2498 = vmatpush3.bf16.msra.mxu1 %v2629_v11  ;;  %2477 = vmatprep.subr.bf16.mxu0 %v2630_v12  ;;  %v861_v33 = vld [vmem:[%s752_s12] sm:$0x7]  ;;  %v862_v34 = vld [vmem:[%s752_s12 + $0x4] sm:$0x7]  ;;  %s734_s22 = scalar_lea.vmem %s3248_s1, %s2894_s24  ;;  %v863_v35 = vld [vmem:[%s752_s12 + $0x8] sm:$0x7]  ;;  %s803_s26 = scalar_lea.vmem %s3252_s5, %s2467_s15 }
  0x13   : > { %2499 = vmatprep.subr.bf16.mxu1 %v2631_v13  ;;  %v864_v36 = vld [vmem:[%s752_s12 + $0xc] sm:$0x7]  ;;  %s2926_s29 = scalar_lea.vmem %s3247_s0, %s2894_s24  ;;  %v856_v40 = vld [vmem:[%s734_s22] sm:$0x7]  ;;  %v2928_v41 = vld [vmem:[%s734_s22 + $0x4] sm:$0x7]  ;;  %v1062_v44 = vcombine.low %v861_v33, %v862_v34  ;;  %v1393_v59 = vrot.slane %v861_v33, %v2939_v50  ;;  %v1401_v60 = vrot.slane %v862_v34, %v2939_v50  ;;  %v1409_v61 = vrot.slane %v863_v35, %v2939_v50  ;;  %s787_s20 = scalar_lea.vmem %s3251_s4, %s2467_s15 }
  0x14   : > { %v2930_v42 = vld [vmem:[%s734_s22 + $0x8] sm:$0x7]  ;;  %v1063_v45 = vcombine.low %v863_v35, %v864_v36  ;;  %v2932_v46 = vld [vmem:[%s734_s22 + $0xc] sm:$0x7]  ;;  %v2934_v47 = vld [vmem:[%s803_s26] sm:$0x7]  ;;  %v895_v48 = vcombine.low %v856_v40, %v2928_v41  ;;  %v1417_v62 = vrot.slane %v864_v36, %v2939_v50  ;;  %s3140_s12 = scalar_lea.vmem %s3250_s3, %s2894_s24 }
  0x15   : > { %2478 = vmatpush3.bf16.msra.mxu0 %v2632_v14  ;;  %v896_v49 = vcombine.low %v2930_v42, %v2932_v46  ;;  %v2942_v51 = vld [vmem:[%s2926_s29 + $0x8] sm:$0x7]  ;;  %v2945_v52 = vld [vmem:[%s2926_s29 + $0xc] sm:$0x7]  ;;  %v1707_v53 = vcombine.low %v2928_v41, %v2930_v42  ;;  %v1708_v54 = vcombine.low %v2932_v46, %v2934_v47  ;;  %v1070_v57 = vrot.slane %v1062_v44, %v2939_v50  ;;  %v2968_v10 = vld [vmem:[%s2926_s29 + $0x4] sm:$0x7] }
  0x16   : > { %2500 = vmatpush3.bf16.msra.mxu1 %v2633_v15  ;;  %2479 = vmatprep.subr.bf16.mxu0 %v2634_v16  ;;  %v874_v55 = vcombine.low %v2942_v51, %v2945_v52  ;;  %v1077_v58 = vrot.slane %v1063_v45, %v2939_v50  ;;  %v903_v63 = vrot.slane %v895_v48, %v2939_v50  ;;  %v1420_v5 = vshrl.u32 %v1393_v59, 16  ;;  %v2977_v15 = vld [vmem:[%s2926_s29] sm:$0x7]  ;;  %vm3031_vm6 = vmor %vm981_vm5, %vm982_vm3  ;;  %v2663_v41 = vld [vmem:[%s3255_s8 + $0x1c8] sm:$0xff]  }
  0x17   : > { %2501 = vmatprep.subr.bf16.mxu1 %v2635_v17  ;;  %v910_v0 = vrot.slane %v896_v49, %v2939_v50  ;;  %v1394_v3 = vcombine.high %v1393_v59, %v1393_v59  ;;  %v1402_v4 = vcombine.high %v1401_v60, %v1401_v60  ;;  %v1410_v6 = vcombine.high %v1409_v61, %v1409_v61 }
  0x18   : > { %v1078_v2 = vcombine.low %v1070_v57, %v1077_v58  ;;  %v1418_v7 = vcombine.high %v1417_v62, %v1417_v62  ;;  %v1423_v8 = vshll.u32 %v1393_v59, 16  ;;  %v1434_v9 = vshrl.u32 %v1401_v60, 16 }
  0x19   : > { %2480 = vmatpush3.bf16.msra.mxu0 %v2636_v18  ;;  %v2970_v11 = vrot.slane %v1420_v5, 6  ;;  %v2972_v12 = vshll.u32 %v1394_v3, 16  ;;  %v1437_v13 = vshll.u32 %v1401_v60, 16  ;;  %v2974_v14 = vshll.u32 %v1402_v4, 16 }
  0x1a   : > { %2502 = vmatpush3.bf16.msra.mxu1 %v2637_v19  ;;  %2481 = vmatprep.subr.bf16.mxu0 %v2638_v20  ;;  %v2979_v16 = vrot.slane %v1423_v8, 7  ;;  %v2981_v17 = vrot.slane %v1434_v9, 6  ;;  %v1448_v18 = vshrl.u32 %v1409_v61, 16  ;;  %v1451_v19 = vshll.u32 %v1409_v61, 16 }
  0x1b   : > { %2503 = vmatprep.subr.bf16.mxu1 %v2639_v21  ;;  %1241 = vmatprep.mubr.bf16.mxu0 %v1078_v2  ;;  %v1431_v20 = vrot.slane %v2972_v12, 7  ;;  %v2989_v21 = vrot.slane %v1437_v13, 7  ;;  %v1465_v31 = vshll.u32 %v1417_v62, 16  ;;  %v3009_v34 = vshll.u32 %v1418_v7, 16 }
  0x1c   : > { %v911_v35 = vcombine.low %v903_v63, %v910_v0  ;;  %v975_v36 = vrot.slane %v2945_v52, %v2939_v50  ;;  %v951_v40 = vrot.slane %v2977_v15, %v2939_v50  ;;  %v959_v43 = vrot.slane %v2968_v10, %v2939_v50 }
  0x1d   : > { %2482 = vmatpush3.bf16.msra.mxu0 %v2640_v22  ;;  %v2991_v22 = vshll.u32 %v1410_v6, 16  ;;  %v3015_v38 = vrot.slane %v1465_v31, 7  ;;  %v967_v44 = vrot.slane %v2942_v51, %v2939_v50  ;;  %v1722_v42 = vrot.slane %v1708_v54, %v2939_v50 }
  0x1e   : > { %2504 = vmatpush3.bf16.msra.mxu1 %v2641_v23  ;;  %2483 = vmatprep.subr.bf16.mxu0 %v2642_v24  ;;  %v873_v23 = vcombine.low %v2977_v15, %v2968_v10  ;;  %v1445_v24 = vrot.slane %v2974_v14, 7  ;;  %v976_v45 = vcombine.high %v975_v36, %v975_v36  ;;  %v1027_v48 = vshrl.u32 %v975_v36, 16 }
  0x1f   : > { %2505 = vmatprep.subr.bf16.mxu1 %v2643_v25  ;;  %v2996_v25 = vrot.slane %v1448_v18, 6  ;;  %1378 = vmatprep.mubr.bf16.mxu1 %v911_v35  ;;  %v952_v59 = vcombine.high %v951_v40, %v951_v40  ;;  %v960_v60 = vcombine.high %v959_v43, %v959_v43  ;;  %v968_v61 = vcombine.high %v967_v44, %v967_v44 }
  0x20   : > { %v988_v2 = vshll.u32 %v951_v40, 16  ;;  %v999_v5 = vshrl.u32 %v959_v43, 16  ;;  %v1002_v6 = vshll.u32 %v959_v43, 16  ;;  %v1013_v9 = vshrl.u32 %v967_v44, 16 }
  0x21   : > { %2484 = vmatpush3.bf16.msra.mxu0 %v2644_v26  ;;  %v2998_v26 = vrot.slane %v1451_v19, 7  ;;  %v994_v4 = vshll.u32 %v952_v59, 16  ;;  %v1008_v8 = vshll.u32 %v960_v60, 16  ;;  %v1016_v13 = vshll.u32 %v967_v44, 16 }
  0x22   : > { %2506 = vmatpush3.bf16.msra.mxu1 %v2645_v27  ;;  %2485 = vmatprep.subr.bf16.mxu0 %v2646_v28  ;;  %v1462_v27 = vshrl.u32 %v1417_v62, 16  ;;  %v1426_v28 = vor.u32 %v2979_v16, %v2970_v11  ;;  %v985_v62 = vshrl.u32 %v951_v40, 16  ;;  %v990_v7 = vrot.slane %v988_v2, 7  ;;  %v2662_v40 = vld [vmem:[%s3255_s8 + $0x108] sm:$0xff]  }
  0x23   : > { %2507 = vmatprep.subr.bf16.mxu1 %v2647_v29  ;;  %v1440_v29 = vor.u32 %v2989_v21, %v2981_v17  ;;  %v1454_v37 = vor.u32 %v2998_v26, %v2996_v25  ;;  %v996_v18 = vrot.slane %v994_v4, 7  ;;  %v1001_v19 = vrot.slane %v999_v5, 6  ;;  %v2667_v25 = vld [vmem:[%s3255_s8 + $0x1d0] sm:$0xff]  }
  0x24   : > { %v3007_v33 = vrot.slane %v1462_v27, 6  ;;  %v987_v3 = vrot.slane %v985_v62, 6  ;;  %v1004_v27 = vrot.slane %v1002_v6, 7  ;;  %v1022_v31 = vshll.u32 %v968_v61, 16 }
  0x25   : > { %2486 = vmatpush3.bf16.msra.mxu0 %v2648_v30  ;;  %v1459_v30 = vrot.slane %v2991_v22, 7  ;;  %v1029_v59 = vrot.slane %v1027_v48, 6  ;;  %v1030_v62 = vshll.u32 %v975_v36, 16  ;;  %v1036_v44 = vshll.u32 %v976_v45, 16  ;;  %v2661_v22 = vld [vmem:[%s3255_s8 + $0x148] sm:$0xff]  }
  0x26   : > { %2508 = vmatpush3.bf16.msra.mxu1 %v2649_v32  ;;  %2515 = vmatprep.subr.bf16.mxu0 %v2657_v56  ;;  %v3005_v32 = vld [vmem:[%s787_s20] sm:$0x7]  ;;  %v1468_v49 = vor.u32 %v3015_v38, %v3007_v33  ;;  %v991_v35 = vor.u32 %v990_v7, %v987_v3  ;;  %v1005_v43 = vor.u32 %v1004_v27, %v1001_v19  ;;  %v1441_v16 = vrot.slane %v1440_v29, 2  ;;  %s2470_s20 = sshll.u32 %s3266_s17, 3 }
  0x27   : > { %2537 = vmatprep.subr.bf16.mxu1 %v2659_v1  ;;  %v1903_v39 = vrot.slane %v3005_v32, %v2939_v50  ;;  %v1032_v6 = vrot.slane %v1030_v62, 7  ;;  %v881_v3 = vrot.slane %v873_v23, %v2939_v50  ;;  %v888_v45 = vrot.slane %v874_v55, %v2939_v50  ;;  %v2675_v62 = vld [vmem:[%s3255_s8 + $0x1e0] sm:$0xff]   ;;  %s848_s22 = scalar_lea.vmem %s3258_s11, %s2470_s20 }
  0x28   : > { %v992_v60 = vrot.slane %v991_v35, 2  ;;  %v1006_v5 = vrot.slane %v1005_v43, 2  ;;  %v1715_v15 = vrot.slane %v1707_v53, %v2939_v50  ;;  %v1427_v55 = vrot.slane %v1426_v28, 2  ;;  %v2668_v35 = vld [vmem:[%s3255_s8 + $0x190] sm:$0xff]  }
  0x29   : > { %v1904_v56 = vcombine.high %v1903_v39, %v1903_v39  ;;  %v1906_v57 = vshrl.u32 %v1903_v39, 16  ;;  %v1909_v58 = vshll.u32 %v1903_v39, 16  ;;  %v1010_v39 = vrot.slane %v1008_v8, 7  ;;  %v2665_v43 = vld [vmem:[%s3255_s8 + $0x150] sm:$0xff]  }
  0x2a   : > { %v997_v7 = vsel %vm3031_vm6, %v992_v60, %v996_v18  ;;  %v1033_v48 = vor.u32 %v1032_v6, %v1029_v59  ;;  %v889_v27 = vcombine.low %v881_v3, %v888_v45  ;;  %v1473_v53 = vrot.slane %v3009_v34, 7  ;;  %v2672_v59 = vld [vmem:[%s3255_s8 + $0x198] sm:$0xff]   ;;  %v2666_v60 = vld [vmem:[%s3255_s8 + $0x110] sm:$0xff]   ;;  %v2673_v6 = vld [vmem:[%s3255_s8 + $0x160] sm:$0xff]  }
  0x2b   : > { %v1908_v63 = vrot.slane %v1906_v57, 6  ;;  %v1911_v0 = vrot.slane %v1909_v58, 7  ;;  %v1915_v1 = vshll.u32 %v1904_v56, 16  ;;  %v1015_v57 = vrot.slane %v1013_v9, 6  ;;  %v2683_v3 = vld [vmem:[%s3255_s8 + $0x1f0] sm:$0xff]   ;;  %v2688_v45 = vld [vmem:[%s3255_s8 + $0x1b8] sm:$0xff]  }
  0x2c   : > { %v1018_v58 = vrot.slane %v1016_v13, 7  ;;  %v1024_v56 = vrot.slane %v1022_v31, 7  ;;  %v1038_v9 = vrot.slane %v1036_v44, 7  ;;  %v1011_v36 = vsel %vm3031_vm6, %v1006_v5, %v1010_v39  ;;  %1379 = vmatmul.mubr.bf16.vlgmr.msra.gmra.mrb[0].mxu1 %v889_v27  ;;  %v2676_v44 = vld [vmem:[%s3255_s8 + $0x1a0] sm:$0xff]   ;;  %v2670_v5 = vld [vmem:[%s3255_s8 + $0x118] sm:$0xff]   ;;  %v2693_v27 = vld [vmem:[%s3256_s9 + $0x8] sm:$0xff]  }
  0x2d   : > { %v1912_v4 = vor.u32 %v1911_v0, %v1908_v63  ;;  %v1917_v61 = vrot.slane %v1915_v1, 7  ;;  %v1040_v63 = vcombine.low %v997_v7, %v1011_v36  ;;  %v2660_v1 = vld [vmem:[%s3255_s8 + $0x180] sm:$0xff]   ;;  %v1034_v18 = vrot.slane %v1033_v48, 2  ;;  %v2681_v48 = vld [vmem:[%s3255_s8 + $0x170] sm:$0xff]  }
  0x2e   : > { %v1019_v2 = vor.u32 %v1018_v58, %v1015_v57  ;;  %v1432_v11 = vsel %vm3031_vm6, %v1427_v55, %v1431_v20  ;;  %v1455_v46 = vrot.slane %v1454_v37, 2  ;;  %v1723_v47 = vcombine.low %v1715_v15, %v1722_v42  ;;  %2538 = vmatpush3.bf16.msra.mxu1 %v2660_v1  ;;  %v2664_v20 = vld [vmem:[%s3255_s8 + $0x188] sm:$0xff]   ;;  %v2671_v57 = vld [vmem:[%s3255_s8 + $0x1d8] sm:$0xff]  }
  0x2f   : > { %v1913_v13 = vrot.slane %v1912_v4, 2  ;;  %v1039_v28 = vsel %vm3031_vm6, %v1034_v18, %v1038_v9  ;;  %v1048_v31 = vrot.slane %v1040_v63, %v2939_v50  ;;  %v1446_v17 = vsel %vm3031_vm6, %v1441_v16, %v1445_v24  ;;  %2539 = vmatprep.subr.bf16.mxu1 %v2663_v41  ;;  %v2658_v24 = vld [vmem:[%s3255_s8 + $0x100] sm:$0xff]   ;;  %v2679_v4 = vld [vmem:[%s3255_s8 + $0x1e8] sm:$0xff]   ;;  %v2682_v63 = vld [vmem:[%s3255_s8 + $0x130] sm:$0xff]  }
  0x30   : > { %v1020_v8 = vrot.slane %v1019_v2, 2  ;;  %v1469_v21 = vrot.slane %v1468_v49, 2  ;;  %v1460_v26 = vsel %vm3031_vm6, %v1455_v46, %v1459_v30  ;;  %v1497_v29 = vcombine.low %v1432_v11, %v1446_v17  ;;  %1886 = vmatprep.mubr.bf16.mxu1 %v1723_v47  ;;  %v2669_v2 = vld [vmem:[%s3255_s8 + $0x158] sm:$0xff]   ;;  %v2691_v18 = vld [vmem:[%s3256_s9] sm:$0xff]   ;;  %v2694_v41 = vld [vmem:[%s3256_s9 + $0x10] sm:$0xff]  }
  0x31   : > { %v1918_v0 = vsel %vm3031_vm6, %v1913_v13, %v1917_v61  ;;  %v2680_v61 = vld [vmem:[%s3255_s8 + $0x1a8] sm:$0xff]   ;;  %v1689_v7 = vcombine.low %v2945_v52, %v3005_v32  ;;  %v1688_v9 = vcombine.low %v2968_v10, %v2942_v51  ;;  %v2684_v52 = vld [vmem:[%s3255_s8 + $0x1b0] sm:$0xff]   ;;  %v2687_v32 = vld [vmem:[%s3255_s8 + $0x1f8] sm:$0xff]  }
  0x32   : > { %v1025_v23 = vsel %vm3031_vm6, %v1020_v8, %v1024_v56  ;;  %v1936_v12 = vcombine.low %v1039_v28, %v1918_v0  ;;  %v1474_v33 = vsel %vm3031_vm6, %v1469_v21, %v1473_v53  ;;  %v1505_v38 = vrot.slane %v1497_v29, %v2939_v50  ;;  %2540 = vmatpush3.bf16.msra.mxu1 %v2664_v20  ;;  %v2674_v8 = vld [vmem:[%s3255_s8 + $0x120] sm:$0xff]   ;;  %v2677_v13 = vld [vmem:[%s3255_s8 + $0x168] sm:$0xff]   ;;  %v2686_v1 = vld [vmem:[%s3255_s8 + $0x138] sm:$0xff]  }
  0x33   : > { %v1935_v19 = vcombine.low %v1011_v36, %v1025_v23  ;;  %v1041_v54 = vcombine.low %v1025_v23, %v1039_v28  ;;  %v1498_v30 = vcombine.low %v1460_v26, %v1474_v33  ;;  %2541 = vmatprep.subr.bf16.mxu1 %v2667_v25  ;;  %v2678_v51 = vld [vmem:[%s3255_s8 + $0x128] sm:$0xff]   ;;  %v1696_v10 = vrot.slane %v1688_v9, %v2939_v50  ;;  %v2700_v15 = vld.sshfl [vmem:[%s3140_s12] sm:$0x5f pattern:$0x76325410]  ;;  %v2695_v42 = vld [vmem:[%s3256_s9 + $0x18] sm:$0xff]  }
  0x34   : > { %v3109_v37 = vrot.slane %v1936_v12, %v2939_v50  ;;  %v1703_v36 = vrot.slane %v1689_v7, %v2939_v50  ;;  %v2701_v23 = vld.sshfl [vmem:[%s3140_s12 + $0x8] sm:$0x5f pattern:$0x76325410]  ;;  %v2696_v53 = vld [vmem:[%s3256_s9 + $0x20] sm:$0xff]   ;;  %v2698_v16 = vld [vmem:[%s3256_s9 + $0x30] sm:$0xff]  }
  0x35   : > { %v1055_v14 = vrot.slane %v1041_v54, %v2939_v50  ;;  %v3106_v34 = vrot.slane %v1935_v19, %v2939_v50  ;;  %v1512_v58 = vrot.slane %v1498_v30, %v2939_v50  ;;  %v2685_v50 = vld [vmem:[%s3255_s8 + $0x178] sm:$0xff]   ;;  %v1495_v55 = vcombine.low %v2700_v15, %v2701_v23  ;;  %v2697_v11 = vld [vmem:[%s3256_s9 + $0x28] sm:$0xff]  }
  0x36   : > { %2542 = vmatpush3.bf16.msra.mxu1 %v2668_v35  ;;  %v1704_v0 = vcombine.low %v1696_v10, %v1703_v36  ;;  %v2727_v19 = vmov 0.0   ;;  %v2699_v28 = vld [vmem:[%s3256_s9 + $0x38] sm:$0xff]  }
  0x37   : > { %v1056_v49 = vcombine.low %v1048_v31, %v1055_v14  ;;  %v1951_v39 = vcombine.low %v3106_v34, %v3109_v37  ;;  %v1513_v56 = vcombine.low %v1505_v38, %v1512_v58  ;;  %2543 = vmatprep.subr.bf16.mxu1 %v2671_v57 }
  0x39   : > { %1242 = vmatmul.mubr.bf16.vlgmr.msra.gmra.mrb[0].mxu0 %v1056_v49 }
  0x3a   : > { %2516 = vmatpush3.bf16.msra.mxu0 %v2658_v24  ;;  %1676 = vmatprep.mubr.bf16.mxu0 %v1513_v56 }
  0x3b   : > { %2517 = vmatprep.subr.bf16.mxu0 %v2661_v22  ;;  %2544 = vmatpush3.bf16.msra.mxu1 %v2672_v59 }
  0x3c   : > { %2545 = vmatprep.subr.bf16.mxu1 %v2675_v62 }
  0x3e   : > { %2518 = vmatpush3.bf16.msra.mxu0 %v2662_v40 }
  0x3f   : > { %2519 = vmatprep.subr.bf16.mxu0 %v2665_v43  ;;  %2546 = vmatpush3.bf16.msra.mxu1 %v2676_v44  ;;  %v2463_v44 = vld [vmem:[%s3257_s10] ss:$0 sm:$0xff] }
  0x40   : > { %2547 = vmatprep.subr.bf16.mxu1 %v2679_v4 }
  0x42   : > { %2520 = vmatpush3.bf16.msra.mxu0 %v2666_v60 }
  0x43   : > { %2521 = vmatprep.subr.bf16.mxu0 %v2669_v2  ;;  %2548 = vmatpush3.bf16.msra.mxu1 %v2680_v61 }
  0x44   : > { %2549 = vmatprep.subr.bf16.mxu1 %v2683_v3 }
  0x46   : > { %2522 = vmatpush3.bf16.msra.mxu0 %v2670_v5 }
  0x47   : > { %2523 = vmatprep.subr.bf16.mxu0 %v2673_v6  ;;  %2550 = vmatpush3.bf16.msra.mxu1 %v2684_v52 }
  0x48   : > { %2551 = vmatprep.subr.bf16.mxu1 %v2687_v32 }
  0x4a   : > { %2524 = vmatpush3.bf16.msra.mxu0 %v2674_v8 }
  0x4b   : > { %2525 = vmatprep.subr.bf16.mxu0 %v2677_v13  ;;  %2552 = vmatpush3.bf16.msra.mxu1 %v2688_v45 }
  0x4e   : > { %2526 = vmatpush3.bf16.msra.mxu0 %v2678_v51  ;;  %1887 = vmatmul.mubr.bf16.vlgmr.msra.gmra.mrb[4].mxu1 %v1704_v0 }
  0x4f   : > { %2527 = vmatprep.subr.bf16.mxu0 %v2681_v48 }
  0x52   : > { %2528 = vmatpush3.bf16.msra.mxu0 %v2682_v63 }
  0x53   : > { %2529 = vmatprep.subr.bf16.mxu0 %v2685_v50 }
  0x56   : > { %2530 = vmatpush3.bf16.msra.mxu0 %v2686_v1 }
  0x57   : > { %2568 = vmatprep.subr.bf16.mxu0 %v2727_v19 }
  0x59   : > { %1677 = vmatmul.mubr.bf16.vlgmr.msra.gmra.mrb[4].mxu0 %v1495_v55 }
  0x5a   : > { %2569 = vmatpush3.bf16.msra.mxu0 %v2691_v18  ;;  %2584 = vmatprep.mubr.msk.bf16.mxu0 %vm2728_vm7, %v2727_v19 }
  0x5b   : > { %2570 = vmatprep.subr.bf16.mxu0 %v2727_v19 }
  0x5e   : > { %2571 = vmatpush3.bf16.msra.mxu0 %v2693_v27 }
  0x5f   : > { %2572 = vmatprep.subr.bf16.mxu0 %v2727_v19 }
  0x62   : > { %2573 = vmatpush3.bf16.msra.mxu0 %v2694_v41 }
  0x63   : > { %2574 = vmatprep.subr.bf16.mxu0 %v2727_v19 }
  0x66   : > { %2575 = vmatpush3.bf16.msra.mxu0 %v2695_v42 }
  0x67   : > { %2576 = vmatprep.subr.bf16.mxu0 %v2727_v19 }
  0x6a   : > { %2577 = vmatpush3.bf16.msra.mxu0 %v2696_v53 }
  0x6b   : > { %2578 = vmatprep.subr.bf16.mxu0 %v2727_v19 }
  0x6e   : > { %2579 = vmatpush3.bf16.msra.mxu0 %v2697_v11 }
  0x6f   : > { %2580 = vmatprep.subr.bf16.mxu0 %v2727_v19 }
  0x72   : > { %2581 = vmatpush3.bf16.msra.mxu0 %v2698_v16 }
  0x73   : > { %2582 = vmatprep.subr.bf16.mxu0 %v2727_v19 }
  0x76   : > { %2583 = vmatpush3.bf16.msra.mxu0 %v2699_v28 }
  0x79   : > { %2585 = vmatmul.mubr.bf16.vlgmr.msra.gmra.mrb[8].mxu0 %v1951_v39 }
  0xff   : > { %v2509_v31 = vpop.f32.mrb[0].mxu1 }
 0x100   : > { %v2510_v46 = vpop.f32.mrb[1].mxu1 }
 0x101   : > { %v2511_v47 = vadd.f32 %v2510_v46, %v2509_v31  ;;  %v2512_v54 = vpop.f32.mrb[2].mxu1 }
 0x102   : > { %v2513_v12 = vpop.f32.mrb[3].mxu1 }
 0x103   : > { %v2514_v20 = vadd.f32 %v2513_v12, %v2512_v54 }
 0x10c   : > { %v2487_v17 = vpop.f32.mrb[0].mxu0 }
 0x10d   : > { %v2488_v21 = vpop.f32.mrb[1].mxu0 }
 0x10e   : > { %v2489_v25 = vadd.f32 %v2488_v21, %v2487_v17  ;;  %v2490_v26 = vpop.f32.mrb[2].mxu0 }
 0x10f   : > { %v2491_v29 = vpop.f32.mrb[3].mxu0 }
 0x110   : > { %v1381_v14 = vadd.f32 %v2511_v47, %v2489_v25  ;;  %v2492_v24 = vadd.f32 %v2491_v29, %v2490_v26 }
 0x112   : > { %v1384_v33 = vadd.f32 %v2514_v20, %v2492_v24 }
 0x121   : > { %v2553_v22 = vpop.f32.mrb[4].mxu1 }
 0x122   : > { %v2554_v30 = vpop.f32.mrb[5].mxu1 }
 0x123   : > { %v2555_v38 = vadd.f32 %v2554_v30, %v2553_v22  ;;  %v2556_v49 = vpop.f32.mrb[6].mxu1 }
 0x124   : > { %v2557_v34 = vpop.f32.mrb[7].mxu1 }
 0x125   : > { %v2558_v37 = vadd.f32 %v2557_v34, %v2556_v49 }
 0x12c   : > { %v2531_v35 = vpop.f32.mrb[4].mxu0 }
 0x12d   : > { %v2532_v39 = vpop.f32.mrb[5].mxu0 }
 0x12e   : > { %v2533_v57 = vadd.f32 %v2532_v39, %v2531_v35  ;;  %v2534_v58 = vpop.f32.mrb[6].mxu0 }
 0x12f   : > { %v2535_v40 = vpop.f32.mrb[7].mxu0 }
 0x130   : > { %v1685_v43 = vadd.f32 %v2533_v57, %v1381_v14  ;;  %v2536_v56 = vadd.f32 %v2535_v40, %v2534_v58 }
 0x132   : > { %v1686_v59 = vadd.f32 %v2536_v56, %v1384_v33  ;;  %v1895_v62 = vadd.f32 %v2555_v38, %v1685_v43 }
 0x134   : > { %v1896_v60 = vadd.f32 %v2558_v37, %v1686_v59 }
 0x14c   : > { %v2035_v2 = vpop.f32.mrb[8].mxu0 }
 0x14d   : > { %v2042_v4 = vadd.f32 %v2035_v2, %v1895_v62  ;;  %v2586_v5 = vpop.f32.mrb[9].mxu0 }
 0x14e   : > { %v2038_v6 = vpop.f32.mrb[10].mxu0 }
 0x14f   : > { %v2051_v61 = vadd.f32 %v2463_v44, %v2042_v4  ;;  %v2043_v3 = vadd.f32 %v2038_v6, %v1896_v60  ;;  %v2587_v7 = vpop.f32.mrb[11].mxu0 }
 0x151   : > { %v2053_v8 = vmax.f32 %v2051_v61, 0.0  ;;  %v2052_v9 = vadd.f32 %v2463_v44, %v2043_v3 }
 0x153   : > { %v2057_v13 = vcombine.high %v2053_v8, %v2053_v8  ;;  %v2061_v52 = vpack.c.bf16 %v2053_v8, %v2053_v8  ;;  %v2054_v32 = vmax.f32 %v2052_v9, 0.0 }
 0x155   : > { %v2062_v51 = vpack.c.bf16 %v2057_v13, %v2057_v13  ;;  %2065 = vst [vmem:[%s848_s22] sm:$0x3] %v2061_v52  ;;  %v2058_v10 = vcombine.high %v2054_v32, %v2054_v32  ;;  %v2063_v36 = vpack.c.bf16 %v2054_v32, %v2054_v32 }
 0x157   : > { %2066 = vst [vmem:[%s848_s22 + $0x2] sm:$0x3] %v2062_v51  ;;  %v2064_v48 = vpack.c.bf16 %v2058_v10, %v2058_v10  ;;  %2067 = vst [vmem:[%s848_s22 + $0x4] sm:$0x3] %v2063_v36 }
 0x159   : > { %2068 = vst [vmem:[%s848_s22 + $0x6] sm:$0x3] %v2064_v48 }
 0x15a PF: > { %s21_s6 = sadd.s32 1, %s2724_s6   ;;  %s3261_s17 = smov %s2720_s18 }
 0x15b   : > { %p18_p5 = scmp.ge.s32.totalorder %s21_s6, 4   ;;  %s3262_s18 = smov %s3264_s7 }
 0x15d   :  { %20 = sbr.rel (!%p18_p5) target bundleno = 2 (0x2), region = 118 }

// kernel: multiscale_net_v14_forward.18
= control target key start
LH: loop header
LB: loop body
LE: loop exit
PB: predicated region body
PF: predicated region fallthrough
CT: control target
= control target key end

     0   :  { %s3978_s30 = smov 0   ;;  %s3980_s10 = smov 0   ;;  %s4753_s0 = inlined_call_operand.vmem [shape: bf16[2,5,5,32], index: 0, kind: input, shape index: {}]   ;;  %s4754_s1 = inlined_call_operand.vmem [shape: bf16[2,5,5,32], index: 1, kind: input, shape index: {}]   ;;  %s4755_s2 = inlined_call_operand.vmem [shape: bf16[2,5,5,32], index: 2, kind: input, shape index: {}]   ;;  %s4756_s3 = inlined_call_operand.vmem [shape: bf16[2,5,5,32], index: 3, kind: input, shape index: {}]   ;;  %s4757_s4 = inlined_call_operand.vmem [shape: bf16[32,128], index: 4, kind: input, shape index: {}]   ;;  %s4758_s5 = inlined_call_operand.vmem [shape: f32[1,128], index: 5, kind: input, shape index: {}]   ;;  %s4759_s6 = inlined_call_operand.vmem [shape: bf16[2,5,5,128], index: 6, kind: output, shape index: {0}]   ;;  %s4760_s7 = inlined_call_operand.vmem [shape: bf16[2,5,5,128], index: 7, kind: output, shape index: {1}]   ;;  %s4761_s8 = inlined_call_operand.vmem [shape: bf16[2,5,5,128], index: 8, kind: output, shape index: {2}]   ;;  %s4762_s9 = inlined_call_operand.vmem [shape: bf16[2,5,5,128], index: 9, kind: output, shape index: {3}]  }
   0x1   :  { %s3982_s11 = smov 0  }
   0x2 LB: > { %s32_s12 = sadd.s32 1, %s3921_s10  ;;  %p3745_p0 = scmp.ge.s32.totalorder %s3925_s11, 1  ;;  %s3925_s11 = sphi %s3982_s11, %s20_s11   ;;  %s3921_s10 = sphi %s3980_s10, %s4770_s10   ;;  %s3917_s30 = sphi %s3978_s30, %s4769_s30  }
   0x3   : > { %p34_p1 = scmp.ge.s32.totalorder %s32_s12, 2  ;;  %p372_p2 = scmp.lt.s32.totalorder %s3925_s11, 3 }
   0x5   : > { %s4772_s12 = smov (%p34_p1, %s32_s12), 0  ;;  %p373_p3 = pnand %p3745_p0, %p372_p2 }
   0x6   : > { %v3999_v0 = vld [vmem:[%s4757_s4] sm:$0xff] (!%p373_p3)   ;;  %p471_p4 = scmp.lt.s32.totalorder (!%p373_p3), %s3917_s30, 1  ;;  %v577_v1 = vlaneseq (!%p373_p3)  ;;  %v4004_v2 = vld [vmem:[%s4757_s4 + $0x8] sm:$0xff] (!%p373_p3)   ;;  %v3927_v3 = vmov (!%p373_p3), 1966171168   ;;  %vm825_vm0 = vcmask (!%p373_p3), 261120  }
   0x7   : > { %376 = sbr.rel (%p373_p3) target bundleno = 382 (0x17e), region = 44  ;;  %3843 = vmatprep.subr.bf16.mxu0 (!%p373_p3), %v3999_v0  ;;  %3851 = vmatprep.subr.bf16.mxu1 (!%p373_p3), %v3999_v0  ;;  %v575_v4 = vunpack.c.l.s4 (!%p373_p3), %v3927_v3  ;;  %vm1255_vm1 = vcmask (!%p373_p3), 1042432   ;;  %vm1256_vm2 = vsmask.f32 (!%p373_p3), 2304  ;;  %vm1273_vm3 = vcmask (!%p373_p3), 1040384  }
   0x8   : > { %3844 = vmatpush3.bf16.msra.mxu0 (!%p373_p3), %v3999_v0  ;;  %3852 = vmatpush3.bf16.msra.mxu1 (!%p373_p3), %v3999_v0  ;;  %v578_v5 = vshrl.u32 (!%p373_p3), %v577_v1, 7  ;;  %vm1274_vm4 = vsmask.f32 (!%p373_p3), 256  ;;  %vm4271_vm5 = vmand (!%p373_p3), %vm1255_vm1, %vm1256_vm2  ;;  %vm1993_vm7 = vcmask (!%p373_p3), 1042434  }
   0x9   : > { %3845 = vmatprep.subr.bf16.mxu0 (!%p373_p3), %v4004_v2  ;;  %3853 = vmatprep.subr.bf16.mxu1 (!%p373_p3), %v4004_v2  ;;  %v576_v6 = vunpack.c.0.s8 (!%p373_p3), %v575_v4  ;;  %vm4325_vm6 = vmand (!%p373_p3), %vm1273_vm3, %vm1274_vm4 }
   0xa   : > { %vm4399_vm8 = vmand (!%p373_p3), %vm1993_vm7, %vm1256_vm2 }
   0xb   : > { %v4023_v8 = vsub.s32 (!%p373_p3), %v576_v6, %v578_v5 }
   0xc   : > { %3846 = vmatpush3.bf16.msra.mxu0 (!%p373_p3), %v4004_v2  ;;  %3854 = vmatpush3.bf16.msra.mxu1 (!%p373_p3), %v4004_v2 }
   0xd   : > { %3859 = vmatprep.subr.bf16.mxu0 (!%p373_p3), %v3999_v0  ;;  %3867 = vmatprep.subr.bf16.mxu1 (!%p373_p3), %v3999_v0 }
   0xe   : > { %s4774_s30 = smov (!%p471_p4, %s3917_s30), 1 }
   0xf   : > { %s4012_s17 = smul.u32 20, %s4774_s30 }
  0x11   : > { %s4018_s20 = scalar_lea.vmem %s4753_s0, %s4012_s17  ;;  %s4035_s23 = scalar_lea.vmem %s4754_s1, %s4012_s17 }
  0x12   : > { %v3754_v7 = vld.sshfl [vmem:[%s4018_s20] sm:$0x13 pattern:$0x75316420]  ;;  %s4086_s26 = scalar_lea.vmem %s4755_s2, %s4012_s17  ;;  %s4114_s29 = scalar_lea.vmem %s4756_s3, %s4012_s17 }
  0x13   : > { %v3755_v9 = vld.sshfl [vmem:[%s4018_s20 + $0x4] sm:$0x13 pattern:$0x75316420]  ;;  %v573_v10 = vcombine.high %v3754_v7, %v3754_v7  ;;  %v580_v12 = vrot.slane %v3754_v7, %v4023_v8  ;;  %s4256_s16 = scalar_lea.vmem %s4759_s6, %s4012_s17 }
  0x14   : > { %v3756_v11 = vld.sshfl [vmem:[%s4018_s20 + $0x8] sm:$0x13 pattern:$0x75316420]  ;;  %v596_v13 = vcombine.high %v3755_v9, %v3755_v9  ;;  %v603_v14 = vrot.slane %v3755_v9, %v4023_v8 }
  0x15   : > { %v3757_v15 = vld.sshfl [vmem:[%s4018_s20 + $0xc] sm:$0x13 pattern:$0x75316420]  ;;  %v587_v16 = vrot.slane %v573_v10, %v4023_v8  ;;  %v619_v17 = vcombine.high %v3756_v11, %v3756_v11  ;;  %v626_v18 = vrot.slane %v3756_v11, %v4023_v8  ;;  %v588_v19 = vcombine.high %v580_v12, %v580_v12 }
  0x16   : > { %v610_v20 = vrot.slane %v596_v13, %v4023_v8  ;;  %v611_v21 = vcombine.high %v603_v14, %v603_v14  ;;  %v642_v22 = vcombine.high %v3757_v15, %v3757_v15  ;;  %v3773_v23 = vld.sshfl [vmem:[%s4035_s23] sm:$0x13 pattern:$0x75316420]  ;;  %v4044_v26 = vrot.slane %v3757_v15, %v4023_v8 }
  0x17   : > { %v633_v24 = vrot.slane %v619_v17, %v4023_v8  ;;  %v634_v25 = vcombine.high %v626_v18, %v626_v18  ;;  %v687_v27 = vunpack.i.h.s16 %v603_v14  ;;  %v3774_v28 = vld.sshfl [vmem:[%s4035_s23 + $0x4] sm:$0x13 pattern:$0x75316420]  ;;  %v3760_v30 = vpack.i.b16 %v603_v14, %v588_v19 }
  0x18   : > { %v689_v29 = vunpack.i.h.s16 %v610_v20  ;;  %v725_v31 = vcombine.low %v580_v12, %v587_v16  ;;  %v1315_v32 = vcombine.high %v3773_v23, %v3773_v23  ;;  %v3775_v35 = vld.sshfl [vmem:[%s4035_s23 + $0x8] sm:$0x13 pattern:$0x75316420]  ;;  %v1322_v36 = vrot.slane %v3773_v23, %v4023_v8 }
  0x19   : > { %v3761_v33 = vpack.i.b16 %v610_v20, %v687_v27  ;;  %v3763_v34 = vpack.i.b16 %v4044_v26, %v634_v25  ;;  %v1338_v37 = vcombine.high %v3774_v28, %v3774_v28  ;;  %v3776_v40 = vld.sshfl [vmem:[%s4035_s23 + $0xc] sm:$0x13 pattern:$0x75316420]  ;;  %v1345_v42 = vrot.slane %v3774_v28, %v4023_v8 }
  0x1a   : > { %v3762_v38 = vpack.i.b16 %v611_v21, %v689_v29  ;;  %v735_v39 = vrot.slane %v725_v31, %v4023_v8  ;;  %v1329_v41 = vrot.slane %v1315_v32, %v4023_v8  ;;  %v1330_v45 = vcombine.high %v1322_v36, %v1322_v36  ;;  %v3758_v63 = vld.sshfl [vmem:[%s4018_s20 + $0x10] sm:$0x13 pattern:$0x75316420]  ;;  %s4335_s20 = scalar_lea.vmem %s4760_s7, %s4012_s17 }
  0x1b   : > { %v726_v43 = vcombine.low %v3760_v30, %v3761_v33  ;;  %v728_v44 = vcombine.low %v633_v24, %v3763_v34  ;;  %v1352_v46 = vrot.slane %v1338_v37, %v4023_v8  ;;  %v1353_v48 = vcombine.high %v1345_v42, %v1345_v42  ;;  %v3777_v23 = vld.sshfl [vmem:[%s4035_s23 + $0x10] sm:$0x13 pattern:$0x75316420]  ;;  %s4565_s23 = scalar_lea.vmem %s4761_s8, %s4012_s17 }
  0x1c   : > { %v727_v47 = vcombine.low %v3762_v38, %v626_v18  ;;  %v1361_v49 = vcombine.high %v3775_v35, %v3775_v35  ;;  %v1368_v50 = vrot.slane %v3775_v35, %v4023_v8  ;;  %v1384_v53 = vcombine.high %v3776_v40, %v3776_v40 }
  0x1d   : > { %v742_v51 = vrot.slane %v726_v43, %v4023_v8  ;;  %v756_v52 = vrot.slane %v728_v44, %v4023_v8  ;;  %v4059_v54 = vrot.slane %v3776_v40, %v4023_v8  ;;  %v1429_v58 = vunpack.i.h.s16 %v1345_v42  ;;  %v3789_v44 = vld.sshfl [vmem:[%s4086_s26] sm:$0x13 pattern:$0x75316420] }
  0x1e   : > { %v749_v55 = vrot.slane %v727_v47, %v4023_v8  ;;  %v1375_v56 = vrot.slane %v1361_v49, %v4023_v8  ;;  %v1376_v57 = vcombine.high %v1368_v50, %v1368_v50  ;;  %v1431_v60 = vunpack.i.h.s16 %v1352_v46 }
  0x1f   : > { %v757_v59 = vcombine.low %v735_v39, %v742_v51  ;;  %v3778_v61 = vpack.i.b16 %v1345_v42, %v1330_v45  ;;  %v1461_v62 = vcombine.low %v1322_v36, %v1329_v41  ;;  %v3779_v3 = vpack.i.b16 %v1352_v46, %v1429_v58 }
  0x20   : > { %v758_v1 = vcombine.low %v749_v55, %v756_v52  ;;  %v3781_v4 = vpack.i.b16 %v4059_v54, %v1376_v57  ;;  %v656_v5 = vrot.slane %v642_v22, %v4023_v8  ;;  %v3780_v7 = vpack.i.b16 %v1353_v48, %v1431_v60  ;;  %v3790_v48 = vld.sshfl [vmem:[%s4086_s26 + $0x4] sm:$0x13 pattern:$0x75316420] }
  0x21   : > { %v765_v6 = vrot.slane %v757_v59, %v4023_v8  ;;  %v1471_v9 = vrot.slane %v1461_v62, %v4023_v8  ;;  %v657_v10 = vcombine.high %v4044_v26, %v4044_v26  ;;  %v1462_v12 = vcombine.low %v3778_v61, %v3779_v3  ;;  %v4106_v61 = vld.sshfl [vmem:[%s4086_s26 + $0xc] sm:$0x13 pattern:$0x75316420] }
  0x22   : > { %v772_v11 = vrot.slane %v758_v1, %v4023_v8  ;;  %v1464_v13 = vcombine.low %v1375_v56, %v3781_v4  ;;  %v665_v14 = vcombine.high %v3758_v63, %v3758_v63  ;;  %v1463_v15 = vcombine.low %v3780_v7, %v1368_v50  ;;  %v3791_v56 = vld.sshfl [vmem:[%s4086_s26 + $0x8] sm:$0x13 pattern:$0x75316420] }
  0x23   : > { %v672_v16 = vrot.slane %v3758_v63, %v4023_v8  ;;  %v697_v17 = vunpack.i.h.s16 %v4044_v26  ;;  %v699_v18 = vunpack.i.h.s16 %v656_v5  ;;  %v1478_v20 = vrot.slane %v1462_v12, %v4023_v8 }
  0x24   : > { %v773_v19 = vcombine.low %v765_v6, %v772_v11  ;;  %v1492_v21 = vrot.slane %v1464_v13, %v4023_v8  ;;  %v679_v22 = vrot.slane %v665_v14, %v4023_v8  ;;  %v1485_v24 = vrot.slane %v1463_v15, %v4023_v8  ;;  %v3807_v15 = vld.sshfl [vmem:[%s4114_s29] sm:$0x13 pattern:$0x75316420] }
  0x25   : > { %v680_v25 = vcombine.high %v672_v16, %v672_v16  ;;  %v3764_v27 = vpack.i.b16 %v656_v5, %v697_v17  ;;  %v3765_v28 = vpack.i.b16 %v657_v10, %v699_v18  ;;  %v1493_v29 = vcombine.low %v1471_v9, %v1478_v20  ;;  %v3808_v20 = vld.sshfl [vmem:[%s4114_s29 + $0x4] sm:$0x13 pattern:$0x75316420] }
  0x26   : > { %3847 = vmatprep.mubr.msk.bf16.mxu0 %vm825_vm0, %v773_v19  ;;  %v775_v30 = vcombine.low %v672_v16, %v679_v22  ;;  %v1398_v26 = vrot.slane %v1384_v53, %v4023_v8  ;;  %v1399_v31 = vcombine.high %v4059_v54, %v4059_v54  ;;  %v1494_v32 = vcombine.low %v1485_v24, %v1492_v21 }
  0x27   : > { %v705_v33 = vunpack.i.l.s16 %v680_v25  ;;  %v774_v34 = vcombine.low %v3764_v27, %v3765_v28  ;;  %v1407_v35 = vcombine.high %v3777_v23, %v3777_v23  ;;  %v1501_v36 = vrot.slane %v1493_v29, %v4023_v8 }
  0x28   : > { %v789_v37 = vrot.slane %v775_v30, %v4023_v8  ;;  %v1414_v38 = vrot.slane %v3777_v23, %v4023_v8  ;;  %v1439_v39 = vunpack.i.h.s16 %v4059_v54  ;;  %v1508_v40 = vrot.slane %v1494_v32, %v4023_v8 }
  0x29   : > { %v782_v41 = vrot.slane %v774_v34, %v4023_v8  ;;  %v796_v42 = vrot.slane %v705_v33, %v4023_v8  ;;  %v1421_v43 = vrot.slane %v1407_v35, %v4023_v8  ;;  %v1441_v46 = vunpack.i.h.s16 %v1398_v26 }
  0x2a   : > { %v1422_v45 = vcombine.high %v1414_v38, %v1414_v38  ;;  %v3782_v47 = vpack.i.b16 %v1398_v26, %v1439_v39  ;;  %v2033_v49 = vcombine.high %v3789_v44, %v3789_v44  ;;  %v1509_v50 = vcombine.low %v1501_v36, %v1508_v40 }
  0x2b   : > { %v797_v51 = vcombine.low %v782_v41, %v789_v37  ;;  %v811_v52 = vrot.slane %v796_v42, %v4023_v8  ;;  %v1511_v53 = vcombine.low %v1414_v38, %v1421_v43  ;;  %v3783_v55 = vpack.i.b16 %v1399_v31, %v1441_v46  ;;  %v3809_v31 = vld.sshfl [vmem:[%s4114_s29 + $0x8] sm:$0x13 pattern:$0x75316420] }
  0x2c   : > { %v1447_v54 = vunpack.i.l.s16 %v1422_v45  ;;  %v2040_v57 = vrot.slane %v3789_v44, %v4023_v8  ;;  %v2047_v58 = vrot.slane %v2033_v49, %v4023_v8  ;;  %3855 = vmatprep.mubr.msk.bf16.mxu1 %vm825_vm0, %v1509_v50  ;;  %v2056_v62 = vcombine.high %v3790_v48, %v3790_v48  ;;  %v3810_v37 = vld.sshfl [vmem:[%s4114_s29 + $0xc] sm:$0x13 pattern:$0x75316420] }
  0x2d   : > { %v804_v59 = vrot.slane %v797_v51, %v4023_v8  ;;  %v1525_v60 = vrot.slane %v1511_v53, %v4023_v8  ;;  %v2063_v63 = vrot.slane %v3790_v48, %v4023_v8  ;;  %v1510_v1 = vcombine.low %v3782_v47, %v3783_v55  ;;  %v3793_v55 = vld.sshfl [vmem:[%s4086_s26 + $0x10] sm:$0x13 pattern:$0x75316420]  ;;  %s4585_s26 = scalar_lea.vmem %s4762_s9, %s4012_s17 }
  0x2e   : > { %v1532_v3 = vrot.slane %v1447_v54, %v4023_v8  ;;  %v2048_v4 = vcombine.high %v2040_v57, %v2040_v57  ;;  %v2079_v5 = vcombine.high %v3791_v56, %v3791_v56  ;;  %v2070_v7 = vrot.slane %v2056_v62, %v4023_v8 }
  0x2f   : > { %v812_v6 = vcombine.low %v804_v59, %v811_v52  ;;  %v2071_v9 = vcombine.high %v2063_v63, %v2063_v63  ;;  %v2086_v10 = vrot.slane %v3791_v56, %v4023_v8  ;;  %v1518_v11 = vrot.slane %v1510_v1, %v4023_v8 }
  0x30   : > { %v1547_v12 = vrot.slane %v1532_v3, %v4023_v8  ;;  %v2093_v13 = vrot.slane %v2079_v5, %v4023_v8  ;;  %v2102_v14 = vcombine.high %v4106_v61, %v4106_v61  ;;  %v4127_v17 = vrot.slane %v4106_v61, %v4023_v8 }
  0x31   : > { %3848 = vmatmul.mubr.msk.bf16.vlgmr.msra.gmra.mrb[0].mxu0 %vm825_vm0, %v812_v6  ;;  %v2094_v16 = vcombine.high %v2086_v10, %v2086_v10  ;;  %v2147_v18 = vunpack.i.h.s16 %v2063_v63  ;;  %v2149_v19 = vunpack.i.h.s16 %v2070_v7  ;;  %v1533_v21 = vcombine.low %v1518_v11, %v1525_v60 }
  0x32   : > { %3860 = vmatpush3.bf16.msra.mxu0 %v3999_v0  ;;  %v3794_v22 = vpack.i.b16 %v2063_v63, %v2048_v4  ;;  %v2179_v23 = vcombine.low %v2040_v57, %v2047_v58  ;;  %v2750_v24 = vcombine.high %v3807_v15, %v3807_v15  ;;  %v2757_v29 = vrot.slane %v3807_v15, %v4023_v8 }
  0x33   : > { %3861 = vmatprep.subr.bf16.mxu0 %v4004_v2  ;;  %v3795_v25 = vpack.i.b16 %v2070_v7, %v2147_v18  ;;  %v3796_v27 = vpack.i.b16 %v2071_v9, %v2149_v19  ;;  %v3797_v28 = vpack.i.b16 %v4127_v17, %v2094_v16  ;;  %v1540_v30 = vrot.slane %v1533_v21, %v4023_v8 }
  0x34   : > { %v2189_v26 = vrot.slane %v2179_v23, %v4023_v8  ;;  %v2764_v32 = vrot.slane %v2750_v24, %v4023_v8  ;;  %v2773_v33 = vcombine.high %v3808_v20, %v3808_v20  ;;  %v2765_v38 = vcombine.high %v2757_v29, %v2757_v29 }
  0x35   : > { %v2180_v34 = vcombine.low %v3794_v22, %v3795_v25  ;;  %v2181_v35 = vcombine.low %v3796_v27, %v2086_v10  ;;  %v2182_v36 = vcombine.low %v2093_v13, %v3797_v28  ;;  %v1548_v39 = vcombine.low %v1540_v30, %v1547_v12 }
  0x36   : > { %3862 = vmatpush3.bf16.msra.mxu0 %v4004_v2  ;;  %v2780_v40 = vrot.slane %v3808_v20, %v4023_v8  ;;  %v2787_v41 = vrot.slane %v2773_v33, %v4023_v8  ;;  %v2796_v42 = vcombine.high %v3809_v31, %v3809_v31  ;;  %v2803_v46 = vrot.slane %v3809_v31, %v4023_v8 }
  0x37   : > { %v2196_v43 = vrot.slane %v2180_v34, %v4023_v8  ;;  %v2203_v44 = vrot.slane %v2181_v35, %v4023_v8  ;;  %v2210_v45 = vrot.slane %v2182_v36, %v4023_v8  ;;  %3856 = vmatmul.mubr.msk.bf16.vlgmr.msra.gmra.mrb[0].mxu1 %vm825_vm0, %v1548_v39  ;;  %v2819_v49 = vcombine.high %v3810_v37, %v3810_v37 }
  0x38   : > { %v2788_v47 = vcombine.high %v2780_v40, %v2780_v40  ;;  %v2810_v48 = vrot.slane %v2796_v42, %v4023_v8  ;;  %v2826_v50 = vrot.slane %v3810_v37, %v4023_v8  ;;  %3868 = vmatpush3.bf16.msra.mxu1 %v3999_v0  ;;  %v2811_v53 = vcombine.high %v2803_v46, %v2803_v46 }
  0x39   : > { %v2211_v51 = vcombine.low %v2189_v26, %v2196_v43  ;;  %v2212_v52 = vcombine.low %v2203_v44, %v2210_v45  ;;  %v2864_v54 = vunpack.i.h.s16 %v2780_v40  ;;  %3869 = vmatprep.subr.bf16.mxu1 %v4004_v2  ;;  %v2866_v56 = vunpack.i.h.s16 %v2787_v41 }
  0x3a   : > { %v3812_v57 = vpack.i.b16 %v2780_v40, %v2765_v38  ;;  %v2896_v58 = vcombine.low %v2757_v29, %v2764_v32  ;;  %v2116_v59 = vrot.slane %v2102_v14, %v4023_v8  ;;  %v3815_v63 = vpack.i.b16 %v2826_v50, %v2811_v53  ;;  %v3811_v14 = vld.sshfl [vmem:[%s4114_s29 + $0x10] sm:$0x13 pattern:$0x75316420] }
  0x3b   : > { %v2219_v60 = vrot.slane %v2211_v51, %v4023_v8  ;;  %v2226_v61 = vrot.slane %v2212_v52, %v4023_v8  ;;  %v3813_v62 = vpack.i.b16 %v2787_v41, %v2864_v54  ;;  %v3814_v0 = vpack.i.b16 %v2788_v47, %v2866_v56 }
  0x3c   : > { %v2906_v1 = vrot.slane %v2896_v58, %v4023_v8  ;;  %v2117_v3 = vcombine.high %v4127_v17, %v4127_v17  ;;  %v2125_v4 = vcombine.high %v3793_v55, %v3793_v55  ;;  %3870 = vmatpush3.bf16.msra.mxu1 %v4004_v2  ;;  %v2899_v7 = vcombine.low %v2810_v48, %v3815_v63 }
  0x3d   : > { %v2227_v5 = vcombine.low %v2219_v60, %v2226_v61  ;;  %v2897_v6 = vcombine.low %v3812_v57, %v3813_v62  ;;  %v2132_v9 = vrot.slane %v3793_v55, %v4023_v8  ;;  %v2898_v10 = vcombine.low %v3814_v0, %v2803_v46  ;;  %v4188_v55 = vld [vmem:[%s4758_s5] ss:$0 sm:$0xff] }
  0x3e   : > { %v2139_v11 = vrot.slane %v2125_v4, %v4023_v8  ;;  %v2157_v12 = vunpack.i.h.s16 %v4127_v17  ;;  %v2159_v13 = vunpack.i.h.s16 %v2116_v59  ;;  %v2927_v16 = vrot.slane %v2899_v7, %v4023_v8 }
  0x3f   : > { %3863 = vmatprep.mubr.msk.bf16.mxu0 %vm825_vm0, %v2227_v5  ;;  %v2913_v15 = vrot.slane %v2897_v6, %v4023_v8  ;;  %v2140_v18 = vcombine.high %v2132_v9, %v2132_v9  ;;  %v2833_v2 = vrot.slane %v2819_v49, %v4023_v8  ;;  %v2920_v19 = vrot.slane %v2898_v10, %v4023_v8 }
  0x40   : > { %v3798_v20 = vpack.i.b16 %v2116_v59, %v2157_v12  ;;  %v3799_v21 = vpack.i.b16 %v2117_v3, %v2159_v13  ;;  %v2229_v22 = vcombine.low %v2132_v9, %v2139_v11  ;;  %v2834_v25 = vcombine.high %v2826_v50, %v2826_v50 }
  0x41   : > { %v2928_v23 = vcombine.low %v2906_v1, %v2913_v15  ;;  %v2165_v24 = vunpack.i.l.s16 %v2140_v18  ;;  %v2842_v17 = vcombine.high %v3811_v14, %v3811_v14  ;;  %v2929_v27 = vcombine.low %v2920_v19, %v2927_v16 }
  0x42   : > { %v2228_v28 = vcombine.low %v3798_v20, %v3799_v21  ;;  %v2243_v29 = vrot.slane %v2229_v22, %v4023_v8  ;;  %v2849_v30 = vrot.slane %v3811_v14, %v4023_v8  ;;  %v2874_v33 = vunpack.i.h.s16 %v2826_v50 }
  0x43   : > { %v2936_v26 = vrot.slane %v2928_v23, %v4023_v8  ;;  %v2250_v31 = vrot.slane %v2165_v24, %v4023_v8  ;;  %v2856_v32 = vrot.slane %v2842_v17, %v4023_v8  ;;  %v2943_v34 = vrot.slane %v2929_v27, %v4023_v8 }
  0x44   : > { %v2236_v35 = vrot.slane %v2228_v28, %v4023_v8  ;;  %v2857_v36 = vcombine.high %v2849_v30, %v2849_v30  ;;  %v2876_v37 = vunpack.i.h.s16 %v2833_v2  ;;  %v3816_v39 = vpack.i.b16 %v2833_v2, %v2874_v33 }
  0x45   : > { %v2265_v38 = vrot.slane %v2250_v31, %v4023_v8  ;;  %v2946_v40 = vcombine.low %v2849_v30, %v2856_v32  ;;  %v2944_v41 = vcombine.low %v2936_v26, %v2943_v34 }
  0x46   : > { %v2251_v42 = vcombine.low %v2236_v35, %v2243_v29  ;;  %v2882_v43 = vunpack.i.l.s16 %v2857_v36  ;;  %v3817_v44 = vpack.i.b16 %v2834_v25, %v2876_v37 }
  0x47   : > { %3871 = vmatprep.mubr.msk.bf16.mxu1 %vm825_vm0, %v2944_v41  ;;  %v2960_v47 = vrot.slane %v2946_v40, %v4023_v8 }
  0x48   : > { %v2258_v45 = vrot.slane %v2251_v42, %v4023_v8  ;;  %v2945_v46 = vcombine.low %v3816_v39, %v3817_v44  ;;  %v2967_v48 = vrot.slane %v2882_v43, %v4023_v8 }
  0x4a   : > { %v2266_v49 = vcombine.low %v2258_v45, %v2265_v38  ;;  %v2953_v50 = vrot.slane %v2945_v46, %v4023_v8  ;;  %v2982_v52 = vrot.slane %v2967_v48, %v4023_v8 }
  0x4c   : > { %3864 = vmatmul.mubr.msk.bf16.vlgmr.msra.gmra.mrb[4].mxu0 %vm825_vm0, %v2266_v49  ;;  %v2968_v51 = vcombine.low %v2953_v50, %v2960_v47 }
  0x4e   : > { %v2975_v53 = vrot.slane %v2968_v51, %v4023_v8 }
  0x50   : > { %v2983_v54 = vcombine.low %v2975_v53, %v2982_v52 }
  0x52   : > { %3872 = vmatmul.mubr.msk.bf16.vlgmr.msra.gmra.mrb[4].mxu1 %vm825_vm0, %v2983_v54 }
 0x104   : > { %v3849_v56 = vpop.f32.mrb[0].mxu0 }
 0x105   : > { %v875_v57 = vadd.f32 %v3849_v56, %v4188_v55  ;;  %v866_v58 = vpop.f32.mrb[1].mxu0 }
 0x106   : > { %v867_v59 = vadd.f32 %v4188_v55, %v866_v58  ;;  %v3850_v60 = vpop.f32.mrb[2].mxu0 }
 0x107   : > { %v883_v61 = vmax.f32 %v875_v57, 0.0  ;;  %v878_v62 = vadd.f32 %v3850_v60, %v4188_v55  ;;  %v869_v63 = vpop.f32.mrb[3].mxu0 }
 0x108   : > { %v881_v0 = vmax.f32 %v867_v59, 0.0  ;;  %v870_v1 = vadd.f32 %v4188_v55, %v869_v63 }
 0x109   : > { %v987_v3 = vcombine.high %v883_v61, %v883_v61  ;;  %v994_v4 = vrot.slane %v883_v61, %v4023_v8  ;;  %v884_v5 = vmax.f32 %v878_v62, 0.0 }
 0x10a   : > { %v889_v6 = vcombine.high %v881_v0, %v881_v0  ;;  %v896_v7 = vrot.slane %v881_v0, %v4023_v8  ;;  %v3857_v12 = vpop.f32.mrb[0].mxu1  ;;  %v4202_v18 = vmax.f32 %v870_v1, 0.0 }
 0x10b   : > { %v1001_v9 = vrot.slane %v987_v3, %v4023_v8  ;;  %v1002_v10 = vcombine.high %v994_v4, %v994_v4  ;;  %v4198_v11 = vrot.slane %v994_v4, %v4023_v8  ;;  %v1598_v13 = vadd.f32 %v3857_v12, %v4188_v55  ;;  %v1589_v16 = vpop.f32.mrb[1].mxu1 }
 0x10c   : > { %v903_v14 = vrot.slane %v889_v6, %v4023_v8  ;;  %v904_v15 = vcombine.high %v896_v7, %v896_v7  ;;  %v1042_v21 = vrot.slane %v884_v5, %v4023_v8  ;;  %v4208_v22 = vpop.f32.mrb[2].mxu1  ;;  %v912_v25 = vrot.slane %v896_v7, %v4023_v8 }
 0x10d   : > { %v1003_v2 = vcombine.high %v1001_v9, %v1001_v9  ;;  %v1024_v19 = vrot.slane %v1002_v10, %v4023_v8  ;;  %v1032_v20 = vcombine.high %v4198_v11, %v4198_v11  ;;  %v1606_v23 = vmax.f32 %v1598_v13, 0.0  ;;  %v4212_v27 = vpop.f32.mrb[3].mxu1 }
 0x10e   : > { %v905_v24 = vcombine.high %v903_v14, %v903_v14  ;;  %v926_v17 = vrot.slane %v904_v15, %v4023_v8  ;;  %v1017_v28 = vrot.slane %v1001_v9, %v4023_v8  ;;  %v919_v26 = vrot.slane %v903_v14, %v4023_v8 }
 0x10f   : > { %v1031_v29 = vrot.slane %v1003_v2, %v4023_v8  ;;  %v1034_v30 = vcombine.high %v1024_v19, %v1024_v19  ;;  %v4217_v31 = vcombine.low %v1024_v19, %v1032_v20  ;;  %v1710_v32 = vcombine.high %v1606_v23, %v1606_v23 }
 0x110   : > { %v1717_v33 = vrot.slane %v1606_v23, %v4023_v8  ;;  %v1590_v34 = vadd.f32 %v4188_v55, %v1589_v16  ;;  %v4225_v38 = vrot.slane %v905_v24, %v4023_v8  ;;  %v1050_v42 = vcombine.low %v912_v25, %v926_v17  ;;  %v1258_v23 = vld [vmem:[%s4256_s16] sm:$0x7] }
 0x111   : > { %v4222_v35 = vrot.slane %v1034_v30, %v4023_v8  ;;  %v1206_v36 = vcombine.low %v1017_v28, %v1031_v29  ;;  %v3772_v37 = vcombine.high %v1017_v28, %v1031_v29  ;;  %v1724_v39 = vrot.slane %v1710_v32, %v4023_v8 }
 0x112   : > { %v1725_v40 = vcombine.high %v1717_v33, %v1717_v33  ;;  %v4229_v41 = vrot.slane %v1717_v33, %v4023_v8  ;;  %v935_v45 = vcombine.high %v919_v26, %v919_v26  ;;  %v3770_v46 = vcombine.high %v912_v25, %v926_v17 }
 0x113   : > { %v1214_v43 = vrot.slane %v1206_v36, %v4023_v8  ;;  %v1221_v44 = vrot.slane %v3772_v37, %v4023_v8  ;;  %v1182_v47 = vrot.slane %v4217_v31, %v4023_v8  ;;  %v1726_v48 = vcombine.high %v1724_v39, %v1724_v39 }
 0x114   : > { %v1747_v49 = vrot.slane %v1725_v40, %v4023_v8  ;;  %v1755_v50 = vcombine.high %v4229_v41, %v4229_v41  ;;  %v1204_v51 = vrot.slane %v4222_v35, %v4023_v8  ;;  %v1058_v52 = vrot.slane %v1050_v42, %v4023_v8  ;;  %v1270_v40 = vld [vmem:[%s4256_s16 + $0x10] sm:$0x7] }
 0x115   : > { %v1065_v53 = vrot.slane %v3770_v46, %v4023_v8  ;;  %v1072_v54 = vrot.slane %v919_v26, %v4023_v8  ;;  %v1229_v56 = vcombine.low %v1214_v43, %v1221_v44  ;;  %v1740_v57 = vrot.slane %v1724_v39, %v4023_v8 }
 0x116   : > { %v1754_v58 = vrot.slane %v1726_v48, %v4023_v8  ;;  %v1757_v59 = vcombine.high %v1747_v49, %v1747_v49  ;;  %v4245_v60 = vcombine.low %v1747_v49, %v1755_v50  ;;  %v1604_v62 = vmax.f32 %v1590_v34, 0.0 }
 0x117   : > { %v1073_v61 = vcombine.low %v1058_v52, %v1065_v53  ;;  %v1049_v63 = vrot.slane %v1042_v21, %v4023_v8  ;;  %v1087_v3 = vrot.slane %v1072_v54, %v4023_v8  ;;  %v4250_v4 = vcombine.low %v4225_v38, %v935_v45 }
 0x118   : > { %v1929_v0 = vcombine.low %v1740_v57, %v1754_v58  ;;  %v3788_v1 = vcombine.high %v1740_v57, %v1754_v58  ;;  %v1612_v6 = vcombine.high %v1604_v62, %v1604_v62  ;;  %v1619_v7 = vrot.slane %v1604_v62, %v4023_v8 }
 0x119   : > { %v1080_v5 = vrot.slane %v1073_v61, %v4023_v8  ;;  %v1228_v9 = vrot.slane %v1049_v63, %v4023_v8  ;;  %v4262_v10 = vrot.slane %v1757_v59, %v4023_v8  ;;  %v1236_v14 = vrot.slane %v1229_v56, %v4023_v8 }
 0x11a   : > { %v1937_v12 = vrot.slane %v1929_v0, %v4023_v8  ;;  %v1944_v13 = vrot.slane %v3788_v1, %v4023_v8  ;;  %v1626_v16 = vrot.slane %v1612_v6, %v4023_v8  ;;  %v1627_v2 = vcombine.high %v1619_v7, %v1619_v7 }
 0x11b   : > { %v1088_v15 = vcombine.low %v1080_v5, %v1087_v3  ;;  %v1635_v19 = vrot.slane %v1619_v7, %v4023_v8  ;;  %v1243_v24 = vrot.slane %v1228_v9, %v4023_v8  ;;  %v1601_v25 = vadd.f32 %v4208_v22, %v4188_v55 }
 0x11c   : > { %v1952_v20 = vcombine.low %v1937_v12, %v1944_v13  ;;  %v937_v17 = vcombine.high %v4225_v38, %v4225_v38  ;;  %v1628_v29 = vcombine.high %v1626_v16, %v1626_v16  ;;  %v1642_v30 = vrot.slane %v1626_v16, %v4023_v8 }
 0x11d   : > { %v1250_v28 = vpack.c.bf16 %v1088_v15, %v1088_v15  ;;  %v1649_v26 = vrot.slane %v1627_v2, %v4023_v8  ;;  %v1244_v32 = vcombine.low %v1236_v14, %v1243_v24  ;;  %v1607_v33 = vmax.f32 %v1601_v25, 0.0 }
 0x11e   : > { %v1959_v34 = vrot.slane %v1952_v20, %v4023_v8  ;;  %v938_v36 = vcombine.high %v4202_v18, %v4202_v18  ;;  %v4289_v37 = vrot.slane %v1628_v29, %v4023_v8  ;;  %v1658_v38 = vcombine.high %v1642_v30, %v1642_v30 }
 0x11f   : > { %v1259_v22 = vsel %vm4271_vm5, %v1250_v28, %v1258_v23  ;;  %v1773_v39 = vcombine.low %v1635_v19, %v1649_v26  ;;  %v4292_v42 = vpop.f32.mrb[4].mxu0  ;;  %v3786_v43 = vcombine.high %v1635_v19, %v1649_v26  ;;  %v1795_v44 = vrot.slane %v1642_v30, %v4023_v8 }
 0x120   : > { %1260 = vst [vmem:[%s4256_s16] sm:$0x7] %v1259_v22  ;;  %v1254_v45 = vpack.c.bf16 %v1244_v32, %v1244_v32  ;;  %v1765_v46 = vrot.slane %v1607_v33, %v4023_v8  ;;  %v4297_v48 = vpop.f32.mrb[5].mxu0  ;;  %v4301_v50 = vcombine.low %v4289_v37, %v1658_v38  ;;  %v945_v52 = vrot.slane %v4202_v18, %v4023_v8  ;;  %v1990_v22 = vld [vmem:[%s4335_s20 + $0x10] sm:$0x7] }
 0x121   : > { %v1781_v49 = vrot.slane %v1773_v39, %v4023_v8  ;;  %v952_v53 = vrot.slane %v938_v36, %v4023_v8  ;;  %v4306_v54 = vpop.f32.mrb[6].mxu0  ;;  %v1788_v56 = vrot.slane %v3786_v43, %v4023_v8  ;;  %v1810_v57 = vrot.slane %v1795_v44, %v4023_v8  ;;  %v1978_v36 = vld [vmem:[%s4335_s20] sm:$0x7] }
 0x122   : > { %v1271_v58 = vsel %vm4271_vm5, %v1254_v45, %v1270_v40  ;;  %v1772_v59 = vrot.slane %v1765_v46, %v4023_v8  ;;  %v4313_v61 = vpop.f32.mrb[7].mxu0  ;;  %v953_v62 = vcombine.high %v945_v52, %v945_v52  ;;  %v961_v18 = vrot.slane %v945_v52, %v4023_v8 }
 0x123   : > { %1272 = vst [vmem:[%s4256_s16 + $0x10] sm:$0x7] %v1271_v58  ;;  %v954_v63 = vcombine.high %v952_v53, %v952_v53  ;;  %v968_v0 = vrot.slane %v952_v53, %v4023_v8  ;;  %v1796_v1 = vcombine.low %v1781_v49, %v1788_v56  ;;  %v1097_v5 = vrot.slane %v4250_v4, %v4023_v8 }
 0x124   : > { %v1951_v3 = vrot.slane %v1772_v59, %v4023_v8  ;;  %v1593_v6 = vadd.f32 %v4188_v55, %v4212_v27  ;;  %v975_v9 = vrot.slane %v953_v62, %v4023_v8  ;;  %v1090_v14 = vcombine.low %v937_v17, %v961_v18 }
 0x125   : > { %v982_v12 = vrot.slane %v954_v63, %v4023_v8  ;;  %v984_v13 = vcombine.high %v968_v0, %v968_v0  ;;  %v3873_v15 = vpop.f32.mrb[4].mxu1  ;;  %v1803_v27 = vrot.slane %v1796_v1, %v4023_v8  ;;  %v1660_v2 = vcombine.high %v4289_v37, %v4289_v37 }
 0x126   : > { %v1966_v4 = vrot.slane %v1951_v3, %v4023_v8  ;;  %v1605_v16 = vmax.f32 %v1593_v6, 0.0  ;;  %v4341_v19 = vpop.f32.mrb[5].mxu1  ;;  %v1104_v24 = vrot.slane %v1090_v14, %v4023_v8  ;;  %v1111_v25 = vrot.slane %v975_v9, %v4023_v8  ;;  %v1261_v6 = vld [vmem:[%s4256_s16 + $0x4] sm:$0x7] }
 0x127   : > { %v1276_v20 = vld [vmem:[%s4256_s16] sm:$0x1]  ;;  %v986_v23 = vcombine.high %v982_v12, %v982_v12  ;;  %v3771_v17 = vcombine.high %v961_v18, %v975_v9  ;;  %v4346_v28 = vpop.f32.mrb[6].mxu1  ;;  %v1811_v30 = vcombine.low %v1803_v27, %v1810_v57  ;;  %v1129_v32 = vcombine.low %v968_v0, %v982_v12 }
 0x128   : > { %v1277_v29 = vsel %vm4325_vm6, 0, %v1276_v20  ;;  %v1967_v26 = vcombine.low %v1959_v34, %v1966_v4  ;;  %v4350_v33 = vpop.f32.mrb[7].mxu1  ;;  %v1112_v38 = vcombine.low %v1097_v5, %v1104_v24  ;;  %v1126_v39 = vrot.slane %v1111_v25, %v4023_v8 }
 0x129   : > { %1278 = vst [vmem:[%s4256_s16] sm:$0x1] %v1277_v29  ;;  %v1136_v40 = vrot.slane %v3771_v17, %v4023_v8  ;;  %v1150_v43 = vrot.slane %v984_v13, %v4023_v8  ;;  %v1973_v44 = vpack.c.bf16 %v1811_v30, %v1811_v30  ;;  %v1143_v34 = vrot.slane %v1129_v32, %v4023_v8 }
 0x12a   : > { %v1288_v45 = vld [vmem:[%s4256_s16 + $0x10] sm:$0x1]  ;;  %v1977_v46 = vpack.c.bf16 %v1967_v26, %v1967_v26  ;;  %v1167_v49 = vcombine.low %v986_v23, %v4198_v11  ;;  %v1119_v53 = vrot.slane %v1112_v38, %v4023_v8  ;;  %v1661_v57 = vcombine.high %v1605_v16, %v1605_v16  ;;  %v1264_v23 = vld [vmem:[%s4256_s16 + $0x8] sm:$0x7] }
 0x12b   : > { %v1289_v52 = vsel %vm4325_vm6, 0, %v1288_v45  ;;  %v1165_v56 = vrot.slane %v1150_v43, %v4023_v8  ;;  %v1979_v58 = vsel %vm4271_vm5, %v1973_v44, %v1978_v36  ;;  %v1151_v62 = vcombine.low %v1136_v40, %v1143_v34  ;;  %v1267_v36 = vld [vmem:[%s4256_s16 + $0xc] sm:$0x7] }
 0x12c   : > { %1290 = vst [vmem:[%s4256_s16 + $0x10] sm:$0x1] %v1289_v52  ;;  %v1991_v59 = vsel %vm4271_vm5, %v1977_v46, %v1990_v22  ;;  %v1175_v63 = vrot.slane %v1167_v49, %v4023_v8  ;;  %1980 = vst [vmem:[%s4335_s20] sm:$0x7] %v1979_v58  ;;  %v1127_v11 = vcombine.low %v1119_v53, %v1126_v39 }
 0x12d   : > { %1992 = vst [vmem:[%s4335_s20 + $0x10] sm:$0x7] %v1991_v59  ;;  %v1668_v18 = vrot.slane %v1605_v16, %v4023_v8  ;;  %v1675_v0 = vrot.slane %v1661_v57, %v4023_v8  ;;  %v1820_v1 = vrot.slane %v4301_v50, %v4023_v8  ;;  %v1158_v3 = vrot.slane %v1151_v62, %v4023_v8 }
 0x12e   : > { %v1190_v5 = vcombine.low %v1175_v63, %v1182_v47  ;;  %v2316_v9 = vadd.f32 %v4292_v42, %v4188_v55  ;;  %v3033_v12 = vadd.f32 %v3873_v15, %v4188_v55  ;;  %v1251_v13 = vpack.c.bf16 %v1127_v11, %v1127_v11 }
 0x12f   : > { %v1676_v14 = vcombine.high %v1668_v18, %v1668_v18  ;;  %v1677_v27 = vcombine.high %v1675_v0, %v1675_v0  ;;  %v1684_v50 = vrot.slane %v1668_v18, %v4023_v8  ;;  %v1166_v16 = vcombine.low %v1158_v3, %v1165_v56 }
 0x130   : > { %v1295_v4 = vld [vmem:[%s4256_s16] sm:$0x7]  ;;  %v1197_v31 = vrot.slane %v1190_v5, %v4023_v8  ;;  %v1691_v47 = vrot.slane %v1675_v0, %v4023_v8  ;;  %v2324_v20 = vmax.f32 %v2316_v9, 0.0  ;;  %v1262_v15 = vsel %vm4271_vm5, %v1251_v13, %v1261_v6 }
 0x131   : > { %v1296_v42 = vsel %vm4271_vm5, 0, %v1295_v4  ;;  %v1698_v24 = vrot.slane %v1676_v14, %v4023_v8  ;;  %v1705_v25 = vrot.slane %v1677_v27, %v4023_v8  ;;  %v1252_v30 = vpack.c.bf16 %v1166_v16, %v1166_v16  ;;  %1263 = vst [vmem:[%s4256_s16 + $0x4] sm:$0x7] %v1262_v15  ;;  %v1981_v27 = vld [vmem:[%s4335_s20 + $0x4] sm:$0x7] }
 0x132   : > { %1297 = vst [vmem:[%s4256_s16] sm:$0x7] %v1296_v42  ;;  %v1205_v29 = vcombine.low %v1197_v31, %v1204_v51  ;;  %v1707_v26 = vcombine.high %v1691_v47, %v1691_v47  ;;  %v1813_v32 = vcombine.low %v1660_v2, %v1684_v50  ;;  %v1905_v2 = vrot.slane %v4245_v60, %v4023_v8 }
 0x133   : > { %v1709_v22 = vcombine.high %v1705_v25, %v1705_v25  ;;  %v1834_v38 = vrot.slane %v1698_v24, %v4023_v8  ;;  %v3787_v39 = vcombine.high %v1684_v50, %v1698_v24  ;;  %v1852_v40 = vcombine.low %v1691_v47, %v1705_v25  ;;  %v1995_v43 = vld [vmem:[%s4335_s20] sm:$0x4] }
 0x134   : > { %v2007_v44 = vld [vmem:[%s4335_s20 + $0x10] sm:$0x4]  ;;  %v1253_v35 = vpack.c.bf16 %v1205_v29, %v1205_v29  ;;  %v1265_v51 = vsel %vm4271_vm5, %v1252_v30, %v1264_v23  ;;  %v1827_v45 = vrot.slane %v1813_v32, %v4023_v8  ;;  %v1873_v37 = vrot.slane %v1707_v26, %v4023_v8  ;;  %v1984_v29 = vld [vmem:[%s4335_s20 + $0x8] sm:$0x7] }
 0x135   : > { %v1927_v46 = vrot.slane %v4262_v10, %v4023_v8  ;;  %v1996_v34 = vsel %vm4399_vm8, 0, %v1995_v43  ;;  %v2008_v49 = vsel %vm4399_vm8, 0, %v2007_v44  ;;  %1266 = vst [vmem:[%s4256_s16 + $0x8] sm:$0x7] %v1265_v51  ;;  %v1859_v56 = vrot.slane %v3787_v39, %v4023_v8 }
 0x136   : > { %1997 = vst [vmem:[%s4335_s20] sm:$0x4] %v1996_v34  ;;  %2009 = vst [vmem:[%s4335_s20 + $0x10] sm:$0x4] %v2008_v49  ;;  %v1268_v52 = vsel %vm4271_vm5, %v1253_v35, %v1267_v36  ;;  %v1835_v53 = vcombine.low %v1820_v1, %v1827_v45  ;;  %v1866_v60 = vrot.slane %v1852_v40, %v4023_v8  ;;  %v3041_v59 = vmax.f32 %v3033_v12, 0.0  ;;  %v1987_v45 = vld [vmem:[%s4335_s20 + $0xc] sm:$0x7] }
 0x137   : > { %1269 = vst [vmem:[%s4256_s16 + $0xc] sm:$0x7] %v1268_v52  ;;  %v1890_v10 = vcombine.low %v1709_v22, %v4229_v41  ;;  %v2428_v57 = vcombine.high %v2324_v20, %v2324_v20  ;;  %v2435_v58 = vrot.slane %v2324_v20, %v4023_v8  ;;  %v1849_v63 = vrot.slane %v1834_v38, %v4023_v8 }
 0x138   : > { %v1842_v62 = vrot.slane %v1835_v53, %v4023_v8  ;;  %v1874_v11 = vcombine.low %v1859_v56, %v1866_v60  ;;  %v1888_v18 = vrot.slane %v1873_v37, %v4023_v8  ;;  %v1279_v0 = vld [vmem:[%s4256_s16 + $0x4] sm:$0x1]  ;;  %v3145_v13 = vcombine.high %v3041_v59, %v3041_v59 }
 0x139   : > { %v1898_v1 = vrot.slane %v1890_v10, %v4023_v8  ;;  %v2442_v3 = vrot.slane %v2428_v57, %v4023_v8  ;;  %v2443_v41 = vcombine.high %v2435_v58, %v2435_v58  ;;  %v4443_v5 = vrot.slane %v2435_v58, %v4023_v8 }
 0x13a   : > { %v1280_v6 = vsel %vm4325_vm6, 0, %v1279_v0  ;;  %v1850_v9 = vcombine.low %v1842_v62, %v1849_v63  ;;  %v1881_v12 = vrot.slane %v1874_v11, %v4023_v8  ;;  %v3152_v15 = vrot.slane %v3041_v59, %v4023_v8 }
 0x13b   : > { %1281 = vst [vmem:[%s4256_s16 + $0x4] sm:$0x1] %v1280_v6  ;;  %v1913_v14 = vcombine.low %v1898_v1, %v1905_v2  ;;  %v2444_v50 = vcombine.high %v2442_v3, %v2442_v3  ;;  %v2458_v4 = vrot.slane %v2442_v3, %v4023_v8  ;;  %v2465_v16 = vrot.slane %v2443_v41, %v4023_v8 }
 0x13c   : > { %v1282_v31 = vld [vmem:[%s4256_s16 + $0x8] sm:$0x1]  ;;  %v1889_v47 = vcombine.low %v1881_v12, %v1888_v18  ;;  %v1974_v20 = vpack.c.bf16 %v1850_v9, %v1850_v9  ;;  %v2473_v42 = vcombine.high %v4443_v5, %v4443_v5  ;;  %v2308_v39 = vadd.f32 %v4188_v55, %v4297_v48 }
 0x13d   : > { %v2013_v23 = vld [vmem:[%s4335_s20] sm:$0x7]  ;;  %v1283_v24 = vsel %vm4325_vm6, 0, %v1282_v31  ;;  %v1920_v25 = vrot.slane %v1913_v14, %v4023_v8  ;;  %v2472_v30 = vrot.slane %v2444_v50, %v4023_v8  ;;  %v2475_v26 = vcombine.high %v2465_v16, %v2465_v16 }
 0x13e   : > { %v2014_v32 = vsel %vm4271_vm5, 0, %v2013_v23  ;;  %1284 = vst [vmem:[%s4256_s16 + $0x8] sm:$0x1] %v1283_v24  ;;  %v1285_v36 = vld [vmem:[%s4256_s16 + $0xc] sm:$0x1]  ;;  %v1975_v22 = vpack.c.bf16 %v1889_v47, %v1889_v47  ;;  %v1982_v38 = vsel %vm4271_vm5, %v1974_v20, %v1981_v27  ;;  %v3025_v35 = vadd.f32 %v4188_v55, %v4341_v19 }
 0x13f   : > { %2015 = vst [vmem:[%s4335_s20] sm:$0x7] %v2014_v32  ;;  %v1286_v40 = vsel %vm4325_vm6, 0, %v1285_v36  ;;  %v1928_v43 = vcombine.low %v1920_v25, %v1927_v46  ;;  %1983 = vst [vmem:[%s4335_s20 + $0x4] sm:$0x7] %v1982_v38  ;;  %v2647_v44 = vcombine.low %v2458_v4, %v2472_v30  ;;  %v4480_v37 = vcombine.low %v2465_v16, %v2473_v42 }
 0x140   : > { %1287 = vst [vmem:[%s4256_s16 + $0xc] sm:$0x1] %v1286_v40  ;;  %v1985_v51 = vsel %vm4271_vm5, %v1975_v22, %v1984_v29  ;;  %v3804_v2 = vcombine.high %v2458_v4, %v2472_v30  ;;  %v3159_v48 = vrot.slane %v3145_v13, %v4023_v8  ;;  %v4485_v46 = vrot.slane %v2475_v26, %v4023_v8 }
 0x141   : > { %v1976_v34 = vpack.c.bf16 %v1928_v43, %v1928_v43  ;;  %1986 = vst [vmem:[%s4335_s20 + $0x8] sm:$0x7] %v1985_v51  ;;  %v3160_v49 = vcombine.high %v3152_v15, %v3152_v15  ;;  %v4488_v19 = vrot.slane %v2647_v44, %v4023_v8  ;;  %v2322_v60 = vmax.f32 %v2308_v39, 0.0 }
 0x142   : > { %v3161_v52 = vcombine.high %v3159_v48, %v3159_v48  ;;  %v4493_v56 = vrot.slane %v3804_v2, %v4023_v8  ;;  %v3039_v10 = vmax.f32 %v3025_v35, 0.0  ;;  %v2623_v57 = vrot.slane %v4480_v37, %v4023_v8 }
 0x143   : > { %v1988_v53 = vsel %vm4271_vm5, %v1976_v34, %v1987_v45  ;;  %v4499_v58 = vrot.slane %v3152_v15, %v4023_v8  ;;  %v3175_v59 = vrot.slane %v3159_v48, %v4023_v8  ;;  %v2645_v63 = vrot.slane %v4485_v46, %v4023_v8 }
 0x144   : > { %1989 = vst [vmem:[%s4335_s20 + $0xc] sm:$0x7] %v1988_v53  ;;  %v3189_v62 = vrot.slane %v3161_v52, %v4023_v8  ;;  %v4506_v11 = vrot.slane %v3160_v49, %v4023_v8  ;;  %v2330_v18 = vcombine.high %v2322_v60, %v2322_v60  ;;  %v2337_v0 = vrot.slane %v2322_v60, %v4023_v8 }
 0x145   : > { %v3047_v6 = vcombine.high %v3039_v10, %v3039_v10  ;;  %v3054_v9 = vrot.slane %v3039_v10, %v4023_v8  ;;  %v2670_v13 = vcombine.low %v4488_v19, %v4493_v56  ;;  %v3190_v4 = vcombine.high %v4499_v58, %v4499_v58 }
 0x146   : > { %v1998_v1 = vld [vmem:[%s4335_s20 + $0x4] sm:$0x4]  ;;  %v3364_v3 = vcombine.low %v3175_v59, %v3189_v62  ;;  %v3822_v41 = vcombine.high %v3175_v59, %v3189_v62  ;;  %v2344_v14 = vrot.slane %v2330_v18, %v4023_v8  ;;  %v2345_v27 = vcombine.high %v2337_v0, %v2337_v0 }
 0x147   : > { %v1999_v12 = vsel %vm4399_vm8, 0, %v1998_v1  ;;  %v2319_v47 = vadd.f32 %v4306_v54, %v4188_v55  ;;  %v3192_v42 = vcombine.high %v4506_v11, %v4506_v11  ;;  %v2353_v24 = vrot.slane %v2337_v0, %v4023_v8 }
 0x148   : > { %2000 = vst [vmem:[%s4335_s20 + $0x4] sm:$0x4] %v1999_v12  ;;  %v2001_v50 = vld [vmem:[%s4335_s20 + $0x8] sm:$0x4]  ;;  %v3372_v16 = vrot.slane %v3364_v3, %v4023_v8  ;;  %v3379_v31 = vrot.slane %v3822_v41, %v4023_v8  ;;  %v2346_v15 = vcombine.high %v2344_v14, %v2344_v14  ;;  %v2360_v23 = vrot.slane %v2344_v14, %v4023_v8 }
 0x149   : > { %v2002_v20 = vsel %vm4399_vm8, 0, %v2001_v50  ;;  %v2367_v25 = vrot.slane %v2345_v27, %v4023_v8  ;;  %v3061_v29 = vrot.slane %v3047_v6, %v4023_v8  ;;  %v3062_v30 = vcombine.high %v3054_v9, %v3054_v9 }
 0x14a   : > { %2003 = vst [vmem:[%s4335_s20 + $0x8] sm:$0x4] %v2002_v20  ;;  %v3387_v54 = vcombine.low %v3372_v16, %v3379_v31  ;;  %v4535_v32 = vrot.slane %v2346_v15, %v4023_v8  ;;  %v2376_v36 = vcombine.high %v2360_v23, %v2360_v23  ;;  %v2513_v22 = vrot.slane %v2360_v23, %v4023_v8  ;;  %v2696_v20 = vld [vmem:[%s4565_s23] sm:$0x7] }
 0x14b   : > { %v2004_v26 = vld [vmem:[%s4335_s20 + $0xc] sm:$0x4]  ;;  %v2491_v39 = vcombine.low %v2353_v24, %v2367_v25  ;;  %v3802_v40 = vcombine.high %v2353_v24, %v2367_v25  ;;  %v3063_v43 = vcombine.high %v3061_v29, %v3061_v29  ;;  %v3070_v35 = vrot.slane %v3054_v9, %v4023_v8 }
 0x14c   : > { %v2005_v38 = vsel %vm4399_vm8, 0, %v2004_v26  ;;  %v2528_v44 = vrot.slane %v2513_v22, %v4023_v8  ;;  %v3077_v51 = vrot.slane %v3061_v29, %v4023_v8  ;;  %v3084_v45 = vrot.slane %v3062_v30, %v4023_v8  ;;  %v3413_v22 = vld [vmem:[%s4585_s26] sm:$0x7] }
 0x14d   : > { %2006 = vst [vmem:[%s4335_s20 + $0xc] sm:$0x4] %v2005_v38  ;;  %v2499_v2 = vrot.slane %v2491_v39, %v4023_v8  ;;  %v2506_v48 = vrot.slane %v3802_v40, %v4023_v8  ;;  %v4548_v34 = vrot.slane %v3063_v43, %v4023_v8  ;;  %v2325_v49 = vmax.f32 %v2319_v47, 0.0 }
 0x14e   : > { %v3093_v19 = vcombine.high %v3077_v51, %v3077_v51  ;;  %v3208_v52 = vcombine.low %v3070_v35, %v3084_v45  ;;  %v3820_v53 = vcombine.high %v3070_v35, %v3084_v45  ;;  %v3230_v56 = vrot.slane %v3077_v51, %v4023_v8 }
 0x14f   : > { %v2514_v60 = vcombine.low %v2499_v2, %v2506_v48  ;;  %v4552_v10 = vcombine.low %v4535_v32, %v2376_v36  ;;  %v2483_v59 = vrot.slane %v2325_v49, %v4023_v8  ;;  %v3036_v62 = vadd.f32 %v4346_v28, %v4188_v55 }
 0x150   : > { %v3216_v18 = vrot.slane %v3208_v52, %v4023_v8  ;;  %v3223_v0 = vrot.slane %v3820_v53, %v4023_v8  ;;  %v3245_v1 = vrot.slane %v3230_v56, %v4023_v8  ;;  %v2677_v3 = vrot.slane %v2670_v13, %v4023_v8 }
 0x151   : > { %v2521_v41 = vrot.slane %v2514_v60, %v4023_v8  ;;  %v4569_v6 = vcombine.low %v4548_v34, %v3093_v19  ;;  %v2490_v28 = vrot.slane %v2483_v59, %v4023_v8  ;;  %v3042_v9 = vmax.f32 %v3036_v62, 0.0 }
 0x152   : > { %v3231_v12 = vcombine.low %v3216_v18, %v3223_v0  ;;  %v3394_v14 = vrot.slane %v3387_v54, %v4023_v8  ;;  %v2311_v13 = vadd.f32 %v4188_v55, %v4313_v61  ;;  %v2378_v27 = vcombine.high %v4535_v32, %v4535_v32  ;;  %v3425_v0 = vld [vmem:[%s4585_s26 + $0x10] sm:$0x7] }
 0x153   : > { %v2529_v50 = vcombine.low %v2521_v41, %v2528_v44  ;;  %v2669_v16 = vrot.slane %v2490_v28, %v4023_v8  ;;  %v3200_v31 = vrot.slane %v3042_v9, %v4023_v8  ;;  %v3028_v47 = vadd.f32 %v4188_v55, %v4350_v33  ;;  %v2708_v44 = vld [vmem:[%s4565_s23 + $0x10] sm:$0x7] }
 0x154   : > { %v3238_v61 = vrot.slane %v3231_v12, %v4023_v8  ;;  %v2323_v15 = vmax.f32 %v2311_v13, 0.0  ;;  %v2538_v23 = vrot.slane %v4552_v10, %v4023_v8  ;;  %v3095_v24 = vcombine.high %v4548_v34, %v4548_v34 }
 0x155   : > { %v2691_v25 = vpack.c.bf16 %v2529_v50, %v2529_v50  ;;  %v2684_v55 = vrot.slane %v2669_v16, %v4023_v8  ;;  %v3207_v33 = vrot.slane %v3200_v31, %v4023_v8  ;;  %v3040_v29 = vmax.f32 %v3028_v47, 0.0 }
 0x156   : > { %v3246_v30 = vcombine.low %v3238_v61, %v3245_v1  ;;  %v2379_v26 = vcombine.high %v2323_v15, %v2323_v15  ;;  %v2386_v54 = vrot.slane %v2323_v15, %v4023_v8  ;;  %v3255_v32 = vrot.slane %v4569_v6, %v4023_v8 }
 0x157   : > { %v2697_v36 = vsel %vm4271_vm5, %v2691_v25, %v2696_v20  ;;  %v2685_v38 = vcombine.low %v2677_v3, %v2684_v55  ;;  %v3386_v39 = vrot.slane %v3207_v33, %v4023_v8  ;;  %v3096_v40 = vcombine.high %v3040_v29, %v3040_v29 }
 0x158   : > { %2698 = vst [vmem:[%s4565_s23] sm:$0x7] %v2697_v36  ;;  %v3408_v43 = vpack.c.bf16 %v3246_v30, %v3246_v30  ;;  %v2393_v35 = vrot.slane %v2379_v26, %v4023_v8  ;;  %v2394_v51 = vcombine.high %v2386_v54, %v2386_v54  ;;  %v2402_v45 = vrot.slane %v2386_v54, %v4023_v8 }
 0x159   : > { %v2695_v2 = vpack.c.bf16 %v2685_v38, %v2685_v38  ;;  %v3401_v48 = vrot.slane %v3386_v39, %v4023_v8  ;;  %v3103_v49 = vrot.slane %v3040_v29, %v4023_v8  ;;  %v3110_v19 = vrot.slane %v3096_v40, %v4023_v8 }
 0x15a   : > { %v3414_v52 = vsel %vm4271_vm5, %v3408_v43, %v3413_v22  ;;  %v2395_v53 = vcombine.high %v2393_v35, %v2393_v35  ;;  %v2409_v56 = vrot.slane %v2393_v35, %v4023_v8  ;;  %v2416_v60 = vrot.slane %v2394_v51, %v4023_v8 }
 0x15b   : > { %3415 = vst [vmem:[%s4585_s26] sm:$0x7] %v3414_v52  ;;  %v2709_v10 = vsel %vm4271_vm5, %v2695_v2, %v2708_v44  ;;  %v3402_v59 = vcombine.low %v3394_v14, %v3401_v48  ;;  %v2531_v62 = vcombine.low %v2378_v27, %v2402_v45  ;;  %v3111_v18 = vcombine.high %v3103_v49, %v3103_v49 }
 0x15c   : > { %2710 = vst [vmem:[%s4565_s23 + $0x10] sm:$0x7] %v2709_v10  ;;  %v2423_v1 = vrot.slane %v2395_v53, %v4023_v8  ;;  %v2425_v3 = vcombine.high %v2409_v56, %v2409_v56  ;;  %v2552_v41 = vrot.slane %v2416_v60, %v4023_v8  ;;  %v3803_v28 = vcombine.high %v2402_v45, %v2416_v60 }
 0x15d   : > { %v3412_v9 = vpack.c.bf16 %v3402_v59, %v3402_v59  ;;  %v2545_v12 = vrot.slane %v2531_v62, %v4023_v8  ;;  %v3112_v13 = vcombine.high %v3110_v19, %v3110_v19  ;;  %v3119_v50 = vrot.slane %v3103_v49, %v4023_v8  ;;  %v2702_v62 = vld [vmem:[%s4565_s23 + $0x8] sm:$0x7] }
 0x15e   : > { %v2427_v14 = vcombine.high %v2423_v1, %v2423_v1  ;;  %v2567_v27 = vrot.slane %v2552_v41, %v4023_v8  ;;  %v2570_v16 = vcombine.low %v2409_v56, %v2423_v1  ;;  %v2577_v31 = vrot.slane %v3803_v28, %v4023_v8 }
 0x15f   : > { %v2711_v47 = vld [vmem:[%s4565_s23] sm:$0x1]  ;;  %v3426_v20 = vsel %vm4271_vm5, %v3412_v9, %v3425_v0  ;;  %v2553_v61 = vcombine.low %v2538_v23, %v2545_v12  ;;  %v2591_v15 = vrot.slane %v2425_v3, %v4023_v8  ;;  %v3126_v25 = vrot.slane %v3110_v19, %v4023_v8  ;;  %v2705_v9 = vld [vmem:[%s4565_s23 + $0xc] sm:$0x7] }
 0x160   : > { %v2712_v55 = vsel %vm4325_vm6, 0, %v2711_v47  ;;  %3427 = vst [vmem:[%s4585_s26 + $0x10] sm:$0x7] %v3426_v20  ;;  %v2584_v33 = vrot.slane %v2570_v16, %v4023_v8  ;;  %v2608_v29 = vcombine.low %v2427_v14, %v4443_v5  ;;  %v3133_v30 = vrot.slane %v3111_v18, %v4023_v8 }
 0x161   : > { %2713 = vst [vmem:[%s4565_s23] sm:$0x1] %v2712_v55  ;;  %v2560_v26 = vrot.slane %v2553_v61, %v4023_v8  ;;  %v2606_v23 = vrot.slane %v2591_v15, %v4023_v8  ;;  %v3140_v54 = vrot.slane %v3112_v13, %v4023_v8  ;;  %v3142_v36 = vcombine.high %v3126_v25, %v3126_v25 }
 0x162   : > { %v3428_v22 = vld [vmem:[%s4585_s26] sm:$0x4]  ;;  %v2592_v38 = vcombine.low %v2577_v31, %v2584_v33  ;;  %v2616_v39 = vrot.slane %v2608_v29, %v4023_v8  ;;  %v3248_v5 = vcombine.low %v3095_v24, %v3119_v50  ;;  %v3269_v40 = vrot.slane %v3133_v30, %v4023_v8  ;;  %v2699_v24 = vld [vmem:[%s4565_s23 + $0x4] sm:$0x7]  ;;  %v3419_v33 = vld [vmem:[%s4585_s26 + $0x8] sm:$0x7] }
 0x163   : > { %v3429_v43 = vsel %vm4399_vm8, 0, %v3428_v22  ;;  %v2723_v44 = vld [vmem:[%s4565_s23 + $0x10] sm:$0x1]  ;;  %v2568_v35 = vcombine.low %v2560_v26, %v2567_v27  ;;  %v3144_v51 = vcombine.high %v3140_v54, %v3140_v54  ;;  %v3821_v45 = vcombine.high %v3119_v50, %v3133_v30  ;;  %v3416_v27 = vld [vmem:[%s4585_s26 + $0x4] sm:$0x7] }
 0x164   : > { %3430 = vst [vmem:[%s4585_s26] sm:$0x4] %v3429_v43  ;;  %v2724_v2 = vsel %vm4325_vm6, 0, %v2723_v44  ;;  %v2599_v48 = vrot.slane %v2592_v38, %v4023_v8  ;;  %v2631_v34 = vcombine.low %v2616_v39, %v2623_v57  ;;  %v3262_v49 = vrot.slane %v3248_v5, %v4023_v8 }
 0x165   : > { %v3326_v19 = vcombine.low %v4506_v11, %v3190_v4  ;;  %2725 = vst [vmem:[%s4565_s23 + $0x10] sm:$0x1] %v2724_v2  ;;  %v2692_v52 = vpack.c.bf16 %v2568_v35, %v2568_v35  ;;  %v3284_v53 = vrot.slane %v3269_v40, %v4023_v8  ;;  %v3287_v56 = vcombine.low %v3126_v25, %v3140_v54 }
 0x166   : > { %v2607_v60 = vcombine.low %v2599_v48, %v2606_v23  ;;  %v2638_v10 = vrot.slane %v2631_v34, %v4023_v8  ;;  %v3270_v37 = vcombine.low %v3255_v32, %v3262_v49  ;;  %v3294_v57 = vrot.slane %v3821_v45, %v4023_v8 }
 0x167   : > { %v3440_v59 = vld [vmem:[%s4585_s26 + $0x10] sm:$0x4]  ;;  %v2700_v4 = vsel %vm4271_vm5, %v2692_v52, %v2699_v24  ;;  %v3301_v18 = vrot.slane %v3287_v56, %v4023_v8  ;;  %v3308_v0 = vrot.slane %v3142_v36, %v4023_v8  ;;  %v3325_v1 = vcombine.low %v3144_v51, %v4499_v58 }
 0x168   : > { %v3441_v6 = vsel %vm4399_vm8, 0, %v3440_v59  ;;  %v2646_v32 = vcombine.low %v2638_v10, %v2645_v63  ;;  %v2693_v3 = vpack.c.bf16 %v2607_v60, %v2607_v60  ;;  %2701 = vst [vmem:[%s4565_s23 + $0x4] sm:$0x7] %v2700_v4  ;;  %v3277_v41 = vrot.slane %v3270_v37, %v4023_v8 }
 0x169   : > { %v3340_v28 = vrot.slane %v3326_v19, %v4023_v8  ;;  %v3347_v58 = vrot.slane %v3192_v42, %v4023_v8  ;;  %3442 = vst [vmem:[%s4585_s26 + $0x10] sm:$0x4] %v3441_v6  ;;  %v3309_v12 = vcombine.low %v3294_v57, %v3301_v18  ;;  %v3333_v46 = vrot.slane %v3325_v1, %v4023_v8 }
 0x16a   : > { %v2694_v63 = vpack.c.bf16 %v2646_v32, %v2646_v32  ;;  %v2703_v13 = vsel %vm4271_vm5, %v2693_v3, %v2702_v62  ;;  %v3285_v50 = vcombine.low %v3277_v41, %v3284_v53  ;;  %v3323_v11 = vrot.slane %v3308_v0, %v4023_v8 }
 0x16b   : > { %2704 = vst [vmem:[%s4565_s23 + $0x8] sm:$0x7] %v2703_v13  ;;  %v3316_v14 = vrot.slane %v3309_v12, %v4023_v8  ;;  %v3348_v42 = vcombine.low %v3333_v46, %v3340_v28  ;;  %v3362_v20 = vrot.slane %v3347_v58, %v4023_v8 }
 0x16c   : > { %v3805_v16 = vld [vmem:[%s4565_s23 + $0x10] sm:$0x7]  ;;  %v2706_v31 = vsel %vm4271_vm5, %v2694_v63, %v2705_v9  ;;  %v3409_v47 = vpack.c.bf16 %v3285_v50, %v3285_v50 }
 0x16d   : > { %v2731_v61 = vsel %vm4271_vm5, 0, %v3805_v16  ;;  %2707 = vst [vmem:[%s4565_s23 + $0xc] sm:$0x7] %v2706_v31  ;;  %v3324_v15 = vcombine.low %v3316_v14, %v3323_v11  ;;  %v3355_v25 = vrot.slane %v3348_v42, %v4023_v8  ;;  %v3422_v8 = vld [vmem:[%s4585_s26 + $0xc] sm:$0x7] }
 0x16e   : > { %3806 = vst [vmem:[%s4565_s23 + $0x10] sm:$0x7] %v2731_v61  ;;  %v3417_v55 = vsel %vm4271_vm5, %v3409_v47, %v3416_v27 }
 0x16f   : > { %v2714_v29 = vld [vmem:[%s4565_s23 + $0x4] sm:$0x1]  ;;  %v3363_v30 = vcombine.low %v3355_v25, %v3362_v20  ;;  %v3410_v26 = vpack.c.bf16 %v3324_v15, %v3324_v15  ;;  %3418 = vst [vmem:[%s4585_s26 + $0x4] sm:$0x7] %v3417_v55 }
 0x170   : > { %v3823_v23 = vld [vmem:[%s4585_s26 + $0x10] sm:$0x7]  ;;  %v2715_v54 = vsel %vm4325_vm6, 0, %v2714_v29 }
 0x171   : > { %v3448_v36 = vsel %vm4271_vm5, 0, %v3823_v23  ;;  %2716 = vst [vmem:[%s4565_s23 + $0x4] sm:$0x1] %v2715_v54  ;;  %v3411_v22 = vpack.c.bf16 %v3363_v30, %v3363_v30  ;;  %v3420_v38 = vsel %vm4271_vm5, %v3410_v26, %v3419_v33 }
 0x172   : > { %3824 = vst [vmem:[%s4585_s26 + $0x10] sm:$0x7] %v3448_v36  ;;  %v2717_v39 = vld [vmem:[%s4565_s23 + $0x8] sm:$0x1]  ;;  %3421 = vst [vmem:[%s4585_s26 + $0x8] sm:$0x7] %v3420_v38 }
 0x173   : > { %v2718_v5 = vsel %vm4325_vm6, 0, %v2717_v39  ;;  %v3423_v40 = vsel %vm4271_vm5, %v3411_v22, %v3422_v8 }
 0x174   : > { %2719 = vst [vmem:[%s4565_s23 + $0x8] sm:$0x1] %v2718_v5  ;;  %v2720_v43 = vld [vmem:[%s4565_s23 + $0xc] sm:$0x1]  ;;  %3424 = vst [vmem:[%s4585_s26 + $0xc] sm:$0x7] %v3423_v40 }
 0x175   : > { %v2721_v44 = vsel %vm4325_vm6, 0, %v2720_v43 }
 0x176   : > { %2722 = vst [vmem:[%s4565_s23 + $0xc] sm:$0x1] %v2721_v44  ;;  %v3431_v35 = vld [vmem:[%s4585_s26 + $0x4] sm:$0x4] }
 0x177   : > { %v3432_v51 = vsel %vm4399_vm8, 0, %v3431_v35 }
 0x178   : > { %3433 = vst [vmem:[%s4585_s26 + $0x4] sm:$0x4] %v3432_v51 }
 0x179   : > { %v3434_v45 = vld [vmem:[%s4585_s26 + $0x8] sm:$0x4] }
 0x17a   : > { %v3435_v2 = vsel %vm4399_vm8, 0, %v3434_v45 }
 0x17b   : > { %3436 = vst [vmem:[%s4585_s26 + $0x8] sm:$0x4] %v3435_v2  ;;  %v3437_v48 = vld [vmem:[%s4585_s26 + $0xc] sm:$0x4] }
 0x17c   : > { %v3438_v21 = vsel %vm4399_vm8, 0, %v3437_v48 }
 0x17d   : > { %3439 = vst [vmem:[%s4585_s26 + $0xc] sm:$0x4] %v3438_v21 }
 0x17e PF: > { %s20_s11 = sadd.s32 1, %s3925_s11   ;;  %s4769_s30 = smov %s3921_s10 }
 0x17f   : > { %p17_p5 = scmp.ge.s32.totalorder %s20_s11, 4   ;;  %s4770_s10 = smov %s4772_s12 }
 0x181   :  { %19 = sbr.rel (!%p17_p5) target bundleno = 2 (0x2), region = 137 }

// kernel: multiscale_net_v14_forward.23
= control target key start
LH: loop header
LB: loop body
LE: loop exit
PB: predicated region body
PF: predicated region fallthrough
CT: control target
= control target key end

     0   :  { %8 = vsyncpa [#allocation3], 0  ;;  %s802_s0 = inlined_call_operand.vmem [shape: bf16[2,4,4,128], index: 0, kind: input, shape index: {}]   ;;  %s803_s1 = inlined_call_operand.vmem [shape: bf16[2,4,4,128], index: 1, kind: input, shape index: {}]   ;;  %s804_s2 = inlined_call_operand.vmem [shape: f32[2,4,4,1], index: 2, kind: input, shape index: {}]   ;;  %s805_s3 = inlined_call_operand.hbm [shape: f32[2,4,4,128], index: 3, kind: output, shape index: {}]  }
   0x1   :  { %10 = vsyncpa [#allocation3 + $0x1], 0  ;;  %s681_s12 = smov 0   ;;  %s683_s13 = smov 0  }
   0x2   :  { %s685_s14 = smov 0   ;;  %s687_s15 = smov 0  }
   0x3   :  { %s689_s16 = smov 0   ;;  %s691_s17 = smov 0  }
   0x4 LB: > { %s488_s18 = sadd.s32 4294967295, %s655_s17   ;;  %s489_s19 = sadd.s32 4294967294, %s655_s17   ;;  %s655_s17 = sphi %s691_s17, %s16_s17   ;;  %s651_s16 = sphi %s689_s16, %s812_s16   ;;  %s647_s15 = sphi %s687_s15, %s811_s15   ;;  %s643_s14 = sphi %s685_s14, %s810_s14   ;;  %s639_s13 = sphi %s683_s13, %s809_s13   ;;  %s635_s12 = sphi %s681_s12, %s808_s12  }
   0x5   : > { %s28_s20 = sadd.s32 1, %s651_s16  ;;  %s121_s21 = sadd.s32 1, %s643_s14 }
   0x6   : > { %p30_p0 = scmp.ge.s32.totalorder %s28_s20, 2  ;;  %p131_p1 = scmp.ne.s32.totalorder %s643_s14, %s639_s13 }
   0x7   : > { %p132_p2 = scmp.eq.s32.totalorder %s488_s18, 1  ;;  %p137_p3 = scmp.ne.s32.totalorder %s639_s13, %s635_s12 }
   0x8   : > { %s814_s20 = smov (%p30_p0, %s28_s20), 0  ;;  %p138_p5 = scmp.eq.s32.totalorder %s489_s19, 1 }
   0x9   : > { %p721_p4 = por %p132_p2, %p131_p1  ;;  %s116_s23 = ssub.s32 %s651_s16, %s814_s20 }
   0xa   : > { %p492_p6 = scmp.ge.s32.totalorder %s655_s17, 1  ;;  %p119_p7 = scmp.eq.s32.totalorder %s116_s23, 0 }
   0xb   : > { %p728_p8 = por %p138_p5, %p137_p3  ;;  %p195_p9 = scmp.lt.s32.totalorder %s655_s17, 3 }
   0xc   : > { %s734_s25 = scalar_select %p119_p7, %s643_s14, %s121_s21  }
   0xd   : > { %p196_p10 = pnand %p492_p6, %p195_p9 }
   0xe   : > { %p242_p11 = scmp.lt.s32.totalorder (!%p196_p10), %s647_s15, 1  ;;  %v657_v0 = vmov (!%p196_p10), 0   ;;  %vm328_vm0 = vcmask (!%p196_p10), 1043456   ;;  %s238_s11 = sand.u32 (!%p196_p10), 1, %s639_s13  }
   0xf   : > { %199 = sbr.rel (%p196_p10) target bundleno = 342 (0x156), region = 32  ;;  %568 = vset.pattern.permute.xlu1 (!%p196_p10), %v657_v0  ;;  %567 = vset.pattern.permute.xlu0 (!%p196_p10), %v657_v0  ;;  %s493_s18 = sshll.u32 (!%p196_p10), %s238_s11, 4 }
  0x10   : > { %s240_s19 = scalar_lea.vmem (!%p196_p10), [#allocation2], %s493_s18  ;;  %s508_s21 = sshll.u32 (!%p196_p10), %s647_s15, 8 }
  0x11   : > { %s373_s23 = sshll.u32 (!%p196_p10), %s240_s19, 4  ;;  %s752_s28 = scalar_lea.hbm (!%p196_p10), %s805_s3, %s508_s21  ;;  %s754_s23 = int_to_ptr.vmem [resolvable:$true] %s373_s23 }
  0x12   : > { %s756_s29 = scalar_lea.sflag (!%p196_p10), [#allocation3], %s238_s11 }
  0x16   : > { %s243_s26 = scalar_select %p242_p11, %s647_s15, 1 }
  0x17   : > { %s577_s15 = scalar_lea.vmem %s754_s23, 256 }
  0x18   : > { %s507_s27 = sshll.u32 %s243_s26, 4  ;;  %s505_s4 = sshll.u32 %s243_s26, 3 }
  0x19   : > { %s269_s30 = scalar_lea.vmem %s804_s2, %s507_s27  ;;  %s249_s7 = scalar_lea.vmem %s802_s0, %s505_s4 }
  0x1a   : > { %v290_v1 = vld [vmem:[%s269_s30 + $0x8] sm:$0xf]  ;;  %v288_v2 = vld [vmem:[%s269_s30] sm:$0xf]  ;;  %v291_v3 = vld [vmem:[%s269_s30 + $0xc] sm:$0xf]  ;;  %s259_s10 = scalar_lea.vmem %s803_s1, %s505_s4  ;;  %p578_p12 = scmp.ne.s32.totalorder %s754_s23, %s577_s15 }
  0x1b   : > { %308 = vperm.xlu1 %568, %v290_v1   ;;  %298 = vperm.xlu0 %567, %v288_v2   ;;  %v289_v4 = vld [vmem:[%s269_s30 + $0x4] sm:$0xf]  ;;  %v272_v7 = vld [vmem:[%s249_s7] sm:$0x3]  ;;  %v273_v15 = vld [vmem:[%s249_s7 + $0x2] sm:$0x3] }
  0x1c   : > { %v274_v5 = vld [vmem:[%s249_s7 + $0x4] sm:$0x3]  ;;  %v280_v8 = vld [vmem:[%s259_s10] sm:$0x3]  ;;  %v276_v11 = vunpack.c.l.bf16 %v272_v7  ;;  %v275_v13 = vld [vmem:[%s249_s7 + $0x6] sm:$0x3]  ;;  %v277_v21 = vunpack.c.l.bf16 %v273_v15  ;;  %p579_p13 = pnand %p578_p12, %p721_p4 }
  0x1d   : > { %v282_v6 = vld [vmem:[%s259_s10 + $0x4] sm:$0x3]  ;;  %v278_v9 = vunpack.c.l.bf16 %v274_v5  ;;  %v284_v12 = vunpack.c.l.bf16 %v280_v8  ;;  %v283_v14 = vld [vmem:[%s259_s10 + $0x6] sm:$0x3]  ;;  %v281_v16 = vld [vmem:[%s259_s10 + $0x2] sm:$0x3]  ;;  %v279_v18 = vunpack.c.l.bf16 %v275_v13 }
  0x1e   : > { %v286_v10 = vunpack.c.l.bf16 %v282_v6  ;;  %v287_v20 = vunpack.c.l.bf16 %v283_v14  ;;  %v285_v22 = vunpack.c.l.bf16 %v281_v16  ;;  %p580_p0 = pneg %p579_p13  ;;  %s658_s30 = smov [#allocation2]  }
  0x1f   : > { %313 = vperm.xlu1 %568, %v291_v3   ;;  %303 = vperm.xlu0 %567, %v289_v4   ;;  %v292_v19 = vsub.f32 %v284_v12, %v276_v11  ;;  %s581_s4 = sshll.u32 %s658_s30, 4  ;;  %s582_s4 = int_to_ptr.vmem [resolvable:$false] %s581_s4 }
  0x20   : > { %v294_v17 = vsub.f32 %v286_v10, %v278_v9  ;;  %v295_v27 = vsub.f32 %v287_v20, %v279_v18  ;;  %v293_v28 = vsub.f32 %v285_v22, %v277_v21  ;;  %s583_s5 = scalar_lea.vmem %s582_s4, 512  ;;  %p584_p1 = scmp.lt.s32.totalorder %s754_s23, %s582_s4 }
  0x21   : > { %p585_p2 = scmp.lt.s32.totalorder %s583_s5, %s577_s15 }
  0x23   : > { %p586_p3 = por %p585_p2, %p584_p1 }
  0x25   : > { %p587_p5 = pnand %p586_p3, %p580_p0 }
  0x9a   : > { %v309_v23 = vpop.permute.xlu1 %308  ;;  %v299_v24 = vpop.permute.xlu0 %298 }
  0x9b   : > { %v318_v25 = vmul.f32 %v309_v23, %v294_v17  ;;  %v316_v26 = vmul.f32 %v299_v24, %v292_v19 }
  0x9d   : > { %v322_v29 = vadd.f32 %v318_v25, %v278_v9  ;;  %v320_v30 = vadd.f32 %v316_v26, %v276_v11 }
  0x9e   : > { %v314_v31 = vpop.permute.xlu1 %313  ;;  %v304_v32 = vpop.permute.xlu0 %303 }
  0x9f   : > { %v319_v33 = vmul.f32 %v314_v31, %v295_v27  ;;  %v317_v34 = vmul.f32 %v304_v32, %v293_v28  ;;  %v324_v35 = vmul.f32 %v320_v30, %v320_v30  ;;  %v326_v36 = vmul.f32 %v322_v29, %v322_v29 }
  0xa1   : > { %v323_v37 = vadd.f32 %v319_v33, %v279_v18  ;;  %v321_v38 = vadd.f32 %v317_v34, %v277_v21  ;;  %v329_v39 = vsel %vm328_vm0, %v324_v35, 0.0  ;;  %v335_v41 = vsel %vm328_vm0, %v326_v36, 0.0 }
  0xa2   : > { %330 = vadd.xlane.f32.xlu0 %v329_v39 }
  0xa3   : > { %v325_v40 = vmul.f32 %v321_v38, %v321_v38  ;;  %v327_v43 = vmul.f32 %v323_v37, %v323_v37 }
  0xa5   : > { %v332_v42 = vsel %vm328_vm0, %v325_v40, 0.0  ;;  %v338_v44 = vsel %vm328_vm0, %v327_v43, 0.0 }
  0xa6   : > { %333 = vadd.xlane.f32.xlu1 %v332_v42  ;;  %336 = vadd.xlane.f32.xlu0 %v335_v41 }
  0xaa   : > { %339 = vadd.xlane.f32.xlu0 %v338_v44 }
 0x12f   : > { %v331_v45 = vpop.xlane.xlu0 %330 }
 0x130   : > { %v341_v46 = vmax.f32 %v331_v45, 1e-24 }
 0x132   : > { %569 = vrsqrt.f32 %v341_v46 }
 0x133   : > { %v334_v47 = vpop.xlane.xlu1 %333  ;;  %v337_v48 = vpop.xlane.xlu0 %336 }
 0x134   : > { %v342_v49 = vmax.f32 %v334_v47, 1e-24  ;;  %v343_v50 = vmax.f32 %v337_v48, 1e-24 }
 0x136   : > { %571 = vrsqrt.f32 %v342_v49 }
 0x137   : > { %573 = vrsqrt.f32 %v343_v50  ;;  %v340_v51 = vpop.xlane.xlu0 %339 }
 0x138   : > { %v344_v52 = vmax.f32 %v340_v51, 1e-24 }
 0x13a   : > { %575 = vrsqrt.f32 %v344_v52 }
 0x13c   : > { %v570_v53 = vpop.eup %569 }
 0x13d   : > { %v349_v54 = vmul.f32 %v570_v53, %v320_v30 }
 0x13f   : > { %353 = vst [vmem:[%s240_s19] sm:$0xf] %v349_v54 }
 0x140   : > { %v572_v55 = vpop.eup %571 }
 0x141   : > { %v574_v56 = vpop.eup %573  ;;  %v350_v57 = vmul.f32 %v572_v55, %v321_v38 }
 0x142   : > { %v351_v58 = vmul.f32 %v574_v56, %v322_v29 }
 0x143   : > { %354 = vst [vmem:[%s240_s19 + $0x4] sm:$0xf] %v350_v57 }
 0x144   : > { %v576_v59 = vpop.eup %575  ;;  %355 = vst [vmem:[%s240_s19 + $0x8] sm:$0xf] %v351_v58 }
 0x145   : > { %v352_v60 = vmul.f32 %v576_v59, %v323_v37 }
 0x147   : > { %356 = vst [vmem:[%s240_s19 + $0xc] sm:$0xf] %v352_v60 }
 0x148   : > { %590 = shalt.err (!%p587_p5)
}
 0x149   : > { %s591_s6 = scalar_lea.hbm %s752_s28, 256  ;;  %s595_s9 = scalar_lea.hbm %s805_s3, 512 }
 0x14a   : > { %p592_p6 = scmp.ne.s32.totalorder %s752_s28, %s591_s6  ;;  %p596_p10 = scmp.lt.u32.totalorder %s752_s28, %s805_s3 }
 0x14b   : > { %p597_p11 = scmp.lt.u32.totalorder %s595_s9, %s591_s6  ;;  %p599_p13 = scmp.lt.u32.totalorder %s591_s6, %s752_s28 }
 0x14c   : > { %p593_p7 = pnand %p592_p6, %p721_p4 }
 0x14d   : > { %p598_p12 = por %p597_p11, %p596_p10 }
 0x14e   : > { %p594_p9 = pneg %p593_p7 }
 0x14f   : > { %p600_p0 = por %p599_p13, %p598_p12 }
 0x151   : > { %p601_p1 = pnand %p600_p0, %p594_p9 }
 0x153   : > { %604 = shalt.err (!%p601_p1)
}
 0x154   : > { %s659_s18 = smov 64   ;;  %s660_s19 = smov 4  }
 0x155   : > { %509 = dma.vmem_to_hbm [thread:$0]  (%p721_p4), %s754_s23, 256, %s752_s28, %s756_s29, %s659_s18, %s659_s18, %s660_s19  }
 0x156 PF: > { %p515_p2 = scmp.ge.s32.totalorder %s655_s17, 2  ;;  %s388_s21 = sand.u32 1, %s635_s12  }
 0x157   : > { %s389_s26 = scalar_lea.sflag [#allocation3], %s388_s21 }
 0x158   : > { %p512_p3 = pnand %p515_p2, %p728_p8 }
 0x15a   : > { %630 = dma.done.wait (!%p512_p3), %s389_s26, 256  }
 0x15b   : > { %632 = vsyncadd (!%p512_p3), %s389_s26, 4294967040  ;;  %s16_s17 = sadd.s32 1, %s655_s17   ;;  %s808_s12 = smov %s639_s13 }
 0x15c   : > { %p13_p5 = scmp.ge.s32.totalorder %s16_s17, 4   ;;  %s809_s13 = smov %s643_s14 }
 0x15d   : > { %s810_s14 = smov %s734_s25  ;;  %s811_s15 = smov %s651_s16 }
 0x15e   : > { %s812_s16 = smov %s814_s20  ;;  %15 = sbr.rel (!%p13_p5) target bundleno = 4 (0x4), region = 73 }
 0x165   :  { %394 = vsyncpa [#allocation3], 1 }
 0x166   :  { %396 = vsyncpa [#allocation3 + $0x1], 1 }

// kernel: multiscale_net_v14_forward.22
= control target key start
LH: loop header
LB: loop body
LE: loop exit
PB: predicated region body
PF: predicated region fallthrough
CT: control target
= control target key end

     0   :  { %s4133_s30 = smov 0   ;;  %s4135_s10 = smov 0   ;;  %s4881_s0 = inlined_call_operand.vmem [shape: bf16[2,2,2,128], index: 0, kind: input, shape index: {}, may-alias: {0,1,2}]   ;;  %s4882_s1 = inlined_call_operand.vmem [shape: bf16[2,2,2,128], index: 1, kind: input, shape index: {}, may-alias: {0,1,2}]   ;;  %s4883_s2 = inlined_call_operand.vmem [shape: bf16[2,2,2,128], index: 2, kind: input, shape index: {}, may-alias: {0,1,2}]   ;;  %s4884_s3 = inlined_call_operand.vmem [shape: bf16[128,256], index: 3, kind: input, shape index: {}]   ;;  %s4885_s4 = inlined_call_operand.vmem [shape: f32[1,256], index: 4, kind: input, shape index: {}]   ;;  %s4886_s5 = inlined_call_operand.vmem [shape: bf16[9,256,128], index: 5, kind: input, shape index: {}]   ;;  %s4887_s6 = inlined_call_operand.vmem [shape: f32[1,128], index: 6, kind: input, shape index: {}]   ;;  %s4888_s7 = inlined_call_operand.vmem [shape: bf16[128,128], index: 7, kind: input, shape index: {}]   ;;  %s4889_s8 = inlined_call_operand.vmem [shape: f32[1,128], index: 8, kind: input, shape index: {}]   ;;  %s4890_s9 = inlined_call_operand.vmem [shape: bf16[2,2,2,128], index: 9, kind: output, shape index: {}]  }
   0x1   :  { %s4137_s11 = smov 0  }
   0x2 LB: > { %s31_s12 = sadd.s32 1, %s4072_s10  ;;  %p3158_p0 = scmp.ge.s32.totalorder %s4076_s11, 1  ;;  %s4076_s11 = sphi %s4137_s11, %s19_s11   ;;  %s4072_s10 = sphi %s4135_s10, %s4902_s10   ;;  %s4068_s30 = sphi %s4133_s30, %s4901_s30  }
   0x3   : > { %p33_p1 = scmp.ge.s32.totalorder %s31_s12, 2  ;;  %p367_p2 = scmp.lt.s32.totalorder %s4076_s11, 3 }
   0x5   : > { %s4904_s12 = smov (%p33_p1, %s31_s12), 0  ;;  %p368_p3 = pnand %p3158_p0, %p367_p2 }
   0x6   : > { %v4154_v0 = vld [vmem:[%s4884_s3 + $0x4] ss:$8 sps:$4 sm:$0xff] (!%p368_p3)   ;;  %v4159_v1 = vld [vmem:[%s4884_s3] ss:$8 sps:$4 sm:$0xff] (!%p368_p3)   ;;  %v4078_v2 = vmov (!%p368_p3), 0   ;;  %p432_p4 = scmp.lt.s32.totalorder (!%p368_p3), %s4068_s30, 1  ;;  %v500_v8 = vlaneseq (!%p368_p3) }
   0x7   : > { %371 = sbr.rel (%p368_p3) target bundleno = 880 (0x370), region = 56  ;;  %640 = vmatprep.mubr.bf16.mxu0 (!%p368_p3), %v4078_v2  ;;  %769 = vmatprep.mubr.bf16.mxu1 (!%p368_p3), %v4078_v2  ;;  %v4167_v3 = vld [vmem:[%s4884_s3 + $0x14] ss:$8 sps:$4 sm:$0xff] (!%p368_p3)   ;;  %v4174_v4 = vld [vmem:[%s4884_s3 + $0x10] ss:$8 sps:$4 sm:$0xff] (!%p368_p3)   ;;  %v3902_v30 = vld [vmem:[%s4886_s5 + $0x40] sm:$0xff] (!%p368_p3)  }
   0x8   : > { %608 = vmatprep.subr.bf16.mxu0 (!%p368_p3), %v4154_v0  ;;  %737 = vmatprep.subr.bf16.mxu1 (!%p368_p3), %v4154_v0  ;;  %v3884_v5 = vld [vmem:[%s4884_s3 + $0x24] ss:$8 sps:$4 sm:$0xff] (!%p368_p3)   ;;  %v3886_v6 = vld [vmem:[%s4884_s3 + $0x20] ss:$8 sps:$4 sm:$0xff] (!%p368_p3)   ;;  %v3887_v7 = vld [vmem:[%s4884_s3 + $0x34] ss:$8 sps:$4 sm:$0xff] (!%p368_p3)  }
   0x9   : > { %609 = vmatpush1.bf16.msra.mxu0 (!%p368_p3), %v4159_v1  ;;  %738 = vmatpush1.bf16.msra.mxu1 (!%p368_p3), %v4159_v1  ;;  %v3889_v9 = vld [vmem:[%s4884_s3 + $0x30] ss:$8 sps:$4 sm:$0xff] (!%p368_p3)   ;;  %v3890_v10 = vld [vmem:[%s4884_s3 + $0x44] ss:$8 sps:$4 sm:$0xff] (!%p368_p3)   ;;  %v4198_v11 = vshrl.u32 (!%p368_p3), %v500_v8, 7  ;;  %vm723_vm0 = vcmask (!%p368_p3), 1041408  }
   0xa   : > { %610 = vmatprep.subr.bf16.mxu0 (!%p368_p3), %v4167_v3  ;;  %739 = vmatprep.subr.bf16.mxu1 (!%p368_p3), %v4167_v3  ;;  %v3892_v12 = vld [vmem:[%s4884_s3 + $0x40] ss:$8 sps:$4 sm:$0xff] (!%p368_p3)   ;;  %v3893_v13 = vld [vmem:[%s4884_s3 + $0x54] ss:$8 sps:$4 sm:$0xff] (!%p368_p3)   ;;  %v4079_v14 = vmov (!%p368_p3), 1966171168  }
   0xb   : > { %v514_v15 = vunpack.c.l.s4 (!%p368_p3), %v4079_v14  ;;  %v3895_v16 = vld [vmem:[%s4884_s3 + $0x50] ss:$8 sps:$4 sm:$0xff] (!%p368_p3)   ;;  %v3896_v19 = vld [vmem:[%s4884_s3 + $0x64] ss:$8 sps:$4 sm:$0xff] (!%p368_p3)   ;;  %v3898_v21 = vld [vmem:[%s4884_s3 + $0x60] ss:$8 sps:$4 sm:$0xff] (!%p368_p3)  }
   0xc   : > { %v3899_v22 = vld [vmem:[%s4884_s3 + $0x74] ss:$8 sps:$4 sm:$0xff] (!%p368_p3)   ;;  %v3901_v25 = vld [vmem:[%s4884_s3 + $0x70] ss:$8 sps:$4 sm:$0xff] (!%p368_p3)   ;;  %v3903_v31 = vld [vmem:[%s4886_s5] sm:$0xff] (!%p368_p3)   ;;  %vm726_vm2 = vcmask (!%p368_p3), 1043458  }
   0xd   : > { %611 = vmatpush1.bf16.msra.mxu0 (!%p368_p3), %v4174_v4  ;;  %740 = vmatpush1.bf16.msra.mxu1 (!%p368_p3), %v4174_v4  ;;  %v515_v20 = vunpack.c.0.s8 (!%p368_p3), %v514_v15  ;;  %v3904_v32 = vld [vmem:[%s4886_s5 + $0x48] sm:$0xff] (!%p368_p3)   ;;  %v3905_v33 = vld [vmem:[%s4886_s5 + $0xc0] sm:$0xff] (!%p368_p3)   ;;  %v3908_v36 = vld [vmem:[%s4886_s5 + $0x50] sm:$0xff] (!%p368_p3)   ;;  %vm724_vm1 = vsmask.f32 (!%p368_p3), 1282  ;;  %vm871_vm7 = vcmask (!%p368_p3), 1040384  }
   0xe   : > { %s4906_s30 = smov (!%p432_p4, %s4068_s30), 1  ;;  %612 = vmatprep.subr.bf16.mxu0 %v3884_v5  ;;  %741 = vmatprep.subr.bf16.mxu1 %v3884_v5  ;;  %v3906_v34 = vld [vmem:[%s4886_s5 + $0x8] sm:$0xff]   ;;  %v3907_v35 = vld [vmem:[%s4886_s5 + $0x80] sm:$0xff]   ;;  %v3910_v38 = vld [vmem:[%s4886_s5 + $0x10] sm:$0xff]   ;;  %vm727_vm3 = vsmask.f32 3338 }
   0xf   : > { %s4196_s14 = sshll.u32 %s4906_s30, 1  ;;  %v4224_v24 = vsub.s32 %v515_v20, %v4198_v11  ;;  %v3909_v37 = vld [vmem:[%s4886_s5 + $0xc8] sm:$0xff]   ;;  %v3912_v40 = vld [vmem:[%s4886_s5 + $0x58] sm:$0xff]   ;;  %v3913_v41 = vld [vmem:[%s4886_s5 + $0xd0] sm:$0xff]   ;;  %vm872_vm8 = vsmask.f32 256 }
  0x10   : > { %s464_s15 = sadd.s32 1, %s4196_s14  ;;  %s438_s30 = scalar_lea.vmem %s4881_s0, %s4196_s14  ;;  %v3911_v39 = vld [vmem:[%s4886_s5 + $0x88] sm:$0xff]   ;;  %v3914_v42 = vld [vmem:[%s4886_s5 + $0x18] sm:$0xff]   ;;  %v3915_v43 = vld [vmem:[%s4886_s5 + $0x90] sm:$0xff]   ;;  %vm874_vm9 = vcmask 1042434   ;;  %vm890_vm11 = vcmask 1041409  }
  0x11   : > { %613 = vmatpush1.bf16.msra.mxu0 %v3886_v6  ;;  %742 = vmatpush1.bf16.msra.mxu1 %v3886_v6  ;;  %v497_v17 = vld [vmem:[%s438_s30] sm:$0x1]  ;;  %v498_v18 = vld [vmem:[%s438_s30 + $0x1] sm:$0x1]  ;;  %s450_s19 = scalar_lea.vmem %s4882_s1, %s4196_s14  ;;  %s465_s30 = scalar_lea.vmem %s4883_s2, %s464_s15  ;;  %v3917_v45 = vld [vmem:[%s4886_s5 + $0xd8] sm:$0xff]   ;;  %vm893_vm13 = vcmask 1043459  }
  0x12   : > { %614 = vmatprep.subr.bf16.mxu0 %v3887_v7  ;;  %743 = vmatprep.subr.bf16.mxu1 %v3887_v7  ;;  %v512_v23 = vcombine.low %v497_v17, %v498_v18  ;;  %v736_v27 = vld [vmem:[%s450_s19] sm:$0x1]  ;;  %v3919_v47 = vld [vmem:[%s4886_s5 + $0x98] sm:$0xff]   ;;  %v3920_v48 = vld [vmem:[%s4886_s5 + $0x68] sm:$0xff]   ;;  %vm875_vm10 = vsmask.f32 2304  ;;  %s477_s15 = scalar_lea.vmem %s4890_s9, %s4196_s14 }
  0x13   : > { %v803_v29 = vld [vmem:[%s465_s30] sm:$0x1]  ;;  %v3922_v50 = vld [vmem:[%s4886_s5 + $0x28] sm:$0xff]   ;;  %v3924_v52 = vld [vmem:[%s4886_s5 + $0x70] sm:$0xff]   ;;  %vm891_vm12 = vsmask.f32 7942 }
  0x14   : > { %v519_v26 = vrot.slane %v512_v23, %v4224_v24  ;;  %v3916_v44 = vld [vmem:[%s4886_s5 + $0x60] sm:$0xff]   ;;  %v3925_v53 = vld [vmem:[%s4886_s5 + $0xe8] sm:$0xff]   ;;  %v3926_v54 = vld [vmem:[%s4886_s5 + $0x30] sm:$0xff]   ;;  %vm894_vm15 = vsmask.f32 7950 }
  0x15   : > { %615 = vmatpush1.bf16.msra.mxu0 %v3889_v9  ;;  %744 = vmatpush1.bf16.msra.mxu1 %v3889_v9  ;;  %v3918_v46 = vld [vmem:[%s4886_s5 + $0x20] sm:$0xff]   ;;  %v3927_v55 = vld [vmem:[%s4886_s5 + $0xa8] sm:$0xff]   ;;  %v3928_v56 = vld [vmem:[%s4886_s5 + $0x78] sm:$0xff]  }
  0x16   : > { %616 = vmatprep.subr.bf16.mxu0 %v3890_v10  ;;  %745 = vmatprep.subr.bf16.mxu1 %v3890_v10  ;;  %v526_v28 = vrot.slane %v519_v26, %v4224_v24  ;;  %v3921_v49 = vld [vmem:[%s4886_s5 + $0xe0] sm:$0xff]   ;;  %v3929_v57 = vld [vmem:[%s4886_s5 + $0xf0] sm:$0xff]   ;;  %v3930_v58 = vld [vmem:[%s4886_s5 + $0x38] sm:$0xff]  }
  0x17   : > { %v3923_v51 = vld [vmem:[%s4886_s5 + $0xa0] sm:$0xff]   ;;  %v3931_v59 = vld [vmem:[%s4886_s5 + $0xb0] sm:$0xff]   ;;  %v3933_v61 = vld [vmem:[%s4886_s5 + $0xf8] sm:$0xff]  }
  0x18   : > { %v3932_v60 = vld [vmem:[%s4886_s5 + $0x1c0] sm:$0xff]   ;;  %v3935_v62 = vld [vmem:[%s4886_s5 + $0xb8] sm:$0xff]   ;;  %vm725_vm4 = vmand %vm723_vm0, %vm724_vm1 }
  0x19   : > { %617 = vmatpush1.bf16.msra.mxu0 %v3892_v12  ;;  %746 = vmatpush1.bf16.msra.mxu1 %v3892_v12  ;;  %v3937_v63 = vld [vmem:[%s4886_s5 + $0x140] sm:$0xff]   ;;  %vm728_vm5 = vmand %vm726_vm2, %vm727_vm3 }
  0x1a   : > { %618 = vmatprep.subr.bf16.mxu0 %v3893_v13  ;;  %747 = vmatprep.subr.bf16.mxu1 %v3893_v13  ;;  %vm4367_vm6 = vmor %vm728_vm5, %vm725_vm4  ;;  %vm985_vm4 = vsmask.f32 1284 }
  0x1b   : > { %vm873_vm14 = vmand %vm871_vm7, %vm872_vm8 }
  0x1c   : > { %vm876_vm0 = vmand %vm874_vm9, %vm875_vm10  ;;  %vm987_vm9 = vsmask.f32 2312 }
  0x1d   : > { %619 = vmatpush1.bf16.msra.mxu0 %v3895_v16  ;;  %748 = vmatpush1.bf16.msra.mxu1 %v3895_v16  ;;  %vm892_vm1 = vmand %vm890_vm11, %vm891_vm12  ;;  %vm989_vm11 = vsmask.f32 3340 }
  0x1e   : > { %620 = vmatprep.subr.bf16.mxu0 %v3896_v19  ;;  %749 = vmatprep.subr.bf16.mxu1 %v3896_v19  ;;  %vm895_vm2 = vmand %vm893_vm13, %vm894_vm15 }
  0x1f   : > { %vm4376_vm3 = vmor %vm876_vm0, %vm873_vm14  ;;  %vm993_vm14 = vsmask.f32 5396  ;;  %vm995_vm0 = vsmask.f32 6424 }
  0x20   : > { %vm4380_vm5 = vmor %vm895_vm2, %vm892_vm1  ;;  %vm997_vm2 = vsmask.f32 7452 }
  0x21   : > { %621 = vmatpush1.bf16.msra.mxu0 %v3898_v21  ;;  %750 = vmatpush1.bf16.msra.mxu1 %v3898_v21  ;;  %vm986_vm7 = vmor %vm872_vm8, %vm985_vm4  ;;  %vm991_vm8 = vsmask.f32 4368 }
  0x22   : > { %622 = vmatprep.subr.bf16.mxu0 %v3899_v22  ;;  %751 = vmatprep.subr.bf16.mxu1 %v3899_v22  ;;  %vm988_vm10 = vmor %vm986_vm7, %vm987_vm9 }
  0x23   : > { %vm990_vm12 = vmor %vm988_vm10, %vm989_vm11 }
  0x24   : > { %vm4399_vm13 = vmor %vm990_vm12, %vm991_vm8 }
  0x25   : > { %623 = vmatpush1.bf16.msra.mxu0 %v3901_v25  ;;  %752 = vmatpush1.bf16.msra.mxu1 %v3901_v25  ;;  %vm994_vm15 = vmor %vm4399_vm13, %vm993_vm14 }
  0x26   : > { %804 = vmatprep.subr.bf16.mxu0 %v4154_v0  ;;  %3622 = vmatprep.subr.bf16.mxu1 %v3905_v33  ;;  %v502_v0 = vsub.s32 0, %v4198_v11  ;;  %vm996_vm1 = vmor %vm994_vm15, %vm995_vm0 }
  0x27   : > { %vm4411_vm4 = vmor %vm996_vm1, %vm997_vm2 }
  0x28   : > { %641 = vmatmul.mubr.bf16.vlgmr.msra.gmra.mrb[0].mxu0 %v526_v28  ;;  %770 = vmatmul.mubr.bf16.vlgmr.msra.gmra.mrb[0].mxu1 %v736_v27 }
  0x29   : > { %805 = vmatpush1.bf16.msra.mxu0 %v4159_v1  ;;  %836 = vmatprep.mubr.bf16.mxu0 %v4078_v2  ;;  %v496_v1 = vld [vmem:[%s4885_s4] sm:$0x3] }
  0x2a   : > { %806 = vmatprep.subr.bf16.mxu0 %v4167_v3  ;;  %3623 = vmatpush3.bf16.msra.mxu1 %v3907_v35  ;;  %v506_v3 = vsub.s32 1, %v4198_v11 }
  0x2b   : > { %3624 = vmatprep.subr.bf16.mxu1 %v3909_v37 }
  0x2d   : > { %807 = vmatpush1.bf16.msra.mxu0 %v4174_v4  ;;  %v4080_v4 = vmov 1983009808  }
  0x2e   : > { %808 = vmatprep.subr.bf16.mxu0 %v3884_v5  ;;  %3625 = vmatpush3.bf16.msra.mxu1 %v3911_v39  ;;  %v655_v5 = vunpack.c.l.s4 %v4080_v4  ;;  %v800_v39 = vld [vmem:[#allocation2] sm:$0xf] }
  0x2f   : > { %3626 = vmatprep.subr.bf16.mxu1 %v3913_v41 }
  0x31   : > { %809 = vmatpush1.bf16.msra.mxu0 %v3886_v6  ;;  %v4352_v6 = vrot.slane %v496_v1, %v502_v0 }
  0x32   : > { %810 = vmatprep.subr.bf16.mxu0 %v3887_v7  ;;  %3627 = vmatpush3.bf16.msra.mxu1 %v3915_v43  ;;  %v4354_v7 = vrot.slane %v496_v1, %v506_v3 }
  0x33   : > { %3628 = vmatprep.subr.bf16.mxu1 %v3917_v45 }
  0x35   : > { %811 = vmatpush1.bf16.msra.mxu0 %v3889_v9  ;;  %v656_v9 = vunpack.c.0.s8 %v655_v5 }
  0x36   : > { %812 = vmatprep.subr.bf16.mxu0 %v3890_v10  ;;  %3629 = vmatpush3.bf16.msra.mxu1 %v3919_v47 }
  0x37   : > { %3630 = vmatprep.subr.bf16.mxu1 %v3921_v49  ;;  %v4361_v26 = vsub.s32 %v656_v9, %v4198_v11 }
  0x39   : > { %813 = vmatpush1.bf16.msra.mxu0 %v3892_v12 }
  0x3a   : > { %814 = vmatprep.subr.bf16.mxu0 %v3893_v13  ;;  %3631 = vmatpush3.bf16.msra.mxu1 %v3923_v51  ;;  %v730_v51 = vld [vmem:[#allocation2 + $0x4] sm:$0xf] }
  0x3b   : > { %3632 = vmatprep.subr.bf16.mxu1 %v3925_v53 }
  0x3d   : > { %815 = vmatpush1.bf16.msra.mxu0 %v3895_v16 }
  0x3e   : > { %816 = vmatprep.subr.bf16.mxu0 %v3896_v19  ;;  %3633 = vmatpush3.bf16.msra.mxu1 %v3927_v55 }
  0x3f   : > { %3634 = vmatprep.subr.bf16.mxu1 %v3929_v57  ;;  %v733_v57 = vld [vmem:[#allocation2 + $0x8] sm:$0xf] }
  0x41   : > { %817 = vmatpush1.bf16.msra.mxu0 %v3898_v21 }
  0x42   : > { %818 = vmatprep.subr.bf16.mxu0 %v3899_v22  ;;  %3635 = vmatpush3.bf16.msra.mxu1 %v3931_v59 }
  0x43   : > { %3636 = vmatprep.subr.bf16.mxu1 %v3933_v61 }
  0x45   : > { %819 = vmatpush1.bf16.msra.mxu0 %v3901_v25 }
  0x46   : > { %3644 = vmatprep.subr.bf16.mxu0 %v3902_v30  ;;  %3637 = vmatpush3.bf16.msra.mxu1 %v3935_v62 }
  0x47   : > { %3666 = vmatprep.subr.bf16.mxu1 %v3937_v63 }
  0x48   : > { %837 = vmatmul.mubr.bf16.vlgmr.msra.gmra.mrb[4].mxu0 %v803_v29 }
  0x49   : > { %3645 = vmatpush3.bf16.msra.mxu0 %v3903_v31 }
  0x4a   : > { %3646 = vmatprep.subr.bf16.mxu0 %v3904_v32 }
  0x4d   : > { %3647 = vmatpush3.bf16.msra.mxu0 %v3906_v34 }
  0x4e   : > { %3648 = vmatprep.subr.bf16.mxu0 %v3908_v36 }
  0x51   : > { %3649 = vmatpush3.bf16.msra.mxu0 %v3910_v38 }
  0x52   : > { %3650 = vmatprep.subr.bf16.mxu0 %v3912_v40 }
  0x55   : > { %3651 = vmatpush3.bf16.msra.mxu0 %v3914_v42 }
  0x56   : > { %3652 = vmatprep.subr.bf16.mxu0 %v3916_v44 }
  0x59   : > { %3653 = vmatpush3.bf16.msra.mxu0 %v3918_v46 }
  0x5a   : > { %3654 = vmatprep.subr.bf16.mxu0 %v3920_v48 }
  0x5d   : > { %3655 = vmatpush3.bf16.msra.mxu0 %v3922_v50 }
  0x5e   : > { %3656 = vmatprep.subr.bf16.mxu0 %v3924_v52  ;;  %v3945_v52 = vld [vmem:[%s4886_s5 + $0x150] sm:$0xff]  }
  0x61   : > { %3657 = vmatpush3.bf16.msra.mxu0 %v3926_v54 }
  0x62   : > { %3658 = vmatprep.subr.bf16.mxu0 %v3928_v56  ;;  %v3946_v56 = vld [vmem:[%s4886_s5 + $0x198] sm:$0xff]  }
  0x65   : > { %3659 = vmatpush3.bf16.msra.mxu0 %v3930_v58 }
  0x66   : > { %3688 = vmatprep.subr.bf16.mxu0 %v3932_v60 }
  0xfb   : > { %v642_v8 = vpop.f32.mrb[0].mxu0  ;;  %v771_v10 = vpop.f32.mrb[0].mxu1 }
  0xfc   : > { %v643_v12 = vadd.f32 %v642_v8, %v4352_v6  ;;  %v644_v13 = vpop.f32.mrb[1].mxu0  ;;  %v772_v14 = vadd.f32 %v771_v10, %v4352_v6  ;;  %v773_v15 = vpop.f32.mrb[1].mxu1 }
  0xfd   : > { %v645_v16 = vadd.f32 %v644_v13, %v4354_v7  ;;  %v646_v17 = vpop.f32.mrb[2].mxu0  ;;  %v774_v18 = vadd.f32 %v773_v15, %v4354_v7  ;;  %v775_v19 = vpop.f32.mrb[2].mxu1 }
  0xfe   : > { %v649_v20 = vmax.f32 %v643_v12, 0.0  ;;  %v647_v21 = vpop.f32.mrb[3].mxu0  ;;  %v778_v22 = vmax.f32 %v772_v14, 0.0  ;;  %v776_v23 = vpop.f32.mrb[3].mxu1 }
  0xff   : > { %v650_v25 = vmax.f32 %v645_v16, 0.0  ;;  %v779_v27 = vmax.f32 %v774_v18, 0.0 }
 0x101   : > { %v653_v28 = vcombine.low %v649_v20, %v650_v25  ;;  %v3181_v29 = vpack.c.bf16 %v779_v27, %v778_v22 }
 0x103   : > { %v660_v30 = vrot.slane %v653_v28, %v4361_v26  ;;  %v791_v31 = vrot.slane %v3181_v29, %v4361_v26 }
 0x105   : > { %v661_v32 = vcombine.high %v660_v30, %v660_v30  ;;  %v668_v33 = vrot.slane %v660_v30, %v4361_v26  ;;  %v793_v34 = vshrl.u32 %v791_v31, 16  ;;  %v796_v35 = vshll.u32 %v791_v31, 16 }
 0x107   : > { %v669_v11 = vcombine.high %v668_v33, %v668_v33  ;;  %v676_v36 = vrot.slane %v661_v32, %v4361_v26  ;;  %v795_v37 = vrot.slane %v793_v34, 7 }
 0x109   : > { %v677_v40 = vcombine.high %v676_v36, %v676_v36  ;;  %v3179_v41 = vpack.c.bf16 %v669_v11, %v668_v33  ;;  %v798_v42 = vor.u32 %v796_v35, %v795_v37  ;;  %v3989_v35 = vld [vmem:[%s4886_s5 + $0x268] sm:$0xff]  }
 0x10b   : > { %v697_v43 = vrot.slane %v3179_v41, %v4361_v26  ;;  %v3180_v44 = vpack.c.bf16 %v677_v40, %v676_v36  ;;  %v801_v45 = vsel %vm4367_vm6, %v798_v42, %v800_v39  ;;  %v868_v42 = vld [vmem:[#allocation2 + $0xc] sm:$0xf] }
 0x10c   : > { %802 = vst [vmem:[#allocation2] sm:$0xf] %v801_v45 }
 0x10d   : > { %v705_v46 = vrot.slane %v3180_v44, %v4361_v26  ;;  %v707_v47 = vshrl.u32 %v697_v43, 16  ;;  %v710_v49 = vshll.u32 %v697_v43, 16 }
 0x10f   : > { %v709_v48 = vrot.slane %v707_v47, 7  ;;  %v714_v50 = vshrl.u32 %v705_v46, 16  ;;  %v717_v55 = vshll.u32 %v705_v46, 16 }
 0x111   : > { %v712_v53 = vor.u32 %v710_v49, %v709_v48  ;;  %v716_v54 = vrot.slane %v714_v50, 7 }
 0x113   : > { %v719_v58 = vor.u32 %v717_v55, %v716_v54  ;;  %v731_v59 = vsel %vm4367_vm6, %v712_v53, %v730_v51  ;;  %v878_v60 = vld [vmem:[#allocation2] sm:$0x5]  ;;  %v897_v61 = vld [vmem:[#allocation2] sm:$0xa] }
 0x114   : > { %732 = vst [vmem:[#allocation2 + $0x4] sm:$0xf] %v731_v59  ;;  %v879_v62 = vsel %vm4376_vm3, 0, %v878_v60  ;;  %v898_v63 = vsel %vm4380_vm5, 0, %v897_v61  ;;  %v3934_v55 = vld [vmem:[%s4886_s5 + $0x180] sm:$0xff]   ;;  %v3936_v60 = vld [vmem:[%s4886_s5 + $0x1c8] sm:$0xff]  }
 0x115   : > { %v734_v0 = vsel %vm4367_vm6, %v719_v58, %v733_v57  ;;  %880 = vst [vmem:[#allocation2] sm:$0x5] %v879_v62  ;;  %899 = vst [vmem:[#allocation2] sm:$0xa] %v898_v63  ;;  %v3938_v63 = vld [vmem:[%s4886_s5 + $0x188] sm:$0xff]  }
 0x116   : > { %735 = vst [vmem:[#allocation2 + $0x8] sm:$0xf] %v734_v0  ;;  %913 = vst [vmem:[#allocation2] sm:$0xf] %v4078_v2 }
 0x11b   : > { %v881_v1 = vld [vmem:[#allocation2 + $0x4] sm:$0x5]  ;;  %v900_v3 = vld [vmem:[#allocation2 + $0x4] sm:$0xa]  ;;  %v838_v4 = vpop.f32.mrb[4].mxu0 }
 0x11c   : > { %v882_v5 = vsel %vm4376_vm3, 0, %v881_v1  ;;  %v901_v8 = vsel %vm4380_vm5, 0, %v900_v3  ;;  %v839_v9 = vadd.f32 %v838_v4, %v4352_v6  ;;  %v840_v10 = vpop.f32.mrb[5].mxu0  ;;  %v3940_v1 = vld [vmem:[%s4886_s5 + $0x1d0] sm:$0xff]   ;;  %v3939_v4 = vld [vmem:[%s4886_s5 + $0x100] sm:$0xff]  }
 0x11d   : > { %883 = vst [vmem:[#allocation2 + $0x4] sm:$0x5] %v882_v5  ;;  %v884_v13 = vld [vmem:[#allocation2 + $0x8] sm:$0x5]  ;;  %902 = vst [vmem:[#allocation2 + $0x4] sm:$0xa] %v901_v8  ;;  %v841_v15 = vadd.f32 %v840_v10, %v4354_v7 }
 0x11e   : > { %v903_v14 = vld [vmem:[#allocation2 + $0x8] sm:$0xa]  ;;  %v842_v16 = vpop.f32.mrb[6].mxu0  ;;  %v885_v17 = vsel %vm4376_vm3, 0, %v884_v13  ;;  %v845_v6 = vmax.f32 %v839_v9, 0.0  ;;  %v3942_v13 = vld [vmem:[%s4886_s5 + $0x190] sm:$0xff]  }
 0x11f   : > { %v904_v18 = vsel %vm4380_vm5, 0, %v903_v14  ;;  %v843_v19 = vpop.f32.mrb[7].mxu0  ;;  %886 = vst [vmem:[#allocation2 + $0x8] sm:$0x5] %v885_v17  ;;  %v846_v20 = vmax.f32 %v841_v15, 0.0  ;;  %v3941_v8 = vld [vmem:[%s4886_s5 + $0x148] sm:$0xff]  }
 0x120   : > { %905 = vst [vmem:[#allocation2 + $0x8] sm:$0xa] %v904_v18  ;;  %v3185_v21 = vld.sshfl [vmem:[#allocation2] sm:$0x33 pattern:$0x75316420] }
 0x121   : > { %v3182_v22 = vpack.c.bf16 %v846_v20, %v845_v6  ;;  %v976_v23 = vcombine.high %v3185_v21, %v3185_v21  ;;  %v3183_v7 = vld.sshfl [vmem:[#allocation2] sm:$0x3 pattern:$0x75316420]  ;;  %v1000_v29 = vshrl.u32 %v3185_v21, 16  ;;  %v3944_v16 = vld [vmem:[%s4886_s5 + $0x1d8] sm:$0xff]  }
 0x122   : > { %v3253_v27 = vld.sshfl [vmem:[#allocation2] sm:$0x30 pattern:$0x75316420]  ;;  %v3943_v17 = vld [vmem:[%s4886_s5 + $0x108] sm:$0xff]   ;;  %v3949_v19 = vld [vmem:[%s4886_s5 + $0x158] sm:$0xff]  }
 0x123   : > { %v858_v25 = vrot.slane %v3182_v22, %v4361_v26  ;;  %v1005_v30 = vshll.u32 %v976_v23, 16  ;;  %v3948_v18 = vld [vmem:[%s4886_s5 + $0x1e0] sm:$0xff]   ;;  %v3952_v21 = vld [vmem:[%s4886_s5 + $0x1e8] sm:$0xff]   ;;  %v3951_v23 = vld [vmem:[%s4886_s5 + $0x118] sm:$0xff]  }
 0x124   : > { %v3184_v28 = vld.sshfl [vmem:[#allocation2 + $0x4] sm:$0x3 pattern:$0x75316420] }
 0x125   : > { %v860_v31 = vshrl.u32 %v858_v25, 16  ;;  %v863_v32 = vshll.u32 %v858_v25, 16  ;;  %v1211_v33 = vcombine.low %v3183_v7, %v3184_v28  ;;  %v3186_v34 = vld.sshfl [vmem:[#allocation2 + $0x4] sm:$0x33 pattern:$0x75316420]  ;;  %v1007_v43 = vsel %vm4411_vm4, %v1000_v29, %v1005_v30 }
 0x126   : > { %v4415_v11 = vld.sshfl [vmem:[#allocation2 + $0x8] sm:$0x3 pattern:$0x75316420]  ;;  %v984_v36 = vcombine.high %v3186_v34, %v3186_v34  ;;  %v1009_v44 = vshrl.u32 %v3186_v34, 16  ;;  %v3950_v20 = vld [vmem:[%s4886_s5 + $0x1a0] sm:$0xff]  }
 0x127   : > { %v862_v37 = vrot.slane %v860_v31, 7  ;;  %v1218_v39 = vrot.slane %v1211_v33, %v4224_v24  ;;  %v1638_v40 = vcombine.low %v3184_v28, %v4415_v11  ;;  %v4419_v41 = vld.sshfl [vmem:[#allocation2 + $0x4] sm:$0x30 pattern:$0x75316420]  ;;  %v3956_v28 = vld [vmem:[%s4886_s5 + $0x1f0] sm:$0xff]  }
 0x128   : > { %v1014_v45 = vshll.u32 %v984_v36, 16  ;;  %v3287_v46 = vcombine.high %v3253_v27, %v4419_v41  ;;  %v3355_v6 = vld.sshfl [vmem:[#allocation2 + $0x8] sm:$0x33 pattern:$0x75316420]  ;;  %v3953_v7 = vld [vmem:[%s4886_s5 + $0x160] sm:$0xff]  }
 0x129   : > { %v865_v47 = vor.u32 %v863_v32, %v862_v37  ;;  %v1219_v48 = vcombine.high %v1218_v39, %v1218_v39  ;;  %v4425_v49 = vrot.slane %v1638_v40, %v4224_v24  ;;  %v1226_v59 = vrot.slane %v1218_v39, %v4224_v24  ;;  %v4507_v25 = vld.sshfl [vmem:[#allocation2 + $0x8] sm:$0x30 pattern:$0x75316420]  ;;  %v3955_v30 = vld [vmem:[%s4886_s5 + $0x120] sm:$0xff]   ;;  %v3958_v34 = vld [vmem:[%s4886_s5 + $0x1b0] sm:$0xff]  }
 0x12a   : > { %v4429_v50 = vsel %vm4411_vm4, %v1009_v44, %v1014_v45  ;;  %v4432_v51 = vrot.slane %v3287_v46, %v4224_v24  ;;  %v1819_v22 = vcombine.high %v3355_v6, %v3355_v6  ;;  %v3954_v27 = vld [vmem:[%s4886_s5 + $0x1a8] sm:$0xff]   ;;  %v3440_v31 = vcombine.high %v4419_v41, %v4507_v25  ;;  %v3960_v36 = vld [vmem:[%s4886_s5 + $0x1f8] sm:$0xff]   ;;  %v3961_v41 = vld [vmem:[%s4886_s5 + $0x170] sm:$0xff]  }
 0x12b   : > { %v869_v53 = vsel %vm4367_vm6, %v865_v47, %v868_v42  ;;  %v1233_v54 = vrot.slane %v1219_v48, %v4224_v24  ;;  %v1646_v57 = vcombine.high %v4425_v49, %v4425_v49  ;;  %v1050_v58 = vcombine.low %v1007_v43, %v4429_v50  ;;  %v3957_v32 = vld [vmem:[%s4886_s5 + $0x168] sm:$0xff]   ;;  %v3962_v42 = vld [vmem:[%s4886_s5 + $0x1b8] sm:$0xff]   ;;  %v3964_v44 = vld [vmem:[%s4886_s5 + $0x2c0] sm:$0xff]  }
 0x12c   : > { %870 = vst [vmem:[#allocation2 + $0xc] sm:$0xf] %v869_v53  ;;  %v1433_v0 = vcombine.high %v4432_v51, %v4432_v51  ;;  %v1835_v29 = vshll.u32 %v1819_v22, 16  ;;  %v1830_v33 = vshrl.u32 %v3355_v6, 16  ;;  %v3959_v39 = vld [vmem:[%s4886_s5 + $0x128] sm:$0xff]   ;;  %v4537_v40 = vrot.slane %v3440_v31, %v4224_v24  ;;  %v3963_v45 = vld [vmem:[%s4886_s5 + $0x130] sm:$0xff]  }
 0x12d   : > { %1364 = vmatprep.mubr.bf16.mxu0 %v1233_v54  ;;  %v1660_v38 = vrot.slane %v1646_v57, %v4224_v24  ;;  %v1057_v61 = vrot.slane %v1050_v58, %v4224_v24  ;;  %v3965_v47 = vld [vmem:[%s4886_s5 + $0x178] sm:$0xff]   ;;  %v3966_v48 = vld [vmem:[%s4886_s5 + $0x280] sm:$0xff]   ;;  %v1653_v53 = vrot.slane %v4425_v49, %v4224_v24  ;;  %v3968_v54 = vld [vmem:[%s4886_s5 + $0x2c8] sm:$0xff]   ;;  %vm4082_vm6 = vmmov 0  }
 0x12e   : > { %1365 = vmatmul.mubr.bf16.vlgmr.msra.gmra.mrb[8].mxu0 %v1226_v59  ;;  %v1447_v12 = vrot.slane %v1433_v0, %v4224_v24  ;;  %v4531_v37 = vsel %vm4411_vm4, %v1830_v33, %v1835_v29  ;;  %v2094_v46 = vcombine.high %v4537_v40, %v4537_v40  ;;  %v3967_v57 = vld [vmem:[%s4886_s5 + $0x138] sm:$0xff]   ;;  %v3969_v58 = vld [vmem:[%s4886_s5 + $0x240] sm:$0xff]   ;;  %v3970_v49 = vld [vmem:[%s4886_s5 + $0x288] sm:$0xff]  }
 0x12f   : > { %3689 = vmatpush3.bf16.msra.mxu0 %v3934_v55  ;;  %1791 = vmatprep.mubr.bf16.mxu0 %v1660_v38  ;;  %v1058_v62 = vcombine.high %v1057_v61, %v1057_v61  ;;  %v1065_v5 = vrot.slane %v1057_v61, %v4224_v24  ;;  %v1871_v43 = vcombine.low %v4429_v50, %v4531_v37  ;;  %v3971_v38 = vld [vmem:[%s4886_s5 + $0x200] sm:$0xff]   ;;  %v3974_v0 = vld [vmem:[%s4886_s5 + $0x290] sm:$0xff]   ;;  %v3997_v33 = vld [vmem:[%s4886_s5 + $0x278] sm:$0xff]  }
 0x130   : > { %3690 = vmatprep.subr.bf16.mxu0 %v3936_v60  ;;  %v2108_v55 = vrot.slane %v2094_v46, %v4224_v24  ;;  %v3972_v60 = vld [vmem:[%s4886_s5 + $0x2d0] sm:$0xff]   ;;  %v1440_v61 = vrot.slane %v4432_v51, %v4224_v24  ;;  %v3975_v51 = vld [vmem:[%s4886_s5 + $0x208] sm:$0xff]   ;;  %v3987_v6 = vld [vmem:[%s4886_s5 + $0x220] sm:$0xff]  }
 0x131   : > { %v1072_v3 = vrot.slane %v1058_v62, %v4224_v24  ;;  %v4562_v50 = vrot.slane %v1871_v43, %v4224_v24  ;;  %v3973_v62 = vld [vmem:[%s4886_s5 + $0x248] sm:$0xff]   ;;  %v3995_v31 = vld [vmem:[%s4886_s5 + $0x230] sm:$0xff]  }
 0x133   : > { %v887_v9 = vld [vmem:[#allocation2 + $0xc] sm:$0x5]  ;;  %v906_v10 = vld [vmem:[#allocation2 + $0xc] sm:$0xa]  ;;  %1203 = vmatprep.mubr.bf16.mxu1 %v1072_v3  ;;  %3691 = vmatpush3.bf16.msra.mxu0 %v3938_v63  ;;  %v1879_v59 = vcombine.high %v4562_v50, %v4562_v50  ;;  %v3976_v3 = vld [vmem:[%s4886_s5 + $0x2d8] sm:$0xff]   ;;  %v1886_v46 = vrot.slane %v4562_v50, %v4224_v24 }
 0x134   : > { %v888_v14 = vsel %vm4376_vm3, 0, %v887_v9  ;;  %v907_v15 = vsel %vm4380_vm5, 0, %v906_v10  ;;  %1204 = vmatmul.mubr.bf16.vlgmr.msra.gmra.mrb[4].mxu1 %v1065_v5  ;;  %3692 = vmatprep.subr.bf16.mxu0 %v3940_v1  ;;  %v3980_v9 = vld [vmem:[%s4886_s5 + $0x2e0] sm:$0xff]   ;;  %v3979_v10 = vld [vmem:[%s4886_s5 + $0x210] sm:$0xff]   ;;  %v4007_v50 = vld [vmem:[%s4886_s5 + $0x308] sm:$0xff]  }
 0x135   : > { %889 = vst [vmem:[#allocation2 + $0xc] sm:$0x5] %v888_v14  ;;  %908 = vst [vmem:[#allocation2 + $0xc] sm:$0xa] %v907_v15  ;;  %3667 = vmatpush3.bf16.msra.mxu1 %v3939_v4  ;;  %1578 = vmatprep.mubr.bf16.mxu1 %v1447_v12  ;;  %v1893_v63 = vrot.slane %v1879_v59, %v4224_v24  ;;  %v3977_v4 = vld [vmem:[%s4886_s5 + $0x250] sm:$0xff]   ;;  %v3981_v12 = vld [vmem:[%s4886_s5 + $0x258] sm:$0xff]  }
 0x136   : > { %914 = vst [vmem:[#allocation2 + $0xc] sm:$0xf] %v4078_v2  ;;  %3668 = vmatprep.subr.bf16.mxu1 %v3941_v8  ;;  %v3947_v2 = vld [vmem:[%s4886_s5 + $0x110] sm:$0xff]   ;;  %v3978_v8 = vld [vmem:[%s4886_s5 + $0x298] sm:$0xff]   ;;  %v3982_v15 = vld [vmem:[%s4886_s5 + $0x2a0] sm:$0xff]  }
 0x137   : > { %3693 = vmatpush3.bf16.msra.mxu0 %v3942_v13  ;;  %v4013_v59 = vld [vmem:[%s4886_s5 + $0x358] sm:$0xff]  }
 0x138   : > { %3694 = vmatprep.subr.bf16.mxu0 %v3944_v16  ;;  %v3984_v16 = vld [vmem:[%s4886_s5 + $0x2e8] sm:$0xff]  }
 0x139   : > { %3669 = vmatpush3.bf16.msra.mxu1 %v3943_v17  ;;  %v3983_v17 = vld [vmem:[%s4886_s5 + $0x218] sm:$0xff]  }
 0x13a   : > { %3670 = vmatprep.subr.bf16.mxu1 %v3945_v52  ;;  %v3985_v52 = vld [vmem:[%s4886_s5 + $0x260] sm:$0xff]  }
 0x13b   : > { %3695 = vmatpush3.bf16.msra.mxu0 %v3946_v56 }
 0x13c   : > { %3696 = vmatprep.subr.bf16.mxu0 %v3948_v18  ;;  %v3986_v18 = vld [vmem:[%s4886_s5 + $0x2a8] sm:$0xff]  }
 0x13d   : > { %3671 = vmatpush3.bf16.msra.mxu1 %v3947_v2  ;;  %v3508_v1 = vld.sshfl [vmem:[#allocation2 + $0xc] sm:$0x33 pattern:$0x75316420]  ;;  %v3988_v2 = vld [vmem:[%s4886_s5 + $0x2f0] sm:$0xff]  }
 0x13e   : > { %3672 = vmatprep.subr.bf16.mxu1 %v3949_v19  ;;  %v2481_v5 = vcombine.high %v3508_v1, %v3508_v1  ;;  %v2492_v13 = vshrl.u32 %v3508_v1, 16  ;;  %v3458_v22 = vld.sshfl [vmem:[#allocation2 + $0xc] sm:$0x3 pattern:$0x75316420]  ;;  %v4019_v1 = vld [vmem:[%s4886_s5 + $0x320] sm:$0xff]  }
 0x13f   : > { %3697 = vmatpush3.bf16.msra.mxu0 %v3950_v20  ;;  %v3990_v20 = vld [vmem:[%s4886_s5 + $0x2b0] sm:$0xff]   ;;  %v2300_v29 = vcombine.low %v4415_v11, %v3458_v22  ;;  %v3998_v11 = vld [vmem:[%s4886_s5 + $0x380] sm:$0xff]   ;;  %v4037_v22 = vld [vmem:[%s4886_s5 + $0x418] sm:$0xff]  }
 0x140   : > { %3698 = vmatprep.subr.bf16.mxu0 %v3952_v21  ;;  %v2497_v14 = vshll.u32 %v2481_v5, 16  ;;  %v3992_v21 = vld [vmem:[%s4886_s5 + $0x2f8] sm:$0xff]   ;;  %v3560_v5 = vld.sshfl [vmem:[#allocation2 + $0xc] sm:$0x30 pattern:$0x75316420] }
 0x141   : > { %3673 = vmatpush3.bf16.msra.mxu1 %v3951_v23  ;;  %v3991_v23 = vld [vmem:[%s4886_s5 + $0x228] sm:$0xff]  }
 0x142   : > { %3674 = vmatprep.subr.bf16.mxu1 %v3953_v7  ;;  %v2499_v56 = vsel %vm4411_vm4, %v2492_v13, %v2497_v14  ;;  %v4027_v13 = vld [vmem:[%s4886_s5 + $0x330] sm:$0xff]   ;;  %v4028_v14 = vld [vmem:[%s4886_s5 + $0x378] sm:$0xff]  }
 0x143   : > { %3699 = vmatpush3.bf16.msra.mxu0 %v3954_v27  ;;  %v2533_v19 = vcombine.low %v4531_v37, %v2499_v56  ;;  %v3993_v27 = vld [vmem:[%s4886_s5 + $0x270] sm:$0xff]   ;;  %v4000_v37 = vld [vmem:[%s4886_s5 + $0x3c8] sm:$0xff]   ;;  %v4031_v56 = vld [vmem:[%s4886_s5 + $0x400] sm:$0xff]  }
 0x144   : > { %3700 = vmatprep.subr.bf16.mxu0 %v3956_v28  ;;  %v3994_v28 = vld [vmem:[%s4886_s5 + $0x2b8] sm:$0xff]  }
 0x145   : > { %3675 = vmatpush3.bf16.msra.mxu1 %v3955_v30  ;;  %v4654_v7 = vrot.slane %v2533_v19, %v4224_v24  ;;  %v3996_v30 = vld [vmem:[%s4886_s5 + $0x3c0] sm:$0xff]   ;;  %v4033_v19 = vld [vmem:[%s4886_s5 + $0x408] sm:$0xff]  }
 0x146   : > { %3676 = vmatprep.subr.bf16.mxu1 %v3957_v32 }
 0x147   : > { %3701 = vmatpush3.bf16.msra.mxu0 %v3958_v34  ;;  %v2541_v32 = vcombine.high %v4654_v7, %v4654_v7  ;;  %v4678_v34 = vrot.slane %v2300_v29, %v4224_v24  ;;  %v4042_v29 = vld [vmem:[%s4886_s5 + $0x470] sm:$0xff]  }
 0x148   : > { %3702 = vmatprep.subr.bf16.mxu0 %v3960_v36  ;;  %v2101_v36 = vrot.slane %v4537_v40, %v4224_v24  ;;  %v4002_v40 = vld [vmem:[%s4886_s5 + $0x388] sm:$0xff]  }
 0x149   : > { %3677 = vmatpush3.bf16.msra.mxu1 %v3959_v39  ;;  %v2555_v39 = vrot.slane %v2541_v32, %v4224_v24  ;;  %v2308_v43 = vcombine.high %v4678_v34, %v4678_v34  ;;  %v4045_v32 = vld [vmem:[%s4886_s5 + $0x438] sm:$0xff]  }
 0x14a   : > { %3678 = vmatprep.subr.bf16.mxu1 %v3961_v41  ;;  %v3999_v41 = vld [vmem:[%s4886_s5 + $0x238] sm:$0xff]  }
 0x14b   : > { %3703 = vmatpush3.bf16.msra.mxu0 %v3962_v42  ;;  %v4001_v42 = vld [vmem:[%s4886_s5 + $0x340] sm:$0xff]  }
 0x14c   : > { %3732 = vmatprep.subr.bf16.mxu0 %v3964_v44  ;;  %v4004_v44 = vld [vmem:[%s4886_s5 + $0x3d0] sm:$0xff]  }
 0x14d   : > { %3679 = vmatpush3.bf16.msra.mxu1 %v3963_v45  ;;  %v4003_v45 = vld [vmem:[%s4886_s5 + $0x300] sm:$0xff]  }
 0x14e   : > { %1792 = vmatmul.mubr.bf16.vlgmr.msra.gmra.mrb[12].mxu0 %v1653_v53  ;;  %3680 = vmatprep.subr.bf16.mxu1 %v3965_v47  ;;  %v4005_v47 = vld [vmem:[%s4886_s5 + $0x348] sm:$0xff]   ;;  %v4006_v53 = vld [vmem:[%s4886_s5 + $0x390] sm:$0xff]  }
 0x14f   : > { %3733 = vmatpush3.bf16.msra.mxu0 %v3966_v48  ;;  %2239 = vmatprep.mubr.bf16.mxu0 %v2108_v55  ;;  %v2322_v48 = vrot.slane %v2308_v43, %v4224_v24  ;;  %v4009_v55 = vld [vmem:[%s4886_s5 + $0x350] sm:$0xff]  }
 0x150   : > { %3734 = vmatprep.subr.bf16.mxu0 %v3968_v54  ;;  %v4008_v54 = vld [vmem:[%s4886_s5 + $0x3d8] sm:$0xff]  }
 0x151   : > { %3681 = vmatpush3.bf16.msra.mxu1 %v3967_v57  ;;  %v4010_v57 = vld [vmem:[%s4886_s5 + $0x398] sm:$0xff]  }
 0x152   : > { %3710 = vmatprep.subr.bf16.mxu1 %v3969_v58  ;;  %v4012_v58 = vld [vmem:[%s4886_s5 + $0x3e0] sm:$0xff]  }
 0x153   : > { %3735 = vmatpush3.bf16.msra.mxu0 %v3970_v49  ;;  %v4011_v49 = vld [vmem:[%s4886_s5 + $0x310] sm:$0xff]  }
 0x154   : > { %1579 = vmatmul.mubr.bf16.vlgmr.msra.gmra.mrb[8].mxu1 %v1440_v61  ;;  %3736 = vmatprep.subr.bf16.mxu0 %v3972_v60  ;;  %v4014_v60 = vld [vmem:[%s4886_s5 + $0x3a0] sm:$0xff]   ;;  %v4015_v61 = vld [vmem:[%s4886_s5 + $0x318] sm:$0xff]  }
 0x155   : > { %3711 = vmatpush3.bf16.msra.mxu1 %v3971_v38  ;;  %2024 = vmatprep.mubr.bf16.mxu1 %v1893_v63  ;;  %v4016_v38 = vld [vmem:[%s4886_s5 + $0x3e8] sm:$0xff]  }
 0x156   : > { %3712 = vmatprep.subr.bf16.mxu1 %v3973_v62  ;;  %v4017_v62 = vld [vmem:[%s4886_s5 + $0x360] sm:$0xff]   ;;  %v4018_v63 = vld [vmem:[%s4886_s5 + $0x3a8] sm:$0xff]  }
 0x157   : > { %3737 = vmatpush3.bf16.msra.mxu0 %v3974_v0  ;;  %v4020_v0 = vld [vmem:[%s4886_s5 + $0x3f0] sm:$0xff]  }
 0x158   : > { %3738 = vmatprep.subr.bf16.mxu0 %v3976_v3  ;;  %v4021_v3 = vld [vmem:[%s4886_s5 + $0x368] sm:$0xff]  }
 0x159   : > { %3713 = vmatpush3.bf16.msra.mxu1 %v3975_v51  ;;  %v4022_v51 = vld [vmem:[%s4886_s5 + $0x3b0] sm:$0xff]  }
 0x15a   : > { %3714 = vmatprep.subr.bf16.mxu1 %v3977_v4  ;;  %v4024_v4 = vld [vmem:[%s4886_s5 + $0x3f8] sm:$0xff]  }
 0x15b   : > { %3739 = vmatpush3.bf16.msra.mxu0 %v3978_v8  ;;  %v4023_v8 = vld [vmem:[%s4886_s5 + $0x328] sm:$0xff]  }
 0x15c   : > { %3740 = vmatprep.subr.bf16.mxu0 %v3980_v9  ;;  %v4025_v9 = vld [vmem:[%s4886_s5 + $0x370] sm:$0xff]  }
 0x15d   : > { %3715 = vmatpush3.bf16.msra.mxu1 %v3979_v10  ;;  %v4026_v10 = vld [vmem:[%s4886_s5 + $0x3b8] sm:$0xff]  }
 0x15e   : > { %3716 = vmatprep.subr.bf16.mxu1 %v3981_v12  ;;  %v3593_v12 = vcombine.high %v4507_v25, %v3560_v5  ;;  %v4029_v25 = vld [vmem:[%s4886_s5 + $0x338] sm:$0xff]  }
 0x15f   : > { %3741 = vmatpush3.bf16.msra.mxu0 %v3982_v15 }
 0x160   : > { %3742 = vmatprep.subr.bf16.mxu0 %v3984_v16  ;;  %v2755_v15 = vrot.slane %v3593_v12, %v4224_v24  ;;  %v2548_v16 = vrot.slane %v4654_v7, %v4224_v24  ;;  %v4039_v7 = vld [vmem:[%s4886_s5 + $0x420] sm:$0xff]  }
 0x161   : > { %3717 = vmatpush3.bf16.msra.mxu1 %v3983_v17  ;;  %v4030_v17 = vld [vmem:[%s4886_s5 + $0x440] sm:$0xff]  }
 0x162   : > { %3718 = vmatprep.subr.bf16.mxu1 %v3985_v52  ;;  %v2756_v52 = vcombine.high %v2755_v15, %v2755_v15 }
 0x163   : > { %3743 = vmatpush3.bf16.msra.mxu0 %v3986_v18  ;;  %v2315_v18 = vrot.slane %v4678_v34, %v4224_v24  ;;  %v4081_v34 = vmov 0.0  }
 0x164   : > { %3744 = vmatprep.subr.bf16.mxu0 %v3988_v2  ;;  %v4032_v2 = vld [vmem:[%s4886_s5 + $0x448] sm:$0xff]  }
 0x165   : > { %3719 = vmatpush3.bf16.msra.mxu1 %v3987_v6  ;;  %v2770_v6 = vrot.slane %v2756_v52, %v4224_v24 }
 0x166   : > { %3720 = vmatprep.subr.bf16.mxu1 %v3989_v35  ;;  %v4034_v35 = vld [vmem:[%s4886_s5 + $0x450] sm:$0xff]  }
 0x167   : > { %3745 = vmatpush3.bf16.msra.mxu0 %v3990_v20  ;;  %v4035_v20 = vld [vmem:[%s4886_s5 + $0x410] sm:$0xff]  }
 0x168   : > { %3746 = vmatprep.subr.bf16.mxu0 %v3992_v21  ;;  %v4036_v21 = vld [vmem:[%s4886_s5 + $0x458] sm:$0xff]  }
 0x169   : > { %3721 = vmatpush3.bf16.msra.mxu1 %v3991_v23  ;;  %v4038_v23 = vld [vmem:[%s4886_s5 + $0x460] sm:$0xff]  }
 0x16a   : > { %3722 = vmatprep.subr.bf16.mxu1 %v3993_v27  ;;  %v4040_v27 = vld [vmem:[%s4886_s5 + $0x468] sm:$0xff]  }
 0x16b   : > { %3747 = vmatpush3.bf16.msra.mxu0 %v3994_v28  ;;  %v4041_v28 = vld [vmem:[%s4886_s5 + $0x428] sm:$0xff]  }
 0x16c   : > { %3776 = vmatprep.subr.bf16.mxu0 %v3996_v30  ;;  %v4043_v30 = vld [vmem:[%s4886_s5 + $0x430] sm:$0xff]  }
 0x16d   : > { %3723 = vmatpush3.bf16.msra.mxu1 %v3995_v31  ;;  %v4044_v31 = vld [vmem:[%s4886_s5 + $0x478] sm:$0xff]  }
 0x16e   : > { %2240 = vmatmul.mubr.bf16.vlgmr.msra.gmra.mrb[16].mxu0 %v2101_v36  ;;  %3724 = vmatprep.subr.bf16.mxu1 %v3997_v33  ;;  %v2763_v33 = vrot.slane %v2755_v15, %v4224_v24  ;;  %v4047_v36 = vld [vmem:[%s4888_s7 + $0x8] sm:$0xff]   ;;  %v4049_v24 = vld [vmem:[%s4888_s7 + $0x18] sm:$0xff]  }
 0x16f   : > { %3777 = vmatpush3.bf16.msra.mxu0 %v3998_v11  ;;  %2686 = vmatprep.mubr.bf16.mxu0 %v2555_v39  ;;  %v4046_v11 = vld [vmem:[%s4888_s7] sm:$0xff]  }
 0x170   : > { %3778 = vmatprep.subr.bf16.mxu0 %v4000_v37  ;;  %v4048_v37 = vld [vmem:[%s4888_s7 + $0x10] sm:$0xff]   ;;  %v4050_v39 = vld [vmem:[%s4888_s7 + $0x20] sm:$0xff]  }
 0x171   : > { %3725 = vmatpush3.bf16.msra.mxu1 %v3999_v41 }
 0x172   : > { %3754 = vmatprep.subr.bf16.mxu1 %v4001_v42 }
 0x173   : > { %3779 = vmatpush3.bf16.msra.mxu0 %v4002_v40 }
 0x174   : > { %2025 = vmatmul.mubr.bf16.vlgmr.msra.gmra.mrb[12].mxu1 %v1886_v46  ;;  %3780 = vmatprep.subr.bf16.mxu0 %v4004_v44 }
 0x175   : > { %3755 = vmatpush3.bf16.msra.mxu1 %v4003_v45  ;;  %2453 = vmatprep.mubr.bf16.mxu1 %v2322_v48 }
 0x176   : > { %3756 = vmatprep.subr.bf16.mxu1 %v4005_v47 }
 0x177   : > { %3781 = vmatpush3.bf16.msra.mxu0 %v4006_v53 }
 0x178   : > { %3782 = vmatprep.subr.bf16.mxu0 %v4008_v54  ;;  %v4051_v54 = vld [vmem:[%s4888_s7 + $0x28] sm:$0xff]  }
 0x179   : > { %3757 = vmatpush3.bf16.msra.mxu1 %v4007_v50 }
 0x17a   : > { %3758 = vmatprep.subr.bf16.mxu1 %v4009_v55  ;;  %v4052_v55 = vld [vmem:[%s4888_s7 + $0x30] sm:$0xff]  }
 0x17b   : > { %3783 = vmatpush3.bf16.msra.mxu0 %v4010_v57  ;;  %v4053_v57 = vld [vmem:[%s4888_s7 + $0x38] sm:$0xff]  }
 0x17c   : > { %3784 = vmatprep.subr.bf16.mxu0 %v4012_v58 }
 0x17d   : > { %3759 = vmatpush3.bf16.msra.mxu1 %v4011_v49 }
 0x17e   : > { %3760 = vmatprep.subr.bf16.mxu1 %v4013_v59 }
 0x17f   : > { %3785 = vmatpush3.bf16.msra.mxu0 %v4014_v60 }
 0x180   : > { %3786 = vmatprep.subr.bf16.mxu0 %v4016_v38 }
 0x181   : > { %3761 = vmatpush3.bf16.msra.mxu1 %v4015_v61 }
 0x182   : > { %3762 = vmatprep.subr.bf16.mxu1 %v4017_v62 }
 0x183   : > { %3787 = vmatpush3.bf16.msra.mxu0 %v4018_v63 }
 0x184   : > { %3788 = vmatprep.subr.bf16.mxu0 %v4020_v0 }
 0x185   : > { %3763 = vmatpush3.bf16.msra.mxu1 %v4019_v1 }
 0x186   : > { %3764 = vmatprep.subr.bf16.mxu1 %v4021_v3 }
 0x187   : > { %3789 = vmatpush3.bf16.msra.mxu0 %v4022_v51 }
 0x188   : > { %3790 = vmatprep.subr.bf16.mxu0 %v4024_v4 }
 0x189   : > { %3765 = vmatpush3.bf16.msra.mxu1 %v4023_v8 }
 0x18a   : > { %3766 = vmatprep.subr.bf16.mxu1 %v4025_v9 }
 0x18b   : > { %3791 = vmatpush3.bf16.msra.mxu0 %v4026_v10 }
 0x18c   : > { %3829 = vmatprep.subr.bf16.mxu0 %v4081_v34 }
 0x18d   : > { %3767 = vmatpush3.bf16.msra.mxu1 %v4027_v13 }
 0x18e   : > { %2687 = vmatmul.mubr.bf16.vlgmr.msra.gmra.mrb[20].mxu0 %v2548_v16  ;;  %3768 = vmatprep.subr.bf16.mxu1 %v4028_v14 }
 0x18f   : > { %3830 = vmatpush3.bf16.msra.mxu0 %v4046_v11  ;;  %3845 = vmatprep.mubr.msk.bf16.mxu0 %vm4082_vm6, %v4081_v34 }
 0x190   : > { %3831 = vmatprep.subr.bf16.mxu0 %v4081_v34 }
 0x191   : > { %3769 = vmatpush3.bf16.msra.mxu1 %v4029_v25 }
 0x192   : > { %3798 = vmatprep.subr.bf16.mxu1 %v4030_v17 }
 0x193   : > { %3832 = vmatpush3.bf16.msra.mxu0 %v4047_v36 }
 0x194   : > { %2454 = vmatmul.mubr.bf16.vlgmr.msra.gmra.mrb[16].mxu1 %v2315_v18  ;;  %3833 = vmatprep.subr.bf16.mxu0 %v4081_v34 }
 0x195   : > { %3799 = vmatpush3.bf16.msra.mxu1 %v4031_v56  ;;  %2901 = vmatprep.mubr.bf16.mxu1 %v2770_v6 }
 0x196   : > { %3800 = vmatprep.subr.bf16.mxu1 %v4032_v2 }
 0x197   : > { %3834 = vmatpush3.bf16.msra.mxu0 %v4048_v37  ;;  %v3611_v37 = vld [vmem:[%s4889_s8] ss:$0 sm:$0xff] }
 0x198   : > { %3835 = vmatprep.subr.bf16.mxu0 %v4081_v34 }
 0x199   : > { %3801 = vmatpush3.bf16.msra.mxu1 %v4033_v19 }
 0x19a   : > { %3802 = vmatprep.subr.bf16.mxu1 %v4034_v35 }
 0x19b   : > { %3836 = vmatpush3.bf16.msra.mxu0 %v4049_v24 }
 0x19c   : > { %3837 = vmatprep.subr.bf16.mxu0 %v4081_v34 }
 0x19d   : > { %3803 = vmatpush3.bf16.msra.mxu1 %v4035_v20 }
 0x19e   : > { %3804 = vmatprep.subr.bf16.mxu1 %v4036_v21 }
 0x19f   : > { %3838 = vmatpush3.bf16.msra.mxu0 %v4050_v39 }
 0x1a0   : > { %3839 = vmatprep.subr.bf16.mxu0 %v4081_v34 }
 0x1a1   : > { %3805 = vmatpush3.bf16.msra.mxu1 %v4037_v22 }
 0x1a2   : > { %3806 = vmatprep.subr.bf16.mxu1 %v4038_v23 }
 0x1a3   : > { %3840 = vmatpush3.bf16.msra.mxu0 %v4051_v54 }
 0x1a4   : > { %3841 = vmatprep.subr.bf16.mxu0 %v4081_v34 }
 0x1a5   : > { %3807 = vmatpush3.bf16.msra.mxu1 %v4039_v7 }
 0x1a6   : > { %3808 = vmatprep.subr.bf16.mxu1 %v4040_v27 }
 0x1a7   : > { %3842 = vmatpush3.bf16.msra.mxu0 %v4052_v55 }
 0x1a8   : > { %3843 = vmatprep.subr.bf16.mxu0 %v4081_v34 }
 0x1a9   : > { %3809 = vmatpush3.bf16.msra.mxu1 %v4041_v28 }
 0x1aa   : > { %3810 = vmatprep.subr.bf16.mxu1 %v4042_v29 }
 0x1ab   : > { %3844 = vmatpush3.bf16.msra.mxu0 %v4053_v57 }
 0x1ad   : > { %3811 = vmatpush3.bf16.msra.mxu1 %v4043_v30 }
 0x1ae   : > { %3812 = vmatprep.subr.bf16.mxu1 %v4044_v31  ;;  %v3610_v31 = vld [vmem:[%s4887_s6] ss:$0 sm:$0xff] }
 0x1b1   : > { %3813 = vmatpush3.bf16.msra.mxu1 %v4045_v32 }
 0x1b4   : > { %2902 = vmatmul.mubr.bf16.vlgmr.msra.gmra.mrb[20].mxu1 %v2763_v33 }
 0x201   : > { %v3660_v41 = vpop.f32.mrb[8].mxu0 }
 0x202   : > { %v3661_v42 = vpop.f32.mrb[9].mxu0 }
 0x203   : > { %v3662_v40 = vadd.f32 %v3661_v42, %v3660_v41  ;;  %v3663_v43 = vpop.f32.mrb[10].mxu0 }
 0x204   : > { %v3664_v44 = vpop.f32.mrb[11].mxu0 }
 0x207   : > { %v3638_v45 = vpop.f32.mrb[4].mxu1 }
 0x208   : > { %v3639_v46 = vpop.f32.mrb[5].mxu1 }
 0x209   : > { %v3640_v47 = vadd.f32 %v3639_v46, %v3638_v45  ;;  %v3641_v48 = vpop.f32.mrb[6].mxu1 }
 0x20a   : > { %v3642_v53 = vpop.f32.mrb[7].mxu1 }
 0x20b   : > { %v1367_v50 = vadd.f32 %v3662_v40, %v3640_v47 }
 0x221   : > { %v3704_v58 = vpop.f32.mrb[12].mxu0 }
 0x222   : > { %v3705_v49 = vpop.f32.mrb[13].mxu0 }
 0x223   : > { %v3706_v59 = vadd.f32 %v3705_v49, %v3704_v58  ;;  %v3707_v60 = vpop.f32.mrb[14].mxu0 }
 0x224   : > { %v3708_v38 = vpop.f32.mrb[15].mxu0 }
 0x227   : > { %v3682_v61 = vpop.f32.mrb[8].mxu1 }
 0x228   : > { %v3683_v62 = vpop.f32.mrb[9].mxu1 }
 0x229   : > { %v3684_v63 = vadd.f32 %v3683_v62, %v3682_v61  ;;  %v3685_v0 = vpop.f32.mrb[10].mxu1 }
 0x22a   : > { %v3686_v1 = vpop.f32.mrb[11].mxu1 }
 0x22b   : > { %v1586_v3 = vadd.f32 %v3684_v63, %v1367_v50 }
 0x22d   : > { %v1799_v51 = vadd.f32 %v3706_v59, %v1586_v3 }
 0x241   : > { %v3748_v4 = vpop.f32.mrb[16].mxu0 }
 0x242   : > { %v3749_v5 = vpop.f32.mrb[17].mxu0 }
 0x243   : > { %v3750_v8 = vadd.f32 %v3749_v5, %v3748_v4  ;;  %v3751_v9 = vpop.f32.mrb[18].mxu0 }
 0x244   : > { %v3752_v10 = vpop.f32.mrb[19].mxu0 }
 0x247   : > { %v3726_v12 = vpop.f32.mrb[12].mxu1 }
 0x248   : > { %v3727_v13 = vpop.f32.mrb[13].mxu1 }
 0x249   : > { %v3728_v14 = vadd.f32 %v3727_v13, %v3726_v12  ;;  %v3729_v15 = vpop.f32.mrb[14].mxu1 }
 0x24a   : > { %v3730_v16 = vpop.f32.mrb[15].mxu1 }
 0x24b   : > { %v2032_v25 = vadd.f32 %v3728_v14, %v1799_v51 }
 0x24d   : > { %v2247_v17 = vadd.f32 %v3750_v8, %v2032_v25 }
 0x261   : > { %v3792_v52 = vpop.f32.mrb[20].mxu0 }
 0x262   : > { %v3793_v56 = vpop.f32.mrb[21].mxu0 }
 0x263   : > { %v3794_v18 = vadd.f32 %v3793_v56, %v3792_v52  ;;  %v3795_v2 = vpop.f32.mrb[22].mxu0 }
 0x264   : > { %v3796_v6 = vpop.f32.mrb[23].mxu0 }
 0x267   : > { %v3770_v19 = vpop.f32.mrb[16].mxu1 }
 0x268   : > { %v3771_v35 = vpop.f32.mrb[17].mxu1 }
 0x269   : > { %v3772_v20 = vadd.f32 %v3771_v35, %v3770_v19  ;;  %v3773_v21 = vpop.f32.mrb[18].mxu1 }
 0x26a   : > { %v3774_v22 = vpop.f32.mrb[19].mxu1 }
 0x26b   : > { %v2461_v23 = vadd.f32 %v3772_v20, %v2247_v17 }
 0x26d   : > { %v2694_v7 = vadd.f32 %v3794_v18, %v2461_v23 }
 0x287   : > { %v3814_v27 = vpop.f32.mrb[20].mxu1 }
 0x288   : > { %v3815_v28 = vpop.f32.mrb[21].mxu1 }
 0x289   : > { %v3816_v29 = vadd.f32 %v3815_v28, %v3814_v27  ;;  %v3817_v30 = vpop.f32.mrb[22].mxu1 }
 0x28a   : > { %v3818_v32 = vpop.f32.mrb[23].mxu1 }
 0x28b   : > { %v2909_v33 = vadd.f32 %v3816_v29, %v2694_v7 }
 0x28d   : > { %v2917_v11 = vadd.f32 %v3610_v31, %v2909_v33 }
 0x28f   : > { %v2918_v34 = vmax.f32 %v2917_v11, 0.0 }
 0x291   : > { %v2919_v36 = vpack.c.bf16 %v2918_v34, %v2918_v34 }
 0x293   : > { %3846 = vmatmul.mubr.bf16.vlgmr.msra.gmra.mrb[24].mxu0 %v2919_v36 }
 0x366   : > { %v3025_v24 = vpop.f32.mrb[24].mxu0 }
 0x367   : > { %v3026_v39 = vadd.f32 %v3611_v37, %v3025_v24  ;;  %v3847_v41 = vpop.f32.mrb[25].mxu0 }
 0x368   : > { %v3028_v42 = vpop.f32.mrb[26].mxu0 }
 0x369   : > { %v3038_v40 = vrot.slane %v3026_v39, %v4361_v26  ;;  %v3848_v43 = vpop.f32.mrb[27].mxu0 }
 0x36b   : > { %v3039_v44 = vcombine.high %v3038_v40, %v3038_v40  ;;  %v3042_v45 = vpack.c.bf16 %v3038_v40, %v3038_v40 }
 0x36d   : > { %v3043_v46 = vpack.c.bf16 %v3039_v44, %v3039_v44  ;;  %3044 = vst [vmem:[%s477_s15] sm:$0x1] %v3042_v45 }
 0x36f   : > { %3045 = vst [vmem:[%s477_s15 + $0x1] sm:$0x1] %v3043_v46 }
 0x370 PF: > { %s19_s11 = sadd.s32 1, %s4076_s11   ;;  %s4901_s30 = smov %s4072_s10 }
 0x371   : > { %p16_p5 = scmp.ge.s32.totalorder %s19_s11, 4   ;;  %s4902_s10 = smov %s4904_s12 }
 0x373   :  { %18 = sbr.rel (!%p16_p5) target bundleno = 2 (0x2), region = 107 }

// kernel: multiscale_net_v14_forward.20
= control target key start
LH: loop header
LB: loop body
LE: loop exit
PB: predicated region body
PF: predicated region fallthrough
CT: control target
= control target key end

     0   :  { %s4532_s30 = smov 0   ;;  %s4534_s10 = smov 0   ;;  %s5389_s0 = inlined_call_operand.vmem [shape: bf16[2,4,4,128], index: 0, kind: input, shape index: {}, may-alias: {0,1,2}]   ;;  %s5390_s1 = inlined_call_operand.vmem [shape: bf16[2,4,4,128], index: 1, kind: input, shape index: {}, may-alias: {0,1,2}]   ;;  %s5391_s2 = inlined_call_operand.vmem [shape: bf16[2,4,4,128], index: 2, kind: input, shape index: {}, may-alias: {0,1,2}]   ;;  %s5392_s3 = inlined_call_operand.vmem [shape: bf16[128,256], index: 3, kind: input, shape index: {}]   ;;  %s5393_s4 = inlined_call_operand.vmem [shape: f32[1,256], index: 4, kind: input, shape index: {}]   ;;  %s5394_s5 = inlined_call_operand.vmem [shape: bf16[9,256,128], index: 5, kind: input, shape index: {}]   ;;  %s5395_s6 = inlined_call_operand.vmem [shape: f32[1,128], index: 6, kind: input, shape index: {}]   ;;  %s5396_s7 = inlined_call_operand.vmem [shape: bf16[128,128], index: 7, kind: input, shape index: {}]   ;;  %s5397_s8 = inlined_call_operand.vmem [shape: f32[1,128], index: 8, kind: input, shape index: {}]   ;;  %s5398_s9 = inlined_call_operand.vmem [shape: bf16[2,4,4,128], index: 9, kind: output, shape index: {}]  }
   0x1   :  { %s4536_s11 = smov 0  }
   0x2 LB: > { %s31_s12 = sadd.s32 1, %s4472_s10  ;;  %p3516_p0 = scmp.ge.s32.totalorder %s4476_s11, 1  ;;  %s4476_s11 = sphi %s4536_s11, %s19_s11   ;;  %s4472_s10 = sphi %s4534_s10, %s5422_s10   ;;  %s4468_s30 = sphi %s4532_s30, %s5421_s30  }
   0x3   : > { %p33_p1 = scmp.ge.s32.totalorder %s31_s12, 2  ;;  %p370_p2 = scmp.lt.s32.totalorder %s4476_s11, 3 }
   0x5   : > { %s5424_s12 = smov (%p33_p1, %s31_s12), 0  ;;  %p371_p3 = pnand %p3516_p0, %p370_p2 }
   0x6   : > { %v4553_v0 = vld [vmem:[%s5392_s3 + $0x4] ss:$8 sps:$4 sm:$0xff] (!%p371_p3)   ;;  %v4558_v1 = vld [vmem:[%s5392_s3] ss:$8 sps:$4 sm:$0xff] (!%p371_p3)   ;;  %v4478_v2 = vmov (!%p371_p3), 0   ;;  %p439_p4 = scmp.lt.s32.totalorder (!%p371_p3), %s4468_s30, 1  ;;  %v513_v8 = vlaneseq (!%p371_p3) }
   0x7   : > { %374 = sbr.rel (%p371_p3) target bundleno = 888 (0x378), region = 56  ;;  %657 = vmatprep.mubr.bf16.mxu0 (!%p371_p3), %v4478_v2  ;;  %805 = vmatprep.mubr.bf16.mxu1 (!%p371_p3), %v4478_v2  ;;  %v4567_v3 = vld [vmem:[%s5392_s3 + $0x14] ss:$8 sps:$4 sm:$0xff] (!%p371_p3)   ;;  %v4574_v4 = vld [vmem:[%s5392_s3 + $0x10] ss:$8 sps:$4 sm:$0xff] (!%p371_p3)   ;;  %v4302_v34 = vld [vmem:[%s5394_s5 + $0x40] sm:$0xff] (!%p371_p3)  }
   0x8   : > { %625 = vmatprep.subr.bf16.mxu0 (!%p371_p3), %v4553_v0  ;;  %773 = vmatprep.subr.bf16.mxu1 (!%p371_p3), %v4553_v0  ;;  %v4581_v5 = vld [vmem:[%s5392_s3 + $0x24] ss:$8 sps:$4 sm:$0xff] (!%p371_p3)   ;;  %v4588_v6 = vld [vmem:[%s5392_s3 + $0x20] ss:$8 sps:$4 sm:$0xff] (!%p371_p3)   ;;  %v4287_v7 = vld [vmem:[%s5392_s3 + $0x34] ss:$8 sps:$4 sm:$0xff] (!%p371_p3)  }
   0x9   : > { %626 = vmatpush1.bf16.msra.mxu0 (!%p371_p3), %v4558_v1  ;;  %774 = vmatpush1.bf16.msra.mxu1 (!%p371_p3), %v4558_v1  ;;  %v4289_v9 = vld [vmem:[%s5392_s3 + $0x30] ss:$8 sps:$4 sm:$0xff] (!%p371_p3)   ;;  %v4290_v10 = vld [vmem:[%s5392_s3 + $0x44] ss:$8 sps:$4 sm:$0xff] (!%p371_p3)   ;;  %v4605_v11 = vshrl.u32 (!%p371_p3), %v513_v8, 7  ;;  %vm753_vm0 = vcmask (!%p371_p3), 1042432  }
   0xa   : > { %627 = vmatprep.subr.bf16.mxu0 (!%p371_p3), %v4567_v3  ;;  %775 = vmatprep.subr.bf16.mxu1 (!%p371_p3), %v4567_v3  ;;  %v4292_v12 = vld [vmem:[%s5392_s3 + $0x40] ss:$8 sps:$4 sm:$0xff] (!%p371_p3)   ;;  %v4293_v13 = vld [vmem:[%s5392_s3 + $0x54] ss:$8 sps:$4 sm:$0xff] (!%p371_p3)   ;;  %v4479_v14 = vmov (!%p371_p3), 1983009808  }
   0xb   : > { %v530_v15 = vunpack.c.l.s4 (!%p371_p3), %v4479_v14  ;;  %v4295_v16 = vld [vmem:[%s5392_s3 + $0x50] ss:$8 sps:$4 sm:$0xff] (!%p371_p3)   ;;  %v4296_v21 = vld [vmem:[%s5392_s3 + $0x64] ss:$8 sps:$4 sm:$0xff] (!%p371_p3)   ;;  %v4298_v23 = vld [vmem:[%s5392_s3 + $0x60] ss:$8 sps:$4 sm:$0xff] (!%p371_p3)  }
   0xc   : > { %v4299_v24 = vld [vmem:[%s5392_s3 + $0x74] ss:$8 sps:$4 sm:$0xff] (!%p371_p3)   ;;  %v4301_v28 = vld [vmem:[%s5392_s3 + $0x70] ss:$8 sps:$4 sm:$0xff] (!%p371_p3)   ;;  %v4303_v35 = vld [vmem:[%s5394_s5] sm:$0xff] (!%p371_p3)   ;;  %vm756_vm2 = vcmask (!%p371_p3), 1046532  }
   0xd   : > { %628 = vmatpush1.bf16.msra.mxu0 (!%p371_p3), %v4574_v4  ;;  %776 = vmatpush1.bf16.msra.mxu1 (!%p371_p3), %v4574_v4  ;;  %v531_v22 = vunpack.c.0.s8 (!%p371_p3), %v530_v15  ;;  %v4304_v36 = vld [vmem:[%s5394_s5 + $0x48] sm:$0xff] (!%p371_p3)   ;;  %v4306_v38 = vld [vmem:[%s5394_s5 + $0x50] sm:$0xff] (!%p371_p3)   ;;  %v4307_v39 = vld [vmem:[%s5394_s5 + $0xc0] sm:$0xff] (!%p371_p3)   ;;  %vm754_vm1 = vsmask.f32 (!%p371_p3), 2306  ;;  %vm897_vm6 = vcmask (!%p371_p3), 1040384  }
   0xe   : > { %s5426_s30 = smov (!%p439_p4, %s4468_s30), 1  ;;  %629 = vmatprep.subr.bf16.mxu0 %v4581_v5  ;;  %777 = vmatprep.subr.bf16.mxu1 %v4581_v5  ;;  %v4305_v37 = vld [vmem:[%s5394_s5 + $0x8] sm:$0xff]   ;;  %v4308_v40 = vld [vmem:[%s5394_s5 + $0x10] sm:$0xff]   ;;  %v4309_v41 = vld [vmem:[%s5394_s5 + $0x80] sm:$0xff]   ;;  %vm757_vm3 = vsmask.f32 6418 }
   0xf   : > { %s4600_s29 = sshll.u32 %s5426_s30, 3  ;;  %v4631_v27 = vsub.s32 %v531_v22, %v4605_v11  ;;  %v4310_v42 = vld [vmem:[%s5394_s5 + $0x58] sm:$0xff]   ;;  %v4311_v43 = vld [vmem:[%s5394_s5 + $0xc8] sm:$0xff]   ;;  %v4314_v46 = vld [vmem:[%s5394_s5 + $0x60] sm:$0xff]   ;;  %vm898_vm7 = vsmask.f32 256 }
  0x10   : > { %s4014_s15 = sadd.s32 6, %s4600_s29  ;;  %s446_s21 = scalar_lea.vmem %s5389_s0, %s4600_s29  ;;  %v4312_v44 = vld [vmem:[%s5394_s5 + $0x18] sm:$0xff]   ;;  %v4313_v45 = vld [vmem:[%s5394_s5 + $0x88] sm:$0xff]   ;;  %v4315_v47 = vld [vmem:[%s5394_s5 + $0xd0] sm:$0xff]   ;;  %vm900_vm9 = vcmask 1044484   ;;  %vm922_vm11 = vcmask 1042434  }
  0x11   : > { %630 = vmatpush1.bf16.msra.mxu0 %v4588_v6  ;;  %778 = vmatpush1.bf16.msra.mxu1 %v4588_v6  ;;  %v508_v17 = vld [vmem:[%s446_s21] sm:$0x3]  ;;  %v509_v18 = vld [vmem:[%s446_s21 + $0x2] sm:$0x3]  ;;  %v510_v19 = vld [vmem:[%s446_s21 + $0x4] sm:$0x3]  ;;  %s459_s19 = scalar_lea.vmem %s5390_s1, %s4600_s29 }
  0x12   : > { %631 = vmatprep.subr.bf16.mxu0 %v4287_v7  ;;  %779 = vmatprep.subr.bf16.mxu1 %v4287_v7  ;;  %v511_v20 = vld [vmem:[%s446_s21 + $0x6] sm:$0x3]  ;;  %v527_v25 = vcombine.low %v508_v17, %v509_v18  ;;  %v772_v31 = vld [vmem:[%s459_s19] sm:$0x3]  ;;  %s475_s21 = scalar_lea.vmem %s5391_s2, %s4014_s15  ;;  %v4317_v49 = vld [vmem:[%s5394_s5 + $0x90] sm:$0xff]   ;;  %vm925_vm13 = vcmask 1046534   ;;  %s488_s15 = scalar_lea.vmem %s5398_s9, %s4600_s29 }
  0x13   : > { %v528_v26 = vcombine.low %v510_v19, %v511_v20  ;;  %v834_v33 = vld [vmem:[%s475_s21] sm:$0x3]  ;;  %v4318_v50 = vld [vmem:[%s5394_s5 + $0x68] sm:$0xff]   ;;  %v4319_v51 = vld [vmem:[%s5394_s5 + $0xd8] sm:$0xff]   ;;  %vm901_vm10 = vsmask.f32 4352 }
  0x14   : > { %v535_v29 = vrot.slane %v527_v25, %v4631_v27  ;;  %v4316_v48 = vld [vmem:[%s5394_s5 + $0x20] sm:$0xff]   ;;  %v4320_v52 = vld [vmem:[%s5394_s5 + $0x28] sm:$0xff]   ;;  %v4321_v53 = vld [vmem:[%s5394_s5 + $0x98] sm:$0xff]   ;;  %vm923_vm12 = vsmask.f32 7946 }
  0x15   : > { %632 = vmatpush1.bf16.msra.mxu0 %v4289_v9  ;;  %780 = vmatpush1.bf16.msra.mxu1 %v4289_v9  ;;  %v542_v30 = vrot.slane %v528_v26, %v4631_v27  ;;  %v4322_v54 = vld [vmem:[%s5394_s5 + $0x70] sm:$0xff]   ;;  %v4323_v55 = vld [vmem:[%s5394_s5 + $0xe0] sm:$0xff]   ;;  %v4326_v58 = vld [vmem:[%s5394_s5 + $0x78] sm:$0xff]   ;;  %vm926_vm14 = vsmask.f32 7962 }
  0x16   : > { %633 = vmatprep.subr.bf16.mxu0 %v4290_v10  ;;  %781 = vmatprep.subr.bf16.mxu1 %v4290_v10  ;;  %v4324_v56 = vld [vmem:[%s5394_s5 + $0x30] sm:$0xff]   ;;  %v4325_v57 = vld [vmem:[%s5394_s5 + $0xa0] sm:$0xff]   ;;  %v4327_v59 = vld [vmem:[%s5394_s5 + $0xe8] sm:$0xff]  }
  0x17   : > { %v543_v32 = vcombine.low %v535_v29, %v542_v30  ;;  %v4328_v60 = vld [vmem:[%s5394_s5 + $0x38] sm:$0xff]   ;;  %v4329_v61 = vld [vmem:[%s5394_s5 + $0xa8] sm:$0xff]   ;;  %v4330_v62 = vld [vmem:[%s5394_s5 + $0x1c0] sm:$0xff]  }
  0x18   : > { %v4331_v63 = vld [vmem:[%s5394_s5 + $0xf0] sm:$0xff]   ;;  %vm4772_vm4 = vmand %vm753_vm0, %vm754_vm1 }
  0x19   : > { %634 = vmatpush1.bf16.msra.mxu0 %v4292_v12  ;;  %782 = vmatpush1.bf16.msra.mxu1 %v4292_v12  ;;  %vm4776_vm5 = vmand %vm756_vm2, %vm757_vm3 }
  0x1a   : > { %635 = vmatprep.subr.bf16.mxu0 %v4293_v13  ;;  %783 = vmatprep.subr.bf16.mxu1 %v4293_v13  ;;  %vm4784_vm8 = vmor %vm4776_vm5, %vm4772_vm4  ;;  %vm1061_vm5 = vsmask.f32 1280 }
  0x1b   : > { %vm899_vm15 = vmand %vm897_vm6, %vm898_vm7  ;;  %vm1062_vm7 = vsmask.f32 3336 }
  0x1c   : > { %vm902_vm0 = vmand %vm900_vm9, %vm901_vm10  ;;  %vm1064_vm10 = vsmask.f32 5392 }
  0x1d   : > { %636 = vmatpush1.bf16.msra.mxu0 %v4295_v16  ;;  %784 = vmatpush1.bf16.msra.mxu1 %v4295_v16  ;;  %vm924_vm1 = vmand %vm922_vm11, %vm923_vm12  ;;  %vm1066_vm12 = vsmask.f32 7448 }
  0x1e   : > { %637 = vmatprep.subr.bf16.mxu0 %v4296_v21  ;;  %785 = vmatprep.subr.bf16.mxu1 %v4296_v21  ;;  %vm927_vm2 = vmand %vm925_vm13, %vm926_vm14 }
  0x1f   : > { %vm4806_vm3 = vmor %vm902_vm0, %vm899_vm15 }
  0x20   : > { %vm4810_vm4 = vmor %vm927_vm2, %vm924_vm1 }
  0x21   : > { %638 = vmatpush1.bf16.msra.mxu0 %v4298_v23  ;;  %786 = vmatpush1.bf16.msra.mxu1 %v4298_v23  ;;  %vm4839_vm14 = vmor %vm1061_vm5, %vm1062_vm7 }
  0x22   : > { %639 = vmatprep.subr.bf16.mxu0 %v4299_v24  ;;  %787 = vmatprep.subr.bf16.mxu1 %v4299_v24  ;;  %vm4847_vm15 = vmor %vm4839_vm14, %vm1064_vm10 }
  0x23   : > { %vm4867_vm0 = vmor %vm4847_vm15, %vm1066_vm12 }
  0x24   : > { %vm4873_vm1 = vmor %vm897_vm6, %vm922_vm11 }
  0x25   : > { %640 = vmatpush1.bf16.msra.mxu0 %v4301_v28  ;;  %788 = vmatpush1.bf16.msra.mxu1 %v4301_v28  ;;  %vm4888_vm6 = vmor %vm4873_vm1, %vm900_vm9  ;;  %vm4481_vm9 = vmmov 0  }
  0x26   : > { %835 = vmatprep.subr.bf16.mxu0 %v4553_v0  ;;  %4023 = vmatprep.subr.bf16.mxu1 %v4307_v39  ;;  %v4333_v0 = vld [vmem:[%s5394_s5 + $0xb0] sm:$0xff]  }
  0x28   : > { %658 = vmatmul.mubr.bf16.vlgmr.msra.gmra.mrb[0].mxu0 %v543_v32  ;;  %806 = vmatmul.mubr.bf16.vlgmr.msra.gmra.mrb[0].mxu1 %v772_v31 }
  0x29   : > { %836 = vmatpush1.bf16.msra.mxu0 %v4558_v1  ;;  %867 = vmatprep.mubr.bf16.mxu0 %v4478_v2  ;;  %v4335_v1 = vld [vmem:[%s5394_s5 + $0xf8] sm:$0xff]  }
  0x2a   : > { %837 = vmatprep.subr.bf16.mxu0 %v4567_v3  ;;  %4024 = vmatpush3.bf16.msra.mxu1 %v4309_v41  ;;  %v4337_v3 = vld [vmem:[%s5394_s5 + $0xb8] sm:$0xff]  }
  0x2b   : > { %4025 = vmatprep.subr.bf16.mxu1 %v4311_v43 }
  0x2d   : > { %838 = vmatpush1.bf16.msra.mxu0 %v4574_v4  ;;  %v4339_v4 = vld [vmem:[%s5394_s5 + $0x140] sm:$0xff]  }
  0x2e   : > { %839 = vmatprep.subr.bf16.mxu0 %v4581_v5  ;;  %4026 = vmatpush3.bf16.msra.mxu1 %v4313_v45  ;;  %v515_v5 = vsub.s32 0, %v4605_v11 }
  0x2f   : > { %4027 = vmatprep.subr.bf16.mxu1 %v4315_v47 }
  0x31   : > { %840 = vmatpush1.bf16.msra.mxu0 %v4588_v6  ;;  %v507_v6 = vld [vmem:[%s5393_s4] sm:$0x3] }
  0x32   : > { %841 = vmatprep.subr.bf16.mxu0 %v4287_v7  ;;  %4028 = vmatpush3.bf16.msra.mxu1 %v4317_v49  ;;  %v519_v7 = vsub.s32 1, %v4605_v11  ;;  %v4761_v8 = vrot.slane %v507_v6, %v515_v5 }
  0x33   : > { %4029 = vmatprep.subr.bf16.mxu1 %v4319_v51 }
  0x35   : > { %842 = vmatpush1.bf16.msra.mxu0 %v4289_v9  ;;  %v4763_v9 = vrot.slane %v507_v6, %v519_v7 }
  0x36   : > { %843 = vmatprep.subr.bf16.mxu0 %v4290_v10  ;;  %4030 = vmatpush3.bf16.msra.mxu1 %v4321_v53  ;;  %v4336_v53 = vld [vmem:[%s5394_s5 + $0x188] sm:$0xff]  }
  0x37   : > { %4031 = vmatprep.subr.bf16.mxu1 %v4323_v55  ;;  %v760_v55 = vld [vmem:[#allocation2 + $0x8] sm:$0x77] }
  0x39   : > { %844 = vmatpush1.bf16.msra.mxu0 %v4292_v12 }
  0x3a   : > { %845 = vmatprep.subr.bf16.mxu0 %v4293_v13  ;;  %4032 = vmatpush3.bf16.msra.mxu1 %v4325_v57 }
  0x3b   : > { %4033 = vmatprep.subr.bf16.mxu1 %v4327_v59 }
  0x3d   : > { %846 = vmatpush1.bf16.msra.mxu0 %v4295_v16 }
  0x3e   : > { %847 = vmatprep.subr.bf16.mxu0 %v4296_v21  ;;  %4034 = vmatpush3.bf16.msra.mxu1 %v4329_v61 }
  0x3f   : > { %4035 = vmatprep.subr.bf16.mxu1 %v4331_v63 }
  0x41   : > { %848 = vmatpush1.bf16.msra.mxu0 %v4298_v23 }
  0x42   : > { %849 = vmatprep.subr.bf16.mxu0 %v4299_v24  ;;  %4036 = vmatpush3.bf16.msra.mxu1 %v4333_v0 }
  0x43   : > { %4037 = vmatprep.subr.bf16.mxu1 %v4335_v1 }
  0x45   : > { %850 = vmatpush1.bf16.msra.mxu0 %v4301_v28 }
  0x46   : > { %4045 = vmatprep.subr.bf16.mxu0 %v4302_v34  ;;  %4038 = vmatpush3.bf16.msra.mxu1 %v4337_v3 }
  0x47   : > { %4067 = vmatprep.subr.bf16.mxu1 %v4339_v4 }
  0x48   : > { %868 = vmatmul.mubr.bf16.vlgmr.msra.gmra.mrb[4].mxu0 %v834_v33 }
  0x49   : > { %4046 = vmatpush3.bf16.msra.mxu0 %v4303_v35 }
  0x4a   : > { %4047 = vmatprep.subr.bf16.mxu0 %v4304_v36 }
  0x4d   : > { %4048 = vmatpush3.bf16.msra.mxu0 %v4305_v37 }
  0x4e   : > { %4049 = vmatprep.subr.bf16.mxu0 %v4306_v38 }
  0x51   : > { %4050 = vmatpush3.bf16.msra.mxu0 %v4308_v40 }
  0x52   : > { %4051 = vmatprep.subr.bf16.mxu0 %v4310_v42 }
  0x55   : > { %4052 = vmatpush3.bf16.msra.mxu0 %v4312_v44 }
  0x56   : > { %4053 = vmatprep.subr.bf16.mxu0 %v4314_v46 }
  0x59   : > { %4054 = vmatpush3.bf16.msra.mxu0 %v4316_v48 }
  0x5a   : > { %4055 = vmatprep.subr.bf16.mxu0 %v4318_v50 }
  0x5d   : > { %4056 = vmatpush3.bf16.msra.mxu0 %v4320_v52 }
  0x5e   : > { %4057 = vmatprep.subr.bf16.mxu0 %v4322_v54  ;;  %v831_v54 = vld [vmem:[#allocation2] sm:$0x77] }
  0x61   : > { %4058 = vmatpush3.bf16.msra.mxu0 %v4324_v56  ;;  %v763_v56 = vld [vmem:[#allocation2 + $0x10] sm:$0x77] }
  0x62   : > { %4059 = vmatprep.subr.bf16.mxu0 %v4326_v58 }
  0x65   : > { %4060 = vmatpush3.bf16.msra.mxu0 %v4328_v60 }
  0x66   : > { %4089 = vmatprep.subr.bf16.mxu0 %v4330_v62 }
  0xfb   : > { %v659_v10 = vpop.f32.mrb[0].mxu0  ;;  %v807_v12 = vpop.f32.mrb[0].mxu1 }
  0xfc   : > { %v660_v13 = vadd.f32 %v659_v10, %v4761_v8  ;;  %v808_v14 = vadd.f32 %v807_v12, %v4761_v8  ;;  %v661_v15 = vpop.f32.mrb[1].mxu0  ;;  %v809_v16 = vpop.f32.mrb[1].mxu1  ;;  %v766_v10 = vld [vmem:[#allocation2 + $0x18] sm:$0x77]  ;;  %v769_v12 = vld [vmem:[#allocation2 + $0x20] sm:$0x77] }
  0xfd   : > { %v662_v17 = vadd.f32 %v661_v15, %v4763_v9  ;;  %v810_v18 = vadd.f32 %v809_v16, %v4763_v9  ;;  %v663_v19 = vpop.f32.mrb[2].mxu0  ;;  %v811_v20 = vpop.f32.mrb[2].mxu1 }
  0xfe   : > { %v668_v21 = vmax.f32 %v660_v13, 0.0  ;;  %v814_v11 = vmax.f32 %v808_v14, 0.0  ;;  %v664_v22 = vadd.f32 %v663_v19, %v4761_v8  ;;  %v665_v23 = vpop.f32.mrb[3].mxu0  ;;  %v812_v24 = vpop.f32.mrb[3].mxu1 }
  0xff   : > { %v669_v25 = vmax.f32 %v662_v17, 0.0  ;;  %v815_v26 = vmax.f32 %v810_v18, 0.0  ;;  %v666_v28 = vadd.f32 %v665_v23, %v4763_v9 }
 0x100   : > { %v670_v29 = vmax.f32 %v664_v22, 0.0 }
 0x101   : > { %v676_v30 = vcombine.low %v668_v21, %v669_v25  ;;  %v677_v31 = vcombine.high %v668_v21, %v669_v25  ;;  %v3541_v32 = vcombine.low %v669_v25, %v669_v25  ;;  %v3542_v33 = vcombine.high %v669_v25, %v669_v25 }
 0x102   : > { %v4020_v34 = vpack.c.bf16 %v815_v26, %v814_v11  ;;  %v671_v35 = vmax.f32 %v666_v28, 0.0 }
 0x103   : > { %v4016_v36 = vpack.c.bf16 %v3541_v32, %v676_v30  ;;  %v4017_v37 = vpack.c.bf16 %v3542_v33, %v677_v31 }
 0x104   : > { %v824_v40 = vshrl.u32 %v4020_v34, 16  ;;  %v827_v41 = vshll.u32 %v4020_v34, 16  ;;  %v678_v42 = vcombine.low %v670_v29, %v671_v35  ;;  %v679_v43 = vcombine.high %v670_v29, %v671_v35 }
 0x105   : > { %v721_v44 = vshrl.u32 %v4016_v36, 16  ;;  %v728_v45 = vshrl.u32 %v4017_v37, 16  ;;  %v3543_v47 = vcombine.low %v671_v35, %v671_v35  ;;  %v3544_v48 = vcombine.high %v671_v35, %v671_v35 }
 0x106   : > { %v826_v46 = vrot.slane %v824_v40, 7  ;;  %v724_v50 = vshll.u32 %v4016_v36, 16  ;;  %v731_v52 = vshll.u32 %v4017_v37, 16 }
 0x107   : > { %v723_v49 = vrot.slane %v721_v44, 7  ;;  %v730_v51 = vrot.slane %v728_v45, 7  ;;  %v4018_v58 = vpack.c.bf16 %v3543_v47, %v678_v42  ;;  %v4019_v59 = vpack.c.bf16 %v3544_v48, %v679_v43 }
 0x108   : > { %v829_v57 = vor.u32 %v827_v41, %v826_v46 }
 0x109   : > { %v726_v60 = vor.u32 %v724_v50, %v723_v49  ;;  %v733_v61 = vor.u32 %v731_v52, %v730_v51  ;;  %v735_v63 = vshrl.u32 %v4018_v58, 16  ;;  %v742_v0 = vshrl.u32 %v4019_v59, 16 }
 0x10a   : > { %v832_v62 = vsel %vm4784_vm8, %v829_v57, %v831_v54  ;;  %v738_v5 = vshll.u32 %v4018_v58, 16  ;;  %v745_v7 = vshll.u32 %v4019_v59, 16 }
 0x10b   : > { %v761_v1 = vsel %vm4784_vm8, %v726_v60, %v760_v55  ;;  %v764_v3 = vsel %vm4784_vm8, %v733_v61, %v763_v56  ;;  %833 = vst [vmem:[#allocation2] sm:$0x77] %v832_v62  ;;  %v737_v4 = vrot.slane %v735_v63, 7  ;;  %v744_v6 = vrot.slane %v742_v0, 7 }
 0x10c   : > { %762 = vst [vmem:[#allocation2 + $0x8] sm:$0x77] %v761_v1  ;;  %765 = vst [vmem:[#allocation2 + $0x10] sm:$0x77] %v764_v3 }
 0x10d   : > { %v740_v13 = vor.u32 %v738_v5, %v737_v4  ;;  %v747_v14 = vor.u32 %v745_v7, %v744_v6 }
 0x10f   : > { %v767_v15 = vsel %vm4784_vm8, %v740_v13, %v766_v10  ;;  %v770_v16 = vsel %vm4784_vm8, %v747_v14, %v769_v12 }
 0x110   : > { %768 = vst [vmem:[#allocation2 + $0x18] sm:$0x77] %v767_v15  ;;  %771 = vst [vmem:[#allocation2 + $0x20] sm:$0x77] %v770_v16  ;;  %v894_v16 = vld [vmem:[#allocation2 + $0x28] sm:$0x77] }
 0x112   : > { %v904_v19 = vld [vmem:[#allocation2] sm:$0x11]  ;;  %v929_v20 = vld [vmem:[#allocation2] sm:$0x44] }
 0x113   : > { %v907_v21 = vld [vmem:[#allocation2 + $0x8] sm:$0x11]  ;;  %v910_v11 = vld [vmem:[#allocation2 + $0x10] sm:$0x11]  ;;  %v932_v22 = vld [vmem:[#allocation2 + $0x8] sm:$0x44] }
 0x114   : > { %v908_v23 = vsel %vm4806_vm3, 0, %v907_v21  ;;  %v911_v24 = vsel %vm4806_vm3, 0, %v910_v11  ;;  %v933_v25 = vsel %vm4810_vm4, 0, %v932_v22  ;;  %v935_v26 = vld [vmem:[#allocation2 + $0x10] sm:$0x44]  ;;  %v905_v28 = vsel %vm4806_vm3, 0, %v904_v19 }
 0x115   : > { %909 = vst [vmem:[#allocation2 + $0x8] sm:$0x11] %v908_v23  ;;  %912 = vst [vmem:[#allocation2 + $0x10] sm:$0x11] %v911_v24  ;;  %v936_v29 = vsel %vm4810_vm4, 0, %v935_v26  ;;  %v930_v30 = vsel %vm4810_vm4, 0, %v929_v20 }
 0x116   : > { %934 = vst [vmem:[#allocation2 + $0x8] sm:$0x44] %v933_v25  ;;  %906 = vst [vmem:[#allocation2] sm:$0x11] %v905_v28  ;;  %v4332_v19 = vld [vmem:[%s5394_s5 + $0x180] sm:$0xff]   ;;  %v4334_v11 = vld [vmem:[%s5394_s5 + $0x1c8] sm:$0xff]  }
 0x117   : > { %937 = vst [vmem:[#allocation2 + $0x10] sm:$0x44] %v936_v29  ;;  %931 = vst [vmem:[#allocation2] sm:$0x44] %v930_v30  ;;  %v913_v31 = vld [vmem:[#allocation2 + $0x18] sm:$0x11] }
 0x118   : > { %951 = vst [vmem:[#allocation2] sm:$0x77] %v4478_v2  ;;  %v916_v32 = vld [vmem:[#allocation2 + $0x20] sm:$0x11]  ;;  %v938_v33 = vld [vmem:[#allocation2 + $0x18] sm:$0x44] }
 0x119   : > { %v914_v34 = vsel %vm4806_vm3, 0, %v913_v31  ;;  %v917_v35 = vsel %vm4806_vm3, 0, %v916_v32  ;;  %v939_v36 = vsel %vm4810_vm4, 0, %v938_v33  ;;  %v941_v37 = vld [vmem:[#allocation2 + $0x20] sm:$0x44]  ;;  %v4383_v25 = vld [vmem:[%s5394_s5 + $0x258] sm:$0xff]  }
 0x11a   : > { %915 = vst [vmem:[#allocation2 + $0x18] sm:$0x11] %v914_v34  ;;  %918 = vst [vmem:[#allocation2 + $0x20] sm:$0x11] %v917_v35  ;;  %v942_v38 = vsel %vm4810_vm4, 0, %v941_v37 }
 0x11b   : > { %940 = vst [vmem:[#allocation2 + $0x18] sm:$0x44] %v939_v36  ;;  %943 = vst [vmem:[#allocation2 + $0x20] sm:$0x44] %v942_v38  ;;  %v869_v39 = vpop.f32.mrb[4].mxu0 }
 0x11c   : > { %v870_v40 = vadd.f32 %v869_v39, %v4761_v8  ;;  %v871_v41 = vpop.f32.mrb[5].mxu0  ;;  %v3552_v42 = vld.sshfl [vmem:[#allocation2 + $0x8] sm:$0xf pattern:$0x76325410] }
 0x11d   : > { %v872_v43 = vadd.f32 %v871_v41, %v4763_v9  ;;  %v3553_v44 = vld.sshfl [vmem:[#allocation2 + $0x10] sm:$0xf pattern:$0x76325410]  ;;  %v873_v45 = vpop.f32.mrb[6].mxu0 }
 0x11e   : > { %v876_v46 = vmax.f32 %v870_v40, 0.0  ;;  %v874_v48 = vpop.f32.mrb[7].mxu0  ;;  %v3556_v52 = vld.sshfl [vmem:[#allocation2 + $0x8] sm:$0x5f pattern:$0x76325410]  ;;  %v1791_v58 = vcombine.low %v3552_v42, %v3553_v44 }
 0x11f   : > { %v3551_v47 = vld.sshfl [vmem:[#allocation2] sm:$0xf pattern:$0x76325410]  ;;  %v877_v49 = vmax.f32 %v872_v43, 0.0  ;;  %v1083_v59 = vshrl.u32 %v3556_v52, 16  ;;  %v1044_v12 = vcombine.high %v3556_v52, %v3556_v52 }
 0x120   : > { %v1314_v50 = vcombine.low %v3551_v47, %v3552_v42  ;;  %v3555_v51 = vld.sshfl [vmem:[#allocation2] sm:$0x5f pattern:$0x76325410]  ;;  %v4856_v20 = vrot.slane %v1791_v58, %v4631_v27  ;;  %v1086_v34 = vshll.u32 %v3556_v52, 16 }
 0x121   : > { %v1036_v54 = vcombine.high %v3555_v51, %v3555_v51  ;;  %v1069_v8 = vshrl.u32 %v3555_v51, 16  ;;  %v1072_v56 = vshll.u32 %v3555_v51, 16  ;;  %v4021_v57 = vpack.c.bf16 %v877_v49, %v876_v46  ;;  %v3554_v9 = vld.sshfl [vmem:[#allocation2 + $0x18] sm:$0xf pattern:$0x76325410] }
 0x122   : > { %v1315_v60 = vcombine.low %v3553_v44, %v3554_v9  ;;  %v3682_v61 = vld.sshfl [vmem:[#allocation2 + $0x20] sm:$0xf pattern:$0x76325410]  ;;  %v1322_v3 = vrot.slane %v1314_v50, %v4631_v27  ;;  %v1085_v33 = vrot.slane %v1083_v59, 6  ;;  %v1092_v37 = vshll.u32 %v1044_v12, 16 }
 0x123   : > { %v1071_v62 = vrot.slane %v1069_v8, 6  ;;  %v1074_v63 = vrot.slane %v1072_v56, 7  ;;  %v886_v0 = vshrl.u32 %v4021_v57, 16  ;;  %v889_v1 = vshll.u32 %v4021_v57, 16  ;;  %v4338_v46 = vld [vmem:[%s5394_s5 + $0x1d0] sm:$0xff]   ;;  %v4366_v59 = vld [vmem:[%s5394_s5 + $0x2c8] sm:$0xff]  }
 0x124   : > { %v1792_v4 = vcombine.low %v3554_v9, %v3682_v61  ;;  %v3557_v5 = vld.sshfl [vmem:[#allocation2 + $0x10] sm:$0x5f pattern:$0x76325410]  ;;  %v1329_v7 = vrot.slane %v1315_v60, %v4631_v27  ;;  %v1078_v14 = vshll.u32 %v1036_v54, 16  ;;  %v1088_v42 = vrot.slane %v1086_v34, 7 }
 0x125   : > { %v3558_v10 = vld.sshfl [vmem:[#allocation2 + $0x18] sm:$0x5f pattern:$0x76325410]  ;;  %v1075_v13 = vor.u32 %v1074_v63, %v1071_v62  ;;  %v888_v15 = vrot.slane %v886_v0, 7  ;;  %v1052_v22 = vcombine.high %v3557_v5, %v3557_v5  ;;  %v1097_v38 = vshrl.u32 %v3557_v5, 16 }
 0x126   : > { %v4859_v21 = vrot.slane %v1792_v4, %v4631_v27  ;;  %v1331_v23 = vcombine.high %v1322_v3, %v1329_v7  ;;  %v1330_v24 = vcombine.low %v1322_v3, %v1329_v7  ;;  %v1080_v28 = vrot.slane %v1078_v14, 7  ;;  %v3623_v29 = vld.sshfl [vmem:[#allocation2] sm:$0x5a pattern:$0x76325410]  ;;  %v4340_v4 = vld [vmem:[%s5394_s5 + $0x190] sm:$0xff]  }
 0x127   : > { %v1076_v26 = vrot.slane %v1075_v13, 2  ;;  %v891_v31 = vor.u32 %v889_v1, %v888_v15  ;;  %v1060_v32 = vcombine.high %v3558_v10, %v3558_v10  ;;  %v3624_v35 = vld.sshfl [vmem:[#allocation2 + $0x8] sm:$0x5a pattern:$0x76325410]  ;;  %v1100_v39 = vshll.u32 %v3557_v5, 16 }
 0x128   : > { %1462 = vmatprep.mubr.bf16.mxu0 %v1331_v23  ;;  %v1808_v36 = vcombine.high %v4856_v20, %v4859_v21  ;;  %v1111_v43 = vshrl.u32 %v3558_v10, 16  ;;  %v3625_v44 = vld.sshfl [vmem:[#allocation2 + $0x10] sm:$0x5a pattern:$0x76325410]  ;;  %v1099_v47 = vrot.slane %v1097_v38, 6  ;;  %v1089_v51 = vor.u32 %v1088_v42, %v1085_v33 }
 0x129   : > { %v895_v40 = vsel %vm4784_vm8, %v891_v31, %v894_v16  ;;  %1463 = vmatmul.mubr.bf16.vlgmr.msra.gmra.mrb[8].mxu0 %v1330_v24  ;;  %v4883_v41 = vsel %vm4867_vm0, %v1076_v26, %v1080_v28  ;;  %v1102_v48 = vrot.slane %v1100_v39, 7  ;;  %v1106_v49 = vshll.u32 %v1052_v22, 16  ;;  %v3626_v55 = vld.sshfl [vmem:[#allocation2 + $0x18] sm:$0x5a pattern:$0x76325410]  ;;  %vm4901_vm8 = vmor %vm4888_vm6, %vm925_vm13 }
 0x12a   : > { %896 = vst [vmem:[#allocation2 + $0x28] sm:$0x77] %v895_v40  ;;  %4090 = vmatpush3.bf16.msra.mxu0 %v4332_v19  ;;  %1939 = vmatprep.mubr.bf16.mxu0 %v1808_v36  ;;  %v1114_v50 = vshll.u32 %v3558_v10, 16  ;;  %v1113_v52 = vrot.slane %v1111_v43, 6  ;;  %v1120_v54 = vshll.u32 %v1060_v32, 16  ;;  %v1486_v8 = vcombine.high %v3623_v29, %v3623_v29  ;;  %v4342_v13 = vld [vmem:[%s5394_s5 + $0x1d8] sm:$0xff]  }
 0x12b   : > { %4091 = vmatprep.subr.bf16.mxu0 %v4334_v11  ;;  %v1103_v56 = vor.u32 %v1102_v48, %v1099_v47  ;;  %v1494_v9 = vcombine.high %v3624_v35, %v3624_v35  ;;  %v1502_v58 = vcombine.high %v3625_v44, %v3625_v44  ;;  %v1090_v60 = vrot.slane %v1089_v51, 2  ;;  %v4344_v11 = vld [vmem:[%s5394_s5 + $0x198] sm:$0xff]   ;;  %v3786_v34 = vld.sshfl [vmem:[#allocation2 + $0x20] sm:$0x5a pattern:$0x76325410] }
 0x12c   : > { %v1116_v57 = vrot.slane %v1114_v50, 7  ;;  %v1094_v61 = vrot.slane %v1092_v37, 7  ;;  %v1510_v62 = vcombine.high %v3626_v55, %v3626_v55  ;;  %v3627_v63 = vrot.slane %v3623_v29, 9  ;;  %v4346_v37 = vld [vmem:[%s5394_s5 + $0x1e0] sm:$0xff]   ;;  %v4343_v48 = vld [vmem:[%s5394_s5 + $0x148] sm:$0xff]  }
 0x12d   : > { %v1104_v0 = vrot.slane %v1103_v56, 2  ;;  %v1108_v1 = vrot.slane %v1106_v49, 7  ;;  %v1516_v5 = vrot.slane %v1486_v8, 7  ;;  %v3628_v7 = vrot.slane %v3624_v35, 9  ;;  %v4348_v43 = vld [vmem:[%s5394_s5 + $0x1a0] sm:$0xff]   ;;  %v4350_v49 = vld [vmem:[%s5394_s5 + $0x1e8] sm:$0xff]  }
 0x12e   : > { %4092 = vmatpush3.bf16.msra.mxu0 %v4336_v53  ;;  %v1117_v3 = vor.u32 %v1116_v57, %v1113_v52  ;;  %v4910_v6 = vsel %vm4867_vm0, %v1090_v60, %v1094_v61  ;;  %v1520_v10 = vrot.slane %v1494_v9, 7  ;;  %v1524_v12 = vrot.slane %v1502_v58, 7  ;;  %v4341_v53 = vld [vmem:[%s5394_s5 + $0x100] sm:$0xff]   ;;  %v4345_v52 = vld [vmem:[%s5394_s5 + $0x108] sm:$0xff]   ;;  %v4354_v56 = vld [vmem:[%s5394_s5 + $0x1f0] sm:$0xff]  }
 0x12f   : > { %4093 = vmatprep.subr.bf16.mxu0 %v4338_v46  ;;  %v1122_v15 = vrot.slane %v1120_v54, 7  ;;  %v1517_v16 = vsel %vm4901_vm8, %v3627_v63, %v1516_v5  ;;  %v3629_v19 = vrot.slane %v3625_v44, 9  ;;  %v1157_v24 = vcombine.low %v4883_v41, %v4910_v6  ;;  %v3943_v44 = vld.sshfl [vmem:[#allocation2 + $0x10] sm:$0x5a pattern:$0x76325410] }
 0x130   : > { %v1118_v14 = vrot.slane %v1117_v3, 2  ;;  %v4924_v26 = vsel %vm4901_vm8, %v3628_v7, %v1520_v10  ;;  %v3630_v28 = vrot.slane %v3626_v55, 9  ;;  %v1528_v29 = vrot.slane %v1510_v62, 7  ;;  %v4352_v54 = vld [vmem:[%s5394_s5 + $0x1a8] sm:$0xff]   ;;  %v4347_v58 = vld [vmem:[%s5394_s5 + $0x150] sm:$0xff]   ;;  %v4358_v5 = vld [vmem:[%s5394_s5 + $0x1f8] sm:$0xff]  }
 0x131   : > { %v919_v22 = vld [vmem:[#allocation2 + $0x28] sm:$0x11]  ;;  %v944_v23 = vld [vmem:[#allocation2 + $0x28] sm:$0x44]  ;;  %v4932_v32 = vsel %vm4867_vm0, %v1104_v0, %v1108_v1  ;;  %v4942_v17 = vsel %vm4901_vm8, %v3629_v19, %v1524_v12  ;;  %v1563_v36 = vcombine.low %v1517_v16, %v4924_v26  ;;  %v1165_v39 = vrot.slane %v1157_v24, %v4631_v27  ;;  %v4356_v62 = vld [vmem:[%s5394_s5 + $0x1b0] sm:$0xff]  }
 0x132   : > { %v920_v30 = vsel %vm4806_vm3, 0, %v919_v22  ;;  %v945_v31 = vsel %vm4810_vm4, 0, %v944_v23  ;;  %v4936_v33 = vsel %vm4867_vm0, %v1118_v14, %v1122_v15  ;;  %4094 = vmatpush3.bf16.msra.mxu0 %v4340_v4  ;;  %v4946_v18 = vsel %vm4901_vm8, %v3630_v28, %v1528_v29  ;;  %v3944_v47 = vld.sshfl [vmem:[#allocation2 + $0x18] sm:$0x5a pattern:$0x76325410] }
 0x133   : > { %921 = vst [vmem:[#allocation2 + $0x28] sm:$0x11] %v920_v30  ;;  %946 = vst [vmem:[#allocation2 + $0x28] sm:$0x44] %v945_v31  ;;  %v1158_v35 = vcombine.low %v4932_v32, %v4936_v33  ;;  %4095 = vmatprep.subr.bf16.mxu0 %v4342_v13  ;;  %v1564_v38 = vcombine.low %v4942_v17, %v4946_v18  ;;  %v2277_v41 = vcombine.high %v3786_v34, %v3786_v34  ;;  %v4349_v4 = vld [vmem:[%s5394_s5 + $0x110] sm:$0xff]   ;;  %v4351_v10 = vld [vmem:[%s5394_s5 + $0x158] sm:$0xff]  }
 0x134   : > { %952 = vst [vmem:[#allocation2 + $0x28] sm:$0x77] %v4478_v2  ;;  %v4971_v46 = vrot.slane %v1563_v36, %v4631_v27  ;;  %v3018_v55 = vcombine.high %v3943_v44, %v3943_v44  ;;  %v3026_v8 = vcombine.high %v3944_v47, %v3944_v47  ;;  %v3790_v57 = vrot.slane %v3786_v34, 9  ;;  %v4353_v29 = vld [vmem:[%s5394_s5 + $0x118] sm:$0xff]   ;;  %v4355_v31 = vld [vmem:[%s5394_s5 + $0x160] sm:$0xff]  }
 0x135   : > { %v4957_v40 = vrot.slane %v1158_v35, %v4631_v27  ;;  %v4960_v42 = vrot.slane %v1564_v38, %v4631_v27  ;;  %v2292_v51 = vrot.slane %v2277_v41, 7  ;;  %v3734_v9 = vld.sshfl [vmem:[#allocation2 + $0x20] sm:$0x5f pattern:$0x76325410]  ;;  %v3948_v3 = vrot.slane %v3944_v47, 9 }
 0x136   : > { %4096 = vmatpush3.bf16.msra.mxu0 %v4344_v11  ;;  %v3049_v61 = vrot.slane %v3026_v8, 7  ;;  %v2033_v63 = vshrl.u32 %v3734_v9, 16  ;;  %v2036_v0 = vshll.u32 %v3734_v9, 16  ;;  %v3045_v1 = vrot.slane %v3018_v55, 7  ;;  %v4360_v11 = vld [vmem:[%s5394_s5 + $0x1b8] sm:$0xff]   ;;  %v4364_v36 = vld [vmem:[%s5394_s5 + $0x280] sm:$0xff]  }
 0x137   : > { %v1174_v2 = vcombine.high %v1165_v39, %v4957_v40  ;;  %v1173_v45 = vcombine.low %v1165_v39, %v4957_v40  ;;  %4097 = vmatprep.subr.bf16.mxu0 %v4346_v37  ;;  %v1580_v50 = vcombine.high %v4971_v46, %v4960_v42  ;;  %v2293_v60 = vsel %vm4901_vm8, %v3790_v57, %v2292_v51  ;;  %v4357_v39 = vld [vmem:[%s5394_s5 + $0x120] sm:$0xff]   ;;  %v4368_v47 = vld [vmem:[%s5394_s5 + $0x288] sm:$0xff]   ;;  %v4370_v51 = vld [vmem:[%s5394_s5 + $0x2d0] sm:$0xff]  }
 0x138   : > { %v2328_v12 = vcombine.low %v4946_v18, %v2293_v60  ;;  %v3947_v14 = vrot.slane %v3943_v44, 9  ;;  %v3050_v15 = vsel %vm4901_vm8, %v3948_v3, %v3049_v61  ;;  %v2327_v16 = vcombine.low %v4924_v26, %v4942_v17  ;;  %v4362_v26 = vld [vmem:[%s5394_s5 + $0x2c0] sm:$0xff]   ;;  %v4369_v3 = vld [vmem:[%s5394_s5 + $0x138] sm:$0xff]  }
 0x139   : > { %1305 = vmatprep.mubr.bf16.mxu1 %v1174_v2  ;;  %v2035_v22 = vrot.slane %v2033_v63, 6  ;;  %v2038_v23 = vrot.slane %v2036_v0, 7  ;;  %v1989_v35 = vcombine.high %v3734_v9, %v3734_v9  ;;  %v1807_v41 = vcombine.low %v4856_v20, %v4859_v21  ;;  %v4359_v2 = vld [vmem:[%s5394_s5 + $0x168] sm:$0xff]   ;;  %v4365_v9 = vld [vmem:[%s5394_s5 + $0x130] sm:$0xff]  }
 0x13a   : > { %1306 = vmatmul.mubr.bf16.vlgmr.msra.gmra.mrb[4].mxu1 %v1173_v45  ;;  %4098 = vmatpush3.bf16.msra.mxu0 %v4348_v43  ;;  %v3046_v24 = vsel %vm4901_vm8, %v3947_v14, %v3045_v1  ;;  %v5027_v34 = vrot.slane %v2328_v12, %v4631_v27  ;;  %v5035_v37 = vrot.slane %v2327_v16, %v4631_v27  ;;  %v4376_v1 = vld [vmem:[%s5394_s5 + $0x298] sm:$0xff]   ;;  %v4382_v16 = vld [vmem:[%s5394_s5 + $0x2e8] sm:$0xff]  }
 0x13b   : > { %4068 = vmatpush3.bf16.msra.mxu1 %v4341_v53  ;;  %1711 = vmatprep.mubr.bf16.mxu1 %v1580_v50  ;;  %v3946_v7 = vld.sshfl [vmem:[#allocation2 + $0x28] sm:$0x5a pattern:$0x76325410]  ;;  %v3092_v30 = vcombine.low %v3046_v24, %v3050_v15  ;;  %v2039_v38 = vor.u32 %v2038_v23, %v2035_v22  ;;  %v2042_v20 = vshll.u32 %v1989_v35, 16  ;;  %v1579_v14 = vcombine.low %v4971_v46, %v4960_v42  ;;  %v4386_v23 = vld [vmem:[%s5394_s5 + $0x2f0] sm:$0xff]  }
 0x13c   : > { %4069 = vmatprep.subr.bf16.mxu1 %v4343_v48  ;;  %4099 = vmatprep.subr.bf16.mxu0 %v4350_v49  ;;  %v3042_v13 = vcombine.high %v3946_v7, %v3946_v7  ;;  %v3950_v19 = vrot.slane %v3946_v7, 9  ;;  %v2344_v45 = vcombine.high %v5035_v37, %v5027_v34  ;;  %v3894_v49 = vld.sshfl [vmem:[#allocation2 + $0x28] sm:$0x5f pattern:$0x76325410]  ;;  %v4379_v24 = vld [vmem:[%s5394_s5 + $0x250] sm:$0xff]  }
 0x13d   : > { %v5046_v43 = vrot.slane %v3092_v30, %v4631_v27  ;;  %v2040_v48 = vrot.slane %v2039_v38, 2  ;;  %v4361_v50 = vld [vmem:[%s5394_s5 + $0x128] sm:$0xff]   ;;  %v2798_v55 = vshrl.u32 %v3894_v49, 16  ;;  %v2801_v8 = vshll.u32 %v3894_v49, 16  ;;  %v4390_v30 = vld [vmem:[%s5394_s5 + $0x2f8] sm:$0xff]  }
 0x13e   : > { %4100 = vmatpush3.bf16.msra.mxu0 %v4352_v54  ;;  %v3057_v28 = vrot.slane %v3042_v13, 7  ;;  %v2044_v54 = vrot.slane %v2042_v20, 7  ;;  %v4375_v15 = vld [vmem:[%s5394_s5 + $0x248] sm:$0xff]   ;;  %v4392_v35 = vld [vmem:[%s5394_s5 + $0x2b8] sm:$0xff]  }
 0x13f   : > { %4070 = vmatpush3.bf16.msra.mxu1 %v4345_v52  ;;  %4101 = vmatprep.subr.bf16.mxu0 %v4354_v56  ;;  %v4363_v52 = vld [vmem:[%s5394_s5 + $0x170] sm:$0xff]   ;;  %v2800_v63 = vrot.slane %v2798_v55, 6  ;;  %v2803_v0 = vrot.slane %v2801_v8, 7  ;;  %v4384_v42 = vld [vmem:[%s5394_s5 + $0x2a8] sm:$0xff]   ;;  %v4399_v55 = vld [vmem:[%s5394_s5 + $0x278] sm:$0xff]  }
 0x140   : > { %4071 = vmatprep.subr.bf16.mxu1 %v4347_v58  ;;  %v3058_v17 = vsel %vm4901_vm8, %v3950_v19, %v3057_v28  ;;  %v4372_v56 = vld [vmem:[%s5394_s5 + $0x290] sm:$0xff]   ;;  %v5077_v57 = vsel %vm4867_vm0, %v2040_v48, %v2044_v54  ;;  %v4374_v58 = vld [vmem:[%s5394_s5 + $0x2d8] sm:$0xff]   ;;  %v4377_v46 = vld [vmem:[%s5394_s5 + $0x208] sm:$0xff]  }
 0x141   : > { %v3093_v18 = vcombine.low %v2293_v60, %v3058_v17  ;;  %v4367_v60 = vld [vmem:[%s5394_s5 + $0x178] sm:$0xff]   ;;  %v2080_v61 = vcombine.low %v4936_v33, %v5077_v57  ;;  %v4378_v33 = vld [vmem:[%s5394_s5 + $0x2e0] sm:$0xff]   ;;  %v4395_v48 = vld [vmem:[%s5394_s5 + $0x270] sm:$0xff]  }
 0x142   : > { %4102 = vmatpush3.bf16.msra.mxu0 %v4356_v62  ;;  %v2754_v62 = vcombine.high %v3894_v49, %v3894_v49  ;;  %v4385_v17 = vld [vmem:[%s5394_s5 + $0x218] sm:$0xff]   ;;  %v4404_v49 = vld [vmem:[%s5394_s5 + $0x390] sm:$0xff]   ;;  %v3841_v8 = vld.sshfl [vmem:[#allocation2 + $0x20] sm:$0xf pattern:$0x76325410] }
 0x143   : > { %4072 = vmatpush3.bf16.msra.mxu1 %v4349_v4  ;;  %4103 = vmatprep.subr.bf16.mxu0 %v4358_v5  ;;  %v5049_v44 = vrot.slane %v3093_v18, %v4631_v27  ;;  %v2079_v4 = vcombine.low %v4910_v6, %v4932_v32  ;;  %v4371_v5 = vld [vmem:[%s5394_s5 + $0x240] sm:$0xff]   ;;  %v5105_v7 = vrot.slane %v2080_v61, %v4631_v27  ;;  %v4406_v54 = vld [vmem:[%s5394_s5 + $0x3d8] sm:$0xff]  }
 0x144   : > { %4073 = vmatprep.subr.bf16.mxu1 %v4351_v10  ;;  %v2804_v10 = vor.u32 %v2803_v0, %v2800_v63  ;;  %v2807_v12 = vshll.u32 %v2754_v62, 16  ;;  %v4380_v6 = vld [vmem:[%s5394_s5 + $0x2a0] sm:$0xff]  }
 0x145   : > { %v3109_v21 = vcombine.high %v5046_v43, %v5049_v44  ;;  %v3108_v53 = vcombine.low %v5046_v43, %v5049_v44  ;;  %v4373_v32 = vld [vmem:[%s5394_s5 + $0x200] sm:$0xff]   ;;  %v5114_v13 = vrot.slane %v2079_v4, %v4631_v27 }
 0x146   : > { %4104 = vmatpush3.bf16.msra.mxu0 %v4360_v11  ;;  %v2805_v11 = vrot.slane %v2804_v10, 2  ;;  %v2809_v22 = vrot.slane %v2807_v12, 7  ;;  %v4394_v18 = vld [vmem:[%s5394_s5 + $0x3c0] sm:$0xff]   ;;  %v4418_v12 = vld [vmem:[%s5394_s5 + $0x3f0] sm:$0xff]  }
 0x147   : > { %4074 = vmatpush3.bf16.msra.mxu1 %v4353_v29  ;;  %4133 = vmatprep.subr.bf16.mxu0 %v4362_v26  ;;  %v2096_v19 = vcombine.high %v5114_v13, %v5105_v7  ;;  %v4388_v29 = vld [vmem:[%s5394_s5 + $0x2b0] sm:$0xff]   ;;  %v4410_v61 = vld [vmem:[%s5394_s5 + $0x3e0] sm:$0xff]   ;;  %v2095_v4 = vcombine.low %v5114_v13, %v5105_v7  ;;  %v4409_v7 = vld [vmem:[%s5394_s5 + $0x308] sm:$0xff]  }
 0x148   : > { %4075 = vmatprep.subr.bf16.mxu1 %v4355_v31  ;;  %v2810_v28 = vsel %vm4867_vm0, %v2805_v11, %v2809_v22  ;;  %v4381_v26 = vld [vmem:[%s5394_s5 + $0x210] sm:$0xff]   ;;  %v4403_v62 = vld [vmem:[%s5394_s5 + $0x340] sm:$0xff]  }
 0x149   : > { %1940 = vmatmul.mubr.bf16.vlgmr.msra.gmra.mrb[12].mxu0 %v1807_v41  ;;  %v2845_v31 = vcombine.low %v5077_v57, %v2810_v28  ;;  %v4389_v41 = vld [vmem:[%s5394_s5 + $0x220] sm:$0xff]   ;;  %v3839_v57 = vld.sshfl [vmem:[#allocation2 + $0x10] sm:$0xf pattern:$0x76325410]  ;;  %v4428_v28 = vld [vmem:[%s5394_s5 + $0x378] sm:$0xff]  }
 0x14a   : > { %4134 = vmatpush3.bf16.msra.mxu0 %v4364_v36  ;;  %2475 = vmatprep.mubr.bf16.mxu0 %v2344_v45  ;;  %v4387_v36 = vld [vmem:[%s5394_s5 + $0x260] sm:$0xff]   ;;  %v4391_v45 = vld [vmem:[%s5394_s5 + $0x268] sm:$0xff]   ;;  %v4413_v13 = vld [vmem:[%s5394_s5 + $0x310] sm:$0xff]  }
 0x14b   : > { %4076 = vmatpush3.bf16.msra.mxu1 %v4357_v39  ;;  %4135 = vmatprep.subr.bf16.mxu0 %v4366_v59  ;;  %v5166_v38 = vrot.slane %v2845_v31, %v4631_v27  ;;  %v4396_v39 = vld [vmem:[%s5394_s5 + $0x380] sm:$0xff]   ;;  %v2343_v59 = vcombine.low %v5035_v37, %v5027_v34  ;;  %v4400_v34 = vld [vmem:[%s5394_s5 + $0x388] sm:$0xff]  }
 0x14c   : > { %4077 = vmatprep.subr.bf16.mxu1 %v4359_v2  ;;  %v4398_v2 = vld [vmem:[%s5394_s5 + $0x3c8] sm:$0xff]   ;;  %v4412_v0 = vld [vmem:[%s5394_s5 + $0x3a0] sm:$0xff]  }
 0x14d   : > { %v2861_v20 = vcombine.high %v4957_v40, %v5166_v38  ;;  %v4393_v37 = vld [vmem:[%s5394_s5 + $0x228] sm:$0xff]   ;;  %v4419_v11 = vld [vmem:[%s5394_s5 + $0x360] sm:$0xff]  }
 0x14e   : > { %4136 = vmatpush3.bf16.msra.mxu0 %v4368_v47  ;;  %v4402_v47 = vld [vmem:[%s5394_s5 + $0x3d0] sm:$0xff]   ;;  %v4421_v22 = vld [vmem:[%s5394_s5 + $0x320] sm:$0xff]   ;;  %v4432_v31 = vld [vmem:[%s5394_s5 + $0x448] sm:$0xff]  }
 0x14f   : > { %4078 = vmatpush3.bf16.msra.mxu1 %v4361_v50  ;;  %4137 = vmatprep.subr.bf16.mxu0 %v4370_v51  ;;  %v3842_v50 = vld.sshfl [vmem:[#allocation2 + $0x28] sm:$0xf pattern:$0x76325410]  ;;  %v4397_v51 = vld [vmem:[%s5394_s5 + $0x230] sm:$0xff]  }
 0x150   : > { %4079 = vmatprep.subr.bf16.mxu1 %v4363_v52  ;;  %v3840_v52 = vld.sshfl [vmem:[#allocation2 + $0x18] sm:$0xf pattern:$0x76325410] }
 0x152   : > { %4138 = vmatpush3.bf16.msra.mxu0 %v4372_v56  ;;  %v2557_v56 = vcombine.low %v3841_v8, %v3842_v50 }
 0x153   : > { %4080 = vmatpush3.bf16.msra.mxu1 %v4365_v9  ;;  %4139 = vmatprep.subr.bf16.mxu0 %v4374_v58  ;;  %v4408_v9 = vld [vmem:[%s5394_s5 + $0x398] sm:$0xff]  }
 0x154   : > { %4081 = vmatprep.subr.bf16.mxu1 %v4367_v60  ;;  %v4401_v58 = vld [vmem:[%s5394_s5 + $0x238] sm:$0xff]   ;;  %v2556_v60 = vcombine.low %v3839_v57, %v3840_v52  ;;  %v2571_v63 = vrot.slane %v2557_v56, %v4631_v27 }
 0x156   : > { %4140 = vmatpush3.bf16.msra.mxu0 %v4376_v1  ;;  %v4405_v1 = vld [vmem:[%s5394_s5 + $0x300] sm:$0xff]  }
 0x157   : > { %4082 = vmatpush3.bf16.msra.mxu1 %v4369_v3  ;;  %4141 = vmatprep.subr.bf16.mxu0 %v4378_v33  ;;  %v2564_v3 = vrot.slane %v2556_v60, %v4631_v27  ;;  %v4407_v33 = vld [vmem:[%s5394_s5 + $0x348] sm:$0xff]  }
 0x158   : > { %4111 = vmatprep.subr.bf16.mxu1 %v4371_v5  ;;  %v4414_v5 = vld [vmem:[%s5394_s5 + $0x3e8] sm:$0xff]  }
 0x159   : > { %v2573_v10 = vcombine.high %v2564_v3, %v2571_v63  ;;  %v4416_v27 = vld [vmem:[%s5394_s5 + $0x3a8] sm:$0xff]  }
 0x15a   : > { %1712 = vmatmul.mubr.bf16.vlgmr.msra.gmra.mrb[8].mxu1 %v1579_v14  ;;  %4142 = vmatpush3.bf16.msra.mxu0 %v4380_v6  ;;  %v4411_v6 = vld [vmem:[%s5394_s5 + $0x350] sm:$0xff]   ;;  %v4422_v14 = vld [vmem:[%s5394_s5 + $0x3f8] sm:$0xff]  }
 0x15b   : > { %4112 = vmatpush3.bf16.msra.mxu1 %v4373_v32  ;;  %2227 = vmatprep.mubr.bf16.mxu1 %v2096_v19  ;;  %v4420_v32 = vld [vmem:[%s5394_s5 + $0x3b0] sm:$0xff]   ;;  %v4417_v19 = vld [vmem:[%s5394_s5 + $0x318] sm:$0xff]  }
 0x15c   : > { %4113 = vmatprep.subr.bf16.mxu1 %v4375_v15  ;;  %4143 = vmatprep.subr.bf16.mxu0 %v4382_v16  ;;  %v4415_v15 = vld [vmem:[%s5394_s5 + $0x358] sm:$0xff]  }
 0x15d   : > { %v4424_v16 = vld [vmem:[%s5394_s5 + $0x3b8] sm:$0xff]  }
 0x15e   : > { %4144 = vmatpush3.bf16.msra.mxu0 %v4384_v42  ;;  %v2860_v42 = vcombine.low %v4957_v40, %v5166_v38  ;;  %v4427_v40 = vld [vmem:[%s5394_s5 + $0x330] sm:$0xff]   ;;  %v4438_v38 = vld [vmem:[%s5394_s5 + $0x460] sm:$0xff]  }
 0x15f   : > { %4114 = vmatpush3.bf16.msra.mxu1 %v4377_v46  ;;  %4145 = vmatprep.subr.bf16.mxu0 %v4386_v23  ;;  %v4423_v46 = vld [vmem:[%s5394_s5 + $0x368] sm:$0xff]  }
 0x160   : > { %4115 = vmatprep.subr.bf16.mxu1 %v4379_v24  ;;  %v4425_v23 = vld [vmem:[%s5394_s5 + $0x328] sm:$0xff]   ;;  %v4426_v24 = vld [vmem:[%s5394_s5 + $0x370] sm:$0xff]  }
 0x162   : > { %4146 = vmatpush3.bf16.msra.mxu0 %v4388_v29  ;;  %v4429_v29 = vld [vmem:[%s5394_s5 + $0x338] sm:$0xff]  }
 0x163   : > { %4116 = vmatpush3.bf16.msra.mxu1 %v4381_v26  ;;  %4147 = vmatprep.subr.bf16.mxu0 %v4390_v30  ;;  %v4430_v26 = vld [vmem:[%s5394_s5 + $0x440] sm:$0xff]  }
 0x164   : > { %4117 = vmatprep.subr.bf16.mxu1 %v4383_v25  ;;  %v4431_v30 = vld [vmem:[%s5394_s5 + $0x400] sm:$0xff]   ;;  %v2572_v25 = vcombine.low %v2564_v3, %v2571_v63  ;;  %v4451_v63 = vld [vmem:[%s5396_s7 + $0x28] sm:$0xff]  }
 0x166   : > { %4148 = vmatpush3.bf16.msra.mxu0 %v4392_v35  ;;  %v4433_v35 = vld [vmem:[%s5394_s5 + $0x408] sm:$0xff]  }
 0x167   : > { %4118 = vmatpush3.bf16.msra.mxu1 %v4385_v17  ;;  %4177 = vmatprep.subr.bf16.mxu0 %v4394_v18  ;;  %v4434_v17 = vld [vmem:[%s5394_s5 + $0x450] sm:$0xff]  }
 0x168   : > { %4119 = vmatprep.subr.bf16.mxu1 %v4387_v36  ;;  %v4435_v18 = vld [vmem:[%s5394_s5 + $0x410] sm:$0xff]   ;;  %v4436_v36 = vld [vmem:[%s5394_s5 + $0x458] sm:$0xff]  }
 0x169   : > { %2476 = vmatmul.mubr.bf16.vlgmr.msra.gmra.mrb[16].mxu0 %v2343_v59  ;;  %v4441_v59 = vld [vmem:[%s5394_s5 + $0x428] sm:$0xff]  }
 0x16a   : > { %4178 = vmatpush3.bf16.msra.mxu0 %v4396_v39  ;;  %2992 = vmatprep.mubr.bf16.mxu0 %v2861_v20  ;;  %v4439_v39 = vld [vmem:[%s5394_s5 + $0x420] sm:$0xff]   ;;  %v4444_v20 = vld [vmem:[%s5394_s5 + $0x478] sm:$0xff]  }
 0x16b   : > { %4120 = vmatpush3.bf16.msra.mxu1 %v4389_v41  ;;  %4179 = vmatprep.subr.bf16.mxu0 %v4398_v2  ;;  %v4440_v41 = vld [vmem:[%s5394_s5 + $0x468] sm:$0xff]   ;;  %v4442_v2 = vld [vmem:[%s5394_s5 + $0x470] sm:$0xff]  }
 0x16c   : > { %4121 = vmatprep.subr.bf16.mxu1 %v4391_v45  ;;  %v4443_v45 = vld [vmem:[%s5394_s5 + $0x430] sm:$0xff]  }
 0x16e   : > { %4180 = vmatpush3.bf16.msra.mxu0 %v4400_v34  ;;  %v4445_v34 = vld [vmem:[%s5394_s5 + $0x438] sm:$0xff]  }
 0x16f   : > { %4122 = vmatpush3.bf16.msra.mxu1 %v4393_v37  ;;  %4181 = vmatprep.subr.bf16.mxu0 %v4402_v47  ;;  %v4446_v37 = vld [vmem:[%s5396_s7] sm:$0xff]   ;;  %v4480_v47 = vmov 0.0  }
 0x170   : > { %4123 = vmatprep.subr.bf16.mxu1 %v4395_v48  ;;  %v4447_v48 = vld [vmem:[%s5396_s7 + $0x8] sm:$0xff]  }
 0x172   : > { %4182 = vmatpush3.bf16.msra.mxu0 %v4404_v49  ;;  %v4448_v49 = vld [vmem:[%s5396_s7 + $0x10] sm:$0xff]  }
 0x173   : > { %4124 = vmatpush3.bf16.msra.mxu1 %v4397_v51  ;;  %4183 = vmatprep.subr.bf16.mxu0 %v4406_v54 }
 0x174   : > { %4125 = vmatprep.subr.bf16.mxu1 %v4399_v55  ;;  %v4450_v55 = vld [vmem:[%s5396_s7 + $0x20] sm:$0xff]  }
 0x176   : > { %4184 = vmatpush3.bf16.msra.mxu0 %v4408_v9 }
 0x177   : > { %4126 = vmatpush3.bf16.msra.mxu1 %v4401_v58  ;;  %4185 = vmatprep.subr.bf16.mxu0 %v4410_v61 }
 0x178   : > { %4155 = vmatprep.subr.bf16.mxu1 %v4403_v62 }
 0x17a   : > { %2228 = vmatmul.mubr.bf16.vlgmr.msra.gmra.mrb[12].mxu1 %v2095_v4  ;;  %4186 = vmatpush3.bf16.msra.mxu0 %v4412_v0  ;;  %v4452_v0 = vld [vmem:[%s5396_s7 + $0x30] sm:$0xff]  }
 0x17b   : > { %4156 = vmatpush3.bf16.msra.mxu1 %v4405_v1  ;;  %2704 = vmatprep.mubr.bf16.mxu1 %v2573_v10  ;;  %v4453_v10 = vld [vmem:[%s5396_s7 + $0x38] sm:$0xff]  }
 0x17c   : > { %4157 = vmatprep.subr.bf16.mxu1 %v4407_v33  ;;  %4187 = vmatprep.subr.bf16.mxu0 %v4414_v5 }
 0x17e   : > { %4188 = vmatpush3.bf16.msra.mxu0 %v4416_v27 }
 0x17f   : > { %4158 = vmatpush3.bf16.msra.mxu1 %v4409_v7  ;;  %4189 = vmatprep.subr.bf16.mxu0 %v4418_v12 }
 0x180   : > { %4159 = vmatprep.subr.bf16.mxu1 %v4411_v6 }
 0x182   : > { %4190 = vmatpush3.bf16.msra.mxu0 %v4420_v32 }
 0x183   : > { %4160 = vmatpush3.bf16.msra.mxu1 %v4413_v13  ;;  %4191 = vmatprep.subr.bf16.mxu0 %v4422_v14 }
 0x184   : > { %4161 = vmatprep.subr.bf16.mxu1 %v4415_v15 }
 0x186   : > { %4192 = vmatpush3.bf16.msra.mxu0 %v4424_v16 }
 0x187   : > { %4162 = vmatpush3.bf16.msra.mxu1 %v4417_v19  ;;  %4230 = vmatprep.subr.bf16.mxu0 %v4480_v47 }
 0x188   : > { %4163 = vmatprep.subr.bf16.mxu1 %v4419_v11 }
 0x189   : > { %2993 = vmatmul.mubr.bf16.vlgmr.msra.gmra.mrb[20].mxu0 %v2860_v42 }
 0x18a   : > { %4231 = vmatpush3.bf16.msra.mxu0 %v4446_v37  ;;  %4246 = vmatprep.mubr.msk.bf16.mxu0 %vm4481_vm9, %v4480_v47 }
 0x18b   : > { %4164 = vmatpush3.bf16.msra.mxu1 %v4421_v22  ;;  %4232 = vmatprep.subr.bf16.mxu0 %v4480_v47 }
 0x18c   : > { %4165 = vmatprep.subr.bf16.mxu1 %v4423_v46 }
 0x18e   : > { %4233 = vmatpush3.bf16.msra.mxu0 %v4447_v48 }
 0x18f   : > { %4166 = vmatpush3.bf16.msra.mxu1 %v4425_v23  ;;  %4234 = vmatprep.subr.bf16.mxu0 %v4480_v47 }
 0x190   : > { %4167 = vmatprep.subr.bf16.mxu1 %v4426_v24 }
 0x192   : > { %4235 = vmatpush3.bf16.msra.mxu0 %v4448_v49 }
 0x193   : > { %4168 = vmatpush3.bf16.msra.mxu1 %v4427_v40  ;;  %4236 = vmatprep.subr.bf16.mxu0 %v4480_v47 }
 0x194   : > { %4169 = vmatprep.subr.bf16.mxu1 %v4428_v28 }
 0x197   : > { %4170 = vmatpush3.bf16.msra.mxu1 %v4429_v29 }
 0x198   : > { %4199 = vmatprep.subr.bf16.mxu1 %v4430_v26 }
 0x19a   : > { %2705 = vmatmul.mubr.bf16.vlgmr.msra.gmra.mrb[16].mxu1 %v2572_v25 }
 0x19b   : > { %4200 = vmatpush3.bf16.msra.mxu1 %v4431_v30  ;;  %3240 = vmatprep.mubr.bf16.mxu1 %v3109_v21  ;;  %v4437_v21 = vld [vmem:[%s5394_s5 + $0x418] sm:$0xff]  }
 0x19c   : > { %4201 = vmatprep.subr.bf16.mxu1 %v4432_v31 }
 0x19f   : > { %4202 = vmatpush3.bf16.msra.mxu1 %v4433_v35 }
 0x1a0   : > { %4203 = vmatprep.subr.bf16.mxu1 %v4434_v17 }
 0x1a3   : > { %4204 = vmatpush3.bf16.msra.mxu1 %v4435_v18 }
 0x1a4   : > { %4205 = vmatprep.subr.bf16.mxu1 %v4436_v36 }
 0x1a7   : > { %4206 = vmatpush3.bf16.msra.mxu1 %v4437_v21 }
 0x1a8   : > { %4207 = vmatprep.subr.bf16.mxu1 %v4438_v38 }
 0x1ab   : > { %4208 = vmatpush3.bf16.msra.mxu1 %v4439_v39 }
 0x1ac   : > { %4209 = vmatprep.subr.bf16.mxu1 %v4440_v41 }
 0x1af   : > { %4210 = vmatpush3.bf16.msra.mxu1 %v4441_v59 }
 0x1b0   : > { %4211 = vmatprep.subr.bf16.mxu1 %v4442_v2 }
 0x1b3   : > { %4212 = vmatpush3.bf16.msra.mxu1 %v4443_v45 }
 0x1b4   : > { %4213 = vmatprep.subr.bf16.mxu1 %v4444_v20 }
 0x1b7   : > { %4214 = vmatpush3.bf16.msra.mxu1 %v4445_v34 }
 0x1ba   : > { %3241 = vmatmul.mubr.bf16.vlgmr.msra.gmra.mrb[20].mxu1 %v3108_v53  ;;  %v4449_v53 = vld [vmem:[%s5396_s7 + $0x18] sm:$0xff]  }
 0x1bb   : > { %4237 = vmatpush3.bf16.msra.mxu0 %v4449_v53 }
 0x1bc   : > { %4238 = vmatprep.subr.bf16.mxu0 %v4480_v47 }
 0x1bf   : > { %4239 = vmatpush3.bf16.msra.mxu0 %v4450_v55  ;;  %v3999_v55 = vld [vmem:[%s5395_s6] ss:$0 sm:$0xff] }
 0x1c0   : > { %4240 = vmatprep.subr.bf16.mxu0 %v4480_v47 }
 0x1c3   : > { %4241 = vmatpush3.bf16.msra.mxu0 %v4451_v63 }
 0x1c4   : > { %4242 = vmatprep.subr.bf16.mxu0 %v4480_v47 }
 0x1c7   : > { %4243 = vmatpush3.bf16.msra.mxu0 %v4452_v0  ;;  %v4000_v0 = vld [vmem:[%s5397_s8] ss:$0 sm:$0xff] }
 0x1c8   : > { %4244 = vmatprep.subr.bf16.mxu0 %v4480_v47 }
 0x1cb   : > { %4245 = vmatpush3.bf16.msra.mxu0 %v4453_v10 }
 0x1fc   : > { %v4061_v43 = vpop.f32.mrb[8].mxu0 }
 0x1fd   : > { %v4062_v44 = vpop.f32.mrb[9].mxu0 }
 0x1fe   : > { %v4063_v50 = vadd.f32 %v4062_v44, %v4061_v43  ;;  %v4064_v51 = vpop.f32.mrb[10].mxu0 }
 0x1ff   : > { %v4065_v52 = vpop.f32.mrb[11].mxu0 }
 0x200   : > { %v4066_v54 = vadd.f32 %v4065_v52, %v4064_v51 }
 0x20d   : > { %v4039_v8 = vpop.f32.mrb[4].mxu1 }
 0x20e   : > { %v4040_v56 = vpop.f32.mrb[5].mxu1 }
 0x20f   : > { %v4041_v57 = vadd.f32 %v4040_v56, %v4039_v8  ;;  %v4042_v9 = vpop.f32.mrb[6].mxu1 }
 0x210   : > { %v4043_v58 = vpop.f32.mrb[7].mxu1 }
 0x211   : > { %v1465_v60 = vadd.f32 %v4063_v50, %v4041_v57  ;;  %v4044_v61 = vadd.f32 %v4043_v58, %v4042_v9 }
 0x213   : > { %v1468_v62 = vadd.f32 %v4066_v54, %v4044_v61 }
 0x21c   : > { %v4105_v1 = vpop.f32.mrb[12].mxu0 }
 0x21d   : > { %v4106_v3 = vpop.f32.mrb[13].mxu0 }
 0x21e   : > { %v4107_v4 = vadd.f32 %v4106_v3, %v4105_v1  ;;  %v4108_v33 = vpop.f32.mrb[14].mxu0 }
 0x21f   : > { %v4109_v5 = vpop.f32.mrb[15].mxu0 }
 0x220   : > { %v4110_v27 = vadd.f32 %v4109_v5, %v4108_v33 }
 0x22d   : > { %v4083_v7 = vpop.f32.mrb[8].mxu1 }
 0x22e   : > { %v4084_v12 = vpop.f32.mrb[9].mxu1 }
 0x22f   : > { %v4085_v6 = vadd.f32 %v4084_v12, %v4083_v7  ;;  %v4086_v32 = vpop.f32.mrb[10].mxu1 }
 0x230   : > { %v4087_v13 = vpop.f32.mrb[11].mxu1 }
 0x231   : > { %v1720_v14 = vadd.f32 %v4085_v6, %v1465_v60  ;;  %v4088_v15 = vadd.f32 %v4087_v13, %v4086_v32 }
 0x233   : > { %v1721_v16 = vadd.f32 %v4088_v15, %v1468_v62  ;;  %v1948_v19 = vadd.f32 %v4107_v4, %v1720_v14 }
 0x235   : > { %v1949_v11 = vadd.f32 %v4110_v27, %v1721_v16 }
 0x23c   : > { %v4149_v22 = vpop.f32.mrb[16].mxu0 }
 0x23d   : > { %v4150_v42 = vpop.f32.mrb[17].mxu0 }
 0x23e   : > { %v4151_v46 = vadd.f32 %v4150_v42, %v4149_v22  ;;  %v4152_v23 = vpop.f32.mrb[18].mxu0 }
 0x23f   : > { %v4153_v24 = vpop.f32.mrb[19].mxu0 }
 0x240   : > { %v4154_v40 = vadd.f32 %v4153_v24, %v4152_v23 }
 0x24d   : > { %v4127_v28 = vpop.f32.mrb[12].mxu1 }
 0x24e   : > { %v4128_v29 = vpop.f32.mrb[13].mxu1 }
 0x24f   : > { %v4129_v26 = vadd.f32 %v4128_v29, %v4127_v28  ;;  %v4130_v30 = vpop.f32.mrb[14].mxu1 }
 0x250   : > { %v4131_v25 = vpop.f32.mrb[15].mxu1 }
 0x251   : > { %v2236_v31 = vadd.f32 %v4129_v26, %v1948_v19  ;;  %v4132_v35 = vadd.f32 %v4131_v25, %v4130_v30 }
 0x253   : > { %v2237_v17 = vadd.f32 %v4132_v35, %v1949_v11  ;;  %v2484_v18 = vadd.f32 %v4151_v46, %v2236_v31 }
 0x255   : > { %v2485_v36 = vadd.f32 %v4154_v40, %v2237_v17 }
 0x25c   : > { %v4193_v21 = vpop.f32.mrb[20].mxu0 }
 0x25d   : > { %v4194_v38 = vpop.f32.mrb[21].mxu0 }
 0x25e   : > { %v4195_v39 = vadd.f32 %v4194_v38, %v4193_v21  ;;  %v4196_v41 = vpop.f32.mrb[22].mxu0 }
 0x25f   : > { %v4197_v59 = vpop.f32.mrb[23].mxu0 }
 0x260   : > { %v4198_v2 = vadd.f32 %v4197_v59, %v4196_v41 }
 0x26d   : > { %v4171_v45 = vpop.f32.mrb[16].mxu1 }
 0x26e   : > { %v4172_v20 = vpop.f32.mrb[17].mxu1 }
 0x26f   : > { %v4173_v34 = vadd.f32 %v4172_v20, %v4171_v45  ;;  %v4174_v37 = vpop.f32.mrb[18].mxu1 }
 0x270   : > { %v4175_v47 = vpop.f32.mrb[19].mxu1 }
 0x271   : > { %v2713_v48 = vadd.f32 %v4173_v34, %v2484_v18  ;;  %v4176_v49 = vadd.f32 %v4175_v47, %v4174_v37 }
 0x273   : > { %v2714_v43 = vadd.f32 %v4176_v49, %v2485_v36  ;;  %v3001_v44 = vadd.f32 %v4195_v39, %v2713_v48 }
 0x275   : > { %v3002_v53 = vadd.f32 %v4198_v2, %v2714_v43 }
 0x28d   : > { %v4215_v50 = vpop.f32.mrb[20].mxu1 }
 0x28e   : > { %v4216_v51 = vpop.f32.mrb[21].mxu1 }
 0x28f   : > { %v4217_v52 = vadd.f32 %v4216_v51, %v4215_v50  ;;  %v4218_v54 = vpop.f32.mrb[22].mxu1 }
 0x290   : > { %v4219_v8 = vpop.f32.mrb[23].mxu1 }
 0x291   : > { %v3249_v56 = vadd.f32 %v4217_v52, %v3001_v44  ;;  %v4220_v57 = vadd.f32 %v4219_v8, %v4218_v54 }
 0x293   : > { %v3258_v9 = vadd.f32 %v3999_v55, %v3249_v56  ;;  %v3250_v58 = vadd.f32 %v4220_v57, %v3002_v53 }
 0x295   : > { %v3259_v60 = vadd.f32 %v3999_v55, %v3250_v58  ;;  %v3260_v61 = vmax.f32 %v3258_v9, 0.0 }
 0x297   : > { %v3261_v62 = vmax.f32 %v3259_v60, 0.0 }
 0x299   : > { %v3262_v63 = vpack.c.bf16 %v3261_v62, %v3260_v61 }
 0x29b   : > { %4247 = vmatmul.mubr.bf16.vlgmr.msra.gmra.mrb[24].mxu0 %v3262_v63 }
 0x36e   : > { %v3368_v1 = vpop.f32.mrb[24].mxu0 }
 0x36f   : > { %v3369_v3 = vadd.f32 %v4000_v0, %v3368_v1  ;;  %v4248_v4 = vpop.f32.mrb[25].mxu0 }
 0x370   : > { %v3371_v33 = vpop.f32.mrb[26].mxu0 }
 0x371   : > { %v3377_v5 = vcombine.high %v3369_v3, %v3369_v3  ;;  %v3381_v10 = vpack.c.bf16 %v3369_v3, %v3369_v3  ;;  %v3372_v27 = vadd.f32 %v4000_v0, %v3371_v33  ;;  %v4249_v7 = vpop.f32.mrb[27].mxu0 }
 0x373   : > { %v3382_v12 = vpack.c.bf16 %v3377_v5, %v3377_v5  ;;  %3385 = vst [vmem:[%s488_s15] sm:$0x3] %v3381_v10  ;;  %v3378_v6 = vcombine.high %v3372_v27, %v3372_v27  ;;  %v3383_v32 = vpack.c.bf16 %v3372_v27, %v3372_v27 }
 0x375   : > { %3386 = vst [vmem:[%s488_s15 + $0x2] sm:$0x3] %v3382_v12  ;;  %v3384_v13 = vpack.c.bf16 %v3378_v6, %v3378_v6  ;;  %3387 = vst [vmem:[%s488_s15 + $0x4] sm:$0x3] %v3383_v32 }
 0x377   : > { %3388 = vst [vmem:[%s488_s15 + $0x6] sm:$0x3] %v3384_v13 }
 0x378 PF: > { %s19_s11 = sadd.s32 1, %s4476_s11   ;;  %s5421_s30 = smov %s4472_s10 }
 0x379   : > { %p16_p5 = scmp.ge.s32.totalorder %s19_s11, 4   ;;  %s5422_s10 = smov %s5424_s12 }
 0x37b   :  { %18 = sbr.rel (!%p16_p5) target bundleno = 2 (0x2), region = 107 }

</bundles_post_ra>
